<compile_context>
chip_gen: v7x
topology: tpu7x:2x2x1
jax: 0.10.0
libtpu: 0.0.40
codegen_flags: <defaults>
</compile_context>

<pallas_src>
import jax
import jax.numpy as jnp
from jax.experimental import pallas as pl
from jax.experimental.pallas import tpu as pltpu

NUM_FILTERS = 128
BN_EPS = 1e-5

# Standard MobileNetV2 inverted-residual config for features[1..15]:
#   (expand_ratio t, in_channels, out_channels, stride)
IR_CFG = [
    (1, 32, 16, 1),    # f1
    (6, 16, 24, 2),    # f2
    (6, 24, 24, 1),    # f3
    (6, 24, 32, 2),    # f4
    (6, 32, 32, 1),    # f5
    (6, 32, 32, 1),    # f6
    (6, 32, 64, 2),    # f7
    (6, 64, 64, 1),    # f8
    (6, 64, 64, 1),    # f9
    (6, 64, 64, 1),    # f10
    (6, 64, 96, 1),    # f11
    (6, 96, 96, 1),    # f12
    (6, 96, 96, 1),    # f13
    (6, 96, 160, 2),   # f14
    (6, 160, 160, 1),  # f15
]


# ------------------------------ small helpers -------------------------------

def _round_up(x, m):
    return (x + m - 1) // m * m


def _pick_tile(m):
    # Tile rows by 256 when it divides evenly (grid >= 2 -> pipelining / both
    # TensorCores); otherwise full extent (exempt from the (8,128) rule).
    return 256 if (m % 256 == 0) else m


def _pad_rows(x2d, mult=8):
    """Pad the row (sublane) dimension up to a multiple of `mult`."""
    m = x2d.shape[0]
    mp = _round_up(m, mult)
    if mp != m:
        x2d = jnp.pad(x2d, ((0, mp - m), (0, 0)))
    return x2d, m


# ------------------------------ Pallas kernels -------------------------------

def fused_chain(x2d, *, prologue=None, blocks=(), lateral=None):
    """One encoder stage in a single pallas_call.

      h = x
      if prologue:      h = relu6(h @ Wp + bp)              (pool+stem conv+BN)
      for each block:   [h = relu6(h @ We + be)]            (expand, if t != 1)
                        h = relu6(h * a + b)                (1x1 dw conv + BN)
                        h = h @ Wproj + bproj [+ block_in]  (project, residual)
      out0 = h
      if lateral:       out1 = h @ Wlat                     (1x1 lateral conv)

    All intermediates live in VMEM/registers; only the stage output(s) hit HBM.
    """
    x2d, m0 = _pad_rows(x2d)
    M, K = x2d.shape
    TM = _pick_tile(M)

    args = [x2d]
    in_specs = [pl.BlockSpec((TM, K), lambda i: (i, 0))]

    def add_w(arr):
        args.append(arr)
        in_specs.append(pl.BlockSpec(arr.shape, lambda i: (0, 0)))

    plan = []
    c_stage = K
    if prologue is not None:
        pw, pb = prologue
        add_w(pw)
        add_w(pb)
        plan.append(("matmul_relu6",))
        c_stage = pw.shape[1]
    for blk in blocks:
        if blk["has_expand"]:
            add_w(blk["we"])
            add_w(blk["be"])
        add_w(blk["a"])
        add_w(blk["b"])
        add_w(blk["wp"])
        add_w(blk["bp"])
        plan.append(("ir", blk["has_expand"], blk["residual"]))
        c_stage = blk["wp"].shape[1]
    c_lat = None
    if lateral is not None:
        add_w(lateral)
        plan.append(("lateral",))
        c_lat = lateral.shape[1]

    n_in = len(args)
    out_shapes = [jax.ShapeDtypeStruct((M, c_stage), jnp.float32)]
    out_specs = [pl.BlockSpec((TM, c_stage), lambda i: (i, 0))]
    if c_lat is not None:
        out_shapes.append(jax.ShapeDtypeStruct((M, c_lat), jnp.float32))
        out_specs.append(pl.BlockSpec((TM, c_lat), lambda i: (i, 0)))

    def kernel(*refs):
        in_refs, out_refs = refs[:n_in], refs[n_in:]
        idx = 1
        h = in_refs[0][...]

        def take(n):
            nonlocal idx
            vals = tuple(in_refs[idx + j][...] for j in range(n))
            idx += n
            return vals

        for step in plan:
            if step[0] == "matmul_relu6":
                w, b = take(2)
                h = jnp.dot(h.astype(jnp.bfloat16), w,
                            preferred_element_type=jnp.float32) + b
                h = jnp.clip(h, 0.0, 6.0)
            elif step[0] == "ir":
                _, has_expand, residual = step
                xin = h
                if has_expand:
                    we, be = take(2)
                    h = jnp.dot(h.astype(jnp.bfloat16), we,
                                preferred_element_type=jnp.float32) + be
                    h = jnp.clip(h, 0.0, 6.0)
                a, b = take(2)
                h = jnp.clip(h * a + b, 0.0, 6.0)
                wp, bp = take(2)
                h = jnp.dot(h.astype(jnp.bfloat16), wp,
                            preferred_element_type=jnp.float32) + bp
                if residual:
                    h = h + xin
            else:  # "lateral"
                (lw,) = take(1)
                out_refs[1][...] = jnp.dot(h.astype(jnp.bfloat16), lw,
                                           preferred_element_type=jnp.float32)
        out_refs[0][...] = h

    outs = pl.pallas_call(
        kernel,
        out_shape=tuple(out_shapes),
        grid=(M // TM,),
        in_specs=in_specs,
        out_specs=tuple(out_specs),
        compiler_params=pltpu.CompilerParams(dimension_semantics=("parallel",)),
    )(*args)

    if c_lat is None:
        return outs[0][:m0]
    return outs[0][:m0], outs[1][:m0]


def fused_pyramid_level(enc2d, up2d, wl, wtd, btd):
    """One FPN level in a single kernel:
         y = relu((enc @ Wl + up) @ Wtd + btd)
       `up` is the nearest-2x upsampled previous map (tiny, built in wrapper);
       conv bias + eval-BN are folded into Wtd / btd."""
    enc2d, m0 = _pad_rows(enc2d)
    up2d, _ = _pad_rows(up2d)
    M, Cin = enc2d.shape
    Cmid = wl.shape[1]
    Cout = wtd.shape[1]
    TM = _pick_tile(M)

    def kernel(e_ref, u_ref, wl_ref, wtd_ref, b_ref, o_ref):
        s = jnp.dot(e_ref[...].astype(jnp.bfloat16), wl_ref[...],
                    preferred_element_type=jnp.float32) + u_ref[...]
        y = jnp.dot(s.astype(jnp.bfloat16), wtd_ref[...],
                    preferred_element_type=jnp.float32) + b_ref[...]
        o_ref[...] = jnp.maximum(y, 0.0)

    out = pl.pallas_call(
        kernel,
        out_shape=jax.ShapeDtypeStruct((M, Cout), jnp.float32),
        grid=(M // TM,),
        in_specs=[
            pl.BlockSpec((TM, Cin), lambda i: (i, 0)),
            pl.BlockSpec((TM, Cmid), lambda i: (i, 0)),
            pl.BlockSpec((Cin, Cmid), lambda i: (0, 0)),
            pl.BlockSpec((Cmid, Cout), lambda i: (0, 0)),
            pl.BlockSpec((1, Cout), lambda i: (0, 0)),
        ],
        out_specs=pl.BlockSpec((TM, Cout), lambda i: (i, 0)),
        compiler_params=pltpu.CompilerParams(dimension_semantics=("parallel",)),
    )(enc2d, up2d, wl, wtd, btd)
    return out[:m0]


# --------------------------- parameter construction --------------------------

def _bn_fold(key, cout):
    k1, k2, k3, k4 = jax.random.split(key, 4)
    gamma = 1.0 + 0.1 * jax.random.normal(k1, (cout,), jnp.float32)
    beta = 0.1 * jax.random.normal(k2, (cout,), jnp.float32)
    mean = 0.1 * jax.random.normal(k3, (cout,), jnp.float32)
    var = 1.0 + 0.5 * jax.random.uniform(k4, (cout,), jnp.float32)
    scale = gamma / jnp.sqrt(var + BN_EPS)
    return scale, beta, mean


def make_conv1x1(key, cin, cout, use_bn=True, conv_bias=False):
    """1x1 conv (+ optional conv bias) with eval-mode BN folded into W / bias."""
    kw_, kb_, kbn = jax.random.split(key, 3)
    w = jax.random.normal(kw_, (cin, cout), jnp.float32) / (cin ** 0.5)
    cb = (0.01 * jax.random.normal(kb_, (cout,), jnp.float32)
          if conv_bias else jnp.zeros((cout,), jnp.float32))
    if use_bn:
        scale, beta, mean = _bn_fold(kbn, cout)
        w = w * scale[None, :]
        b = beta + (cb - mean) * scale
    else:
        b = cb
    return {"w": w.astype(jnp.bfloat16), "b": b.reshape(1, cout)}


def make_lateral(key, cin, cout):
    """1x1 conv, bias=False, no BN (the FPN lateral projections)."""
    w = jax.random.normal(key, (cin, cout), jnp.float32) / (cin ** 0.5)
    return w.astype(jnp.bfloat16)


def make_pool_stem(key, cin=3, cout=32):
    """AvgPool2d(4,4) fused with the (k=1, stride 2) stem conv + BN: one matmul
    over 4x4 taps sampled at stride 8 over the raw input (K = 16*cin)."""
    kw_, kbn = jax.random.split(key, 2)
    w = jax.random.normal(kw_, (cin, cout), jnp.float32) / (cin ** 0.5)
    scale, beta, mean = _bn_fold(kbn, cout)
    w = w * scale[None, :]
    w_fused = jnp.tile(w, (16, 1)) / 16.0          # tap-major, channel inner
    b = beta - mean * scale
    return {"w": w_fused.astype(jnp.bfloat16), "b": b.reshape(1, cout)}


def make_dw1x1(key, c):
    """1x1 depthwise conv + BN == per-channel affine (a, b)."""
    kw_, kbn = jax.random.split(key, 2)
    wdw = jax.random.normal(kw_, (c,), jnp.float32)
    scale, beta, mean = _bn_fold(kbn, c)
    a = (wdw * scale).reshape(1, c)
    b = (beta - mean * scale).reshape(1, c)
    return a, b


def make_ir(key, t, cin, cout, stride):
    k0, k1, k2 = jax.random.split(key, 3)
    hidden = cin * t
    p = {"has_expand": t != 1, "residual": (stride == 1 and cin == cout)}
    if t != 1:
        e = make_conv1x1(k0, cin, hidden, use_bn=True)
        p["we"], p["be"] = e["w"], e["b"]
    p["a"], p["b"] = make_dw1x1(k1, hidden)
    pr = make_conv1x1(k2, hidden, cout, use_bn=True)
    p["wp"], p["bp"] = pr["w"], pr["b"]
    return p


def init_fpn_params(key, num_filters=NUM_FILTERS):
    keys = iter(jax.random.split(key, 64))
    params = {}
    params["stem"] = make_pool_stem(next(keys))                     # pool + features[0]
    params["ir"] = [make_ir(next(keys), t, ci, co, s)
                    for (t, ci, co, s) in IR_CFG]                   # features[1..15]
    params["lateral4"] = make_lateral(next(keys), 160, num_filters)
    params["lateral3"] = make_lateral(next(keys), 64, num_filters)
    params["lateral2"] = make_lateral(next(keys), 32, num_filters)
    params["lateral1"] = make_lateral(next(keys), 24, num_filters)
    params["lateral0"] = make_lateral(next(keys), 16, num_filters // 2)
    # td = conv_nxn (bias=True, k=1 -> padding 0, dilation irrelevant) + BN + ReLU
    params["td1"] = make_conv1x1(next(keys), num_filters, num_filters,
                                 use_bn=True, conv_bias=True)
    params["td2"] = make_conv1x1(next(keys), num_filters, num_filters,
                                 use_bn=True, conv_bias=True)
    params["td3"] = make_conv1x1(next(keys), num_filters, num_filters,
                                 use_bn=True, conv_bias=True)
    return params


# ---------------------------------- forward ----------------------------------

def _to2d(t):
    n, hh, ww, c = t.shape
    return t.reshape(n * hh * ww, c)


def _sub2(t):
    # k=1 depthwise conv with stride 2 == spatial subsampling; it commutes with
    # the pointwise expand conv, so it is applied before the fused stage.
    return t[:, ::2, ::2, :]


def _up2(x_nhwc):
    # nn.functional.interpolate(scale_factor=2, mode='nearest') on NHWC
    return jnp.repeat(jnp.repeat(x_nhwc, 2, axis=1), 2, axis=2)


def _pyramid_level(enc, prev_map, lat_w, td_p):
    n, hh, ww, c = enc.shape
    up = _up2(prev_map)
    y = fused_pyramid_level(_to2d(enc), _to2d(up), lat_w, td_p["w"], td_p["b"])
    return y.reshape(n, hh, ww, -1)


def fpn_forward(params, x_nchw):
    x = jnp.transpose(x_nchw, (0, 2, 3, 1)).astype(jnp.float32)   # NCHW -> NHWC
    n, h, w, c = x.shape
    ir = params["ir"]

    # Fused AvgPool2d(4,4) + stem conv (k=1, stride 2) + BN + ReLU6:
    # 4x4 taps sampled at stride 8 over the raw input, one matmul (K = 16*c).
    oh = (h // 4 - 1) // 2 + 1
    ow = (w // 4 - 1) // 2 + 1
    taps = []
    for kh in range(4):
        for kw in range(4):
            taps.append(x[:, kh:kh + 8 * (oh - 1) + 1:8,
                             kw:kw + 8 * (ow - 1) + 1:8, :])
    cols = jnp.concatenate(taps, axis=-1).reshape(n * oh * ow, 16 * c)

    # enc0 = features[0:2]  (stem + f1) fused with lateral0, one kernel.
    enc0_2d, lat0_2d = fused_chain(
        cols, prologue=(params["stem"]["w"], params["stem"]["b"]),
        blocks=[ir[0]], lateral=params["lateral0"])
    enc0 = enc0_2d.reshape(n, oh, ow, -1)
    lateral0 = lat0_2d.reshape(n, oh, ow, -1)

    # enc1 = features[2:4]  (f2 stride-2, f3) — one kernel.
    x1 = _sub2(enc0)
    enc1 = fused_chain(_to2d(x1), blocks=[ir[1], ir[2]]).reshape(
        n, x1.shape[1], x1.shape[2], -1)

    # enc2 = features[4:7]  (f4 stride-2, f5, f6) — one kernel.
    x2 = _sub2(enc1)
    enc2 = fused_chain(_to2d(x2), blocks=[ir[3], ir[4], ir[5]]).reshape(
        n, x2.shape[1], x2.shape[2], -1)

    # enc3 = features[7:11] (f7 stride-2, f8, f9, f10) — one kernel.
    x3 = _sub2(enc2)
    enc3 = fused_chain(_to2d(x3), blocks=[ir[6], ir[7], ir[8], ir[9]]).reshape(
        n, x3.shape[1], x3.shape[2], -1)

    # enc4 = features[11:16] (f11, f12, f13 | f14 stride-2, f15) — split around
    # the stride-2 block; the second half also emits lateral4 == map4.
    mid = fused_chain(_to2d(enc3), blocks=[ir[10], ir[11], ir[12]]).reshape(
        n, enc3.shape[1], enc3.shape[2], -1)
    x4 = _sub2(mid)
    enc4_2d, map4_2d = fused_chain(_to2d(x4), blocks=[ir[13], ir[14]],
                                   lateral=params["lateral4"])
    map4 = map4_2d.reshape(n, x4.shape[1], x4.shape[2], -1)

    map3 = _pyramid_level(enc3, map4, params["lateral3"], params["td1"])
    map2 = _pyramid_level(enc2, map3, params["lateral2"], params["td2"])
    map1 = _pyramid_level(enc1, map2, params["lateral1"], params["td3"])

    outs = (lateral0, map1, map2, map3, map4)
    return tuple(jnp.transpose(o, (0, 3, 1, 2)) for o in outs)     # back to NCHW


# ----------------------------------- main ------------------------------------

if __name__ == "__main__":
    key = jax.random.PRNGKey(0)
    pkey, xkey = jax.random.split(key)

    # kernel_size=1 is the runnable FPN configuration (see header note about the
    # dilation=5 / padding=1 shape mismatch for the default kernel_size=3).
    params = init_fpn_params(pkey)

    # Smallest input consistent with the pyramid: /4 avgpool then 5 stride-2
    # stages require H = W = 128 so every nearest-2x upsample matches its lateral.
    x = jax.random.normal(xkey, (2, 3, 128, 128), jnp.float32)

    fwd = jax.jit(lambda inp: fpn_forward(params, inp))
    outs = fwd(x)
    jax.block_until_ready(outs)

    expected = [(2, 64, 16, 16), (2, 128, 8, 8), (2, 128, 4, 4),
                (2, 128, 2, 2), (2, 128, 1, 1)]
    assert [tuple(o.shape) for o in outs] == expected, [o.shape for o in outs]
    assert all(bool(jnp.all(jnp.isfinite(o))) for o in outs)
    print("KERNEL_OK")
</pallas_src>

<mosaic_0001>
module attributes {stable_mosaic.version = 11 : i64} {
  func.func @kernel(%arg0: i32, %arg1: memref<32x24xf32, #tpu.memory_space<vmem>>, %arg2: memref<24x144xbf16, #tpu.memory_space<vmem>>, %arg3: memref<1x144xf32, #tpu.memory_space<vmem>>, %arg4: memref<1x144xf32, #tpu.memory_space<vmem>>, %arg5: memref<1x144xf32, #tpu.memory_space<vmem>>, %arg6: memref<144x32xbf16, #tpu.memory_space<vmem>>, %arg7: memref<1x32xf32, #tpu.memory_space<vmem>>, %arg8: memref<32x192xbf16, #tpu.memory_space<vmem>>, %arg9: memref<1x192xf32, #tpu.memory_space<vmem>>, %arg10: memref<1x192xf32, #tpu.memory_space<vmem>>, %arg11: memref<1x192xf32, #tpu.memory_space<vmem>>, %arg12: memref<192x32xbf16, #tpu.memory_space<vmem>>, %arg13: memref<1x32xf32, #tpu.memory_space<vmem>>, %arg14: memref<32x192xbf16, #tpu.memory_space<vmem>>, %arg15: memref<1x192xf32, #tpu.memory_space<vmem>>, %arg16: memref<1x192xf32, #tpu.memory_space<vmem>>, %arg17: memref<1x192xf32, #tpu.memory_space<vmem>>, %arg18: memref<192x32xbf16, #tpu.memory_space<vmem>>, %arg19: memref<1x32xf32, #tpu.memory_space<vmem>>, %arg20: memref<32x32xf32, #tpu.memory_space<vmem>>) attributes {dimension_semantics = [#tpu.dimension_semantics<parallel>], iteration_bounds = array<i64: 1>, scalar_prefetch = 0 : i64, scratch_operands = 0 : i64, tpu.core_type = #tpu.core_type<tc>, window_params = [{transform_indices = @transform_0, window_bounds = array<i64: 32, 24>}, {pipeline_mode = #tpu.pipeline_mode<synchronous>, transform_indices = @transform_1, window_bounds = array<i64: 24, 144>}, {pipeline_mode = #tpu.pipeline_mode<synchronous>, transform_indices = @transform_2, window_bounds = array<i64: 1, 144>}, {pipeline_mode = #tpu.pipeline_mode<synchronous>, transform_indices = @transform_3, window_bounds = array<i64: 1, 144>}, {pipeline_mode = #tpu.pipeline_mode<synchronous>, transform_indices = @transform_4, window_bounds = array<i64: 1, 144>}, {pipeline_mode = #tpu.pipeline_mode<synchronous>, transform_indices = @transform_5, window_bounds = array<i64: 144, 32>}, {pipeline_mode = #tpu.pipeline_mode<synchronous>, transform_indices = @transform_6, window_bounds = array<i64: 1, 32>}, {pipeline_mode = #tpu.pipeline_mode<synchronous>, transform_indices = @transform_7, window_bounds = array<i64: 32, 192>}, {pipeline_mode = #tpu.pipeline_mode<synchronous>, transform_indices = @transform_8, window_bounds = array<i64: 1, 192>}, {pipeline_mode = #tpu.pipeline_mode<synchronous>, transform_indices = @transform_9, window_bounds = array<i64: 1, 192>}, {pipeline_mode = #tpu.pipeline_mode<synchronous>, transform_indices = @transform_10, window_bounds = array<i64: 1, 192>}, {pipeline_mode = #tpu.pipeline_mode<synchronous>, transform_indices = @transform_11, window_bounds = array<i64: 192, 32>}, {pipeline_mode = #tpu.pipeline_mode<synchronous>, transform_indices = @transform_12, window_bounds = array<i64: 1, 32>}, {pipeline_mode = #tpu.pipeline_mode<synchronous>, transform_indices = @transform_13, window_bounds = array<i64: 32, 192>}, {pipeline_mode = #tpu.pipeline_mode<synchronous>, transform_indices = @transform_14, window_bounds = array<i64: 1, 192>}, {pipeline_mode = #tpu.pipeline_mode<synchronous>, transform_indices = @transform_15, window_bounds = array<i64: 1, 192>}, {pipeline_mode = #tpu.pipeline_mode<synchronous>, transform_indices = @transform_16, window_bounds = array<i64: 1, 192>}, {pipeline_mode = #tpu.pipeline_mode<synchronous>, transform_indices = @transform_17, window_bounds = array<i64: 192, 32>}, {pipeline_mode = #tpu.pipeline_mode<synchronous>, transform_indices = @transform_18, window_bounds = array<i64: 1, 32>}, {transform_indices = @transform_19, window_bounds = array<i64: 32, 32>}]} {
    %c0 = arith.constant 0 : index
    %c0_0 = arith.constant 0 : index
    %0 = vector.load %arg1[%c0, %c0_0] : memref<32x24xf32, #tpu.memory_space<vmem>>, vector<32x24xf32>
    %c0_1 = arith.constant 0 : index
    %c0_2 = arith.constant 0 : index
    %1 = vector.load %arg2[%c0_1, %c0_2] : memref<24x144xbf16, #tpu.memory_space<vmem>>, vector<24x144xbf16>
    %c0_3 = arith.constant 0 : index
    %c0_4 = arith.constant 0 : index
    %2 = vector.load %arg3[%c0_3, %c0_4] : memref<1x144xf32, #tpu.memory_space<vmem>>, vector<1x144xf32>
    %3 = arith.truncf %0 : vector<32x24xf32> to vector<32x24xbf16>
    %cst = arith.constant dense<0.000000e+00> : vector<32x144xf32>
    %4 = tpu.matmul %3, %1, %cst {dimension_numbers = #tpu.dot_dimension_numbers<[1], [0], [0], [1], [0, 0, 1, 1], [], []>} : vector<32x24xbf16>, vector<24x144xbf16>, vector<32x144xf32> -> vector<32x144xf32>
    %5 = vector.broadcast %2 : vector<1x144xf32> to vector<32x144xf32>
    %6 = arith.addf %4, %5 : vector<32x144xf32>
    %cst_5 = arith.constant 0.000000e+00 : f32
    %cst_6 = arith.constant 6.000000e+00 : f32
    %7 = vector.broadcast %cst_5 : f32 to vector<32x144xf32>
    %8 = arith.maximumf %7, %6 : vector<32x144xf32>
    %9 = vector.broadcast %cst_6 : f32 to vector<32x144xf32>
    %10 = arith.minimumf %9, %8 : vector<32x144xf32>
    %c0_7 = arith.constant 0 : index
    %c0_8 = arith.constant 0 : index
    %11 = vector.load %arg4[%c0_7, %c0_8] : memref<1x144xf32, #tpu.memory_space<vmem>>, vector<1x144xf32>
    %c0_9 = arith.constant 0 : index
    %c0_10 = arith.constant 0 : index
    %12 = vector.load %arg5[%c0_9, %c0_10] : memref<1x144xf32, #tpu.memory_space<vmem>>, vector<1x144xf32>
    %13 = vector.broadcast %11 : vector<1x144xf32> to vector<32x144xf32>
    %14 = arith.mulf %10, %13 : vector<32x144xf32>
    %15 = vector.broadcast %12 : vector<1x144xf32> to vector<32x144xf32>
    %16 = arith.addf %14, %15 : vector<32x144xf32>
    %cst_11 = arith.constant 0.000000e+00 : f32
    %cst_12 = arith.constant 6.000000e+00 : f32
    %17 = vector.broadcast %cst_11 : f32 to vector<32x144xf32>
    %18 = arith.maximumf %17, %16 : vector<32x144xf32>
    %19 = vector.broadcast %cst_12 : f32 to vector<32x144xf32>
    %20 = arith.minimumf %19, %18 : vector<32x144xf32>
    %c0_13 = arith.constant 0 : index
    %c0_14 = arith.constant 0 : index
    %21 = vector.load %arg6[%c0_13, %c0_14] : memref<144x32xbf16, #tpu.memory_space<vmem>>, vector<144x32xbf16>
    %c0_15 = arith.constant 0 : index
    %c0_16 = arith.constant 0 : index
    %22 = vector.load %arg7[%c0_15, %c0_16] : memref<1x32xf32, #tpu.memory_space<vmem>>, vector<1x32xf32>
    %23 = arith.truncf %20 : vector<32x144xf32> to vector<32x144xbf16>
    %cst_17 = arith.constant dense<0.000000e+00> : vector<32x32xf32>
    %24 = tpu.matmul %23, %21, %cst_17 {dimension_numbers = #tpu.dot_dimension_numbers<[1], [0], [0], [1], [0, 0, 1, 1], [], []>} : vector<32x144xbf16>, vector<144x32xbf16>, vector<32x32xf32> -> vector<32x32xf32>
    %25 = vector.broadcast %22 : vector<1x32xf32> to vector<32x32xf32>
    %26 = arith.addf %24, %25 : vector<32x32xf32>
    %c0_18 = arith.constant 0 : index
    %c0_19 = arith.constant 0 : index
    %27 = vector.load %arg8[%c0_18, %c0_19] : memref<32x192xbf16, #tpu.memory_space<vmem>>, vector<32x192xbf16>
    %c0_20 = arith.constant 0 : index
    %c0_21 = arith.constant 0 : index
    %28 = vector.load %arg9[%c0_20, %c0_21] : memref<1x192xf32, #tpu.memory_space<vmem>>, vector<1x192xf32>
    %29 = arith.truncf %26 : vector<32x32xf32> to vector<32x32xbf16>
    %cst_22 = arith.constant dense<0.000000e+00> : vector<32x192xf32>
    %30 = tpu.matmul %29, %27, %cst_22 {dimension_numbers = #tpu.dot_dimension_numbers<[1], [0], [0], [1], [0, 0, 1, 1], [], []>} : vector<32x32xbf16>, vector<32x192xbf16>, vector<32x192xf32> -> vector<32x192xf32>
    %31 = vector.broadcast %28 : vector<1x192xf32> to vector<32x192xf32>
    %32 = arith.addf %30, %31 : vector<32x192xf32>
    %cst_23 = arith.constant 0.000000e+00 : f32
    %cst_24 = arith.constant 6.000000e+00 : f32
    %33 = vector.broadcast %cst_23 : f32 to vector<32x192xf32>
    %34 = arith.maximumf %33, %32 : vector<32x192xf32>
    %35 = vector.broadcast %cst_24 : f32 to vector<32x192xf32>
    %36 = arith.minimumf %35, %34 : vector<32x192xf32>
    %c0_25 = arith.constant 0 : index
    %c0_26 = arith.constant 0 : index
    %37 = vector.load %arg10[%c0_25, %c0_26] : memref<1x192xf32, #tpu.memory_space<vmem>>, vector<1x192xf32>
    %c0_27 = arith.constant 0 : index
    %c0_28 = arith.constant 0 : index
    %38 = vector.load %arg11[%c0_27, %c0_28] : memref<1x192xf32, #tpu.memory_space<vmem>>, vector<1x192xf32>
    %39 = vector.broadcast %37 : vector<1x192xf32> to vector<32x192xf32>
    %40 = arith.mulf %36, %39 : vector<32x192xf32>
    %41 = vector.broadcast %38 : vector<1x192xf32> to vector<32x192xf32>
    %42 = arith.addf %40, %41 : vector<32x192xf32>
    %cst_29 = arith.constant 0.000000e+00 : f32
    %cst_30 = arith.constant 6.000000e+00 : f32
    %43 = vector.broadcast %cst_29 : f32 to vector<32x192xf32>
    %44 = arith.maximumf %43, %42 : vector<32x192xf32>
    %45 = vector.broadcast %cst_30 : f32 to vector<32x192xf32>
    %46 = arith.minimumf %45, %44 : vector<32x192xf32>
    %c0_31 = arith.constant 0 : index
    %c0_32 = arith.constant 0 : index
    %47 = vector.load %arg12[%c0_31, %c0_32] : memref<192x32xbf16, #tpu.memory_space<vmem>>, vector<192x32xbf16>
    %c0_33 = arith.constant 0 : index
    %c0_34 = arith.constant 0 : index
    %48 = vector.load %arg13[%c0_33, %c0_34] : memref<1x32xf32, #tpu.memory_space<vmem>>, vector<1x32xf32>
    %49 = arith.truncf %46 : vector<32x192xf32> to vector<32x192xbf16>
    %cst_35 = arith.constant dense<0.000000e+00> : vector<32x32xf32>
    %50 = tpu.matmul %49, %47, %cst_35 {dimension_numbers = #tpu.dot_dimension_numbers<[1], [0], [0], [1], [0, 0, 1, 1], [], []>} : vector<32x192xbf16>, vector<192x32xbf16>, vector<32x32xf32> -> vector<32x32xf32>
    %51 = vector.broadcast %48 : vector<1x32xf32> to vector<32x32xf32>
    %52 = arith.addf %50, %51 : vector<32x32xf32>
    %53 = arith.addf %52, %26 : vector<32x32xf32>
    %c0_36 = arith.constant 0 : index
    %c0_37 = arith.constant 0 : index
    %54 = vector.load %arg14[%c0_36, %c0_37] : memref<32x192xbf16, #tpu.memory_space<vmem>>, vector<32x192xbf16>
    %c0_38 = arith.constant 0 : index
    %c0_39 = arith.constant 0 : index
    %55 = vector.load %arg15[%c0_38, %c0_39] : memref<1x192xf32, #tpu.memory_space<vmem>>, vector<1x192xf32>
    %56 = arith.truncf %53 : vector<32x32xf32> to vector<32x32xbf16>
    %cst_40 = arith.constant dense<0.000000e+00> : vector<32x192xf32>
    %57 = tpu.matmul %56, %54, %cst_40 {dimension_numbers = #tpu.dot_dimension_numbers<[1], [0], [0], [1], [0, 0, 1, 1], [], []>} : vector<32x32xbf16>, vector<32x192xbf16>, vector<32x192xf32> -> vector<32x192xf32>
    %58 = vector.broadcast %55 : vector<1x192xf32> to vector<32x192xf32>
    %59 = arith.addf %57, %58 : vector<32x192xf32>
    %cst_41 = arith.constant 0.000000e+00 : f32
    %cst_42 = arith.constant 6.000000e+00 : f32
    %60 = vector.broadcast %cst_41 : f32 to vector<32x192xf32>
    %61 = arith.maximumf %60, %59 : vector<32x192xf32>
    %62 = vector.broadcast %cst_42 : f32 to vector<32x192xf32>
    %63 = arith.minimumf %62, %61 : vector<32x192xf32>
    %c0_43 = arith.constant 0 : index
    %c0_44 = arith.constant 0 : index
    %64 = vector.load %arg16[%c0_43, %c0_44] : memref<1x192xf32, #tpu.memory_space<vmem>>, vector<1x192xf32>
    %c0_45 = arith.constant 0 : index
    %c0_46 = arith.constant 0 : index
    %65 = vector.load %arg17[%c0_45, %c0_46] : memref<1x192xf32, #tpu.memory_space<vmem>>, vector<1x192xf32>
    %66 = vector.broadcast %64 : vector<1x192xf32> to vector<32x192xf32>
    %67 = arith.mulf %63, %66 : vector<32x192xf32>
    %68 = vector.broadcast %65 : vector<1x192xf32> to vector<32x192xf32>
    %69 = arith.addf %67, %68 : vector<32x192xf32>
    %cst_47 = arith.constant 0.000000e+00 : f32
    %cst_48 = arith.constant 6.000000e+00 : f32
    %70 = vector.broadcast %cst_47 : f32 to vector<32x192xf32>
    %71 = arith.maximumf %70, %69 : vector<32x192xf32>
    %72 = vector.broadcast %cst_48 : f32 to vector<32x192xf32>
    %73 = arith.minimumf %72, %71 : vector<32x192xf32>
    %c0_49 = arith.constant 0 : index
    %c0_50 = arith.constant 0 : index
    %74 = vector.load %arg18[%c0_49, %c0_50] : memref<192x32xbf16, #tpu.memory_space<vmem>>, vector<192x32xbf16>
    %c0_51 = arith.constant 0 : index
    %c0_52 = arith.constant 0 : index
    %75 = vector.load %arg19[%c0_51, %c0_52] : memref<1x32xf32, #tpu.memory_space<vmem>>, vector<1x32xf32>
    %76 = arith.truncf %73 : vector<32x192xf32> to vector<32x192xbf16>
    %cst_53 = arith.constant dense<0.000000e+00> : vector<32x32xf32>
    %77 = tpu.matmul %76, %74, %cst_53 {dimension_numbers = #tpu.dot_dimension_numbers<[1], [0], [0], [1], [0, 0, 1, 1], [], []>} : vector<32x192xbf16>, vector<192x32xbf16>, vector<32x32xf32> -> vector<32x32xf32>
    %78 = vector.broadcast %75 : vector<1x32xf32> to vector<32x32xf32>
    %79 = arith.addf %77, %78 : vector<32x32xf32>
    %80 = arith.addf %79, %53 : vector<32x32xf32>
    %c0_54 = arith.constant 0 : index
    %c0_55 = arith.constant 0 : index
    %81 = vector.load %arg20[%c0_54, %c0_55] : memref<32x32xf32, #tpu.memory_space<vmem>>, vector<32x32xf32>
    tpu.vector_store %arg20[%c0_54, %c0_55], %80 {strides = array<i32>} : memref<32x32xf32, #tpu.memory_space<vmem>>, vector<32x32xf32>,
    return
  }
  func.func @transform_0(%arg0: i32) -> (i32, i32) {
    %c0_i32 = arith.constant 0 : i32
    %c0_i32_0 = arith.constant 0 : i32
    return %arg0, %c0_i32 : i32, i32
  }
  func.func @transform_1(%arg0: i32) -> (i32, i32) {
    %c0_i32 = arith.constant 0 : i32
    %c0_i32_0 = arith.constant 0 : i32
    %c0_i32_1 = arith.constant 0 : i32
    return %c0_i32, %c0_i32_0 : i32, i32
  }
  func.func @transform_2(%arg0: i32) -> (i32, i32) {
    %c0_i32 = arith.constant 0 : i32
    %c0_i32_0 = arith.constant 0 : i32
    %c0_i32_1 = arith.constant 0 : i32
    return %c0_i32, %c0_i32_0 : i32, i32
  }
  func.func @transform_3(%arg0: i32) -> (i32, i32) {
    %c0_i32 = arith.constant 0 : i32
    %c0_i32_0 = arith.constant 0 : i32
    %c0_i32_1 = arith.constant 0 : i32
    return %c0_i32, %c0_i32_0 : i32, i32
  }
  func.func @transform_4(%arg0: i32) -> (i32, i32) {
    %c0_i32 = arith.constant 0 : i32
    %c0_i32_0 = arith.constant 0 : i32
    %c0_i32_1 = arith.constant 0 : i32
    return %c0_i32, %c0_i32_0 : i32, i32
  }
  func.func @transform_5(%arg0: i32) -> (i32, i32) {
    %c0_i32 = arith.constant 0 : i32
    %c0_i32_0 = arith.constant 0 : i32
    %c0_i32_1 = arith.constant 0 : i32
    return %c0_i32, %c0_i32_0 : i32, i32
  }
  func.func @transform_6(%arg0: i32) -> (i32, i32) {
    %c0_i32 = arith.constant 0 : i32
    %c0_i32_0 = arith.constant 0 : i32
    %c0_i32_1 = arith.constant 0 : i32
    return %c0_i32, %c0_i32_0 : i32, i32
  }
  func.func @transform_7(%arg0: i32) -> (i32, i32) {
    %c0_i32 = arith.constant 0 : i32
    %c0_i32_0 = arith.constant 0 : i32
    %c0_i32_1 = arith.constant 0 : i32
    return %c0_i32, %c0_i32_0 : i32, i32
  }
  func.func @transform_8(%arg0: i32) -> (i32, i32) {
    %c0_i32 = arith.constant 0 : i32
    %c0_i32_0 = arith.constant 0 : i32
    %c0_i32_1 = arith.constant 0 : i32
    return %c0_i32, %c0_i32_0 : i32, i32
  }
  func.func @transform_9(%arg0: i32) -> (i32, i32) {
    %c0_i32 = arith.constant 0 : i32
    %c0_i32_0 = arith.constant 0 : i32
    %c0_i32_1 = arith.constant 0 : i32
    return %c0_i32, %c0_i32_0 : i32, i32
  }
  func.func @transform_10(%arg0: i32) -> (i32, i32) {
    %c0_i32 = arith.constant 0 : i32
    %c0_i32_0 = arith.constant 0 : i32
    %c0_i32_1 = arith.constant 0 : i32
    return %c0_i32, %c0_i32_0 : i32, i32
  }
  func.func @transform_11(%arg0: i32) -> (i32, i32) {
    %c0_i32 = arith.constant 0 : i32
    %c0_i32_0 = arith.constant 0 : i32
    %c0_i32_1 = arith.constant 0 : i32
    return %c0_i32, %c0_i32_0 : i32, i32
  }
  func.func @transform_12(%arg0: i32) -> (i32, i32) {
    %c0_i32 = arith.constant 0 : i32
    %c0_i32_0 = arith.constant 0 : i32
    %c0_i32_1 = arith.constant 0 : i32
    return %c0_i32, %c0_i32_0 : i32, i32
  }
  func.func @transform_13(%arg0: i32) -> (i32, i32) {
    %c0_i32 = arith.constant 0 : i32
    %c0_i32_0 = arith.constant 0 : i32
    %c0_i32_1 = arith.constant 0 : i32
    return %c0_i32, %c0_i32_0 : i32, i32
  }
  func.func @transform_14(%arg0: i32) -> (i32, i32) {
    %c0_i32 = arith.constant 0 : i32
    %c0_i32_0 = arith.constant 0 : i32
    %c0_i32_1 = arith.constant 0 : i32
    return %c0_i32, %c0_i32_0 : i32, i32
  }
  func.func @transform_15(%arg0: i32) -> (i32, i32) {
    %c0_i32 = arith.constant 0 : i32
    %c0_i32_0 = arith.constant 0 : i32
    %c0_i32_1 = arith.constant 0 : i32
    return %c0_i32, %c0_i32_0 : i32, i32
  }
  func.func @transform_16(%arg0: i32) -> (i32, i32) {
    %c0_i32 = arith.constant 0 : i32
    %c0_i32_0 = arith.constant 0 : i32
    %c0_i32_1 = arith.constant 0 : i32
    return %c0_i32, %c0_i32_0 : i32, i32
  }
  func.func @transform_17(%arg0: i32) -> (i32, i32) {
    %c0_i32 = arith.constant 0 : i32
    %c0_i32_0 = arith.constant 0 : i32
    %c0_i32_1 = arith.constant 0 : i32
    return %c0_i32, %c0_i32_0 : i32, i32
  }
  func.func @transform_18(%arg0: i32) -> (i32, i32) {
    %c0_i32 = arith.constant 0 : i32
    %c0_i32_0 = arith.constant 0 : i32
    %c0_i32_1 = arith.constant 0 : i32
    return %c0_i32, %c0_i32_0 : i32, i32
  }
  func.func @transform_19(%arg0: i32) -> (i32, i32) {
    %c0_i32 = arith.constant 0 : i32
    %c0_i32_0 = arith.constant 0 : i32
    return %arg0, %c0_i32 : i32, i32
  }
}

module attributes {stable_mosaic.version = 11 : i64} {
  func.func @kernel(%arg0: i32, %arg1: memref<256x48xf32, #tpu.memory_space<vmem>>, %arg2: memref<48x32xbf16, #tpu.memory_space<vmem>>, %arg3: memref<1x32xf32, #tpu.memory_space<vmem>>, %arg4: memref<1x32xf32, #tpu.memory_space<vmem>>, %arg5: memref<1x32xf32, #tpu.memory_space<vmem>>, %arg6: memref<32x16xbf16, #tpu.memory_space<vmem>>, %arg7: memref<1x16xf32, #tpu.memory_space<vmem>>, %arg8: memref<16x64xbf16, #tpu.memory_space<vmem>>, %arg9: memref<256x16xf32, #tpu.memory_space<vmem>>, %arg10: memref<256x64xf32, #tpu.memory_space<vmem>>) attributes {dimension_semantics = [#tpu.dimension_semantics<parallel>], iteration_bounds = array<i64: 2>, scalar_prefetch = 0 : i64, scratch_operands = 0 : i64, tpu.core_type = #tpu.core_type<tc>, window_params = [{transform_indices = @transform_0, window_bounds = array<i64: 256, 48>}, {pipeline_mode = #tpu.pipeline_mode<synchronous>, transform_indices = @transform_1, window_bounds = array<i64: 48, 32>}, {pipeline_mode = #tpu.pipeline_mode<synchronous>, transform_indices = @transform_2, window_bounds = array<i64: 1, 32>}, {pipeline_mode = #tpu.pipeline_mode<synchronous>, transform_indices = @transform_3, window_bounds = array<i64: 1, 32>}, {pipeline_mode = #tpu.pipeline_mode<synchronous>, transform_indices = @transform_4, window_bounds = array<i64: 1, 32>}, {pipeline_mode = #tpu.pipeline_mode<synchronous>, transform_indices = @transform_5, window_bounds = array<i64: 32, 16>}, {pipeline_mode = #tpu.pipeline_mode<synchronous>, transform_indices = @transform_6, window_bounds = array<i64: 1, 16>}, {pipeline_mode = #tpu.pipeline_mode<synchronous>, transform_indices = @transform_7, window_bounds = array<i64: 16, 64>}, {transform_indices = @transform_8, window_bounds = array<i64: 256, 16>}, {transform_indices = @transform_9, window_bounds = array<i64: 256, 64>}]} {
    %c0 = arith.constant 0 : index
    %c0_0 = arith.constant 0 : index
    %0 = vector.load %arg1[%c0, %c0_0] : memref<256x48xf32, #tpu.memory_space<vmem>>, vector<256x48xf32>
    %c0_1 = arith.constant 0 : index
    %c0_2 = arith.constant 0 : index
    %1 = vector.load %arg2[%c0_1, %c0_2] : memref<48x32xbf16, #tpu.memory_space<vmem>>, vector<48x32xbf16>
    %c0_3 = arith.constant 0 : index
    %c0_4 = arith.constant 0 : index
    %2 = vector.load %arg3[%c0_3, %c0_4] : memref<1x32xf32, #tpu.memory_space<vmem>>, vector<1x32xf32>
    %3 = arith.truncf %0 : vector<256x48xf32> to vector<256x48xbf16>
    %cst = arith.constant dense<0.000000e+00> : vector<256x32xf32>
    %4 = tpu.matmul %3, %1, %cst {dimension_numbers = #tpu.dot_dimension_numbers<[1], [0], [0], [1], [0, 0, 1, 1], [], []>} : vector<256x48xbf16>, vector<48x32xbf16>, vector<256x32xf32> -> vector<256x32xf32>
    %5 = vector.broadcast %2 : vector<1x32xf32> to vector<256x32xf32>
    %6 = arith.addf %4, %5 : vector<256x32xf32>
    %cst_5 = arith.constant 0.000000e+00 : f32
    %cst_6 = arith.constant 6.000000e+00 : f32
    %7 = vector.broadcast %cst_5 : f32 to vector<256x32xf32>
    %8 = arith.maximumf %7, %6 : vector<256x32xf32>
    %9 = vector.broadcast %cst_6 : f32 to vector<256x32xf32>
    %10 = arith.minimumf %9, %8 : vector<256x32xf32>
    %c0_7 = arith.constant 0 : index
    %c0_8 = arith.constant 0 : index
    %11 = vector.load %arg4[%c0_7, %c0_8] : memref<1x32xf32, #tpu.memory_space<vmem>>, vector<1x32xf32>
    %c0_9 = arith.constant 0 : index
    %c0_10 = arith.constant 0 : index
    %12 = vector.load %arg5[%c0_9, %c0_10] : memref<1x32xf32, #tpu.memory_space<vmem>>, vector<1x32xf32>
    %13 = vector.broadcast %11 : vector<1x32xf32> to vector<256x32xf32>
    %14 = arith.mulf %10, %13 : vector<256x32xf32>
    %15 = vector.broadcast %12 : vector<1x32xf32> to vector<256x32xf32>
    %16 = arith.addf %14, %15 : vector<256x32xf32>
    %cst_11 = arith.constant 0.000000e+00 : f32
    %cst_12 = arith.constant 6.000000e+00 : f32
    %17 = vector.broadcast %cst_11 : f32 to vector<256x32xf32>
    %18 = arith.maximumf %17, %16 : vector<256x32xf32>
    %19 = vector.broadcast %cst_12 : f32 to vector<256x32xf32>
    %20 = arith.minimumf %19, %18 : vector<256x32xf32>
    %c0_13 = arith.constant 0 : index
    %c0_14 = arith.constant 0 : index
    %21 = vector.load %arg6[%c0_13, %c0_14] : memref<32x16xbf16, #tpu.memory_space<vmem>>, vector<32x16xbf16>
    %c0_15 = arith.constant 0 : index
    %c0_16 = arith.constant 0 : index
    %22 = vector.load %arg7[%c0_15, %c0_16] : memref<1x16xf32, #tpu.memory_space<vmem>>, vector<1x16xf32>
    %23 = arith.truncf %20 : vector<256x32xf32> to vector<256x32xbf16>
    %cst_17 = arith.constant dense<0.000000e+00> : vector<256x16xf32>
    %24 = tpu.matmul %23, %21, %cst_17 {dimension_numbers = #tpu.dot_dimension_numbers<[1], [0], [0], [1], [0, 0, 1, 1], [], []>} : vector<256x32xbf16>, vector<32x16xbf16>, vector<256x16xf32> -> vector<256x16xf32>
    %25 = vector.broadcast %22 : vector<1x16xf32> to vector<256x16xf32>
    %26 = arith.addf %24, %25 : vector<256x16xf32>
    %c0_18 = arith.constant 0 : index
    %c0_19 = arith.constant 0 : index
    %27 = vector.load %arg8[%c0_18, %c0_19] : memref<16x64xbf16, #tpu.memory_space<vmem>>, vector<16x64xbf16>
    %28 = arith.truncf %26 : vector<256x16xf32> to vector<256x16xbf16>
    %cst_20 = arith.constant dense<0.000000e+00> : vector<256x64xf32>
    %29 = tpu.matmul %28, %27, %cst_20 {dimension_numbers = #tpu.dot_dimension_numbers<[1], [0], [0], [1], [0, 0, 1, 1], [], []>} : vector<256x16xbf16>, vector<16x64xbf16>, vector<256x64xf32> -> vector<256x64xf32>
    %c0_21 = arith.constant 0 : index
    %c0_22 = arith.constant 0 : index
    %30 = vector.load %arg10[%c0_21, %c0_22] : memref<256x64xf32, #tpu.memory_space<vmem>>, vector<256x64xf32>
    tpu.vector_store %arg10[%c0_21, %c0_22], %29 {strides = array<i32>} : memref<256x64xf32, #tpu.memory_space<vmem>>, vector<256x64xf32>,
    %c0_23 = arith.constant 0 : index
    %c0_24 = arith.constant 0 : index
    %31 = vector.load %arg9[%c0_23, %c0_24] : memref<256x16xf32, #tpu.memory_space<vmem>>, vector<256x16xf32>
    tpu.vector_store %arg9[%c0_23, %c0_24], %26 {strides = array<i32>} : memref<256x16xf32, #tpu.memory_space<vmem>>, vector<256x16xf32>,
    return
  }
  func.func @transform_0(%arg0: i32) -> (i32, i32) {
    %c0_i32 = arith.constant 0 : i32
    %c0_i32_0 = arith.constant 0 : i32
    return %arg0, %c0_i32 : i32, i32
  }
  func.func @transform_1(%arg0: i32) -> (i32, i32) {
    %c0_i32 = arith.constant 0 : i32
    %c0_i32_0 = arith.constant 0 : i32
    %c0_i32_1 = arith.constant 0 : i32
    return %c0_i32, %c0_i32_0 : i32, i32
  }
  func.func @transform_2(%arg0: i32) -> (i32, i32) {
    %c0_i32 = arith.constant 0 : i32
    %c0_i32_0 = arith.constant 0 : i32
    %c0_i32_1 = arith.constant 0 : i32
    return %c0_i32, %c0_i32_0 : i32, i32
  }
  func.func @transform_3(%arg0: i32) -> (i32, i32) {
    %c0_i32 = arith.constant 0 : i32
    %c0_i32_0 = arith.constant 0 : i32
    %c0_i32_1 = arith.constant 0 : i32
    return %c0_i32, %c0_i32_0 : i32, i32
  }
  func.func @transform_4(%arg0: i32) -> (i32, i32) {
    %c0_i32 = arith.constant 0 : i32
    %c0_i32_0 = arith.constant 0 : i32
    %c0_i32_1 = arith.constant 0 : i32
    return %c0_i32, %c0_i32_0 : i32, i32
  }
  func.func @transform_5(%arg0: i32) -> (i32, i32) {
    %c0_i32 = arith.constant 0 : i32
    %c0_i32_0 = arith.constant 0 : i32
    %c0_i32_1 = arith.constant 0 : i32
    return %c0_i32, %c0_i32_0 : i32, i32
  }
  func.func @transform_6(%arg0: i32) -> (i32, i32) {
    %c0_i32 = arith.constant 0 : i32
    %c0_i32_0 = arith.constant 0 : i32
    %c0_i32_1 = arith.constant 0 : i32
    return %c0_i32, %c0_i32_0 : i32, i32
  }
  func.func @transform_7(%arg0: i32) -> (i32, i32) {
    %c0_i32 = arith.constant 0 : i32
    %c0_i32_0 = arith.constant 0 : i32
    %c0_i32_1 = arith.constant 0 : i32
    return %c0_i32, %c0_i32_0 : i32, i32
  }
  func.func @transform_8(%arg0: i32) -> (i32, i32) {
    %c0_i32 = arith.constant 0 : i32
    %c0_i32_0 = arith.constant 0 : i32
    return %arg0, %c0_i32 : i32, i32
  }
  func.func @transform_9(%arg0: i32) -> (i32, i32) {
    %c0_i32 = arith.constant 0 : i32
    %c0_i32_0 = arith.constant 0 : i32
    return %arg0, %c0_i32 : i32, i32
  }
}

module attributes {stable_mosaic.version = 11 : i64} {
  func.func @kernel(%arg0: i32, %arg1: memref<128x16xf32, #tpu.memory_space<vmem>>, %arg2: memref<16x96xbf16, #tpu.memory_space<vmem>>, %arg3: memref<1x96xf32, #tpu.memory_space<vmem>>, %arg4: memref<1x96xf32, #tpu.memory_space<vmem>>, %arg5: memref<1x96xf32, #tpu.memory_space<vmem>>, %arg6: memref<96x24xbf16, #tpu.memory_space<vmem>>, %arg7: memref<1x24xf32, #tpu.memory_space<vmem>>, %arg8: memref<24x144xbf16, #tpu.memory_space<vmem>>, %arg9: memref<1x144xf32, #tpu.memory_space<vmem>>, %arg10: memref<1x144xf32, #tpu.memory_space<vmem>>, %arg11: memref<1x144xf32, #tpu.memory_space<vmem>>, %arg12: memref<144x24xbf16, #tpu.memory_space<vmem>>, %arg13: memref<1x24xf32, #tpu.memory_space<vmem>>, %arg14: memref<128x24xf32, #tpu.memory_space<vmem>>) attributes {dimension_semantics = [#tpu.dimension_semantics<parallel>], iteration_bounds = array<i64: 1>, scalar_prefetch = 0 : i64, scratch_operands = 0 : i64, tpu.core_type = #tpu.core_type<tc>, window_params = [{transform_indices = @transform_0, window_bounds = array<i64: 128, 16>}, {pipeline_mode = #tpu.pipeline_mode<synchronous>, transform_indices = @transform_1, window_bounds = array<i64: 16, 96>}, {pipeline_mode = #tpu.pipeline_mode<synchronous>, transform_indices = @transform_2, window_bounds = array<i64: 1, 96>}, {pipeline_mode = #tpu.pipeline_mode<synchronous>, transform_indices = @transform_3, window_bounds = array<i64: 1, 96>}, {pipeline_mode = #tpu.pipeline_mode<synchronous>, transform_indices = @transform_4, window_bounds = array<i64: 1, 96>}, {pipeline_mode = #tpu.pipeline_mode<synchronous>, transform_indices = @transform_5, window_bounds = array<i64: 96, 24>}, {pipeline_mode = #tpu.pipeline_mode<synchronous>, transform_indices = @transform_6, window_bounds = array<i64: 1, 24>}, {pipeline_mode = #tpu.pipeline_mode<synchronous>, transform_indices = @transform_7, window_bounds = array<i64: 24, 144>}, {pipeline_mode = #tpu.pipeline_mode<synchronous>, transform_indices = @transform_8, window_bounds = array<i64: 1, 144>}, {pipeline_mode = #tpu.pipeline_mode<synchronous>, transform_indices = @transform_9, window_bounds = array<i64: 1, 144>}, {pipeline_mode = #tpu.pipeline_mode<synchronous>, transform_indices = @transform_10, window_bounds = array<i64: 1, 144>}, {pipeline_mode = #tpu.pipeline_mode<synchronous>, transform_indices = @transform_11, window_bounds = array<i64: 144, 24>}, {pipeline_mode = #tpu.pipeline_mode<synchronous>, transform_indices = @transform_12, window_bounds = array<i64: 1, 24>}, {transform_indices = @transform_13, window_bounds = array<i64: 128, 24>}]} {
    %c0 = arith.constant 0 : index
    %c0_0 = arith.constant 0 : index
    %0 = vector.load %arg1[%c0, %c0_0] : memref<128x16xf32, #tpu.memory_space<vmem>>, vector<128x16xf32>
    %c0_1 = arith.constant 0 : index
    %c0_2 = arith.constant 0 : index
    %1 = vector.load %arg2[%c0_1, %c0_2] : memref<16x96xbf16, #tpu.memory_space<vmem>>, vector<16x96xbf16>
    %c0_3 = arith.constant 0 : index
    %c0_4 = arith.constant 0 : index
    %2 = vector.load %arg3[%c0_3, %c0_4] : memref<1x96xf32, #tpu.memory_space<vmem>>, vector<1x96xf32>
    %3 = arith.truncf %0 : vector<128x16xf32> to vector<128x16xbf16>
    %cst = arith.constant dense<0.000000e+00> : vector<128x96xf32>
    %4 = tpu.matmul %3, %1, %cst {dimension_numbers = #tpu.dot_dimension_numbers<[1], [0], [0], [1], [0, 0, 1, 1], [], []>} : vector<128x16xbf16>, vector<16x96xbf16>, vector<128x96xf32> -> vector<128x96xf32>
    %5 = vector.broadcast %2 : vector<1x96xf32> to vector<128x96xf32>
    %6 = arith.addf %4, %5 : vector<128x96xf32>
    %cst_5 = arith.constant 0.000000e+00 : f32
    %cst_6 = arith.constant 6.000000e+00 : f32
    %7 = vector.broadcast %cst_5 : f32 to vector<128x96xf32>
    %8 = arith.maximumf %7, %6 : vector<128x96xf32>
    %9 = vector.broadcast %cst_6 : f32 to vector<128x96xf32>
    %10 = arith.minimumf %9, %8 : vector<128x96xf32>
    %c0_7 = arith.constant 0 : index
    %c0_8 = arith.constant 0 : index
    %11 = vector.load %arg4[%c0_7, %c0_8] : memref<1x96xf32, #tpu.memory_space<vmem>>, vector<1x96xf32>
    %c0_9 = arith.constant 0 : index
    %c0_10 = arith.constant 0 : index
    %12 = vector.load %arg5[%c0_9, %c0_10] : memref<1x96xf32, #tpu.memory_space<vmem>>, vector<1x96xf32>
    %13 = vector.broadcast %11 : vector<1x96xf32> to vector<128x96xf32>
    %14 = arith.mulf %10, %13 : vector<128x96xf32>
    %15 = vector.broadcast %12 : vector<1x96xf32> to vector<128x96xf32>
    %16 = arith.addf %14, %15 : vector<128x96xf32>
    %cst_11 = arith.constant 0.000000e+00 : f32
    %cst_12 = arith.constant 6.000000e+00 : f32
    %17 = vector.broadcast %cst_11 : f32 to vector<128x96xf32>
    %18 = arith.maximumf %17, %16 : vector<128x96xf32>
    %19 = vector.broadcast %cst_12 : f32 to vector<128x96xf32>
    %20 = arith.minimumf %19, %18 : vector<128x96xf32>
    %c0_13 = arith.constant 0 : index
    %c0_14 = arith.constant 0 : index
    %21 = vector.load %arg6[%c0_13, %c0_14] : memref<96x24xbf16, #tpu.memory_space<vmem>>, vector<96x24xbf16>
    %c0_15 = arith.constant 0 : index
    %c0_16 = arith.constant 0 : index
    %22 = vector.load %arg7[%c0_15, %c0_16] : memref<1x24xf32, #tpu.memory_space<vmem>>, vector<1x24xf32>
    %23 = arith.truncf %20 : vector<128x96xf32> to vector<128x96xbf16>
    %cst_17 = arith.constant dense<0.000000e+00> : vector<128x24xf32>
    %24 = tpu.matmul %23, %21, %cst_17 {dimension_numbers = #tpu.dot_dimension_numbers<[1], [0], [0], [1], [0, 0, 1, 1], [], []>} : vector<128x96xbf16>, vector<96x24xbf16>, vector<128x24xf32> -> vector<128x24xf32>
    %25 = vector.broadcast %22 : vector<1x24xf32> to vector<128x24xf32>
    %26 = arith.addf %24, %25 : vector<128x24xf32>
    %c0_18 = arith.constant 0 : index
    %c0_19 = arith.constant 0 : index
    %27 = vector.load %arg8[%c0_18, %c0_19] : memref<24x144xbf16, #tpu.memory_space<vmem>>, vector<24x144xbf16>
    %c0_20 = arith.constant 0 : index
    %c0_21 = arith.constant 0 : index
    %28 = vector.load %arg9[%c0_20, %c0_21] : memref<1x144xf32, #tpu.memory_space<vmem>>, vector<1x144xf32>
    %29 = arith.truncf %26 : vector<128x24xf32> to vector<128x24xbf16>
    %cst_22 = arith.constant dense<0.000000e+00> : vector<128x144xf32>
    %30 = tpu.matmul %29, %27, %cst_22 {dimension_numbers = #tpu.dot_dimension_numbers<[1], [0], [0], [1], [0, 0, 1, 1], [], []>} : vector<128x24xbf16>, vector<24x144xbf16>, vector<128x144xf32> -> vector<128x144xf32>
    %31 = vector.broadcast %28 : vector<1x144xf32> to vector<128x144xf32>
    %32 = arith.addf %30, %31 : vector<128x144xf32>
    %cst_23 = arith.constant 0.000000e+00 : f32
    %cst_24 = arith.constant 6.000000e+00 : f32
    %33 = vector.broadcast %cst_23 : f32 to vector<128x144xf32>
    %34 = arith.maximumf %33, %32 : vector<128x144xf32>
    %35 = vector.broadcast %cst_24 : f32 to vector<128x144xf32>
    %36 = arith.minimumf %35, %34 : vector<128x144xf32>
    %c0_25 = arith.constant 0 : index
    %c0_26 = arith.constant 0 : index
    %37 = vector.load %arg10[%c0_25, %c0_26] : memref<1x144xf32, #tpu.memory_space<vmem>>, vector<1x144xf32>
    %c0_27 = arith.constant 0 : index
    %c0_28 = arith.constant 0 : index
    %38 = vector.load %arg11[%c0_27, %c0_28] : memref<1x144xf32, #tpu.memory_space<vmem>>, vector<1x144xf32>
    %39 = vector.broadcast %37 : vector<1x144xf32> to vector<128x144xf32>
    %40 = arith.mulf %36, %39 : vector<128x144xf32>
    %41 = vector.broadcast %38 : vector<1x144xf32> to vector<128x144xf32>
    %42 = arith.addf %40, %41 : vector<128x144xf32>
    %cst_29 = arith.constant 0.000000e+00 : f32
    %cst_30 = arith.constant 6.000000e+00 : f32
    %43 = vector.broadcast %cst_29 : f32 to vector<128x144xf32>
    %44 = arith.maximumf %43, %42 : vector<128x144xf32>
    %45 = vector.broadcast %cst_30 : f32 to vector<128x144xf32>
    %46 = arith.minimumf %45, %44 : vector<128x144xf32>
    %c0_31 = arith.constant 0 : index
    %c0_32 = arith.constant 0 : index
    %47 = vector.load %arg12[%c0_31, %c0_32] : memref<144x24xbf16, #tpu.memory_space<vmem>>, vector<144x24xbf16>
    %c0_33 = arith.constant 0 : index
    %c0_34 = arith.constant 0 : index
    %48 = vector.load %arg13[%c0_33, %c0_34] : memref<1x24xf32, #tpu.memory_space<vmem>>, vector<1x24xf32>
    %49 = arith.truncf %46 : vector<128x144xf32> to vector<128x144xbf16>
    %cst_35 = arith.constant dense<0.000000e+00> : vector<128x24xf32>
    %50 = tpu.matmul %49, %47, %cst_35 {dimension_numbers = #tpu.dot_dimension_numbers<[1], [0], [0], [1], [0, 0, 1, 1], [], []>} : vector<128x144xbf16>, vector<144x24xbf16>, vector<128x24xf32> -> vector<128x24xf32>
    %51 = vector.broadcast %48 : vector<1x24xf32> to vector<128x24xf32>
    %52 = arith.addf %50, %51 : vector<128x24xf32>
    %53 = arith.addf %52, %26 : vector<128x24xf32>
    %c0_36 = arith.constant 0 : index
    %c0_37 = arith.constant 0 : index
    %54 = vector.load %arg14[%c0_36, %c0_37] : memref<128x24xf32, #tpu.memory_space<vmem>>, vector<128x24xf32>
    tpu.vector_store %arg14[%c0_36, %c0_37], %53 {strides = array<i32>} : memref<128x24xf32, #tpu.memory_space<vmem>>, vector<128x24xf32>,
    return
  }
  func.func @transform_0(%arg0: i32) -> (i32, i32) {
    %c0_i32 = arith.constant 0 : i32
    %c0_i32_0 = arith.constant 0 : i32
    return %arg0, %c0_i32 : i32, i32
  }
  func.func @transform_1(%arg0: i32) -> (i32, i32) {
    %c0_i32 = arith.constant 0 : i32
    %c0_i32_0 = arith.constant 0 : i32
    %c0_i32_1 = arith.constant 0 : i32
    return %c0_i32, %c0_i32_0 : i32, i32
  }
  func.func @transform_2(%arg0: i32) -> (i32, i32) {
    %c0_i32 = arith.constant 0 : i32
    %c0_i32_0 = arith.constant 0 : i32
    %c0_i32_1 = arith.constant 0 : i32
    return %c0_i32, %c0_i32_0 : i32, i32
  }
  func.func @transform_3(%arg0: i32) -> (i32, i32) {
    %c0_i32 = arith.constant 0 : i32
    %c0_i32_0 = arith.constant 0 : i32
    %c0_i32_1 = arith.constant 0 : i32
    return %c0_i32, %c0_i32_0 : i32, i32
  }
  func.func @transform_4(%arg0: i32) -> (i32, i32) {
    %c0_i32 = arith.constant 0 : i32
    %c0_i32_0 = arith.constant 0 : i32
    %c0_i32_1 = arith.constant 0 : i32
    return %c0_i32, %c0_i32_0 : i32, i32
  }
  func.func @transform_5(%arg0: i32) -> (i32, i32) {
    %c0_i32 = arith.constant 0 : i32
    %c0_i32_0 = arith.constant 0 : i32
    %c0_i32_1 = arith.constant 0 : i32
    return %c0_i32, %c0_i32_0 : i32, i32
  }
  func.func @transform_6(%arg0: i32) -> (i32, i32) {
    %c0_i32 = arith.constant 0 : i32
    %c0_i32_0 = arith.constant 0 : i32
    %c0_i32_1 = arith.constant 0 : i32
    return %c0_i32, %c0_i32_0 : i32, i32
  }
  func.func @transform_7(%arg0: i32) -> (i32, i32) {
    %c0_i32 = arith.constant 0 : i32
    %c0_i32_0 = arith.constant 0 : i32
    %c0_i32_1 = arith.constant 0 : i32
    return %c0_i32, %c0_i32_0 : i32, i32
  }
  func.func @transform_8(%arg0: i32) -> (i32, i32) {
    %c0_i32 = arith.constant 0 : i32
    %c0_i32_0 = arith.constant 0 : i32
    %c0_i32_1 = arith.constant 0 : i32
    return %c0_i32, %c0_i32_0 : i32, i32
  }
  func.func @transform_9(%arg0: i32) -> (i32, i32) {
    %c0_i32 = arith.constant 0 : i32
    %c0_i32_0 = arith.constant 0 : i32
    %c0_i32_1 = arith.constant 0 : i32
    return %c0_i32, %c0_i32_0 : i32, i32
  }
  func.func @transform_10(%arg0: i32) -> (i32, i32) {
    %c0_i32 = arith.constant 0 : i32
    %c0_i32_0 = arith.constant 0 : i32
    %c0_i32_1 = arith.constant 0 : i32
    return %c0_i32, %c0_i32_0 : i32, i32
  }
  func.func @transform_11(%arg0: i32) -> (i32, i32) {
    %c0_i32 = arith.constant 0 : i32
    %c0_i32_0 = arith.constant 0 : i32
    %c0_i32_1 = arith.constant 0 : i32
    return %c0_i32, %c0_i32_0 : i32, i32
  }
  func.func @transform_12(%arg0: i32) -> (i32, i32) {
    %c0_i32 = arith.constant 0 : i32
    %c0_i32_0 = arith.constant 0 : i32
    %c0_i32_1 = arith.constant 0 : i32
    return %c0_i32, %c0_i32_0 : i32, i32
  }
  func.func @transform_13(%arg0: i32) -> (i32, i32) {
    %c0_i32 = arith.constant 0 : i32
    %c0_i32_0 = arith.constant 0 : i32
    return %arg0, %c0_i32 : i32, i32
  }
}

module attributes {stable_mosaic.version = 11 : i64} {
  func.func @kernel(%arg0: i32, %arg1: memref<8x64xf32, #tpu.memory_space<vmem>>, %arg2: memref<64x384xbf16, #tpu.memory_space<vmem>>, %arg3: memref<1x384xf32, #tpu.memory_space<vmem>>, %arg4: memref<1x384xf32, #tpu.memory_space<vmem>>, %arg5: memref<1x384xf32, #tpu.memory_space<vmem>>, %arg6: memref<384x96xbf16, #tpu.memory_space<vmem>>, %arg7: memref<1x96xf32, #tpu.memory_space<vmem>>, %arg8: memref<96x576xbf16, #tpu.memory_space<vmem>>, %arg9: memref<1x576xf32, #tpu.memory_space<vmem>>, %arg10: memref<1x576xf32, #tpu.memory_space<vmem>>, %arg11: memref<1x576xf32, #tpu.memory_space<vmem>>, %arg12: memref<576x96xbf16, #tpu.memory_space<vmem>>, %arg13: memref<1x96xf32, #tpu.memory_space<vmem>>, %arg14: memref<96x576xbf16, #tpu.memory_space<vmem>>, %arg15: memref<1x576xf32, #tpu.memory_space<vmem>>, %arg16: memref<1x576xf32, #tpu.memory_space<vmem>>, %arg17: memref<1x576xf32, #tpu.memory_space<vmem>>, %arg18: memref<576x96xbf16, #tpu.memory_space<vmem>>, %arg19: memref<1x96xf32, #tpu.memory_space<vmem>>, %arg20: memref<8x96xf32, #tpu.memory_space<vmem>>) attributes {dimension_semantics = [#tpu.dimension_semantics<parallel>], iteration_bounds = array<i64: 1>, scalar_prefetch = 0 : i64, scratch_operands = 0 : i64, tpu.core_type = #tpu.core_type<tc>, window_params = [{transform_indices = @transform_0, window_bounds = array<i64: 8, 64>}, {pipeline_mode = #tpu.pipeline_mode<synchronous>, transform_indices = @transform_1, window_bounds = array<i64: 64, 384>}, {pipeline_mode = #tpu.pipeline_mode<synchronous>, transform_indices = @transform_2, window_bounds = array<i64: 1, 384>}, {pipeline_mode = #tpu.pipeline_mode<synchronous>, transform_indices = @transform_3, window_bounds = array<i64: 1, 384>}, {pipeline_mode = #tpu.pipeline_mode<synchronous>, transform_indices = @transform_4, window_bounds = array<i64: 1, 384>}, {pipeline_mode = #tpu.pipeline_mode<synchronous>, transform_indices = @transform_5, window_bounds = array<i64: 384, 96>}, {pipeline_mode = #tpu.pipeline_mode<synchronous>, transform_indices = @transform_6, window_bounds = array<i64: 1, 96>}, {pipeline_mode = #tpu.pipeline_mode<synchronous>, transform_indices = @transform_7, window_bounds = array<i64: 96, 576>}, {pipeline_mode = #tpu.pipeline_mode<synchronous>, transform_indices = @transform_8, window_bounds = array<i64: 1, 576>}, {pipeline_mode = #tpu.pipeline_mode<synchronous>, transform_indices = @transform_9, window_bounds = array<i64: 1, 576>}, {pipeline_mode = #tpu.pipeline_mode<synchronous>, transform_indices = @transform_10, window_bounds = array<i64: 1, 576>}, {pipeline_mode = #tpu.pipeline_mode<synchronous>, transform_indices = @transform_11, window_bounds = array<i64: 576, 96>}, {pipeline_mode = #tpu.pipeline_mode<synchronous>, transform_indices = @transform_12, window_bounds = array<i64: 1, 96>}, {pipeline_mode = #tpu.pipeline_mode<synchronous>, transform_indices = @transform_13, window_bounds = array<i64: 96, 576>}, {pipeline_mode = #tpu.pipeline_mode<synchronous>, transform_indices = @transform_14, window_bounds = array<i64: 1, 576>}, {pipeline_mode = #tpu.pipeline_mode<synchronous>, transform_indices = @transform_15, window_bounds = array<i64: 1, 576>}, {pipeline_mode = #tpu.pipeline_mode<synchronous>, transform_indices = @transform_16, window_bounds = array<i64: 1, 576>}, {pipeline_mode = #tpu.pipeline_mode<synchronous>, transform_indices = @transform_17, window_bounds = array<i64: 576, 96>}, {pipeline_mode = #tpu.pipeline_mode<synchronous>, transform_indices = @transform_18, window_bounds = array<i64: 1, 96>}, {transform_indices = @transform_19, window_bounds = array<i64: 8, 96>}]} {
    %c0 = arith.constant 0 : index
    %c0_0 = arith.constant 0 : index
    %0 = vector.load %arg1[%c0, %c0_0] : memref<8x64xf32, #tpu.memory_space<vmem>>, vector<8x64xf32>
    %c0_1 = arith.constant 0 : index
    %c0_2 = arith.constant 0 : index
    %1 = vector.load %arg2[%c0_1, %c0_2] : memref<64x384xbf16, #tpu.memory_space<vmem>>, vector<64x384xbf16>
    %c0_3 = arith.constant 0 : index
    %c0_4 = arith.constant 0 : index
    %2 = vector.load %arg3[%c0_3, %c0_4] : memref<1x384xf32, #tpu.memory_space<vmem>>, vector<1x384xf32>
    %3 = arith.truncf %0 : vector<8x64xf32> to vector<8x64xbf16>
    %cst = arith.constant dense<0.000000e+00> : vector<8x384xf32>
    %4 = tpu.matmul %3, %1, %cst {dimension_numbers = #tpu.dot_dimension_numbers<[1], [0], [0], [1], [0, 0, 1, 1], [], []>} : vector<8x64xbf16>, vector<64x384xbf16>, vector<8x384xf32> -> vector<8x384xf32>
    %5 = vector.broadcast %2 : vector<1x384xf32> to vector<8x384xf32>
    %6 = arith.addf %4, %5 : vector<8x384xf32>
    %cst_5 = arith.constant 0.000000e+00 : f32
    %cst_6 = arith.constant 6.000000e+00 : f32
    %7 = vector.broadcast %cst_5 : f32 to vector<8x384xf32>
    %8 = arith.maximumf %7, %6 : vector<8x384xf32>
    %9 = vector.broadcast %cst_6 : f32 to vector<8x384xf32>
    %10 = arith.minimumf %9, %8 : vector<8x384xf32>
    %c0_7 = arith.constant 0 : index
    %c0_8 = arith.constant 0 : index
    %11 = vector.load %arg4[%c0_7, %c0_8] : memref<1x384xf32, #tpu.memory_space<vmem>>, vector<1x384xf32>
    %c0_9 = arith.constant 0 : index
    %c0_10 = arith.constant 0 : index
    %12 = vector.load %arg5[%c0_9, %c0_10] : memref<1x384xf32, #tpu.memory_space<vmem>>, vector<1x384xf32>
    %13 = vector.broadcast %11 : vector<1x384xf32> to vector<8x384xf32>
    %14 = arith.mulf %10, %13 : vector<8x384xf32>
    %15 = vector.broadcast %12 : vector<1x384xf32> to vector<8x384xf32>
    %16 = arith.addf %14, %15 : vector<8x384xf32>
    %cst_11 = arith.constant 0.000000e+00 : f32
    %cst_12 = arith.constant 6.000000e+00 : f32
    %17 = vector.broadcast %cst_11 : f32 to vector<8x384xf32>
    %18 = arith.maximumf %17, %16 : vector<8x384xf32>
    %19 = vector.broadcast %cst_12 : f32 to vector<8x384xf32>
    %20 = arith.minimumf %19, %18 : vector<8x384xf32>
    %c0_13 = arith.constant 0 : index
    %c0_14 = arith.constant 0 : index
    %21 = vector.load %arg6[%c0_13, %c0_14] : memref<384x96xbf16, #tpu.memory_space<vmem>>, vector<384x96xbf16>
    %c0_15 = arith.constant 0 : index
    %c0_16 = arith.constant 0 : index
    %22 = vector.load %arg7[%c0_15, %c0_16] : memref<1x96xf32, #tpu.memory_space<vmem>>, vector<1x96xf32>
    %23 = arith.truncf %20 : vector<8x384xf32> to vector<8x384xbf16>
    %cst_17 = arith.constant dense<0.000000e+00> : vector<8x96xf32>
    %24 = tpu.matmul %23, %21, %cst_17 {dimension_numbers = #tpu.dot_dimension_numbers<[1], [0], [0], [1], [0, 0, 1, 1], [], []>} : vector<8x384xbf16>, vector<384x96xbf16>, vector<8x96xf32> -> vector<8x96xf32>
    %25 = vector.broadcast %22 : vector<1x96xf32> to vector<8x96xf32>
    %26 = arith.addf %24, %25 : vector<8x96xf32>
    %c0_18 = arith.constant 0 : index
    %c0_19 = arith.constant 0 : index
    %27 = vector.load %arg8[%c0_18, %c0_19] : memref<96x576xbf16, #tpu.memory_space<vmem>>, vector<96x576xbf16>
    %c0_20 = arith.constant 0 : index
    %c0_21 = arith.constant 0 : index
    %28 = vector.load %arg9[%c0_20, %c0_21] : memref<1x576xf32, #tpu.memory_space<vmem>>, vector<1x576xf32>
    %29 = arith.truncf %26 : vector<8x96xf32> to vector<8x96xbf16>
    %cst_22 = arith.constant dense<0.000000e+00> : vector<8x576xf32>
    %30 = tpu.matmul %29, %27, %cst_22 {dimension_numbers = #tpu.dot_dimension_numbers<[1], [0], [0], [1], [0, 0, 1, 1], [], []>} : vector<8x96xbf16>, vector<96x576xbf16>, vector<8x576xf32> -> vector<8x576xf32>
    %31 = vector.broadcast %28 : vector<1x576xf32> to vector<8x576xf32>
    %32 = arith.addf %30, %31 : vector<8x576xf32>
    %cst_23 = arith.constant 0.000000e+00 : f32
    %cst_24 = arith.constant 6.000000e+00 : f32
    %33 = vector.broadcast %cst_23 : f32 to vector<8x576xf32>
    %34 = arith.maximumf %33, %32 : vector<8x576xf32>
    %35 = vector.broadcast %cst_24 : f32 to vector<8x576xf32>
    %36 = arith.minimumf %35, %34 : vector<8x576xf32>
    %c0_25 = arith.constant 0 : index
    %c0_26 = arith.constant 0 : index
    %37 = vector.load %arg10[%c0_25, %c0_26] : memref<1x576xf32, #tpu.memory_space<vmem>>, vector<1x576xf32>
    %c0_27 = arith.constant 0 : index
    %c0_28 = arith.constant 0 : index
    %38 = vector.load %arg11[%c0_27, %c0_28] : memref<1x576xf32, #tpu.memory_space<vmem>>, vector<1x576xf32>
    %39 = vector.broadcast %37 : vector<1x576xf32> to vector<8x576xf32>
    %40 = arith.mulf %36, %39 : vector<8x576xf32>
    %41 = vector.broadcast %38 : vector<1x576xf32> to vector<8x576xf32>
    %42 = arith.addf %40, %41 : vector<8x576xf32>
    %cst_29 = arith.constant 0.000000e+00 : f32
    %cst_30 = arith.constant 6.000000e+00 : f32
    %43 = vector.broadcast %cst_29 : f32 to vector<8x576xf32>
    %44 = arith.maximumf %43, %42 : vector<8x576xf32>
    %45 = vector.broadcast %cst_30 : f32 to vector<8x576xf32>
    %46 = arith.minimumf %45, %44 : vector<8x576xf32>
    %c0_31 = arith.constant 0 : index
    %c0_32 = arith.constant 0 : index
    %47 = vector.load %arg12[%c0_31, %c0_32] : memref<576x96xbf16, #tpu.memory_space<vmem>>, vector<576x96xbf16>
    %c0_33 = arith.constant 0 : index
    %c0_34 = arith.constant 0 : index
    %48 = vector.load %arg13[%c0_33, %c0_34] : memref<1x96xf32, #tpu.memory_space<vmem>>, vector<1x96xf32>
    %49 = arith.truncf %46 : vector<8x576xf32> to vector<8x576xbf16>
    %cst_35 = arith.constant dense<0.000000e+00> : vector<8x96xf32>
    %50 = tpu.matmul %49, %47, %cst_35 {dimension_numbers = #tpu.dot_dimension_numbers<[1], [0], [0], [1], [0, 0, 1, 1], [], []>} : vector<8x576xbf16>, vector<576x96xbf16>, vector<8x96xf32> -> vector<8x96xf32>
    %51 = vector.broadcast %48 : vector<1x96xf32> to vector<8x96xf32>
    %52 = arith.addf %50, %51 : vector<8x96xf32>
    %53 = arith.addf %52, %26 : vector<8x96xf32>
    %c0_36 = arith.constant 0 : index
    %c0_37 = arith.constant 0 : index
    %54 = vector.load %arg14[%c0_36, %c0_37] : memref<96x576xbf16, #tpu.memory_space<vmem>>, vector<96x576xbf16>
    %c0_38 = arith.constant 0 : index
    %c0_39 = arith.constant 0 : index
    %55 = vector.load %arg15[%c0_38, %c0_39] : memref<1x576xf32, #tpu.memory_space<vmem>>, vector<1x576xf32>
    %56 = arith.truncf %53 : vector<8x96xf32> to vector<8x96xbf16>
    %cst_40 = arith.constant dense<0.000000e+00> : vector<8x576xf32>
    %57 = tpu.matmul %56, %54, %cst_40 {dimension_numbers = #tpu.dot_dimension_numbers<[1], [0], [0], [1], [0, 0, 1, 1], [], []>} : vector<8x96xbf16>, vector<96x576xbf16>, vector<8x576xf32> -> vector<8x576xf32>
    %58 = vector.broadcast %55 : vector<1x576xf32> to vector<8x576xf32>
    %59 = arith.addf %57, %58 : vector<8x576xf32>
    %cst_41 = arith.constant 0.000000e+00 : f32
    %cst_42 = arith.constant 6.000000e+00 : f32
    %60 = vector.broadcast %cst_41 : f32 to vector<8x576xf32>
    %61 = arith.maximumf %60, %59 : vector<8x576xf32>
    %62 = vector.broadcast %cst_42 : f32 to vector<8x576xf32>
    %63 = arith.minimumf %62, %61 : vector<8x576xf32>
    %c0_43 = arith.constant 0 : index
    %c0_44 = arith.constant 0 : index
    %64 = vector.load %arg16[%c0_43, %c0_44] : memref<1x576xf32, #tpu.memory_space<vmem>>, vector<1x576xf32>
    %c0_45 = arith.constant 0 : index
    %c0_46 = arith.constant 0 : index
    %65 = vector.load %arg17[%c0_45, %c0_46] : memref<1x576xf32, #tpu.memory_space<vmem>>, vector<1x576xf32>
    %66 = vector.broadcast %64 : vector<1x576xf32> to vector<8x576xf32>
    %67 = arith.mulf %63, %66 : vector<8x576xf32>
    %68 = vector.broadcast %65 : vector<1x576xf32> to vector<8x576xf32>
    %69 = arith.addf %67, %68 : vector<8x576xf32>
    %cst_47 = arith.constant 0.000000e+00 : f32
    %cst_48 = arith.constant 6.000000e+00 : f32
    %70 = vector.broadcast %cst_47 : f32 to vector<8x576xf32>
    %71 = arith.maximumf %70, %69 : vector<8x576xf32>
    %72 = vector.broadcast %cst_48 : f32 to vector<8x576xf32>
    %73 = arith.minimumf %72, %71 : vector<8x576xf32>
    %c0_49 = arith.constant 0 : index
    %c0_50 = arith.constant 0 : index
    %74 = vector.load %arg18[%c0_49, %c0_50] : memref<576x96xbf16, #tpu.memory_space<vmem>>, vector<576x96xbf16>
    %c0_51 = arith.constant 0 : index
    %c0_52 = arith.constant 0 : index
    %75 = vector.load %arg19[%c0_51, %c0_52] : memref<1x96xf32, #tpu.memory_space<vmem>>, vector<1x96xf32>
    %76 = arith.truncf %73 : vector<8x576xf32> to vector<8x576xbf16>
    %cst_53 = arith.constant dense<0.000000e+00> : vector<8x96xf32>
    %77 = tpu.matmul %76, %74, %cst_53 {dimension_numbers = #tpu.dot_dimension_numbers<[1], [0], [0], [1], [0, 0, 1, 1], [], []>} : vector<8x576xbf16>, vector<576x96xbf16>, vector<8x96xf32> -> vector<8x96xf32>
    %78 = vector.broadcast %75 : vector<1x96xf32> to vector<8x96xf32>
    %79 = arith.addf %77, %78 : vector<8x96xf32>
    %80 = arith.addf %79, %53 : vector<8x96xf32>
    %c0_54 = arith.constant 0 : index
    %c0_55 = arith.constant 0 : index
    %81 = vector.load %arg20[%c0_54, %c0_55] : memref<8x96xf32, #tpu.memory_space<vmem>>, vector<8x96xf32>
    tpu.vector_store %arg20[%c0_54, %c0_55], %80 {strides = array<i32>} : memref<8x96xf32, #tpu.memory_space<vmem>>, vector<8x96xf32>,
    return
  }
  func.func @transform_0(%arg0: i32) -> (i32, i32) {
    %c0_i32 = arith.constant 0 : i32
    %c0_i32_0 = arith.constant 0 : i32
    return %arg0, %c0_i32 : i32, i32
  }
  func.func @transform_1(%arg0: i32) -> (i32, i32) {
    %c0_i32 = arith.constant 0 : i32
    %c0_i32_0 = arith.constant 0 : i32
    %c0_i32_1 = arith.constant 0 : i32
    return %c0_i32, %c0_i32_0 : i32, i32
  }
  func.func @transform_2(%arg0: i32) -> (i32, i32) {
    %c0_i32 = arith.constant 0 : i32
    %c0_i32_0 = arith.constant 0 : i32
    %c0_i32_1 = arith.constant 0 : i32
    return %c0_i32, %c0_i32_0 : i32, i32
  }
  func.func @transform_3(%arg0: i32) -> (i32, i32) {
    %c0_i32 = arith.constant 0 : i32
    %c0_i32_0 = arith.constant 0 : i32
    %c0_i32_1 = arith.constant 0 : i32
    return %c0_i32, %c0_i32_0 : i32, i32
  }
  func.func @transform_4(%arg0: i32) -> (i32, i32) {
    %c0_i32 = arith.constant 0 : i32
    %c0_i32_0 = arith.constant 0 : i32
    %c0_i32_1 = arith.constant 0 : i32
    return %c0_i32, %c0_i32_0 : i32, i32
  }
  func.func @transform_5(%arg0: i32) -> (i32, i32) {
    %c0_i32 = arith.constant 0 : i32
    %c0_i32_0 = arith.constant 0 : i32
    %c0_i32_1 = arith.constant 0 : i32
    return %c0_i32, %c0_i32_0 : i32, i32
  }
  func.func @transform_6(%arg0: i32) -> (i32, i32) {
    %c0_i32 = arith.constant 0 : i32
    %c0_i32_0 = arith.constant 0 : i32
    %c0_i32_1 = arith.constant 0 : i32
    return %c0_i32, %c0_i32_0 : i32, i32
  }
  func.func @transform_7(%arg0: i32) -> (i32, i32) {
    %c0_i32 = arith.constant 0 : i32
    %c0_i32_0 = arith.constant 0 : i32
    %c0_i32_1 = arith.constant 0 : i32
    return %c0_i32, %c0_i32_0 : i32, i32
  }
  func.func @transform_8(%arg0: i32) -> (i32, i32) {
    %c0_i32 = arith.constant 0 : i32
    %c0_i32_0 = arith.constant 0 : i32
    %c0_i32_1 = arith.constant 0 : i32
    return %c0_i32, %c0_i32_0 : i32, i32
  }
  func.func @transform_9(%arg0: i32) -> (i32, i32) {
    %c0_i32 = arith.constant 0 : i32
    %c0_i32_0 = arith.constant 0 : i32
    %c0_i32_1 = arith.constant 0 : i32
    return %c0_i32, %c0_i32_0 : i32, i32
  }
  func.func @transform_10(%arg0: i32) -> (i32, i32) {
    %c0_i32 = arith.constant 0 : i32
    %c0_i32_0 = arith.constant 0 : i32
    %c0_i32_1 = arith.constant 0 : i32
    return %c0_i32, %c0_i32_0 : i32, i32
  }
  func.func @transform_11(%arg0: i32) -> (i32, i32) {
    %c0_i32 = arith.constant 0 : i32
    %c0_i32_0 = arith.constant 0 : i32
    %c0_i32_1 = arith.constant 0 : i32
    return %c0_i32, %c0_i32_0 : i32, i32
  }
  func.func @transform_12(%arg0: i32) -> (i32, i32) {
    %c0_i32 = arith.constant 0 : i32
    %c0_i32_0 = arith.constant 0 : i32
    %c0_i32_1 = arith.constant 0 : i32
    return %c0_i32, %c0_i32_0 : i32, i32
  }
  func.func @transform_13(%arg0: i32) -> (i32, i32) {
    %c0_i32 = arith.constant 0 : i32
    %c0_i32_0 = arith.constant 0 : i32
    %c0_i32_1 = arith.constant 0 : i32
    return %c0_i32, %c0_i32_0 : i32, i32
  }
  func.func @transform_14(%arg0: i32) -> (i32, i32) {
    %c0_i32 = arith.constant 0 : i32
    %c0_i32_0 = arith.constant 0 : i32
    %c0_i32_1 = arith.constant 0 : i32
    return %c0_i32, %c0_i32_0 : i32, i32
  }
  func.func @transform_15(%arg0: i32) -> (i32, i32) {
    %c0_i32 = arith.constant 0 : i32
    %c0_i32_0 = arith.constant 0 : i32
    %c0_i32_1 = arith.constant 0 : i32
    return %c0_i32, %c0_i32_0 : i32, i32
  }
  func.func @transform_16(%arg0: i32) -> (i32, i32) {
    %c0_i32 = arith.constant 0 : i32
    %c0_i32_0 = arith.constant 0 : i32
    %c0_i32_1 = arith.constant 0 : i32
    return %c0_i32, %c0_i32_0 : i32, i32
  }
  func.func @transform_17(%arg0: i32) -> (i32, i32) {
    %c0_i32 = arith.constant 0 : i32
    %c0_i32_0 = arith.constant 0 : i32
    %c0_i32_1 = arith.constant 0 : i32
    return %c0_i32, %c0_i32_0 : i32, i32
  }
  func.func @transform_18(%arg0: i32) -> (i32, i32) {
    %c0_i32 = arith.constant 0 : i32
    %c0_i32_0 = arith.constant 0 : i32
    %c0_i32_1 = arith.constant 0 : i32
    return %c0_i32, %c0_i32_0 : i32, i32
  }
  func.func @transform_19(%arg0: i32) -> (i32, i32) {
    %c0_i32 = arith.constant 0 : i32
    %c0_i32_0 = arith.constant 0 : i32
    return %arg0, %c0_i32 : i32, i32
  }
}

module attributes {stable_mosaic.version = 11 : i64} {
  func.func @kernel(%arg0: i32, %arg1: memref<8x32xf32, #tpu.memory_space<vmem>>, %arg2: memref<32x192xbf16, #tpu.memory_space<vmem>>, %arg3: memref<1x192xf32, #tpu.memory_space<vmem>>, %arg4: memref<1x192xf32, #tpu.memory_space<vmem>>, %arg5: memref<1x192xf32, #tpu.memory_space<vmem>>, %arg6: memref<192x64xbf16, #tpu.memory_space<vmem>>, %arg7: memref<1x64xf32, #tpu.memory_space<vmem>>, %arg8: memref<64x384xbf16, #tpu.memory_space<vmem>>, %arg9: memref<1x384xf32, #tpu.memory_space<vmem>>, %arg10: memref<1x384xf32, #tpu.memory_space<vmem>>, %arg11: memref<1x384xf32, #tpu.memory_space<vmem>>, %arg12: memref<384x64xbf16, #tpu.memory_space<vmem>>, %arg13: memref<1x64xf32, #tpu.memory_space<vmem>>, %arg14: memref<64x384xbf16, #tpu.memory_space<vmem>>, %arg15: memref<1x384xf32, #tpu.memory_space<vmem>>, %arg16: memref<1x384xf32, #tpu.memory_space<vmem>>, %arg17: memref<1x384xf32, #tpu.memory_space<vmem>>, %arg18: memref<384x64xbf16, #tpu.memory_space<vmem>>, %arg19: memref<1x64xf32, #tpu.memory_space<vmem>>, %arg20: memref<64x384xbf16, #tpu.memory_space<vmem>>, %arg21: memref<1x384xf32, #tpu.memory_space<vmem>>, %arg22: memref<1x384xf32, #tpu.memory_space<vmem>>, %arg23: memref<1x384xf32, #tpu.memory_space<vmem>>, %arg24: memref<384x64xbf16, #tpu.memory_space<vmem>>, %arg25: memref<1x64xf32, #tpu.memory_space<vmem>>, %arg26: memref<8x64xf32, #tpu.memory_space<vmem>>) attributes {dimension_semantics = [#tpu.dimension_semantics<parallel>], iteration_bounds = array<i64: 1>, scalar_prefetch = 0 : i64, scratch_operands = 0 : i64, tpu.core_type = #tpu.core_type<tc>, window_params = [{transform_indices = @transform_0, window_bounds = array<i64: 8, 32>}, {pipeline_mode = #tpu.pipeline_mode<synchronous>, transform_indices = @transform_1, window_bounds = array<i64: 32, 192>}, {pipeline_mode = #tpu.pipeline_mode<synchronous>, transform_indices = @transform_2, window_bounds = array<i64: 1, 192>}, {pipeline_mode = #tpu.pipeline_mode<synchronous>, transform_indices = @transform_3, window_bounds = array<i64: 1, 192>}, {pipeline_mode = #tpu.pipeline_mode<synchronous>, transform_indices = @transform_4, window_bounds = array<i64: 1, 192>}, {pipeline_mode = #tpu.pipeline_mode<synchronous>, transform_indices = @transform_5, window_bounds = array<i64: 192, 64>}, {pipeline_mode = #tpu.pipeline_mode<synchronous>, transform_indices = @transform_6, window_bounds = array<i64: 1, 64>}, {pipeline_mode = #tpu.pipeline_mode<synchronous>, transform_indices = @transform_7, window_bounds = array<i64: 64, 384>}, {pipeline_mode = #tpu.pipeline_mode<synchronous>, transform_indices = @transform_8, window_bounds = array<i64: 1, 384>}, {pipeline_mode = #tpu.pipeline_mode<synchronous>, transform_indices = @transform_9, window_bounds = array<i64: 1, 384>}, {pipeline_mode = #tpu.pipeline_mode<synchronous>, transform_indices = @transform_10, window_bounds = array<i64: 1, 384>}, {pipeline_mode = #tpu.pipeline_mode<synchronous>, transform_indices = @transform_11, window_bounds = array<i64: 384, 64>}, {pipeline_mode = #tpu.pipeline_mode<synchronous>, transform_indices = @transform_12, window_bounds = array<i64: 1, 64>}, {pipeline_mode = #tpu.pipeline_mode<synchronous>, transform_indices = @transform_13, window_bounds = array<i64: 64, 384>}, {pipeline_mode = #tpu.pipeline_mode<synchronous>, transform_indices = @transform_14, window_bounds = array<i64: 1, 384>}, {pipeline_mode = #tpu.pipeline_mode<synchronous>, transform_indices = @transform_15, window_bounds = array<i64: 1, 384>}, {pipeline_mode = #tpu.pipeline_mode<synchronous>, transform_indices = @transform_16, window_bounds = array<i64: 1, 384>}, {pipeline_mode = #tpu.pipeline_mode<synchronous>, transform_indices = @transform_17, window_bounds = array<i64: 384, 64>}, {pipeline_mode = #tpu.pipeline_mode<synchronous>, transform_indices = @transform_18, window_bounds = array<i64: 1, 64>}, {pipeline_mode = #tpu.pipeline_mode<synchronous>, transform_indices = @transform_19, window_bounds = array<i64: 64, 384>}, {pipeline_mode = #tpu.pipeline_mode<synchronous>, transform_indices = @transform_20, window_bounds = array<i64: 1, 384>}, {pipeline_mode = #tpu.pipeline_mode<synchronous>, transform_indices = @transform_21, window_bounds = array<i64: 1, 384>}, {pipeline_mode = #tpu.pipeline_mode<synchronous>, transform_indices = @transform_22, window_bounds = array<i64: 1, 384>}, {pipeline_mode = #tpu.pipeline_mode<synchronous>, transform_indices = @transform_23, window_bounds = array<i64: 384, 64>}, {pipeline_mode = #tpu.pipeline_mode<synchronous>, transform_indices = @transform_24, window_bounds = array<i64: 1, 64>}, {transform_indices = @transform_25, window_bounds = array<i64: 8, 64>}]} {
    %c0 = arith.constant 0 : index
    %c0_0 = arith.constant 0 : index
    %0 = vector.load %arg1[%c0, %c0_0] : memref<8x32xf32, #tpu.memory_space<vmem>>, vector<8x32xf32>
    %c0_1 = arith.constant 0 : index
    %c0_2 = arith.constant 0 : index
    %1 = vector.load %arg2[%c0_1, %c0_2] : memref<32x192xbf16, #tpu.memory_space<vmem>>, vector<32x192xbf16>
    %c0_3 = arith.constant 0 : index
    %c0_4 = arith.constant 0 : index
    %2 = vector.load %arg3[%c0_3, %c0_4] : memref<1x192xf32, #tpu.memory_space<vmem>>, vector<1x192xf32>
    %3 = arith.truncf %0 : vector<8x32xf32> to vector<8x32xbf16>
    %cst = arith.constant dense<0.000000e+00> : vector<8x192xf32>
    %4 = tpu.matmul %3, %1, %cst {dimension_numbers = #tpu.dot_dimension_numbers<[1], [0], [0], [1], [0, 0, 1, 1], [], []>} : vector<8x32xbf16>, vector<32x192xbf16>, vector<8x192xf32> -> vector<8x192xf32>
    %5 = vector.broadcast %2 : vector<1x192xf32> to vector<8x192xf32>
    %6 = arith.addf %4, %5 : vector<8x192xf32>
    %cst_5 = arith.constant 0.000000e+00 : f32
    %cst_6 = arith.constant 6.000000e+00 : f32
    %7 = vector.broadcast %cst_5 : f32 to vector<8x192xf32>
    %8 = arith.maximumf %7, %6 : vector<8x192xf32>
    %9 = vector.broadcast %cst_6 : f32 to vector<8x192xf32>
    %10 = arith.minimumf %9, %8 : vector<8x192xf32>
    %c0_7 = arith.constant 0 : index
    %c0_8 = arith.constant 0 : index
    %11 = vector.load %arg4[%c0_7, %c0_8] : memref<1x192xf32, #tpu.memory_space<vmem>>, vector<1x192xf32>
    %c0_9 = arith.constant 0 : index
    %c0_10 = arith.constant 0 : index
    %12 = vector.load %arg5[%c0_9, %c0_10] : memref<1x192xf32, #tpu.memory_space<vmem>>, vector<1x192xf32>
    %13 = vector.broadcast %11 : vector<1x192xf32> to vector<8x192xf32>
    %14 = arith.mulf %10, %13 : vector<8x192xf32>
    %15 = vector.broadcast %12 : vector<1x192xf32> to vector<8x192xf32>
    %16 = arith.addf %14, %15 : vector<8x192xf32>
    %cst_11 = arith.constant 0.000000e+00 : f32
    %cst_12 = arith.constant 6.000000e+00 : f32
    %17 = vector.broadcast %cst_11 : f32 to vector<8x192xf32>
    %18 = arith.maximumf %17, %16 : vector<8x192xf32>
    %19 = vector.broadcast %cst_12 : f32 to vector<8x192xf32>
    %20 = arith.minimumf %19, %18 : vector<8x192xf32>
    %c0_13 = arith.constant 0 : index
    %c0_14 = arith.constant 0 : index
    %21 = vector.load %arg6[%c0_13, %c0_14] : memref<192x64xbf16, #tpu.memory_space<vmem>>, vector<192x64xbf16>
    %c0_15 = arith.constant 0 : index
    %c0_16 = arith.constant 0 : index
    %22 = vector.load %arg7[%c0_15, %c0_16] : memref<1x64xf32, #tpu.memory_space<vmem>>, vector<1x64xf32>
    %23 = arith.truncf %20 : vector<8x192xf32> to vector<8x192xbf16>
    %cst_17 = arith.constant dense<0.000000e+00> : vector<8x64xf32>
    %24 = tpu.matmul %23, %21, %cst_17 {dimension_numbers = #tpu.dot_dimension_numbers<[1], [0], [0], [1], [0, 0, 1, 1], [], []>} : vector<8x192xbf16>, vector<192x64xbf16>, vector<8x64xf32> -> vector<8x64xf32>
    %25 = vector.broadcast %22 : vector<1x64xf32> to vector<8x64xf32>
    %26 = arith.addf %24, %25 : vector<8x64xf32>
    %c0_18 = arith.constant 0 : index
    %c0_19 = arith.constant 0 : index
    %27 = vector.load %arg8[%c0_18, %c0_19] : memref<64x384xbf16, #tpu.memory_space<vmem>>, vector<64x384xbf16>
    %c0_20 = arith.constant 0 : index
    %c0_21 = arith.constant 0 : index
    %28 = vector.load %arg9[%c0_20, %c0_21] : memref<1x384xf32, #tpu.memory_space<vmem>>, vector<1x384xf32>
    %29 = arith.truncf %26 : vector<8x64xf32> to vector<8x64xbf16>
    %cst_22 = arith.constant dense<0.000000e+00> : vector<8x384xf32>
    %30 = tpu.matmul %29, %27, %cst_22 {dimension_numbers = #tpu.dot_dimension_numbers<[1], [0], [0], [1], [0, 0, 1, 1], [], []>} : vector<8x64xbf16>, vector<64x384xbf16>, vector<8x384xf32> -> vector<8x384xf32>
    %31 = vector.broadcast %28 : vector<1x384xf32> to vector<8x384xf32>
    %32 = arith.addf %30, %31 : vector<8x384xf32>
    %cst_23 = arith.constant 0.000000e+00 : f32
    %cst_24 = arith.constant 6.000000e+00 : f32
    %33 = vector.broadcast %cst_23 : f32 to vector<8x384xf32>
    %34 = arith.maximumf %33, %32 : vector<8x384xf32>
    %35 = vector.broadcast %cst_24 : f32 to vector<8x384xf32>
    %36 = arith.minimumf %35, %34 : vector<8x384xf32>
    %c0_25 = arith.constant 0 : index
    %c0_26 = arith.constant 0 : index
    %37 = vector.load %arg10[%c0_25, %c0_26] : memref<1x384xf32, #tpu.memory_space<vmem>>, vector<1x384xf32>
    %c0_27 = arith.constant 0 : index
    %c0_28 = arith.constant 0 : index
    %38 = vector.load %arg11[%c0_27, %c0_28] : memref<1x384xf32, #tpu.memory_space<vmem>>, vector<1x384xf32>
    %39 = vector.broadcast %37 : vector<1x384xf32> to vector<8x384xf32>
    %40 = arith.mulf %36, %39 : vector<8x384xf32>
    %41 = vector.broadcast %38 : vector<1x384xf32> to vector<8x384xf32>
    %42 = arith.addf %40, %41 : vector<8x384xf32>
    %cst_29 = arith.constant 0.000000e+00 : f32
    %cst_30 = arith.constant 6.000000e+00 : f32
    %43 = vector.broadcast %cst_29 : f32 to vector<8x384xf32>
    %44 = arith.maximumf %43, %42 : vector<8x384xf32>
    %45 = vector.broadcast %cst_30 : f32 to vector<8x384xf32>
    %46 = arith.minimumf %45, %44 : vector<8x384xf32>
    %c0_31 = arith.constant 0 : index
    %c0_32 = arith.constant 0 : index
    %47 = vector.load %arg12[%c0_31, %c0_32] : memref<384x64xbf16, #tpu.memory_space<vmem>>, vector<384x64xbf16>
    %c0_33 = arith.constant 0 : index
    %c0_34 = arith.constant 0 : index
    %48 = vector.load %arg13[%c0_33, %c0_34] : memref<1x64xf32, #tpu.memory_space<vmem>>, vector<1x64xf32>
    %49 = arith.truncf %46 : vector<8x384xf32> to vector<8x384xbf16>
    %cst_35 = arith.constant dense<0.000000e+00> : vector<8x64xf32>
    %50 = tpu.matmul %49, %47, %cst_35 {dimension_numbers = #tpu.dot_dimension_numbers<[1], [0], [0], [1], [0, 0, 1, 1], [], []>} : vector<8x384xbf16>, vector<384x64xbf16>, vector<8x64xf32> -> vector<8x64xf32>
    %51 = vector.broadcast %48 : vector<1x64xf32> to vector<8x64xf32>
    %52 = arith.addf %50, %51 : vector<8x64xf32>
    %53 = arith.addf %52, %26 : vector<8x64xf32>
    %c0_36 = arith.constant 0 : index
    %c0_37 = arith.constant 0 : index
    %54 = vector.load %arg14[%c0_36, %c0_37] : memref<64x384xbf16, #tpu.memory_space<vmem>>, vector<64x384xbf16>
    %c0_38 = arith.constant 0 : index
    %c0_39 = arith.constant 0 : index
    %55 = vector.load %arg15[%c0_38, %c0_39] : memref<1x384xf32, #tpu.memory_space<vmem>>, vector<1x384xf32>
    %56 = arith.truncf %53 : vector<8x64xf32> to vector<8x64xbf16>
    %cst_40 = arith.constant dense<0.000000e+00> : vector<8x384xf32>
    %57 = tpu.matmul %56, %54, %cst_40 {dimension_numbers = #tpu.dot_dimension_numbers<[1], [0], [0], [1], [0, 0, 1, 1], [], []>} : vector<8x64xbf16>, vector<64x384xbf16>, vector<8x384xf32> -> vector<8x384xf32>
    %58 = vector.broadcast %55 : vector<1x384xf32> to vector<8x384xf32>
    %59 = arith.addf %57, %58 : vector<8x384xf32>
    %cst_41 = arith.constant 0.000000e+00 : f32
    %cst_42 = arith.constant 6.000000e+00 : f32
    %60 = vector.broadcast %cst_41 : f32 to vector<8x384xf32>
    %61 = arith.maximumf %60, %59 : vector<8x384xf32>
    %62 = vector.broadcast %cst_42 : f32 to vector<8x384xf32>
    %63 = arith.minimumf %62, %61 : vector<8x384xf32>
    %c0_43 = arith.constant 0 : index
    %c0_44 = arith.constant 0 : index
    %64 = vector.load %arg16[%c0_43, %c0_44] : memref<1x384xf32, #tpu.memory_space<vmem>>, vector<1x384xf32>
    %c0_45 = arith.constant 0 : index
    %c0_46 = arith.constant 0 : index
    %65 = vector.load %arg17[%c0_45, %c0_46] : memref<1x384xf32, #tpu.memory_space<vmem>>, vector<1x384xf32>
    %66 = vector.broadcast %64 : vector<1x384xf32> to vector<8x384xf32>
    %67 = arith.mulf %63, %66 : vector<8x384xf32>
    %68 = vector.broadcast %65 : vector<1x384xf32> to vector<8x384xf32>
    %69 = arith.addf %67, %68 : vector<8x384xf32>
    %cst_47 = arith.constant 0.000000e+00 : f32
    %cst_48 = arith.constant 6.000000e+00 : f32
    %70 = vector.broadcast %cst_47 : f32 to vector<8x384xf32>
    %71 = arith.maximumf %70, %69 : vector<8x384xf32>
    %72 = vector.broadcast %cst_48 : f32 to vector<8x384xf32>
    %73 = arith.minimumf %72, %71 : vector<8x384xf32>
    %c0_49 = arith.constant 0 : index
    %c0_50 = arith.constant 0 : index
    %74 = vector.load %arg18[%c0_49, %c0_50] : memref<384x64xbf16, #tpu.memory_space<vmem>>, vector<384x64xbf16>
    %c0_51 = arith.constant 0 : index
    %c0_52 = arith.constant 0 : index
    %75 = vector.load %arg19[%c0_51, %c0_52] : memref<1x64xf32, #tpu.memory_space<vmem>>, vector<1x64xf32>
    %76 = arith.truncf %73 : vector<8x384xf32> to vector<8x384xbf16>
    %cst_53 = arith.constant dense<0.000000e+00> : vector<8x64xf32>
    %77 = tpu.matmul %76, %74, %cst_53 {dimension_numbers = #tpu.dot_dimension_numbers<[1], [0], [0], [1], [0, 0, 1, 1], [], []>} : vector<8x384xbf16>, vector<384x64xbf16>, vector<8x64xf32> -> vector<8x64xf32>
    %78 = vector.broadcast %75 : vector<1x64xf32> to vector<8x64xf32>
    %79 = arith.addf %77, %78 : vector<8x64xf32>
    %80 = arith.addf %79, %53 : vector<8x64xf32>
    %c0_54 = arith.constant 0 : index
    %c0_55 = arith.constant 0 : index
    %81 = vector.load %arg20[%c0_54, %c0_55] : memref<64x384xbf16, #tpu.memory_space<vmem>>, vector<64x384xbf16>
    %c0_56 = arith.constant 0 : index
    %c0_57 = arith.constant 0 : index
    %82 = vector.load %arg21[%c0_56, %c0_57] : memref<1x384xf32, #tpu.memory_space<vmem>>, vector<1x384xf32>
    %83 = arith.truncf %80 : vector<8x64xf32> to vector<8x64xbf16>
    %cst_58 = arith.constant dense<0.000000e+00> : vector<8x384xf32>
    %84 = tpu.matmul %83, %81, %cst_58 {dimension_numbers = #tpu.dot_dimension_numbers<[1], [0], [0], [1], [0, 0, 1, 1], [], []>} : vector<8x64xbf16>, vector<64x384xbf16>, vector<8x384xf32> -> vector<8x384xf32>
    %85 = vector.broadcast %82 : vector<1x384xf32> to vector<8x384xf32>
    %86 = arith.addf %84, %85 : vector<8x384xf32>
    %cst_59 = arith.constant 0.000000e+00 : f32
    %cst_60 = arith.constant 6.000000e+00 : f32
    %87 = vector.broadcast %cst_59 : f32 to vector<8x384xf32>
    %88 = arith.maximumf %87, %86 : vector<8x384xf32>
    %89 = vector.broadcast %cst_60 : f32 to vector<8x384xf32>
    %90 = arith.minimumf %89, %88 : vector<8x384xf32>
    %c0_61 = arith.constant 0 : index
    %c0_62 = arith.constant 0 : index
    %91 = vector.load %arg22[%c0_61, %c0_62] : memref<1x384xf32, #tpu.memory_space<vmem>>, vector<1x384xf32>
    %c0_63 = arith.constant 0 : index
    %c0_64 = arith.constant 0 : index
    %92 = vector.load %arg23[%c0_63, %c0_64] : memref<1x384xf32, #tpu.memory_space<vmem>>, vector<1x384xf32>
    %93 = vector.broadcast %91 : vector<1x384xf32> to vector<8x384xf32>
    %94 = arith.mulf %90, %93 : vector<8x384xf32>
    %95 = vector.broadcast %92 : vector<1x384xf32> to vector<8x384xf32>
    %96 = arith.addf %94, %95 : vector<8x384xf32>
    %cst_65 = arith.constant 0.000000e+00 : f32
    %cst_66 = arith.constant 6.000000e+00 : f32
    %97 = vector.broadcast %cst_65 : f32 to vector<8x384xf32>
    %98 = arith.maximumf %97, %96 : vector<8x384xf32>
    %99 = vector.broadcast %cst_66 : f32 to vector<8x384xf32>
    %100 = arith.minimumf %99, %98 : vector<8x384xf32>
    %c0_67 = arith.constant 0 : index
    %c0_68 = arith.constant 0 : index
    %101 = vector.load %arg24[%c0_67, %c0_68] : memref<384x64xbf16, #tpu.memory_space<vmem>>, vector<384x64xbf16>
    %c0_69 = arith.constant 0 : index
    %c0_70 = arith.constant 0 : index
    %102 = vector.load %arg25[%c0_69, %c0_70] : memref<1x64xf32, #tpu.memory_space<vmem>>, vector<1x64xf32>
    %103 = arith.truncf %100 : vector<8x384xf32> to vector<8x384xbf16>
    %cst_71 = arith.constant dense<0.000000e+00> : vector<8x64xf32>
    %104 = tpu.matmul %103, %101, %cst_71 {dimension_numbers = #tpu.dot_dimension_numbers<[1], [0], [0], [1], [0, 0, 1, 1], [], []>} : vector<8x384xbf16>, vector<384x64xbf16>, vector<8x64xf32> -> vector<8x64xf32>
    %105 = vector.broadcast %102 : vector<1x64xf32> to vector<8x64xf32>
    %106 = arith.addf %104, %105 : vector<8x64xf32>
    %107 = arith.addf %106, %80 : vector<8x64xf32>
    %c0_72 = arith.constant 0 : index
    %c0_73 = arith.constant 0 : index
    %108 = vector.load %arg26[%c0_72, %c0_73] : memref<8x64xf32, #tpu.memory_space<vmem>>, vector<8x64xf32>
    tpu.vector_store %arg26[%c0_72, %c0_73], %107 {strides = array<i32>} : memref<8x64xf32, #tpu.memory_space<vmem>>, vector<8x64xf32>,
    return
  }
  func.func @transform_0(%arg0: i32) -> (i32, i32) {
    %c0_i32 = arith.constant 0 : i32
    %c0_i32_0 = arith.constant 0 : i32
    return %arg0, %c0_i32 : i32, i32
  }
  func.func @transform_1(%arg0: i32) -> (i32, i32) {
    %c0_i32 = arith.constant 0 : i32
    %c0_i32_0 = arith.constant 0 : i32
    %c0_i32_1 = arith.constant 0 : i32
    return %c0_i32, %c0_i32_0 : i32, i32
  }
  func.func @transform_2(%arg0: i32) -> (i32, i32) {
    %c0_i32 = arith.constant 0 : i32
    %c0_i32_0 = arith.constant 0 : i32
    %c0_i32_1 = arith.constant 0 : i32
    return %c0_i32, %c0_i32_0 : i32, i32
  }
  func.func @transform_3(%arg0: i32) -> (i32, i32) {
    %c0_i32 = arith.constant 0 : i32
    %c0_i32_0 = arith.constant 0 : i32
    %c0_i32_1 = arith.constant 0 : i32
    return %c0_i32, %c0_i32_0 : i32, i32
  }
  func.func @transform_4(%arg0: i32) -> (i32, i32) {
    %c0_i32 = arith.constant 0 : i32
    %c0_i32_0 = arith.constant 0 : i32
    %c0_i32_1 = arith.constant 0 : i32
    return %c0_i32, %c0_i32_0 : i32, i32
  }
  func.func @transform_5(%arg0: i32) -> (i32, i32) {
    %c0_i32 = arith.constant 0 : i32
    %c0_i32_0 = arith.constant 0 : i32
    %c0_i32_1 = arith.constant 0 : i32
    return %c0_i32, %c0_i32_0 : i32, i32
  }
  func.func @transform_6(%arg0: i32) -> (i32, i32) {
    %c0_i32 = arith.constant 0 : i32
    %c0_i32_0 = arith.constant 0 : i32
    %c0_i32_1 = arith.constant 0 : i32
    return %c0_i32, %c0_i32_0 : i32, i32
  }
  func.func @transform_7(%arg0: i32) -> (i32, i32) {
    %c0_i32 = arith.constant 0 : i32
    %c0_i32_0 = arith.constant 0 : i32
    %c0_i32_1 = arith.constant 0 : i32
    return %c0_i32, %c0_i32_0 : i32, i32
  }
  func.func @transform_8(%arg0: i32) -> (i32, i32) {
    %c0_i32 = arith.constant 0 : i32
    %c0_i32_0 = arith.constant 0 : i32
    %c0_i32_1 = arith.constant 0 : i32
    return %c0_i32, %c0_i32_0 : i32, i32
  }
  func.func @transform_9(%arg0: i32) -> (i32, i32) {
    %c0_i32 = arith.constant 0 : i32
    %c0_i32_0 = arith.constant 0 : i32
    %c0_i32_1 = arith.constant 0 : i32
    return %c0_i32, %c0_i32_0 : i32, i32
  }
  func.func @transform_10(%arg0: i32) -> (i32, i32) {
    %c0_i32 = arith.constant 0 : i32
    %c0_i32_0 = arith.constant 0 : i32
    %c0_i32_1 = arith.constant 0 : i32
    return %c0_i32, %c0_i32_0 : i32, i32
  }
  func.func @transform_11(%arg0: i32) -> (i32, i32) {
    %c0_i32 = arith.constant 0 : i32
    %c0_i32_0 = arith.constant 0 : i32
    %c0_i32_1 = arith.constant 0 : i32
    return %c0_i32, %c0_i32_0 : i32, i32
  }
  func.func @transform_12(%arg0: i32) -> (i32, i32) {
    %c0_i32 = arith.constant 0 : i32
    %c0_i32_0 = arith.constant 0 : i32
    %c0_i32_1 = arith.constant 0 : i32
    return %c0_i32, %c0_i32_0 : i32, i32
  }
  func.func @transform_13(%arg0: i32) -> (i32, i32) {
    %c0_i32 = arith.constant 0 : i32
    %c0_i32_0 = arith.constant 0 : i32
    %c0_i32_1 = arith.constant 0 : i32
    return %c0_i32, %c0_i32_0 : i32, i32
  }
  func.func @transform_14(%arg0: i32) -> (i32, i32) {
    %c0_i32 = arith.constant 0 : i32
    %c0_i32_0 = arith.constant 0 : i32
    %c0_i32_1 = arith.constant 0 : i32
    return %c0_i32, %c0_i32_0 : i32, i32
  }
  func.func @transform_15(%arg0: i32) -> (i32, i32) {
    %c0_i32 = arith.constant 0 : i32
    %c0_i32_0 = arith.constant 0 : i32
    %c0_i32_1 = arith.constant 0 : i32
    return %c0_i32, %c0_i32_0 : i32, i32
  }
  func.func @transform_16(%arg0: i32) -> (i32, i32) {
    %c0_i32 = arith.constant 0 : i32
    %c0_i32_0 = arith.constant 0 : i32
    %c0_i32_1 = arith.constant 0 : i32
    return %c0_i32, %c0_i32_0 : i32, i32
  }
  func.func @transform_17(%arg0: i32) -> (i32, i32) {
    %c0_i32 = arith.constant 0 : i32
    %c0_i32_0 = arith.constant 0 : i32
    %c0_i32_1 = arith.constant 0 : i32
    return %c0_i32, %c0_i32_0 : i32, i32
  }
  func.func @transform_18(%arg0: i32) -> (i32, i32) {
    %c0_i32 = arith.constant 0 : i32
    %c0_i32_0 = arith.constant 0 : i32
    %c0_i32_1 = arith.constant 0 : i32
    return %c0_i32, %c0_i32_0 : i32, i32
  }
  func.func @transform_19(%arg0: i32) -> (i32, i32) {
    %c0_i32 = arith.constant 0 : i32
    %c0_i32_0 = arith.constant 0 : i32
    %c0_i32_1 = arith.constant 0 : i32
    return %c0_i32, %c0_i32_0 : i32, i32
  }
  func.func @transform_20(%arg0: i32) -> (i32, i32) {
    %c0_i32 = arith.constant 0 : i32
    %c0_i32_0 = arith.constant 0 : i32
    %c0_i32_1 = arith.constant 0 : i32
    return %c0_i32, %c0_i32_0 : i32, i32
  }
  func.func @transform_21(%arg0: i32) -> (i32, i32) {
    %c0_i32 = arith.constant 0 : i32
    %c0_i32_0 = arith.constant 0 : i32
    %c0_i32_1 = arith.constant 0 : i32
    return %c0_i32, %c0_i32_0 : i32, i32
  }
  func.func @transform_22(%arg0: i32) -> (i32, i32) {
    %c0_i32 = arith.constant 0 : i32
    %c0_i32_0 = arith.constant 0 : i32
    %c0_i32_1 = arith.constant 0 : i32
    return %c0_i32, %c0_i32_0 : i32, i32
  }
  func.func @transform_23(%arg0: i32) -> (i32, i32) {
    %c0_i32 = arith.constant 0 : i32
    %c0_i32_0 = arith.constant 0 : i32
    %c0_i32_1 = arith.constant 0 : i32
    return %c0_i32, %c0_i32_0 : i32, i32
  }
  func.func @transform_24(%arg0: i32) -> (i32, i32) {
    %c0_i32 = arith.constant 0 : i32
    %c0_i32_0 = arith.constant 0 : i32
    %c0_i32_1 = arith.constant 0 : i32
    return %c0_i32, %c0_i32_0 : i32, i32
  }
  func.func @transform_25(%arg0: i32) -> (i32, i32) {
    %c0_i32 = arith.constant 0 : i32
    %c0_i32_0 = arith.constant 0 : i32
    return %arg0, %c0_i32 : i32, i32
  }
}

module attributes {stable_mosaic.version = 11 : i64} {
  func.func @kernel(%arg0: i32, %arg1: memref<8x64xf32, #tpu.memory_space<vmem>>, %arg2: memref<8x128xf32, #tpu.memory_space<vmem>>, %arg3: memref<64x128xbf16, #tpu.memory_space<vmem>>, %arg4: memref<128x128xbf16, #tpu.memory_space<vmem>>, %arg5: memref<1x128xf32, #tpu.memory_space<vmem>>, %arg6: memref<8x128xf32, #tpu.memory_space<vmem>>) attributes {dimension_semantics = [#tpu.dimension_semantics<parallel>], iteration_bounds = array<i64: 1>, scalar_prefetch = 0 : i64, scratch_operands = 0 : i64, tpu.core_type = #tpu.core_type<tc>, window_params = [{transform_indices = @transform_0, window_bounds = array<i64: 8, 64>}, {transform_indices = @transform_1, window_bounds = array<i64: 8, 128>}, {pipeline_mode = #tpu.pipeline_mode<synchronous>, transform_indices = @transform_2, window_bounds = array<i64: 64, 128>}, {pipeline_mode = #tpu.pipeline_mode<synchronous>, transform_indices = @transform_3, window_bounds = array<i64: 128, 128>}, {pipeline_mode = #tpu.pipeline_mode<synchronous>, transform_indices = @transform_4, window_bounds = array<i64: 1, 128>}, {transform_indices = @transform_5, window_bounds = array<i64: 8, 128>}]} {
    %c0 = arith.constant 0 : index
    %c0_0 = arith.constant 0 : index
    %0 = vector.load %arg1[%c0, %c0_0] : memref<8x64xf32, #tpu.memory_space<vmem>>, vector<8x64xf32>
    %1 = arith.truncf %0 : vector<8x64xf32> to vector<8x64xbf16>
    %c0_1 = arith.constant 0 : index
    %c0_2 = arith.constant 0 : index
    %2 = vector.load %arg3[%c0_1, %c0_2] : memref<64x128xbf16, #tpu.memory_space<vmem>>, vector<64x128xbf16>
    %cst = arith.constant dense<0.000000e+00> : vector<8x128xf32>
    %3 = tpu.matmul %1, %2, %cst {dimension_numbers = #tpu.dot_dimension_numbers<[1], [0], [0], [1], [0, 0, 1, 1], [], []>} : vector<8x64xbf16>, vector<64x128xbf16>, vector<8x128xf32> -> vector<8x128xf32>
    %c0_3 = arith.constant 0 : index
    %c0_4 = arith.constant 0 : index
    %4 = vector.load %arg2[%c0_3, %c0_4] : memref<8x128xf32, #tpu.memory_space<vmem>>, vector<8x128xf32>
    %5 = arith.addf %3, %4 : vector<8x128xf32>
    %6 = arith.truncf %5 : vector<8x128xf32> to vector<8x128xbf16>
    %c0_5 = arith.constant 0 : index
    %c0_6 = arith.constant 0 : index
    %7 = vector.load %arg4[%c0_5, %c0_6] : memref<128x128xbf16, #tpu.memory_space<vmem>>, vector<128x128xbf16>
    %cst_7 = arith.constant dense<0.000000e+00> : vector<8x128xf32>
    %8 = tpu.matmul %6, %7, %cst_7 {dimension_numbers = #tpu.dot_dimension_numbers<[1], [0], [0], [1], [0, 0, 1, 1], [], []>} : vector<8x128xbf16>, vector<128x128xbf16>, vector<8x128xf32> -> vector<8x128xf32>
    %c0_8 = arith.constant 0 : index
    %c0_9 = arith.constant 0 : index
    %9 = vector.load %arg5[%c0_8, %c0_9] : memref<1x128xf32, #tpu.memory_space<vmem>>, vector<1x128xf32>
    %10 = vector.broadcast %9 : vector<1x128xf32> to vector<8x128xf32>
    %11 = arith.addf %8, %10 : vector<8x128xf32>
    %cst_10 = arith.constant 0.000000e+00 : f32
    %12 = vector.broadcast %cst_10 : f32 to vector<8x128xf32>
    %13 = arith.maximumf %11, %12 : vector<8x128xf32>
    %c0_11 = arith.constant 0 : index
    %c0_12 = arith.constant 0 : index
    %14 = vector.load %arg6[%c0_11, %c0_12] : memref<8x128xf32, #tpu.memory_space<vmem>>, vector<8x128xf32>
    tpu.vector_store %arg6[%c0_11, %c0_12], %13 {strides = array<i32>} : memref<8x128xf32, #tpu.memory_space<vmem>>, vector<8x128xf32>,
    return
  }
  func.func @transform_0(%arg0: i32) -> (i32, i32) {
    %c0_i32 = arith.constant 0 : i32
    %c0_i32_0 = arith.constant 0 : i32
    return %arg0, %c0_i32 : i32, i32
  }
  func.func @transform_1(%arg0: i32) -> (i32, i32) {
    %c0_i32 = arith.constant 0 : i32
    %c0_i32_0 = arith.constant 0 : i32
    return %arg0, %c0_i32 : i32, i32
  }
  func.func @transform_2(%arg0: i32) -> (i32, i32) {
    %c0_i32 = arith.constant 0 : i32
    %c0_i32_0 = arith.constant 0 : i32
    %c0_i32_1 = arith.constant 0 : i32
    return %c0_i32, %c0_i32_0 : i32, i32
  }
  func.func @transform_3(%arg0: i32) -> (i32, i32) {
    %c0_i32 = arith.constant 0 : i32
    %c0_i32_0 = arith.constant 0 : i32
    %c0_i32_1 = arith.constant 0 : i32
    return %c0_i32, %c0_i32_0 : i32, i32
  }
  func.func @transform_4(%arg0: i32) -> (i32, i32) {
    %c0_i32 = arith.constant 0 : i32
    %c0_i32_0 = arith.constant 0 : i32
    %c0_i32_1 = arith.constant 0 : i32
    return %c0_i32, %c0_i32_0 : i32, i32
  }
  func.func @transform_5(%arg0: i32) -> (i32, i32) {
    %c0_i32 = arith.constant 0 : i32
    %c0_i32_0 = arith.constant 0 : i32
    return %arg0, %c0_i32 : i32, i32
  }
}

module attributes {stable_mosaic.version = 11 : i64} {
  func.func @kernel(%arg0: i32, %arg1: memref<8x96xf32, #tpu.memory_space<vmem>>, %arg2: memref<96x576xbf16, #tpu.memory_space<vmem>>, %arg3: memref<1x576xf32, #tpu.memory_space<vmem>>, %arg4: memref<1x576xf32, #tpu.memory_space<vmem>>, %arg5: memref<1x576xf32, #tpu.memory_space<vmem>>, %arg6: memref<576x160xbf16, #tpu.memory_space<vmem>>, %arg7: memref<1x160xf32, #tpu.memory_space<vmem>>, %arg8: memref<160x960xbf16, #tpu.memory_space<vmem>>, %arg9: memref<1x960xf32, #tpu.memory_space<vmem>>, %arg10: memref<1x960xf32, #tpu.memory_space<vmem>>, %arg11: memref<1x960xf32, #tpu.memory_space<vmem>>, %arg12: memref<960x160xbf16, #tpu.memory_space<vmem>>, %arg13: memref<1x160xf32, #tpu.memory_space<vmem>>, %arg14: memref<160x128xbf16, #tpu.memory_space<vmem>>, %arg15: memref<8x160xf32, #tpu.memory_space<vmem>>, %arg16: memref<8x128xf32, #tpu.memory_space<vmem>>) attributes {dimension_semantics = [#tpu.dimension_semantics<parallel>], iteration_bounds = array<i64: 1>, scalar_prefetch = 0 : i64, scratch_operands = 0 : i64, tpu.core_type = #tpu.core_type<tc>, window_params = [{transform_indices = @transform_0, window_bounds = array<i64: 8, 96>}, {pipeline_mode = #tpu.pipeline_mode<synchronous>, transform_indices = @transform_1, window_bounds = array<i64: 96, 576>}, {pipeline_mode = #tpu.pipeline_mode<synchronous>, transform_indices = @transform_2, window_bounds = array<i64: 1, 576>}, {pipeline_mode = #tpu.pipeline_mode<synchronous>, transform_indices = @transform_3, window_bounds = array<i64: 1, 576>}, {pipeline_mode = #tpu.pipeline_mode<synchronous>, transform_indices = @transform_4, window_bounds = array<i64: 1, 576>}, {pipeline_mode = #tpu.pipeline_mode<synchronous>, transform_indices = @transform_5, window_bounds = array<i64: 576, 160>}, {pipeline_mode = #tpu.pipeline_mode<synchronous>, transform_indices = @transform_6, window_bounds = array<i64: 1, 160>}, {pipeline_mode = #tpu.pipeline_mode<synchronous>, transform_indices = @transform_7, window_bounds = array<i64: 160, 960>}, {pipeline_mode = #tpu.pipeline_mode<synchronous>, transform_indices = @transform_8, window_bounds = array<i64: 1, 960>}, {pipeline_mode = #tpu.pipeline_mode<synchronous>, transform_indices = @transform_9, window_bounds = array<i64: 1, 960>}, {pipeline_mode = #tpu.pipeline_mode<synchronous>, transform_indices = @transform_10, window_bounds = array<i64: 1, 960>}, {pipeline_mode = #tpu.pipeline_mode<synchronous>, transform_indices = @transform_11, window_bounds = array<i64: 960, 160>}, {pipeline_mode = #tpu.pipeline_mode<synchronous>, transform_indices = @transform_12, window_bounds = array<i64: 1, 160>}, {pipeline_mode = #tpu.pipeline_mode<synchronous>, transform_indices = @transform_13, window_bounds = array<i64: 160, 128>}, {transform_indices = @transform_14, window_bounds = array<i64: 8, 160>}, {transform_indices = @transform_15, window_bounds = array<i64: 8, 128>}]} {
    %c0 = arith.constant 0 : index
    %c0_0 = arith.constant 0 : index
    %0 = vector.load %arg1[%c0, %c0_0] : memref<8x96xf32, #tpu.memory_space<vmem>>, vector<8x96xf32>
    %c0_1 = arith.constant 0 : index
    %c0_2 = arith.constant 0 : index
    %1 = vector.load %arg2[%c0_1, %c0_2] : memref<96x576xbf16, #tpu.memory_space<vmem>>, vector<96x576xbf16>
    %c0_3 = arith.constant 0 : index
    %c0_4 = arith.constant 0 : index
    %2 = vector.load %arg3[%c0_3, %c0_4] : memref<1x576xf32, #tpu.memory_space<vmem>>, vector<1x576xf32>
    %3 = arith.truncf %0 : vector<8x96xf32> to vector<8x96xbf16>
    %cst = arith.constant dense<0.000000e+00> : vector<8x576xf32>
    %4 = tpu.matmul %3, %1, %cst {dimension_numbers = #tpu.dot_dimension_numbers<[1], [0], [0], [1], [0, 0, 1, 1], [], []>} : vector<8x96xbf16>, vector<96x576xbf16>, vector<8x576xf32> -> vector<8x576xf32>
    %5 = vector.broadcast %2 : vector<1x576xf32> to vector<8x576xf32>
    %6 = arith.addf %4, %5 : vector<8x576xf32>
    %cst_5 = arith.constant 0.000000e+00 : f32
    %cst_6 = arith.constant 6.000000e+00 : f32
    %7 = vector.broadcast %cst_5 : f32 to vector<8x576xf32>
    %8 = arith.maximumf %7, %6 : vector<8x576xf32>
    %9 = vector.broadcast %cst_6 : f32 to vector<8x576xf32>
    %10 = arith.minimumf %9, %8 : vector<8x576xf32>
    %c0_7 = arith.constant 0 : index
    %c0_8 = arith.constant 0 : index
    %11 = vector.load %arg4[%c0_7, %c0_8] : memref<1x576xf32, #tpu.memory_space<vmem>>, vector<1x576xf32>
    %c0_9 = arith.constant 0 : index
    %c0_10 = arith.constant 0 : index
    %12 = vector.load %arg5[%c0_9, %c0_10] : memref<1x576xf32, #tpu.memory_space<vmem>>, vector<1x576xf32>
    %13 = vector.broadcast %11 : vector<1x576xf32> to vector<8x576xf32>
    %14 = arith.mulf %10, %13 : vector<8x576xf32>
    %15 = vector.broadcast %12 : vector<1x576xf32> to vector<8x576xf32>
    %16 = arith.addf %14, %15 : vector<8x576xf32>
    %cst_11 = arith.constant 0.000000e+00 : f32
    %cst_12 = arith.constant 6.000000e+00 : f32
    %17 = vector.broadcast %cst_11 : f32 to vector<8x576xf32>
    %18 = arith.maximumf %17, %16 : vector<8x576xf32>
    %19 = vector.broadcast %cst_12 : f32 to vector<8x576xf32>
    %20 = arith.minimumf %19, %18 : vector<8x576xf32>
    %c0_13 = arith.constant 0 : index
    %c0_14 = arith.constant 0 : index
    %21 = vector.load %arg6[%c0_13, %c0_14] : memref<576x160xbf16, #tpu.memory_space<vmem>>, vector<576x160xbf16>
    %c0_15 = arith.constant 0 : index
    %c0_16 = arith.constant 0 : index
    %22 = vector.load %arg7[%c0_15, %c0_16] : memref<1x160xf32, #tpu.memory_space<vmem>>, vector<1x160xf32>
    %23 = arith.truncf %20 : vector<8x576xf32> to vector<8x576xbf16>
    %cst_17 = arith.constant dense<0.000000e+00> : vector<8x160xf32>
    %24 = tpu.matmul %23, %21, %cst_17 {dimension_numbers = #tpu.dot_dimension_numbers<[1], [0], [0], [1], [0, 0, 1, 1], [], []>} : vector<8x576xbf16>, vector<576x160xbf16>, vector<8x160xf32> -> vector<8x160xf32>
    %25 = vector.broadcast %22 : vector<1x160xf32> to vector<8x160xf32>
    %26 = arith.addf %24, %25 : vector<8x160xf32>
    %c0_18 = arith.constant 0 : index
    %c0_19 = arith.constant 0 : index
    %27 = vector.load %arg8[%c0_18, %c0_19] : memref<160x960xbf16, #tpu.memory_space<vmem>>, vector<160x960xbf16>
    %c0_20 = arith.constant 0 : index
    %c0_21 = arith.constant 0 : index
    %28 = vector.load %arg9[%c0_20, %c0_21] : memref<1x960xf32, #tpu.memory_space<vmem>>, vector<1x960xf32>
    %29 = arith.truncf %26 : vector<8x160xf32> to vector<8x160xbf16>
    %cst_22 = arith.constant dense<0.000000e+00> : vector<8x960xf32>
    %30 = tpu.matmul %29, %27, %cst_22 {dimension_numbers = #tpu.dot_dimension_numbers<[1], [0], [0], [1], [0, 0, 1, 1], [], []>} : vector<8x160xbf16>, vector<160x960xbf16>, vector<8x960xf32> -> vector<8x960xf32>
    %31 = vector.broadcast %28 : vector<1x960xf32> to vector<8x960xf32>
    %32 = arith.addf %30, %31 : vector<8x960xf32>
    %cst_23 = arith.constant 0.000000e+00 : f32
    %cst_24 = arith.constant 6.000000e+00 : f32
    %33 = vector.broadcast %cst_23 : f32 to vector<8x960xf32>
    %34 = arith.maximumf %33, %32 : vector<8x960xf32>
    %35 = vector.broadcast %cst_24 : f32 to vector<8x960xf32>
    %36 = arith.minimumf %35, %34 : vector<8x960xf32>
    %c0_25 = arith.constant 0 : index
    %c0_26 = arith.constant 0 : index
    %37 = vector.load %arg10[%c0_25, %c0_26] : memref<1x960xf32, #tpu.memory_space<vmem>>, vector<1x960xf32>
    %c0_27 = arith.constant 0 : index
    %c0_28 = arith.constant 0 : index
    %38 = vector.load %arg11[%c0_27, %c0_28] : memref<1x960xf32, #tpu.memory_space<vmem>>, vector<1x960xf32>
    %39 = vector.broadcast %37 : vector<1x960xf32> to vector<8x960xf32>
    %40 = arith.mulf %36, %39 : vector<8x960xf32>
    %41 = vector.broadcast %38 : vector<1x960xf32> to vector<8x960xf32>
    %42 = arith.addf %40, %41 : vector<8x960xf32>
    %cst_29 = arith.constant 0.000000e+00 : f32
    %cst_30 = arith.constant 6.000000e+00 : f32
    %43 = vector.broadcast %cst_29 : f32 to vector<8x960xf32>
    %44 = arith.maximumf %43, %42 : vector<8x960xf32>
    %45 = vector.broadcast %cst_30 : f32 to vector<8x960xf32>
    %46 = arith.minimumf %45, %44 : vector<8x960xf32>
    %c0_31 = arith.constant 0 : index
    %c0_32 = arith.constant 0 : index
    %47 = vector.load %arg12[%c0_31, %c0_32] : memref<960x160xbf16, #tpu.memory_space<vmem>>, vector<960x160xbf16>
    %c0_33 = arith.constant 0 : index
    %c0_34 = arith.constant 0 : index
    %48 = vector.load %arg13[%c0_33, %c0_34] : memref<1x160xf32, #tpu.memory_space<vmem>>, vector<1x160xf32>
    %49 = arith.truncf %46 : vector<8x960xf32> to vector<8x960xbf16>
    %cst_35 = arith.constant dense<0.000000e+00> : vector<8x160xf32>
    %50 = tpu.matmul %49, %47, %cst_35 {dimension_numbers = #tpu.dot_dimension_numbers<[1], [0], [0], [1], [0, 0, 1, 1], [], []>} : vector<8x960xbf16>, vector<960x160xbf16>, vector<8x160xf32> -> vector<8x160xf32>
    %51 = vector.broadcast %48 : vector<1x160xf32> to vector<8x160xf32>
    %52 = arith.addf %50, %51 : vector<8x160xf32>
    %53 = arith.addf %52, %26 : vector<8x160xf32>
    %c0_36 = arith.constant 0 : index
    %c0_37 = arith.constant 0 : index
    %54 = vector.load %arg14[%c0_36, %c0_37] : memref<160x128xbf16, #tpu.memory_space<vmem>>, vector<160x128xbf16>
    %55 = arith.truncf %53 : vector<8x160xf32> to vector<8x160xbf16>
    %cst_38 = arith.constant dense<0.000000e+00> : vector<8x128xf32>
    %56 = tpu.matmul %55, %54, %cst_38 {dimension_numbers = #tpu.dot_dimension_numbers<[1], [0], [0], [1], [0, 0, 1, 1], [], []>} : vector<8x160xbf16>, vector<160x128xbf16>, vector<8x128xf32> -> vector<8x128xf32>
    %c0_39 = arith.constant 0 : index
    %c0_40 = arith.constant 0 : index
    %57 = vector.load %arg16[%c0_39, %c0_40] : memref<8x128xf32, #tpu.memory_space<vmem>>, vector<8x128xf32>
    tpu.vector_store %arg16[%c0_39, %c0_40], %56 {strides = array<i32>} : memref<8x128xf32, #tpu.memory_space<vmem>>, vector<8x128xf32>,
    %c0_41 = arith.constant 0 : index
    %c0_42 = arith.constant 0 : index
    %58 = vector.load %arg15[%c0_41, %c0_42] : memref<8x160xf32, #tpu.memory_space<vmem>>, vector<8x160xf32>
    tpu.vector_store %arg15[%c0_41, %c0_42], %53 {strides = array<i32>} : memref<8x160xf32, #tpu.memory_space<vmem>>, vector<8x160xf32>,
    return
  }
  func.func @transform_0(%arg0: i32) -> (i32, i32) {
    %c0_i32 = arith.constant 0 : i32
    %c0_i32_0 = arith.constant 0 : i32
    return %arg0, %c0_i32 : i32, i32
  }
  func.func @transform_1(%arg0: i32) -> (i32, i32) {
    %c0_i32 = arith.constant 0 : i32
    %c0_i32_0 = arith.constant 0 : i32
    %c0_i32_1 = arith.constant 0 : i32
    return %c0_i32, %c0_i32_0 : i32, i32
  }
  func.func @transform_2(%arg0: i32) -> (i32, i32) {
    %c0_i32 = arith.constant 0 : i32
    %c0_i32_0 = arith.constant 0 : i32
    %c0_i32_1 = arith.constant 0 : i32
    return %c0_i32, %c0_i32_0 : i32, i32
  }
  func.func @transform_3(%arg0: i32) -> (i32, i32) {
    %c0_i32 = arith.constant 0 : i32
    %c0_i32_0 = arith.constant 0 : i32
    %c0_i32_1 = arith.constant 0 : i32
    return %c0_i32, %c0_i32_0 : i32, i32
  }
  func.func @transform_4(%arg0: i32) -> (i32, i32) {
    %c0_i32 = arith.constant 0 : i32
    %c0_i32_0 = arith.constant 0 : i32
    %c0_i32_1 = arith.constant 0 : i32
    return %c0_i32, %c0_i32_0 : i32, i32
  }
  func.func @transform_5(%arg0: i32) -> (i32, i32) {
    %c0_i32 = arith.constant 0 : i32
    %c0_i32_0 = arith.constant 0 : i32
    %c0_i32_1 = arith.constant 0 : i32
    return %c0_i32, %c0_i32_0 : i32, i32
  }
  func.func @transform_6(%arg0: i32) -> (i32, i32) {
    %c0_i32 = arith.constant 0 : i32
    %c0_i32_0 = arith.constant 0 : i32
    %c0_i32_1 = arith.constant 0 : i32
    return %c0_i32, %c0_i32_0 : i32, i32
  }
  func.func @transform_7(%arg0: i32) -> (i32, i32) {
    %c0_i32 = arith.constant 0 : i32
    %c0_i32_0 = arith.constant 0 : i32
    %c0_i32_1 = arith.constant 0 : i32
    return %c0_i32, %c0_i32_0 : i32, i32
  }
  func.func @transform_8(%arg0: i32) -> (i32, i32) {
    %c0_i32 = arith.constant 0 : i32
    %c0_i32_0 = arith.constant 0 : i32
    %c0_i32_1 = arith.constant 0 : i32
    return %c0_i32, %c0_i32_0 : i32, i32
  }
  func.func @transform_9(%arg0: i32) -> (i32, i32) {
    %c0_i32 = arith.constant 0 : i32
    %c0_i32_0 = arith.constant 0 : i32
    %c0_i32_1 = arith.constant 0 : i32
    return %c0_i32, %c0_i32_0 : i32, i32
  }
  func.func @transform_10(%arg0: i32) -> (i32, i32) {
    %c0_i32 = arith.constant 0 : i32
    %c0_i32_0 = arith.constant 0 : i32
    %c0_i32_1 = arith.constant 0 : i32
    return %c0_i32, %c0_i32_0 : i32, i32
  }
  func.func @transform_11(%arg0: i32) -> (i32, i32) {
    %c0_i32 = arith.constant 0 : i32
    %c0_i32_0 = arith.constant 0 : i32
    %c0_i32_1 = arith.constant 0 : i32
    return %c0_i32, %c0_i32_0 : i32, i32
  }
  func.func @transform_12(%arg0: i32) -> (i32, i32) {
    %c0_i32 = arith.constant 0 : i32
    %c0_i32_0 = arith.constant 0 : i32
    %c0_i32_1 = arith.constant 0 : i32
    return %c0_i32, %c0_i32_0 : i32, i32
  }
  func.func @transform_13(%arg0: i32) -> (i32, i32) {
    %c0_i32 = arith.constant 0 : i32
    %c0_i32_0 = arith.constant 0 : i32
    %c0_i32_1 = arith.constant 0 : i32
    return %c0_i32, %c0_i32_0 : i32, i32
  }
  func.func @transform_14(%arg0: i32) -> (i32, i32) {
    %c0_i32 = arith.constant 0 : i32
    %c0_i32_0 = arith.constant 0 : i32
    return %arg0, %c0_i32 : i32, i32
  }
  func.func @transform_15(%arg0: i32) -> (i32, i32) {
    %c0_i32 = arith.constant 0 : i32
    %c0_i32_0 = arith.constant 0 : i32
    return %arg0, %c0_i32 : i32, i32
  }
}

module attributes {stable_mosaic.version = 11 : i64} {
  func.func @kernel(%arg0: i32, %arg1: memref<32x32xf32, #tpu.memory_space<vmem>>, %arg2: memref<32x128xf32, #tpu.memory_space<vmem>>, %arg3: memref<32x128xbf16, #tpu.memory_space<vmem>>, %arg4: memref<128x128xbf16, #tpu.memory_space<vmem>>, %arg5: memref<1x128xf32, #tpu.memory_space<vmem>>, %arg6: memref<32x128xf32, #tpu.memory_space<vmem>>) attributes {dimension_semantics = [#tpu.dimension_semantics<parallel>], iteration_bounds = array<i64: 1>, scalar_prefetch = 0 : i64, scratch_operands = 0 : i64, tpu.core_type = #tpu.core_type<tc>, window_params = [{transform_indices = @transform_0, window_bounds = array<i64: 32, 32>}, {transform_indices = @transform_1, window_bounds = array<i64: 32, 128>}, {pipeline_mode = #tpu.pipeline_mode<synchronous>, transform_indices = @transform_2, window_bounds = array<i64: 32, 128>}, {pipeline_mode = #tpu.pipeline_mode<synchronous>, transform_indices = @transform_3, window_bounds = array<i64: 128, 128>}, {pipeline_mode = #tpu.pipeline_mode<synchronous>, transform_indices = @transform_4, window_bounds = array<i64: 1, 128>}, {transform_indices = @transform_5, window_bounds = array<i64: 32, 128>}]} {
    %c0 = arith.constant 0 : index
    %c0_0 = arith.constant 0 : index
    %0 = vector.load %arg1[%c0, %c0_0] : memref<32x32xf32, #tpu.memory_space<vmem>>, vector<32x32xf32>
    %1 = arith.truncf %0 : vector<32x32xf32> to vector<32x32xbf16>
    %c0_1 = arith.constant 0 : index
    %c0_2 = arith.constant 0 : index
    %2 = vector.load %arg3[%c0_1, %c0_2] : memref<32x128xbf16, #tpu.memory_space<vmem>>, vector<32x128xbf16>
    %cst = arith.constant dense<0.000000e+00> : vector<32x128xf32>
    %3 = tpu.matmul %1, %2, %cst {dimension_numbers = #tpu.dot_dimension_numbers<[1], [0], [0], [1], [0, 0, 1, 1], [], []>} : vector<32x32xbf16>, vector<32x128xbf16>, vector<32x128xf32> -> vector<32x128xf32>
    %c0_3 = arith.constant 0 : index
    %c0_4 = arith.constant 0 : index
    %4 = vector.load %arg2[%c0_3, %c0_4] : memref<32x128xf32, #tpu.memory_space<vmem>>, vector<32x128xf32>
    %5 = arith.addf %3, %4 : vector<32x128xf32>
    %6 = arith.truncf %5 : vector<32x128xf32> to vector<32x128xbf16>
    %c0_5 = arith.constant 0 : index
    %c0_6 = arith.constant 0 : index
    %7 = vector.load %arg4[%c0_5, %c0_6] : memref<128x128xbf16, #tpu.memory_space<vmem>>, vector<128x128xbf16>
    %cst_7 = arith.constant dense<0.000000e+00> : vector<32x128xf32>
    %8 = tpu.matmul %6, %7, %cst_7 {dimension_numbers = #tpu.dot_dimension_numbers<[1], [0], [0], [1], [0, 0, 1, 1], [], []>} : vector<32x128xbf16>, vector<128x128xbf16>, vector<32x128xf32> -> vector<32x128xf32>
    %c0_8 = arith.constant 0 : index
    %c0_9 = arith.constant 0 : index
    %9 = vector.load %arg5[%c0_8, %c0_9] : memref<1x128xf32, #tpu.memory_space<vmem>>, vector<1x128xf32>
    %10 = vector.broadcast %9 : vector<1x128xf32> to vector<32x128xf32>
    %11 = arith.addf %8, %10 : vector<32x128xf32>
    %cst_10 = arith.constant 0.000000e+00 : f32
    %12 = vector.broadcast %cst_10 : f32 to vector<32x128xf32>
    %13 = arith.maximumf %11, %12 : vector<32x128xf32>
    %c0_11 = arith.constant 0 : index
    %c0_12 = arith.constant 0 : index
    %14 = vector.load %arg6[%c0_11, %c0_12] : memref<32x128xf32, #tpu.memory_space<vmem>>, vector<32x128xf32>
    tpu.vector_store %arg6[%c0_11, %c0_12], %13 {strides = array<i32>} : memref<32x128xf32, #tpu.memory_space<vmem>>, vector<32x128xf32>,
    return
  }
  func.func @transform_0(%arg0: i32) -> (i32, i32) {
    %c0_i32 = arith.constant 0 : i32
    %c0_i32_0 = arith.constant 0 : i32
    return %arg0, %c0_i32 : i32, i32
  }
  func.func @transform_1(%arg0: i32) -> (i32, i32) {
    %c0_i32 = arith.constant 0 : i32
    %c0_i32_0 = arith.constant 0 : i32
    return %arg0, %c0_i32 : i32, i32
  }
  func.func @transform_2(%arg0: i32) -> (i32, i32) {
    %c0_i32 = arith.constant 0 : i32
    %c0_i32_0 = arith.constant 0 : i32
    %c0_i32_1 = arith.constant 0 : i32
    return %c0_i32, %c0_i32_0 : i32, i32
  }
  func.func @transform_3(%arg0: i32) -> (i32, i32) {
    %c0_i32 = arith.constant 0 : i32
    %c0_i32_0 = arith.constant 0 : i32
    %c0_i32_1 = arith.constant 0 : i32
    return %c0_i32, %c0_i32_0 : i32, i32
  }
  func.func @transform_4(%arg0: i32) -> (i32, i32) {
    %c0_i32 = arith.constant 0 : i32
    %c0_i32_0 = arith.constant 0 : i32
    %c0_i32_1 = arith.constant 0 : i32
    return %c0_i32, %c0_i32_0 : i32, i32
  }
  func.func @transform_5(%arg0: i32) -> (i32, i32) {
    %c0_i32 = arith.constant 0 : i32
    %c0_i32_0 = arith.constant 0 : i32
    return %arg0, %c0_i32 : i32, i32
  }
}

module attributes {stable_mosaic.version = 11 : i64} {
  func.func @kernel(%arg0: i32, %arg1: memref<128x24xf32, #tpu.memory_space<vmem>>, %arg2: memref<128x128xf32, #tpu.memory_space<vmem>>, %arg3: memref<24x128xbf16, #tpu.memory_space<vmem>>, %arg4: memref<128x128xbf16, #tpu.memory_space<vmem>>, %arg5: memref<1x128xf32, #tpu.memory_space<vmem>>, %arg6: memref<128x128xf32, #tpu.memory_space<vmem>>) attributes {dimension_semantics = [#tpu.dimension_semantics<parallel>], iteration_bounds = array<i64: 1>, scalar_prefetch = 0 : i64, scratch_operands = 0 : i64, tpu.core_type = #tpu.core_type<tc>, window_params = [{transform_indices = @transform_0, window_bounds = array<i64: 128, 24>}, {transform_indices = @transform_1, window_bounds = array<i64: 128, 128>}, {pipeline_mode = #tpu.pipeline_mode<synchronous>, transform_indices = @transform_2, window_bounds = array<i64: 24, 128>}, {pipeline_mode = #tpu.pipeline_mode<synchronous>, transform_indices = @transform_3, window_bounds = array<i64: 128, 128>}, {pipeline_mode = #tpu.pipeline_mode<synchronous>, transform_indices = @transform_4, window_bounds = array<i64: 1, 128>}, {transform_indices = @transform_5, window_bounds = array<i64: 128, 128>}]} {
    %c0 = arith.constant 0 : index
    %c0_0 = arith.constant 0 : index
    %0 = vector.load %arg1[%c0, %c0_0] : memref<128x24xf32, #tpu.memory_space<vmem>>, vector<128x24xf32>
    %1 = arith.truncf %0 : vector<128x24xf32> to vector<128x24xbf16>
    %c0_1 = arith.constant 0 : index
    %c0_2 = arith.constant 0 : index
    %2 = vector.load %arg3[%c0_1, %c0_2] : memref<24x128xbf16, #tpu.memory_space<vmem>>, vector<24x128xbf16>
    %cst = arith.constant dense<0.000000e+00> : vector<128x128xf32>
    %3 = tpu.matmul %1, %2, %cst {dimension_numbers = #tpu.dot_dimension_numbers<[1], [0], [0], [1], [0, 0, 1, 1], [], []>} : vector<128x24xbf16>, vector<24x128xbf16>, vector<128x128xf32> -> vector<128x128xf32>
    %c0_3 = arith.constant 0 : index
    %c0_4 = arith.constant 0 : index
    %4 = vector.load %arg2[%c0_3, %c0_4] : memref<128x128xf32, #tpu.memory_space<vmem>>, vector<128x128xf32>
    %5 = arith.addf %3, %4 : vector<128x128xf32>
    %6 = arith.truncf %5 : vector<128x128xf32> to vector<128x128xbf16>
    %c0_5 = arith.constant 0 : index
    %c0_6 = arith.constant 0 : index
    %7 = vector.load %arg4[%c0_5, %c0_6] : memref<128x128xbf16, #tpu.memory_space<vmem>>, vector<128x128xbf16>
    %cst_7 = arith.constant dense<0.000000e+00> : vector<128x128xf32>
    %8 = tpu.matmul %6, %7, %cst_7 {dimension_numbers = #tpu.dot_dimension_numbers<[1], [0], [0], [1], [0, 0, 1, 1], [], []>} : vector<128x128xbf16>, vector<128x128xbf16>, vector<128x128xf32> -> vector<128x128xf32>
    %c0_8 = arith.constant 0 : index
    %c0_9 = arith.constant 0 : index
    %9 = vector.load %arg5[%c0_8, %c0_9] : memref<1x128xf32, #tpu.memory_space<vmem>>, vector<1x128xf32>
    %10 = vector.broadcast %9 : vector<1x128xf32> to vector<128x128xf32>
    %11 = arith.addf %8, %10 : vector<128x128xf32>
    %cst_10 = arith.constant 0.000000e+00 : f32
    %12 = vector.broadcast %cst_10 : f32 to vector<128x128xf32>
    %13 = arith.maximumf %11, %12 : vector<128x128xf32>
    %c0_11 = arith.constant 0 : index
    %c0_12 = arith.constant 0 : index
    %14 = vector.load %arg6[%c0_11, %c0_12] : memref<128x128xf32, #tpu.memory_space<vmem>>, vector<128x128xf32>
    tpu.vector_store %arg6[%c0_11, %c0_12], %13 {strides = array<i32>} : memref<128x128xf32, #tpu.memory_space<vmem>>, vector<128x128xf32>,
    return
  }
  func.func @transform_0(%arg0: i32) -> (i32, i32) {
    %c0_i32 = arith.constant 0 : i32
    %c0_i32_0 = arith.constant 0 : i32
    return %arg0, %c0_i32 : i32, i32
  }
  func.func @transform_1(%arg0: i32) -> (i32, i32) {
    %c0_i32 = arith.constant 0 : i32
    %c0_i32_0 = arith.constant 0 : i32
    return %arg0, %c0_i32 : i32, i32
  }
  func.func @transform_2(%arg0: i32) -> (i32, i32) {
    %c0_i32 = arith.constant 0 : i32
    %c0_i32_0 = arith.constant 0 : i32
    %c0_i32_1 = arith.constant 0 : i32
    return %c0_i32, %c0_i32_0 : i32, i32
  }
  func.func @transform_3(%arg0: i32) -> (i32, i32) {
    %c0_i32 = arith.constant 0 : i32
    %c0_i32_0 = arith.constant 0 : i32
    %c0_i32_1 = arith.constant 0 : i32
    return %c0_i32, %c0_i32_0 : i32, i32
  }
  func.func @transform_4(%arg0: i32) -> (i32, i32) {
    %c0_i32 = arith.constant 0 : i32
    %c0_i32_0 = arith.constant 0 : i32
    %c0_i32_1 = arith.constant 0 : i32
    return %c0_i32, %c0_i32_0 : i32, i32
  }
  func.func @transform_5(%arg0: i32) -> (i32, i32) {
    %c0_i32 = arith.constant 0 : i32
    %c0_i32_0 = arith.constant 0 : i32
    return %arg0, %c0_i32 : i32, i32
  }
}

</mosaic_0001>

<bundles_post_ra>
// kernel: _lambda_.11
= control target key start
LH: loop header
LB: loop body
LE: loop exit
PB: predicated region body
PF: predicated region fallthrough
CT: control target
= control target key end

     0   :  { %s2125_s0 = inlined_call_operand.vmem [shape: f32[32,24], index: 0, kind: input, shape index: {}]   ;;  %s2126_s1 = inlined_call_operand.vmem [shape: bf16[24,144], index: 1, kind: input, shape index: {}]   ;;  %s2127_s2 = inlined_call_operand.hbm [shape: f32[1,144], index: 2, kind: input, shape index: {}]   ;;  %s2128_s3 = inlined_call_operand.hbm [shape: f32[1,144], index: 3, kind: input, shape index: {}]   ;;  %s2129_s4 = inlined_call_operand.hbm [shape: f32[1,144], index: 4, kind: input, shape index: {}]   ;;  %s2130_s5 = inlined_call_operand.vmem [shape: bf16[144,32], index: 5, kind: input, shape index: {}]   ;;  %s2131_s6 = inlined_call_operand.hbm [shape: f32[1,32], index: 6, kind: input, shape index: {}]   ;;  %s2132_s7 = inlined_call_operand.vmem [shape: bf16[32,192], index: 7, kind: input, shape index: {}]   ;;  %s2133_s8 = inlined_call_operand.hbm [shape: f32[1,192], index: 8, kind: input, shape index: {}]   ;;  %s2134_s9 = inlined_call_operand.hbm [shape: f32[1,192], index: 9, kind: input, shape index: {}]   ;;  %s2135_s10 = inlined_call_operand.hbm [shape: f32[1,192], index: 10, kind: input, shape index: {}]   ;;  %s2136_s11 = inlined_call_operand.vmem [shape: bf16[192,32], index: 11, kind: input, shape index: {}]   ;;  %s2137_s12 = inlined_call_operand.hbm [shape: f32[1,32], index: 12, kind: input, shape index: {}]   ;;  %s2138_s13 = inlined_call_operand.vmem [shape: bf16[32,192], index: 13, kind: input, shape index: {}]   ;;  %s2139_s14 = inlined_call_operand.hbm [shape: f32[1,192], index: 14, kind: input, shape index: {}]   ;;  %s2140_s15 = inlined_call_operand.hbm [shape: f32[1,192], index: 15, kind: input, shape index: {}]   ;;  %s2141_s16 = inlined_call_operand.hbm [shape: f32[1,192], index: 16, kind: input, shape index: {}]   ;;  %s2142_s17 = inlined_call_operand.vmem [shape: bf16[192,32], index: 17, kind: input, shape index: {}]   ;;  %s2143_s18 = inlined_call_operand.hbm [shape: f32[1,32], index: 18, kind: input, shape index: {}]   ;;  %s2144_s19 = inlined_call_operand.vmem [shape: f32[32,32], index: 19, kind: output, shape index: {}]  }
   0x1   :  { %2149 = sst [smem:[#allocation28_spill]] %s2125_s0 }
   0x2   :  { %2150 = sst [smem:[#allocation29_spill]] %s2126_s1 }
   0x3   :  { %2151 = sst [smem:[#allocation30_spill]] %s2127_s2 }
   0x4   :  { %2152 = sst [smem:[#allocation31_spill]] %s2128_s3 }
   0x5   :  { %24 = vsyncpa [#allocation3], 0 }
   0x6   :  { %25 = vsyncpa [#allocation5], 0 }
   0x7   :  { %26 = vsyncpa [#allocation8], 0 }
   0x8   :  { %27 = vsyncpa [#allocation11], 0 }
   0x9   :  { %28 = vsyncpa [#allocation14], 0 }
   0xa   :  { %29 = vsyncpa [#allocation17], 0 }
   0xb   :  { %30 = vsyncpa [#allocation20], 0  ;;  %s1605_s0 = smov [#allocation4]   ;;  %s1606_s20 = smov [#allocation7]  }
   0xc   :  { %s51_s30 = sshll.u32 %s1605_s0, 4  ;;  %s73_s21 = sshll.u32 %s1606_s20, 4  ;;  %s52_s30 = int_to_ptr.vmem [resolvable:$true] %s51_s30  ;;  %s74_s21 = int_to_ptr.vmem [resolvable:$true] %s73_s21 }
   0xd   :  { %s2153_s2 = sld [smem:[#allocation31_spill]] }
  0x13   :  { %s1327_s23 = scalar_lea.hbm %s2153_s2, 32 }
  0x14   :  { %p1328_p0 = scmp.ne.s32.totalorder %s2153_s2, %s1327_s23  ;;  %p1331_p1 = scmp.lt.u32.totalorder %s1327_s23, %s2153_s2 }
  0x16   :  { %p1333_p2 = pnand %p1331_p1, %p1328_p0 }
  0x18   :  { %1336 = shalt.err (!%p1333_p2)
}
  0x19   :  { %s1337_s27 = scalar_lea.vmem %s52_s30, 32  ;;  %p1342_p4 = scmp.lt.s32.totalorder %s52_s30, %s52_s30 }
  0x1a   :  { %p1338_p3 = scmp.ne.s32.totalorder %s52_s30, %s1337_s27  ;;  %p1343_p5 = scmp.lt.s32.totalorder %s1337_s27, %s1337_s27 }
  0x1c   :  { %p1344_p6 = por %p1343_p5, %p1342_p4 }
  0x1e   :  { %p1345_p7 = pnand %p1344_p6, %p1338_p3 }
  0x20   :  { %1348 = shalt.err (!%p1345_p7)
}
  0x21   :  { %54 = dma.hbm_to_vmem [thread:$0]  %s2153_s2, 32, %s52_s30, [#allocation5]  }
  0x22   :  { %s1349_s1 = scalar_lea.hbm %s2131_s6, 16 }
  0x23   :  { %p1350_p8 = scmp.ne.s32.totalorder %s2131_s6, %s1349_s1  ;;  %p1353_p9 = scmp.lt.u32.totalorder %s1349_s1, %s2131_s6 }
  0x25   :  { %p1355_p10 = pnand %p1353_p9, %p1350_p8 }
  0x27   :  { %1358 = shalt.err (!%p1355_p10)
}
  0x28   :  { %s1359_s3 = scalar_lea.vmem %s74_s21, 16  ;;  %s1363_s26 = scalar_lea.vmem %s74_s21, 32 }
  0x29   :  { %p1360_p11 = scmp.ne.s32.totalorder %s74_s21, %s1359_s3  ;;  %p1364_p12 = scmp.lt.s32.totalorder %s74_s21, %s74_s21 }
  0x2a   :  { %p1365_p13 = scmp.lt.s32.totalorder %s1363_s26, %s1359_s3 }
  0x2c   :  { %p1366_p0 = por %p1365_p13, %p1364_p12 }
  0x2e   :  { %p1367_p1 = pnand %p1366_p0, %p1360_p11 }
  0x30   :  { %1370 = shalt.err (!%p1367_p1)
}
  0x31   :  { %76 = dma.hbm_to_vmem [thread:$0]  %s2131_s6, 16, %s74_s21, [#allocation8]  }
  0x32   :  { %s1607_s27 = smov [#allocation10]   ;;  %s1608_s29 = smov [#allocation13]  }
  0x33   :  { %s95_s28 = sshll.u32 %s1607_s27, 4  ;;  %s117_s0 = sshll.u32 %s1608_s29, 4  ;;  %s96_s28 = int_to_ptr.vmem [resolvable:$true] %s95_s28  ;;  %s118_s0 = int_to_ptr.vmem [resolvable:$true] %s117_s0 }
  0x34   :  { %s1371_s22 = scalar_lea.hbm %s2134_s9, 32 }
  0x35   :  { %p1372_p2 = scmp.ne.s32.totalorder %s2134_s9, %s1371_s22  ;;  %p1375_p3 = scmp.lt.u32.totalorder %s1371_s22, %s2134_s9 }
  0x37   :  { %p1377_p4 = pnand %p1375_p3, %p1372_p2 }
  0x39   :  { %1380 = shalt.err (!%p1377_p4)
}
  0x3a   :  { %s1381_s6 = scalar_lea.vmem %s96_s28, 32  ;;  %p1386_p6 = scmp.lt.s32.totalorder %s96_s28, %s96_s28 }
  0x3b   :  { %p1382_p5 = scmp.ne.s32.totalorder %s96_s28, %s1381_s6  ;;  %p1387_p7 = scmp.lt.s32.totalorder %s1381_s6, %s1381_s6 }
  0x3d   :  { %p1388_p8 = por %p1387_p7, %p1386_p6 }
  0x3f   :  { %p1389_p9 = pnand %p1388_p8, %p1382_p5 }
  0x41   :  { %1392 = shalt.err (!%p1389_p9)
}
  0x42   :  { %98 = dma.hbm_to_vmem [thread:$0]  %s2134_s9, 32, %s96_s28, [#allocation11]  }
  0x43   :  { %s1393_s27 = scalar_lea.hbm %s2137_s12, 16 }
  0x44   :  { %p1394_p10 = scmp.ne.s32.totalorder %s2137_s12, %s1393_s27  ;;  %p1397_p11 = scmp.lt.u32.totalorder %s1393_s27, %s2137_s12 }
  0x46   :  { %p1399_p12 = pnand %p1397_p11, %p1394_p10 }
  0x48   :  { %1402 = shalt.err (!%p1399_p12)
}
  0x49   :  { %s1403_s24 = scalar_lea.vmem %s118_s0, 16  ;;  %s1407_s23 = scalar_lea.vmem %s118_s0, 32 }
  0x4a   :  { %p1404_p13 = scmp.ne.s32.totalorder %s118_s0, %s1403_s24  ;;  %p1408_p0 = scmp.lt.s32.totalorder %s118_s0, %s118_s0 }
  0x4b   :  { %p1409_p1 = scmp.lt.s32.totalorder %s1407_s23, %s1403_s24 }
  0x4d   :  { %p1410_p2 = por %p1409_p1, %p1408_p0 }
  0x4f   :  { %p1411_p3 = pnand %p1410_p2, %p1404_p13 }
  0x51   :  { %1414 = shalt.err (!%p1411_p3)
}
  0x52   :  { %120 = dma.hbm_to_vmem [thread:$0]  %s2137_s12, 16, %s118_s0, [#allocation14]  }
  0x53   :  { %s1609_s25 = smov [#allocation16]   ;;  %s1610_s6 = smov [#allocation2]  }
  0x54   :  { %s139_s3 = sshll.u32 %s1609_s25, 4  ;;  %s41_s21 = sshll.u32 %s1610_s6, 4  ;;  %s140_s3 = int_to_ptr.vmem [resolvable:$true] %s139_s3  ;;  %s42_s21 = int_to_ptr.vmem [resolvable:$true] %s41_s21 }
  0x55   :  { %s1415_s2 = scalar_lea.hbm %s2140_s15, 32 }
  0x56   :  { %p1416_p4 = scmp.ne.s32.totalorder %s2140_s15, %s1415_s2  ;;  %p1419_p5 = scmp.lt.u32.totalorder %s1415_s2, %s2140_s15 }
  0x58   :  { %p1421_p6 = pnand %p1419_p5, %p1416_p4 }
  0x5a   :  { %1424 = shalt.err (!%p1421_p6)
}
  0x5b   :  { %s1425_s12 = scalar_lea.vmem %s140_s3, 32  ;;  %p1430_p8 = scmp.lt.s32.totalorder %s140_s3, %s140_s3 }
  0x5c   :  { %p1426_p7 = scmp.ne.s32.totalorder %s140_s3, %s1425_s12  ;;  %p1431_p9 = scmp.lt.s32.totalorder %s1425_s12, %s1425_s12 }
  0x5e   :  { %p1432_p10 = por %p1431_p9, %p1430_p8 }
  0x60   :  { %p1433_p11 = pnand %p1432_p10, %p1426_p7 }
  0x62   :  { %1436 = shalt.err (!%p1433_p11)
}
  0x63   :  { %142 = dma.hbm_to_vmem [thread:$0]  %s2140_s15, 32, %s140_s3, [#allocation17]  }
  0x64   :  { %s2154_s9 = sld [smem:[#allocation30_spill]] }
  0x6a   :  { %s1437_s28 = scalar_lea.hbm %s2154_s9, 32 }
  0x6b   :  { %p1438_p12 = scmp.ne.s32.totalorder %s2154_s9, %s1437_s28  ;;  %p1441_p13 = scmp.lt.u32.totalorder %s1437_s28, %s2154_s9 }
  0x6d   :  { %p1443_p0 = pnand %p1441_p13, %p1438_p12 }
  0x6f   :  { %1446 = shalt.err (!%p1443_p0)
}
  0x70   :  { %s1447_s2 = scalar_lea.vmem %s42_s21, 32  ;;  %p1452_p2 = scmp.lt.s32.totalorder %s42_s21, %s42_s21 }
  0x71   :  { %p1448_p1 = scmp.ne.s32.totalorder %s42_s21, %s1447_s2  ;;  %p1453_p3 = scmp.lt.s32.totalorder %s1447_s2, %s1447_s2 }
  0x73   :  { %p1454_p4 = por %p1453_p3, %p1452_p2 }
  0x75   :  { %p1455_p5 = pnand %p1454_p4, %p1448_p1 }
  0x77   :  { %1458 = shalt.err (!%p1455_p5)
}
  0x78   :  { %44 = dma.hbm_to_vmem [thread:$0]  %s2154_s9, 32, %s42_s21, [#allocation3]  }
  0x79   :  { %s1611_s27 = smov [#allocation6]   ;;  %s1612_s20 = smov [#allocation9]  }
  0x7a   :  { %s61_s29 = sshll.u32 %s1611_s27, 4  ;;  %s85_s1 = sshll.u32 %s1612_s20, 4  ;;  %s62_s29 = int_to_ptr.vmem [resolvable:$true] %s61_s29  ;;  %s86_s1 = int_to_ptr.vmem [resolvable:$true] %s85_s1 }
  0x7b   :  { %s1459_s22 = scalar_lea.hbm %s2129_s4, 32 }
  0x7c   :  { %p1460_p6 = scmp.ne.s32.totalorder %s2129_s4, %s1459_s22  ;;  %p1463_p7 = scmp.lt.u32.totalorder %s1459_s22, %s2129_s4 }
  0x7e   :  { %p1465_p8 = pnand %p1463_p7, %p1460_p6 }
  0x80   :  { %1468 = shalt.err (!%p1465_p8)
}
  0x81   :  { %s1469_s21 = scalar_lea.vmem %s62_s29, 32  ;;  %p1474_p10 = scmp.lt.s32.totalorder %s62_s29, %s62_s29 }
  0x82   :  { %p1470_p9 = scmp.ne.s32.totalorder %s62_s29, %s1469_s21  ;;  %p1475_p11 = scmp.lt.s32.totalorder %s1469_s21, %s1469_s21 }
  0x84   :  { %p1476_p12 = por %p1475_p11, %p1474_p10 }
  0x86   :  { %p1477_p13 = pnand %p1476_p12, %p1470_p9 }
  0x88   :  { %1480 = shalt.err (!%p1477_p13)
}
  0x89   :  { %64 = dma.hbm_to_vmem [thread:$0]  %s2129_s4, 32, %s62_s29, [#allocation5]  }
  0x8a   :  { %s1481_s2 = scalar_lea.hbm %s2133_s8, 32 }
  0x8b   :  { %p1482_p0 = scmp.ne.s32.totalorder %s2133_s8, %s1481_s2  ;;  %p1485_p1 = scmp.lt.u32.totalorder %s1481_s2, %s2133_s8 }
  0x8d   :  { %p1487_p2 = pnand %p1485_p1, %p1482_p0 }
  0x8f   :  { %1490 = shalt.err (!%p1487_p2)
}
  0x90   :  { %s1491_s12 = scalar_lea.vmem %s86_s1, 32  ;;  %p1496_p4 = scmp.lt.s32.totalorder %s86_s1, %s86_s1 }
  0x91   :  { %p1492_p3 = scmp.ne.s32.totalorder %s86_s1, %s1491_s12  ;;  %p1497_p5 = scmp.lt.s32.totalorder %s1491_s12, %s1491_s12 }
  0x93   :  { %p1498_p6 = por %p1497_p5, %p1496_p4 }
  0x95   :  { %p1499_p7 = pnand %p1498_p6, %p1492_p3 }
  0x97   :  { %1502 = shalt.err (!%p1499_p7)
}
  0x98   :  { %88 = dma.hbm_to_vmem [thread:$0]  %s2133_s8, 32, %s86_s1, [#allocation8]  }
  0x99   :  { %s1613_s0 = smov [#allocation12]   ;;  %s1614_s24 = smov [#allocation15]  }
  0x9a   :  { %s105_s22 = sshll.u32 %s1613_s0, 4  ;;  %s129_s23 = sshll.u32 %s1614_s24, 4  ;;  %s106_s22 = int_to_ptr.vmem [resolvable:$true] %s105_s22  ;;  %s130_s23 = int_to_ptr.vmem [resolvable:$true] %s129_s23 }
  0x9b   :  { %s1503_s21 = scalar_lea.hbm %s2135_s10, 32 }
  0x9c   :  { %p1504_p8 = scmp.ne.s32.totalorder %s2135_s10, %s1503_s21  ;;  %p1507_p9 = scmp.lt.u32.totalorder %s1503_s21, %s2135_s10 }
  0x9e   :  { %p1509_p10 = pnand %p1507_p9, %p1504_p8 }
  0xa0   :  { %1512 = shalt.err (!%p1509_p10)
}
  0xa1   :  { %s1513_s8 = scalar_lea.vmem %s106_s22, 32  ;;  %p1518_p12 = scmp.lt.s32.totalorder %s106_s22, %s106_s22 }
  0xa2   :  { %p1514_p11 = scmp.ne.s32.totalorder %s106_s22, %s1513_s8  ;;  %p1519_p13 = scmp.lt.s32.totalorder %s1513_s8, %s1513_s8 }
  0xa4   :  { %p1520_p0 = por %p1519_p13, %p1518_p12 }
  0xa6   :  { %p1521_p1 = pnand %p1520_p0, %p1514_p11 }
  0xa8   :  { %1524 = shalt.err (!%p1521_p1)
}
  0xa9   :  { %108 = dma.hbm_to_vmem [thread:$0]  %s2135_s10, 32, %s106_s22, [#allocation11]  }
  0xaa   :  { %s1525_s27 = scalar_lea.hbm %s2139_s14, 32 }
  0xab   :  { %p1526_p2 = scmp.ne.s32.totalorder %s2139_s14, %s1525_s27  ;;  %p1529_p3 = scmp.lt.u32.totalorder %s1525_s27, %s2139_s14 }
  0xad   :  { %p1531_p4 = pnand %p1529_p3, %p1526_p2 }
  0xaf   :  { %1534 = shalt.err (!%p1531_p4)
}
  0xb0   :  { %s1535_s0 = scalar_lea.vmem %s130_s23, 32  ;;  %p1540_p6 = scmp.lt.s32.totalorder %s130_s23, %s130_s23 }
  0xb1   :  { %p1536_p5 = scmp.ne.s32.totalorder %s130_s23, %s1535_s0  ;;  %p1541_p7 = scmp.lt.s32.totalorder %s1535_s0, %s1535_s0 }
  0xb3   :  { %p1542_p8 = por %p1541_p7, %p1540_p6 }
  0xb5   :  { %p1543_p9 = pnand %p1542_p8, %p1536_p5 }
  0xb7   :  { %1546 = shalt.err (!%p1543_p9)
}
  0xb8   :  { %132 = dma.hbm_to_vmem [thread:$0]  %s2139_s14, 32, %s130_s23, [#allocation14]  }
  0xb9   :  { %s1615_s24 = smov [#allocation18]   ;;  %s1616_s25 = smov [#allocation19]  }
  0xba   :  { %s149_s28 = sshll.u32 %s1615_s24, 4  ;;  %s161_s21 = sshll.u32 %s1616_s25, 4  ;;  %s150_s28 = int_to_ptr.vmem [resolvable:$true] %s149_s28  ;;  %s162_s21 = int_to_ptr.vmem [resolvable:$true] %s161_s21 }
  0xbb   :  { %s1547_s26 = scalar_lea.hbm %s2141_s16, 32 }
  0xbc   :  { %p1548_p10 = scmp.ne.s32.totalorder %s2141_s16, %s1547_s26  ;;  %p1551_p11 = scmp.lt.u32.totalorder %s1547_s26, %s2141_s16 }
  0xbe   :  { %p1553_p12 = pnand %p1551_p11, %p1548_p10 }
  0xc0   :  { %1556 = shalt.err (!%p1553_p12)
}
  0xc1   :  { %s1557_s14 = scalar_lea.vmem %s150_s28, 32  ;;  %p1562_p0 = scmp.lt.s32.totalorder %s150_s28, %s150_s28 }
  0xc2   :  { %p1558_p13 = scmp.ne.s32.totalorder %s150_s28, %s1557_s14  ;;  %p1563_p1 = scmp.lt.s32.totalorder %s1557_s14, %s1557_s14 }
  0xc4   :  { %p1564_p2 = por %p1563_p1, %p1562_p0 }
  0xc6   :  { %p1565_p3 = pnand %p1564_p2, %p1558_p13 }
  0xc8   :  { %1568 = shalt.err (!%p1565_p3)
}
  0xc9   :  { %152 = dma.hbm_to_vmem [thread:$0]  %s2141_s16, 32, %s150_s28, [#allocation17]  }
  0xca   :  { %s1569_s20 = scalar_lea.hbm %s2143_s18, 16 }
  0xcb   :  { %p1570_p4 = scmp.ne.s32.totalorder %s2143_s18, %s1569_s20  ;;  %p1573_p5 = scmp.lt.u32.totalorder %s1569_s20, %s2143_s18 }
  0xcd   :  { %p1575_p6 = pnand %p1573_p5, %p1570_p4 }
  0xcf   :  { %1578 = shalt.err (!%p1575_p6)
}
  0xd0   :  { %s1579_s10 = scalar_lea.vmem %s162_s21, 16  ;;  %s1583_s22 = scalar_lea.vmem %s162_s21, 32 }
  0xd1   :  { %p1580_p7 = scmp.ne.s32.totalorder %s162_s21, %s1579_s10  ;;  %p1584_p8 = scmp.lt.s32.totalorder %s162_s21, %s162_s21 }
  0xd2   :  { %p1585_p9 = scmp.lt.s32.totalorder %s1583_s22, %s1579_s10 }
  0xd4   :  { %p1586_p10 = por %p1585_p9, %p1584_p8 }
  0xd6   :  { %p1587_p11 = pnand %p1586_p10, %p1580_p7 }
  0xd8   :  { %1590 = shalt.err (!%p1587_p11)
}
  0xd9   :  { %164 = dma.hbm_to_vmem [thread:$0]  %s2143_s18, 16, %s162_s21, [#allocation20]  }
  0xda   :  { %1591 = dma.done.wait [#allocation3], 32  }
  0xdb   :  { %1592 = vsyncadd [#allocation3], 4294967264 }
  0xdc   :  { %1593 = dma.done.wait [#allocation5], 64  }
  0xdd   :  { %1594 = vsyncadd [#allocation5], 4294967232 }
  0xde   :  { %1595 = dma.done.wait [#allocation8], 48  }
  0xdf   :  { %1596 = vsyncadd [#allocation8], 4294967248 }
  0xe0   :  { %1597 = dma.done.wait [#allocation11], 64  }
  0xe1   :  { %1598 = vsyncadd [#allocation11], 4294967232 }
  0xe2   :  { %1599 = dma.done.wait [#allocation14], 48  }
  0xe3   :  { %1600 = vsyncadd [#allocation14], 4294967248 }
  0xe4   :  { %1601 = dma.done.wait [#allocation17], 64  }
  0xe5   :  { %1602 = vsyncadd [#allocation17], 4294967232 }
  0xe6   :  { %1603 = dma.done.wait [#allocation20], 16  }
  0xe7   :  { %1604 = vsyncadd [#allocation20], 4294967280  ;;  %v1617_v0 = vmov 0   ;;  %s2155_s25 = sld [smem:[#allocation29_spill]]  ;;  %vm245_vm0 = vcmask 1043456   ;;  %s2156_s1 = sld [smem:[#allocation28_spill]]  ;;  %v213_v26 = vlaneseq }
  0xe8   :  { %284 = vmatprep.mubr.bf16.mxu0 %v1617_v0  ;;  %467 = vmatprep.subr.bf16.mxu1 %v1617_v0  ;;  %v1282_v8 = vld [vmem:[%s2130_s5] sm:$0xff]   ;;  %v1283_v10 = vld [vmem:[%s2130_s5 + $0x8] sm:$0xff]   ;;  %vm238_vm1 = vcmask 195584   ;;  %v1284_v12 = vld [vmem:[%s2130_s5 + $0x10] sm:$0xff]   ;;  %vm460_vm2 = vcmask 130048   ;;  %vm554_vm3 = vcmask 261120  }
  0xe9   :  { %468 = vmatpush1.bf16.msra.mxu1 %v1282_v8  ;;  %v1285_v15 = vld [vmem:[%s2130_s5 + $0x18] sm:$0xff]   ;;  %v1286_v17 = vld [vmem:[%s2130_s5 + $0x20] sm:$0xff]   ;;  %v1287_v18 = vld [vmem:[%s2130_s5 + $0x28] sm:$0xff]   ;;  %v214_v27 = vshrl.u32 %v213_v26, 7  ;;  %vm793_vm4 = vcmask 523264  }
  0xea   :  { %469 = vmatprep.subr.bf16.mxu1 %v1617_v0  ;;  %v1288_v19 = vld [vmem:[%s2130_s5 + $0x30] sm:$0xff]   ;;  %v1289_v20 = vld [vmem:[%s2130_s5 + $0x38] sm:$0xff]   ;;  %v1290_v21 = vld [vmem:[%s2130_s5 + $0x40] sm:$0xff]  }
  0xeb   :  { %v1291_v22 = vld [vmem:[%s2132_s7] ss:$8 sps:$4 sm:$0xff]   ;;  %v1293_v23 = vld [vmem:[%s2132_s7 + $0x4] ss:$8 sps:$4 sm:$0xff]   ;;  %v1296_v24 = vld [vmem:[%s2132_s7 + $0x14] ss:$8 sps:$4 sm:$0xff]  }
  0xec   :  { %v1294_v25 = vld [vmem:[%s2132_s7 + $0x10] ss:$8 sps:$4 sm:$0xff]   ;;  %v1936_v28 = vsub.s32 0, %v214_v27  ;;  %v209_v29 = vld [vmem:[#allocation2] sm:$0x3]  ;;  %v1938_v30 = vsub.s32 1, %v214_v27 }
  0xed   :  { %v1277_v1 = vld [vmem:[%s2155_s25 + $0x4] ss:$8 sps:$4 sm:$0xff]   ;;  %v1279_v2 = vld [vmem:[%s2155_s25] ss:$8 sps:$4 sm:$0xff]   ;;  %v208_v3 = vld [vmem:[%s2155_s25 + $0x10] sm:$0xff]  ;;  %470 = vmatpush1.bf16.msra.mxu1 %v1283_v10 }
  0xee   :  { %252 = vmatprep.subr.bf16.mxu0 %v1277_v1  ;;  %v1206_v4 = vcombine.high %v208_v3, %v208_v3  ;;  %v1205_v5 = vcombine.low %v208_v3, %v208_v3  ;;  %v202_v6 = vld [vmem:[%s2156_s1] sm:$0xff]  ;;  %v203_v7 = vld [vmem:[%s2156_s1 + $0x8] sm:$0xff]  ;;  %v204_v13 = vld [vmem:[%s2156_s1 + $0x10] sm:$0xff]  ;;  %471 = vmatprep.subr.bf16.mxu1 %v1617_v0  ;;  %v216_v31 = vrot.slane %v209_v29, %v1936_v28 }
  0xef   :  { %253 = vmatpush1.bf16.msra.mxu0 %v1279_v2  ;;  %v210_v11 = vpack.c.bf16 %v203_v7, %v202_v6  ;;  %v205_v14 = vld [vmem:[%s2156_s1 + $0x18] sm:$0xff]  ;;  %v220_v32 = vrot.slane %v209_v29, %v1938_v30  ;;  %v321_v34 = vld [vmem:[#allocation4] sm:$0x3]  ;;  %v322_v37 = vld [vmem:[#allocation6] sm:$0x3] }
  0xf0   :  { %1207 = vmatprep.subr.msk.bf16.mxu0 %vm245_vm0, %v1206_v4  ;;  %v247_v9 = vsel %vm245_vm0, %v1205_v5, 0  ;;  %v211_v16 = vpack.c.bf16 %v205_v14, %v204_v13  ;;  %v327_v41 = vrot.slane %v321_v34, %v1936_v28  ;;  %v331_v45 = vrot.slane %v321_v34, %v1938_v30 }
  0xf1   :  { %472 = vmatpush1.bf16.msra.mxu1 %v1284_v12  ;;  %v346_v48 = vrot.slane %v322_v37, %v1936_v28  ;;  %v350_v52 = vrot.slane %v322_v37, %v1938_v30 }
  0xf2   :  { %473 = vmatprep.subr.bf16.mxu1 %v1617_v0 }
  0xf3   :  { %255 = vmatpush1.bf16.msra.mxu0 %v247_v9 }
  0xf4   :  { %561 = vmatprep.subr.bf16.mxu0 %v1293_v23 }
  0xf5   :  { %474 = vmatpush1.bf16.msra.mxu1 %v1285_v15 }
  0xf6   :  { %1208 = vmatmul.mubr.msk.bf16.vlgmr.msra.gmra.mrb[0].mxu0 %vm238_vm1, %v210_v11  ;;  %475 = vmatprep.subr.bf16.mxu1 %v1617_v0 }
  0xf7   :  { %294 = vmatprep.mubr.bf16.mxu0 %v1617_v0  ;;  %562 = vmatpush1.bf16.msra.mxu0 %v1291_v22 }
  0xf8   :  { %563 = vmatprep.subr.bf16.mxu0 %v1296_v24 }
  0xf9   :  { %476 = vmatpush1.bf16.msra.mxu1 %v1286_v17 }
  0xfa   :  { %477 = vmatprep.subr.bf16.mxu1 %v1617_v0 }
  0xfb   :  { %564 = vmatpush1.bf16.msra.mxu0 %v1294_v25 }
  0xfc   :  { %800 = vmatprep.subr.bf16.mxu0 %v1617_v0 }
  0xfd   :  { %478 = vmatpush1.bf16.msra.mxu1 %v1287_v18 }
  0xfe   :  { %1209 = vmatmul.mubr.msk.bf16.gmra.mrb[4].mxu0 %vm238_vm1, %v211_v16  ;;  %479 = vmatprep.subr.bf16.mxu1 %v1617_v0 }
  0xff   :  { %593 = vmatprep.mubr.bf16.mxu0 %v1617_v0 }
 0x101   :  { %480 = vmatpush1.bf16.msra.mxu1 %v1288_v19 }
 0x102   :  { %481 = vmatprep.subr.bf16.mxu1 %v1617_v0 }
 0x105   :  { %482 = vmatpush1.bf16.msra.mxu1 %v1289_v20 }
 0x106   :  { %483 = vmatprep.subr.bf16.mxu1 %v1617_v0 }
 0x109   :  { %484 = vmatpush1.bf16.msra.mxu1 %v1290_v21 }
 0x10a   :  { %1135 = vmatprep.subr.bf16.mxu1 %v1617_v0 }
 0x1c9   :  { %v286_v33 = vpop.f32.mrb[0].mxu0 }
 0x1ca   :  { %v287_v35 = vadd.f32 %v286_v33, %v216_v31  ;;  %v288_v36 = vpop.f32.mrb[1].mxu0 }
 0x1cb   :  { %v289_v38 = vadd.f32 %v288_v36, %v220_v32  ;;  %v290_v39 = vpop.f32.mrb[2].mxu0 }
 0x1cc   :  { %v305_v40 = vmax.f32 %v287_v35, 0.0  ;;  %v291_v42 = vadd.f32 %v290_v39, %v216_v31  ;;  %v292_v43 = vpop.f32.mrb[3].mxu0 }
 0x1cd   :  { %v306_v44 = vmax.f32 %v289_v38, 0.0  ;;  %v293_v46 = vadd.f32 %v292_v43, %v220_v32 }
 0x1ce   :  { %v313_v47 = vmin.f32 %v305_v40, 6.0  ;;  %v307_v49 = vmax.f32 %v291_v42, 0.0 }
 0x1cf   :  { %v314_v50 = vmin.f32 %v306_v44, 6.0  ;;  %v308_v51 = vmax.f32 %v293_v46, 0.0 }
 0x1d0   :  { %v334_v53 = vmul.f32 %v327_v41, %v313_v47  ;;  %v315_v54 = vmin.f32 %v307_v49, 6.0 }
 0x1d1   :  { %v335_v55 = vmul.f32 %v331_v45, %v314_v50  ;;  %v316_v56 = vmin.f32 %v308_v51, 6.0  ;;  %v296_v57 = vpop.f32.mrb[4].mxu0 }
 0x1d2   :  { %v353_v58 = vadd.f32 %v346_v48, %v334_v53  ;;  %v336_v59 = vmul.f32 %v327_v41, %v315_v54  ;;  %v297_v60 = vadd.f32 %v296_v57, %v216_v31  ;;  %v298_v61 = vpop.f32.mrb[5].mxu0  ;;  %v1297_v53 = vld [vmem:[%s2136_s11] sm:$0xff]  }
 0x1d3   :  { %v337_v62 = vmul.f32 %v331_v45, %v316_v56  ;;  %v299_v63 = vadd.f32 %v298_v61, %v220_v32  ;;  %v300_v1 = vpop.f32.mrb[6].mxu0  ;;  %v354_v2 = vadd.f32 %v350_v52, %v335_v55  ;;  %v1298_v56 = vld [vmem:[%s2136_s11 + $0x8] sm:$0xff]  }
 0x1d4   :  { %v361_v3 = vmax.f32 %v353_v58, 0.0  ;;  %v355_v4 = vadd.f32 %v346_v48, %v336_v59  ;;  %v309_v5 = vmax.f32 %v297_v60, 0.0  ;;  %v301_v6 = vadd.f32 %v300_v1, %v216_v31  ;;  %v302_v7 = vpop.f32.mrb[7].mxu0  ;;  %v1300_v1 = vld [vmem:[%s2136_s11 + $0x18] sm:$0xff]  }
 0x1d5   :  { %v310_v8 = vmax.f32 %v299_v63, 0.0  ;;  %v303_v9 = vadd.f32 %v302_v7, %v220_v32  ;;  %v356_v10 = vadd.f32 %v350_v52, %v337_v62  ;;  %v362_v11 = vmax.f32 %v354_v2, 0.0  ;;  %v1299_v62 = vld [vmem:[%s2136_s11 + $0x10] sm:$0xff]   ;;  %v1301_v2 = vld [vmem:[%s2136_s11 + $0x20] sm:$0xff]   ;;  %v1306_v7 = vld [vmem:[%s2136_s11 + $0x48] sm:$0xff]  }
 0x1d6   :  { %v363_v12 = vmax.f32 %v355_v4, 0.0  ;;  %v317_v13 = vmin.f32 %v309_v5, 6.0  ;;  %v311_v14 = vmax.f32 %v301_v6, 0.0  ;;  %v369_v20 = vmin.f32 %v361_v3, 6.0  ;;  %v1302_v3 = vld [vmem:[%s2136_s11 + $0x28] sm:$0xff]   ;;  %v1303_v4 = vld [vmem:[%s2136_s11 + $0x30] sm:$0xff]  }
 0x1d7   :  { %v318_v15 = vmin.f32 %v310_v8, 6.0  ;;  %v312_v16 = vmax.f32 %v303_v9, 0.0  ;;  %v364_v17 = vmax.f32 %v356_v10, 0.0  ;;  %v370_v24 = vmin.f32 %v362_v11, 6.0  ;;  %v1304_v5 = vld [vmem:[%s2136_s11 + $0x38] sm:$0xff]   ;;  %v1305_v6 = vld [vmem:[%s2136_s11 + $0x40] sm:$0xff]  }
 0x1d8   :  { %v338_v18 = vmul.f32 %v327_v41, %v317_v13  ;;  %v319_v19 = vmin.f32 %v311_v14, 6.0  ;;  %v371_v21 = vmin.f32 %v363_v12, 6.0  ;;  %v1307_v8 = vld [vmem:[%s2136_s11 + $0x50] sm:$0xff]   ;;  %v1308_v9 = vld [vmem:[%s2136_s11 + $0x58] sm:$0xff]   ;;  %v1311_v10 = vld [vmem:[%s2138_s13 + $0x4] ss:$8 sps:$4 sm:$0xff]  }
 0x1d9   :  { %v339_v22 = vmul.f32 %v331_v45, %v318_v15  ;;  %v320_v23 = vmin.f32 %v312_v16, 6.0  ;;  %v372_v25 = vmin.f32 %v364_v17, 6.0  ;;  %v520_v11 = vld [vmem:[#allocation9] sm:$0x3]  ;;  %v630_v15 = vld [vmem:[#allocation10] sm:$0x3] }
 0x1da   :  { %v357_v26 = vadd.f32 %v346_v48, %v338_v18  ;;  %v340_v27 = vmul.f32 %v327_v41, %v319_v19  ;;  %v396_v29 = vpack.c.bf16 %v371_v21, %v369_v20  ;;  %v527_v12 = vrot.slane %v520_v11, %v1936_v28  ;;  %v631_v18 = vld [vmem:[#allocation12] sm:$0x3] }
 0x1db   :  { %v358_v31 = vadd.f32 %v350_v52, %v339_v22  ;;  %v341_v32 = vmul.f32 %v331_v45, %v320_v23  ;;  %v397_v33 = vpack.c.bf16 %v372_v25, %v370_v24  ;;  %v1210_v45 = vld [vmem:[#allocation7] ss:$0 sm:$0xff]  ;;  %v531_v13 = vrot.slane %v520_v11, %v1938_v30 }
 0x1dc   :  { %v365_v34 = vmax.f32 %v357_v26, 0.0  ;;  %v359_v35 = vadd.f32 %v346_v48, %v340_v27  ;;  %v636_v22 = vrot.slane %v630_v15, %v1936_v28  ;;  %v640_v26 = vrot.slane %v630_v15, %v1938_v30 }
 0x1dd   :  { %v366_v36 = vmax.f32 %v358_v31, 0.0  ;;  %v360_v37 = vadd.f32 %v350_v52, %v341_v32  ;;  %1220 = vmatprep.mubr.msk.bf16.mxu1 %vm460_vm2, %v397_v33  ;;  %v655_v31 = vrot.slane %v631_v18, %v1936_v28 }
 0x1de   :  { %v367_v38 = vmax.f32 %v359_v35, 0.0  ;;  %500 = vmatmul.mubr.bf16.vlgmr.msra.gmra.mrb[0].mxu1 %v396_v29  ;;  %v373_v40 = vmin.f32 %v365_v34, 6.0  ;;  %v659_v34 = vrot.slane %v631_v18, %v1938_v30 }
 0x1df   :  { %v368_v39 = vmax.f32 %v360_v37, 0.0  ;;  %v374_v43 = vmin.f32 %v366_v36, 6.0 }
 0x1e0   :  { %v375_v42 = vmin.f32 %v367_v38, 6.0 }
 0x1e1   :  { %v376_v44 = vmin.f32 %v368_v39, 6.0 }
 0x1e2   :  { %v398_v46 = vpack.c.bf16 %v375_v42, %v373_v40 }
 0x1e3   :  { %v399_v41 = vpack.c.bf16 %v376_v44, %v374_v43 }
 0x1e5   :  { %1221 = vmatprep.mubr.msk.bf16.mxu1 %vm460_vm2, %v399_v41 }
 0x1e6   :  { %508 = vmatmul.mubr.bf16.gmra.mrb[4].mxu1 %v398_v46 }
 0x2b1   :  { %v501_v47 = vpop.f32.mrb[0].mxu1 }
 0x2b2   :  { %v503_v49 = vpop.f32.mrb[1].mxu1  ;;  %v1948_v50 = vadd.f32 %v1210_v45, %v501_v47 }
 0x2b3   :  { %v504_v48 = vpop.f32.mrb[2].mxu1 }
 0x2b4   :  { %v1950_v51 = vadd.f32 %v1210_v45, %v504_v48  ;;  %v506_v52 = vpop.f32.mrb[3].mxu1 }
 0x2b6   :  { %v521_v54 = vpack.c.bf16 %v1950_v51, %v1948_v50 }
 0x2b8   :  { %1226 = vmatmul.mubr.msk.bf16.vlgmr.msra.gmra.mrb[8].mxu0 %vm554_vm3, %v521_v54 }
 0x2b9   :  { %v509_v55 = vpop.f32.mrb[4].mxu1  ;;  %603 = vmatprep.mubr.bf16.mxu0 %v1617_v0  ;;  %801 = vmatpush1.bf16.msra.mxu0 %v1297_v53 }
 0x2ba   :  { %v511_v57 = vpop.f32.mrb[5].mxu1  ;;  %802 = vmatprep.subr.bf16.mxu0 %v1617_v0  ;;  %v1963_v59 = vadd.f32 %v1210_v45, %v509_v55 }
 0x2bb   :  { %v512_v58 = vpop.f32.mrb[6].mxu1 }
 0x2bc   :  { %v1965_v60 = vadd.f32 %v1210_v45, %v512_v58  ;;  %v514_v61 = vpop.f32.mrb[7].mxu1 }
 0x2bd   :  { %803 = vmatpush1.bf16.msra.mxu0 %v1298_v56 }
 0x2be   :  { %v522_v63 = vpack.c.bf16 %v1965_v60, %v1963_v59  ;;  %804 = vmatprep.subr.bf16.mxu0 %v1617_v0 }
 0x2c0   :  { %1227 = vmatmul.mubr.msk.bf16.gmra.mrb[12].mxu0 %vm554_vm3, %v522_v63 }
 0x2c1   :  { %805 = vmatpush1.bf16.msra.mxu0 %v1299_v62 }
 0x2c2   :  { %806 = vmatprep.subr.bf16.mxu0 %v1617_v0 }
 0x2c5   :  { %807 = vmatpush1.bf16.msra.mxu0 %v1300_v1 }
 0x2c6   :  { %808 = vmatprep.subr.bf16.mxu0 %v1617_v0 }
 0x2c9   :  { %809 = vmatpush1.bf16.msra.mxu0 %v1301_v2 }
 0x2ca   :  { %810 = vmatprep.subr.bf16.mxu0 %v1617_v0 }
 0x2cd   :  { %811 = vmatpush1.bf16.msra.mxu0 %v1302_v3 }
 0x2ce   :  { %812 = vmatprep.subr.bf16.mxu0 %v1617_v0 }
 0x2d1   :  { %813 = vmatpush1.bf16.msra.mxu0 %v1303_v4 }
 0x2d2   :  { %814 = vmatprep.subr.bf16.mxu0 %v1617_v0 }
 0x2d5   :  { %815 = vmatpush1.bf16.msra.mxu0 %v1304_v5 }
 0x2d6   :  { %816 = vmatprep.subr.bf16.mxu0 %v1617_v0 }
 0x2d9   :  { %817 = vmatpush1.bf16.msra.mxu0 %v1305_v6 }
 0x2da   :  { %818 = vmatprep.subr.bf16.mxu0 %v1617_v0 }
 0x2dd   :  { %819 = vmatpush1.bf16.msra.mxu0 %v1306_v7 }
 0x2de   :  { %820 = vmatprep.subr.bf16.mxu0 %v1617_v0 }
 0x2e1   :  { %821 = vmatpush1.bf16.msra.mxu0 %v1307_v8 }
 0x2e2   :  { %822 = vmatprep.subr.bf16.mxu0 %v1617_v0 }
 0x2e5   :  { %823 = vmatpush1.bf16.msra.mxu0 %v1308_v9 }
 0x2e6   :  { %897 = vmatprep.subr.bf16.mxu0 %v1311_v10 }
 0x38b   :  { %v595_v14 = vpop.f32.mrb[8].mxu0 }
 0x38c   :  { %v596_v16 = vadd.f32 %v595_v14, %v527_v12  ;;  %v597_v17 = vpop.f32.mrb[9].mxu0 }
 0x38d   :  { %v598_v19 = vadd.f32 %v597_v17, %v531_v13  ;;  %v599_v20 = vpop.f32.mrb[10].mxu0 }
 0x38e   :  { %v614_v21 = vmax.f32 %v596_v16, 0.0  ;;  %v600_v23 = vadd.f32 %v599_v20, %v527_v12  ;;  %v601_v24 = vpop.f32.mrb[11].mxu0 }
 0x38f   :  { %v615_v25 = vmax.f32 %v598_v19, 0.0  ;;  %v602_v27 = vadd.f32 %v601_v24, %v531_v13  ;;  %v1309_v19 = vld [vmem:[%s2138_s13] ss:$8 sps:$4 sm:$0xff]  }
 0x390   :  { %v622_v29 = vmin.f32 %v614_v21, 6.0  ;;  %v616_v32 = vmax.f32 %v600_v23, 0.0 }
 0x391   :  { %v623_v33 = vmin.f32 %v615_v25, 6.0  ;;  %v617_v35 = vmax.f32 %v602_v27, 0.0 }
 0x392   :  { %v643_v36 = vmul.f32 %v636_v22, %v622_v29  ;;  %v624_v37 = vmin.f32 %v616_v32, 6.0 }
 0x393   :  { %v644_v38 = vmul.f32 %v640_v26, %v623_v33  ;;  %v625_v39 = vmin.f32 %v617_v35, 6.0  ;;  %v605_v40 = vpop.f32.mrb[12].mxu0 }
 0x394   :  { %v662_v42 = vadd.f32 %v655_v31, %v643_v36  ;;  %v645_v43 = vmul.f32 %v636_v22, %v624_v37  ;;  %v606_v44 = vadd.f32 %v605_v40, %v527_v12  ;;  %v607_v46 = vpop.f32.mrb[13].mxu0  ;;  %v1315_v36 = vld [vmem:[%s2142_s17] sm:$0xff]   ;;  %v1316_v37 = vld [vmem:[%s2142_s17 + $0x8] sm:$0xff]  }
 0x395   :  { %v663_v41 = vadd.f32 %v659_v34, %v644_v38  ;;  %v646_v45 = vmul.f32 %v640_v26, %v625_v39  ;;  %v608_v47 = vadd.f32 %v607_v46, %v531_v13  ;;  %v609_v49 = vpop.f32.mrb[14].mxu0  ;;  %1136 = vmatpush1.bf16.msra.mxu1 %v1315_v36  ;;  %v1317_v38 = vld [vmem:[%s2142_s17 + $0x10] sm:$0xff]   ;;  %v1318_v39 = vld [vmem:[%s2142_s17 + $0x18] sm:$0xff]   ;;  %v1319_v40 = vld [vmem:[%s2142_s17 + $0x20] sm:$0xff]  }
 0x396   :  { %v670_v48 = vmax.f32 %v662_v42, 0.0  ;;  %v664_v52 = vadd.f32 %v655_v31, %v645_v43  ;;  %v618_v53 = vmax.f32 %v606_v44, 0.0  ;;  %v610_v54 = vadd.f32 %v609_v49, %v527_v12  ;;  %v611_v55 = vpop.f32.mrb[15].mxu0  ;;  %1137 = vmatprep.subr.bf16.mxu1 %v1617_v0  ;;  %v1320_v42 = vld [vmem:[%s2142_s17 + $0x28] sm:$0xff]   ;;  %v1321_v43 = vld [vmem:[%s2142_s17 + $0x30] sm:$0xff]  }
 0x397   :  { %v671_v56 = vmax.f32 %v663_v41, 0.0  ;;  %v665_v57 = vadd.f32 %v659_v34, %v646_v45  ;;  %v619_v58 = vmax.f32 %v608_v47, 0.0  ;;  %v612_v61 = vadd.f32 %v611_v55, %v531_v13  ;;  %v1228_v44 = vld [vmem:[#allocation13] ss:$0 sm:$0xff] }
 0x398   :  { %v672_v62 = vmax.f32 %v664_v52, 0.0  ;;  %v626_v63 = vmin.f32 %v618_v53, 6.0  ;;  %v620_v1 = vmax.f32 %v610_v54, 0.0  ;;  %v678_v5 = vmin.f32 %v670_v48, 6.0 }
 0x399   :  { %v673_v2 = vmax.f32 %v665_v57, 0.0  ;;  %v627_v3 = vmin.f32 %v619_v58, 6.0  ;;  %v621_v4 = vmax.f32 %v612_v61, 0.0  ;;  %v679_v9 = vmin.f32 %v671_v56, 6.0  ;;  %1138 = vmatpush1.bf16.msra.mxu1 %v1316_v37 }
 0x39a   :  { %v680_v6 = vmin.f32 %v672_v62, 6.0  ;;  %v647_v7 = vmul.f32 %v636_v22, %v626_v63  ;;  %v628_v8 = vmin.f32 %v620_v1, 6.0  ;;  %1139 = vmatprep.subr.bf16.mxu1 %v1617_v0  ;;  %v1322_v1 = vld [vmem:[%s2142_s17 + $0x38] sm:$0xff]  }
 0x39b   :  { %v681_v10 = vmin.f32 %v673_v2, 6.0  ;;  %v648_v11 = vmul.f32 %v640_v26, %v627_v3  ;;  %v629_v14 = vmin.f32 %v621_v4, 6.0  ;;  %v1325_v2 = vld [vmem:[%s2142_s17 + $0x50] sm:$0xff]   ;;  %v1326_v3 = vld [vmem:[%s2142_s17 + $0x58] sm:$0xff]  }
 0x39c   :  { %v711_v12 = vpack.c.bf16 %v680_v6, %v678_v5  ;;  %v666_v15 = vadd.f32 %v655_v31, %v647_v7  ;;  %v649_v16 = vmul.f32 %v636_v22, %v628_v8  ;;  %v857_v4 = vld [vmem:[#allocation15] sm:$0x3]  ;;  %v966_v8 = vld [vmem:[#allocation16] sm:$0x3] }
 0x39d   :  { %v667_v17 = vadd.f32 %v659_v34, %v648_v11  ;;  %v650_v13 = vmul.f32 %v640_v26, %v629_v14  ;;  %v712_v18 = vpack.c.bf16 %v681_v10, %v679_v9  ;;  %1140 = vmatpush1.bf16.msra.mxu1 %v1317_v38  ;;  %v864_v5 = vrot.slane %v857_v4, %v1936_v28  ;;  %v967_v11 = vld [vmem:[#allocation18] sm:$0x3] }
 0x39e   :  { %v674_v20 = vmax.f32 %v666_v15, 0.0  ;;  %v668_v21 = vadd.f32 %v655_v31, %v649_v16  ;;  %v1312_v31 = vld [vmem:[%s2138_s13 + $0x10] ss:$8 sps:$4 sm:$0xff]   ;;  %1141 = vmatprep.subr.bf16.mxu1 %v1617_v0  ;;  %v868_v6 = vrot.slane %v857_v4, %v1938_v30 }
 0x39f   :  { %v675_v23 = vmax.f32 %v667_v17, 0.0  ;;  %v669_v24 = vadd.f32 %v659_v34, %v650_v13  ;;  %1241 = vmatprep.mubr.msk.bf16.mxu0 %vm793_vm4, %v712_v18  ;;  %v1314_v34 = vld [vmem:[%s2138_s13 + $0x14] ss:$8 sps:$4 sm:$0xff]   ;;  %v976_v18 = vrot.slane %v966_v8, %v1938_v30 }
 0x3a0   :  { %v676_v25 = vmax.f32 %v668_v21, 0.0  ;;  %833 = vmatmul.mubr.bf16.vlgmr.msra.gmra.mrb[16].mxu0 %v711_v12  ;;  %v682_v29 = vmin.f32 %v674_v20, 6.0  ;;  %v991_v21 = vrot.slane %v967_v11, %v1936_v28 }
 0x3a1   :  { %v677_v27 = vmax.f32 %v669_v24, 0.0  ;;  %898 = vmatpush1.bf16.msra.mxu0 %v1309_v19  ;;  %v683_v32 = vmin.f32 %v675_v23, 6.0  ;;  %1142 = vmatpush1.bf16.msra.mxu1 %v1318_v39 }
 0x3a2   :  { %v684_v22 = vmin.f32 %v676_v25, 6.0  ;;  %899 = vmatprep.subr.bf16.mxu0 %v1314_v34  ;;  %1143 = vmatprep.subr.bf16.mxu1 %v1617_v0  ;;  %v995_v25 = vrot.slane %v967_v11, %v1938_v30 }
 0x3a3   :  { %v685_v33 = vmin.f32 %v677_v27, 6.0 }
 0x3a4   :  { %v713_v26 = vpack.c.bf16 %v684_v22, %v682_v29 }
 0x3a5   :  { %v714_v35 = vpack.c.bf16 %v685_v33, %v683_v32  ;;  %900 = vmatpush1.bf16.msra.mxu0 %v1312_v31  ;;  %1144 = vmatpush1.bf16.msra.mxu1 %v1319_v40 }
 0x3a6   :  { %1145 = vmatprep.subr.bf16.mxu1 %v1617_v0 }
 0x3a7   :  { %1242 = vmatprep.mubr.msk.bf16.mxu0 %vm793_vm4, %v714_v35 }
 0x3a8   :  { %841 = vmatmul.mubr.bf16.gmra.mrb[20].mxu0 %v713_v26 }
 0x3a9   :  { %929 = vmatprep.mubr.bf16.mxu0 %v1617_v0  ;;  %1146 = vmatpush1.bf16.msra.mxu1 %v1320_v42 }
 0x3aa   :  { %1147 = vmatprep.subr.bf16.mxu1 %v1617_v0 }
 0x3ad   :  { %1148 = vmatpush1.bf16.msra.mxu1 %v1321_v43 }
 0x3ae   :  { %1149 = vmatprep.subr.bf16.mxu1 %v1617_v0 }
 0x3b1   :  { %1150 = vmatpush1.bf16.msra.mxu1 %v1322_v1 }
 0x3b2   :  { %1151 = vmatprep.subr.bf16.mxu1 %v1617_v0 }
 0x473   :  { %v834_v46 = vpop.f32.mrb[16].mxu0 }
 0x474   :  { %v835_v41 = vadd.f32 %v1228_v44, %v834_v46  ;;  %v836_v45 = vpop.f32.mrb[17].mxu0 }
 0x475   :  { %v837_v47 = vpop.f32.mrb[18].mxu0 }
 0x476   :  { %v838_v49 = vadd.f32 %v1228_v44, %v837_v47  ;;  %v839_v48 = vpop.f32.mrb[19].mxu0  ;;  %v2060_v52 = vadd.f32 %v835_v41, %v1948_v50 }
 0x478   :  { %v2063_v53 = vadd.f32 %v838_v49, %v1950_v51 }
 0x47a   :  { %v858_v54 = vpack.c.bf16 %v2063_v53, %v2060_v52 }
 0x47b   :  { %v842_v55 = vpop.f32.mrb[20].mxu0 }
 0x47c   :  { %v843_v56 = vadd.f32 %v1228_v44, %v842_v55  ;;  %v844_v57 = vpop.f32.mrb[21].mxu0  ;;  %1247 = vmatmul.mubr.msk.bf16.vlgmr.msra.gmra.mrb[24].mxu0 %vm554_vm3, %v858_v54 }
 0x47d   :  { %v845_v58 = vpop.f32.mrb[22].mxu0  ;;  %939 = vmatprep.mubr.bf16.mxu0 %v1617_v0 }
 0x47e   :  { %v846_v61 = vadd.f32 %v1228_v44, %v845_v58  ;;  %v847_v62 = vpop.f32.mrb[23].mxu0  ;;  %v2070_v63 = vadd.f32 %v843_v56, %v1963_v59  ;;  %v1323_v59 = vld [vmem:[%s2142_s17 + $0x40] sm:$0xff]  }
 0x47f   :  { %1152 = vmatpush1.bf16.msra.mxu1 %v1323_v59 }
 0x480   :  { %v2073_v50 = vadd.f32 %v846_v61, %v1965_v60  ;;  %1153 = vmatprep.subr.bf16.mxu1 %v1617_v0  ;;  %v1324_v60 = vld [vmem:[%s2142_s17 + $0x48] sm:$0xff]  }
 0x482   :  { %v859_v51 = vpack.c.bf16 %v2073_v50, %v2070_v63 }
 0x483   :  { %1154 = vmatpush1.bf16.msra.mxu1 %v1324_v60 }
 0x484   :  { %1248 = vmatmul.mubr.msk.bf16.gmra.mrb[28].mxu0 %vm554_vm3, %v859_v51  ;;  %1155 = vmatprep.subr.bf16.mxu1 %v1617_v0 }
 0x487   :  { %1156 = vmatpush1.bf16.msra.mxu1 %v1325_v2 }
 0x488   :  { %1157 = vmatprep.subr.bf16.mxu1 %v1617_v0  ;;  %v972_v0 = vrot.slane %v966_v8, %v1936_v28 }
 0x48b   :  { %1158 = vmatpush1.bf16.msra.mxu1 %v1326_v3 }
 0x54f   :  { %v931_v7 = vpop.f32.mrb[24].mxu0 }
 0x550   :  { %v932_v9 = vadd.f32 %v931_v7, %v864_v5  ;;  %v933_v10 = vpop.f32.mrb[25].mxu0 }
 0x551   :  { %v934_v14 = vadd.f32 %v933_v10, %v868_v6  ;;  %v935_v12 = vpop.f32.mrb[26].mxu0 }
 0x552   :  { %v950_v15 = vmax.f32 %v932_v9, 0.0  ;;  %v936_v16 = vadd.f32 %v935_v12, %v864_v5  ;;  %v937_v17 = vpop.f32.mrb[27].mxu0 }
 0x553   :  { %v951_v13 = vmax.f32 %v934_v14, 0.0  ;;  %v938_v19 = vadd.f32 %v937_v17, %v868_v6 }
 0x554   :  { %v958_v20 = vmin.f32 %v950_v15, 6.0  ;;  %v952_v23 = vmax.f32 %v936_v16, 0.0 }
 0x555   :  { %v959_v24 = vmin.f32 %v951_v13, 6.0  ;;  %v953_v27 = vmax.f32 %v938_v19, 0.0 }
 0x556   :  { %v979_v29 = vmul.f32 %v972_v0, %v958_v20  ;;  %v960_v22 = vmin.f32 %v952_v23, 6.0 }
 0x557   :  { %v980_v32 = vmul.f32 %v976_v18, %v959_v24  ;;  %v961_v33 = vmin.f32 %v953_v27, 6.0  ;;  %v941_v26 = vpop.f32.mrb[28].mxu0 }
 0x558   :  { %v998_v35 = vadd.f32 %v991_v21, %v979_v29  ;;  %v981_v31 = vmul.f32 %v972_v0, %v960_v22  ;;  %v942_v34 = vadd.f32 %v941_v26, %v864_v5  ;;  %v943_v36 = vpop.f32.mrb[29].mxu0 }
 0x559   :  { %v999_v37 = vadd.f32 %v995_v25, %v980_v32  ;;  %v982_v38 = vmul.f32 %v976_v18, %v961_v33  ;;  %v944_v39 = vadd.f32 %v943_v36, %v868_v6  ;;  %v945_v40 = vpop.f32.mrb[30].mxu0 }
 0x55a   :  { %v1006_v42 = vmax.f32 %v998_v35, 0.0  ;;  %v1000_v28 = vadd.f32 %v991_v21, %v981_v31  ;;  %v954_v43 = vmax.f32 %v942_v34, 0.0  ;;  %v946_v44 = vadd.f32 %v945_v40, %v864_v5  ;;  %v947_v46 = vpop.f32.mrb[31].mxu0 }
 0x55b   :  { %v1007_v30 = vmax.f32 %v999_v37, 0.0  ;;  %v1001_v41 = vadd.f32 %v995_v25, %v982_v38  ;;  %v955_v45 = vmax.f32 %v944_v39, 0.0  ;;  %v948_v47 = vadd.f32 %v947_v46, %v868_v6 }
 0x55c   :  { %v1008_v49 = vmax.f32 %v1000_v28, 0.0  ;;  %v962_v48 = vmin.f32 %v954_v43, 6.0  ;;  %v956_v54 = vmax.f32 %v946_v44, 0.0  ;;  %v1014_v58 = vmin.f32 %v1006_v42, 6.0 }
 0x55d   :  { %v1009_v55 = vmax.f32 %v1001_v41, 0.0  ;;  %v963_v56 = vmin.f32 %v955_v45, 6.0  ;;  %v957_v57 = vmax.f32 %v948_v47, 0.0  ;;  %v1015_v1 = vmin.f32 %v1007_v30, 6.0 }
 0x55e   :  { %v1016_v61 = vmin.f32 %v1008_v49, 6.0  ;;  %v983_v62 = vmul.f32 %v972_v0, %v962_v48  ;;  %v964_v51 = vmin.f32 %v956_v54, 6.0 }
 0x55f   :  { %v1017_v59 = vmin.f32 %v1009_v55, 6.0  ;;  %v984_v60 = vmul.f32 %v976_v18, %v963_v56  ;;  %v965_v2 = vmin.f32 %v957_v57, 6.0 }
 0x560   :  { %v1047_v3 = vpack.c.bf16 %v1016_v61, %v1014_v58  ;;  %v1002_v4 = vadd.f32 %v991_v21, %v983_v62  ;;  %v985_v5 = vmul.f32 %v972_v0, %v964_v51  ;;  %v1249_v0 = vld [vmem:[#allocation19] ss:$0 sm:$0xff] }
 0x561   :  { %v1003_v7 = vadd.f32 %v995_v25, %v984_v60  ;;  %v986_v8 = vmul.f32 %v976_v18, %v965_v2  ;;  %v1048_v6 = vpack.c.bf16 %v1017_v59, %v1015_v1 }
 0x562   :  { %v1010_v9 = vmax.f32 %v1002_v4, 0.0  ;;  %v1004_v10 = vadd.f32 %v991_v21, %v985_v5 }
 0x563   :  { %v1011_v11 = vmax.f32 %v1003_v7, 0.0  ;;  %v1005_v14 = vadd.f32 %v995_v25, %v986_v8  ;;  %1262 = vmatprep.mubr.msk.bf16.mxu1 %vm793_vm4, %v1048_v6 }
 0x564   :  { %v1012_v12 = vmax.f32 %v1004_v10, 0.0  ;;  %1168 = vmatmul.mubr.bf16.vlgmr.msra.gmra.mrb[8].mxu1 %v1047_v3  ;;  %v1018_v16 = vmin.f32 %v1010_v9, 6.0 }
 0x565   :  { %v1013_v15 = vmax.f32 %v1005_v14, 0.0  ;;  %v1019_v13 = vmin.f32 %v1011_v11, 6.0 }
 0x566   :  { %v1020_v17 = vmin.f32 %v1012_v12, 6.0 }
 0x567   :  { %v1021_v19 = vmin.f32 %v1013_v15, 6.0 }
 0x568   :  { %v1049_v20 = vpack.c.bf16 %v1020_v17, %v1018_v16 }
 0x569   :  { %v1050_v23 = vpack.c.bf16 %v1021_v19, %v1019_v13 }
 0x56b   :  { %1263 = vmatprep.mubr.msk.bf16.mxu1 %vm793_vm4, %v1050_v23 }
 0x56c   :  { %1176 = vmatmul.mubr.bf16.gmra.mrb[12].mxu1 %v1049_v20 }
 0x637   :  { %v1169_v18 = vpop.f32.mrb[8].mxu1 }
 0x638   :  { %v1170_v24 = vadd.f32 %v1249_v0, %v1169_v18  ;;  %v1171_v21 = vpop.f32.mrb[9].mxu1 }
 0x639   :  { %v1172_v27 = vpop.f32.mrb[10].mxu1 }
 0x63a   :  { %v1184_v25 = vadd.f32 %v1170_v24, %v2060_v52  ;;  %v1173_v29 = vadd.f32 %v1249_v0, %v1172_v27  ;;  %v1174_v22 = vpop.f32.mrb[11].mxu1 }
 0x63c   :  { %1188 = vst.msk [vmem:[%s2144_s19] sm:$0xff] %vm554_vm3, %v1184_v25  ;;  %v1185_v32 = vadd.f32 %v1173_v29, %v2063_v53 }
 0x63e   :  { %1189 = vst.msk [vmem:[%s2144_s19 + $0x8] sm:$0xff] %vm554_vm3, %v1185_v32 }
 0x63f   :  { %v1177_v33 = vpop.f32.mrb[12].mxu1 }
 0x640   :  { %v1178_v26 = vadd.f32 %v1249_v0, %v1177_v33  ;;  %v1179_v35 = vpop.f32.mrb[13].mxu1 }
 0x641   :  { %v1180_v31 = vpop.f32.mrb[14].mxu1 }
 0x642   :  { %v1186_v52 = vadd.f32 %v1178_v26, %v2070_v63  ;;  %v1181_v34 = vadd.f32 %v1249_v0, %v1180_v31  ;;  %v1182_v36 = vpop.f32.mrb[15].mxu1 }
 0x644   :  { %1190 = vst.msk [vmem:[%s2144_s19 + $0x10] sm:$0xff] %vm554_vm3, %v1186_v52  ;;  %v1187_v53 = vadd.f32 %v1181_v34, %v2073_v50 }
 0x646   :  { %1191 = vst.msk [vmem:[%s2144_s19 + $0x18] sm:$0xff] %vm554_vm3, %v1187_v53 }
 0x647   :  { %1196 = vsyncpa [#allocation3], 1 }
 0x648   :  { %1197 = vsyncpa [#allocation5], 1 }
 0x649   :  { %1198 = vsyncpa [#allocation8], 1 }
 0x64a   :  { %1199 = vsyncpa [#allocation11], 1 }
 0x64b   :  { %1200 = vsyncpa [#allocation14], 1 }
 0x64c   :  { %1201 = vsyncpa [#allocation17], 1 }
 0x64d   :  { %1202 = vsyncpa [#allocation20], 1 }

// kernel: _lambda_.10
= control target key start
LH: loop header
LB: loop body
LE: loop exit
PB: predicated region body
PF: predicated region fallthrough
CT: control target
= control target key end

     0   :  { %18 = vsyncpa [#allocation3], 0  ;;  %s2307_s0 = inlined_call_operand.vmem [shape: f32[128,16], index: 0, kind: input, shape index: {}]   ;;  %s2308_s1 = inlined_call_operand.hbm [shape: bf16[16,96], index: 1, kind: input, shape index: {}]   ;;  %s2309_s2 = inlined_call_operand.hbm [shape: f32[1,96], index: 2, kind: input, shape index: {}]   ;;  %s2310_s3 = inlined_call_operand.hbm [shape: f32[1,96], index: 3, kind: input, shape index: {}]   ;;  %s2311_s4 = inlined_call_operand.hbm [shape: f32[1,96], index: 4, kind: input, shape index: {}]   ;;  %s2312_s5 = inlined_call_operand.vmem [shape: bf16[96,24], index: 5, kind: input, shape index: {}]   ;;  %s2313_s6 = inlined_call_operand.hbm [shape: f32[1,24], index: 6, kind: input, shape index: {}]   ;;  %s2314_s7 = inlined_call_operand.vmem [shape: bf16[24,144], index: 7, kind: input, shape index: {}]   ;;  %s2315_s8 = inlined_call_operand.hbm [shape: f32[1,144], index: 8, kind: input, shape index: {}]   ;;  %s2316_s9 = inlined_call_operand.hbm [shape: f32[1,144], index: 9, kind: input, shape index: {}]   ;;  %s2317_s10 = inlined_call_operand.hbm [shape: f32[1,144], index: 10, kind: input, shape index: {}]   ;;  %s2318_s11 = inlined_call_operand.vmem [shape: bf16[144,24], index: 11, kind: input, shape index: {}]   ;;  %s2319_s12 = inlined_call_operand.hbm [shape: f32[1,24], index: 12, kind: input, shape index: {}]   ;;  %s2320_s13 = inlined_call_operand.vmem [shape: f32[128,24], index: 13, kind: output, shape index: {}]  }
   0x1   :  { %19 = vsyncpa [#allocation5], 0 }
   0x2   :  { %20 = vsyncpa [#allocation8], 0 }
   0x3   :  { %21 = vsyncpa [#allocation11], 0 }
   0x4   :  { %22 = vsyncpa [#allocation14], 0  ;;  %s1649_s25 = smov [#allocation4]   ;;  %s1650_s27 = smov [#allocation7]  }
   0x5   :  { %s43_s26 = sshll.u32 %s1649_s25, 4  ;;  %s63_s28 = sshll.u32 %s1650_s27, 4  ;;  %s44_s26 = int_to_ptr.vmem [resolvable:$true] %s43_s26  ;;  %s64_s28 = int_to_ptr.vmem [resolvable:$true] %s63_s28 }
   0x6   :  { %s1441_s14 = scalar_lea.hbm %s2309_s2, 16 }
   0x7   :  { %p1442_p0 = scmp.ne.s32.totalorder %s2309_s2, %s1441_s14  ;;  %p1445_p1 = scmp.lt.u32.totalorder %s1441_s14, %s2309_s2 }
   0x9   :  { %p1447_p2 = pnand %p1445_p1, %p1442_p0 }
   0xb   :  { %1450 = shalt.err (!%p1447_p2)
}
   0xc   :  { %s1451_s19 = scalar_lea.vmem %s44_s26, 16  ;;  %s1455_s20 = scalar_lea.vmem %s44_s26, 32 }
   0xd   :  { %p1452_p3 = scmp.ne.s32.totalorder %s44_s26, %s1451_s19  ;;  %p1456_p4 = scmp.lt.s32.totalorder %s44_s26, %s44_s26 }
   0xe   :  { %p1457_p5 = scmp.lt.s32.totalorder %s1455_s20, %s1451_s19 }
  0x10   :  { %p1458_p6 = por %p1457_p5, %p1456_p4 }
  0x12   :  { %p1459_p7 = pnand %p1458_p6, %p1452_p3 }
  0x14   :  { %1462 = shalt.err (!%p1459_p7)
}
  0x15   :  { %46 = dma.hbm_to_vmem [thread:$0]  %s2309_s2, 16, %s44_s26, [#allocation5]  }
  0x16   :  { %s1463_s25 = scalar_lea.hbm %s2311_s4, 16 }
  0x17   :  { %p1464_p8 = scmp.ne.s32.totalorder %s2311_s4, %s1463_s25  ;;  %p1467_p9 = scmp.lt.u32.totalorder %s1463_s25, %s2311_s4 }
  0x19   :  { %p1469_p10 = pnand %p1467_p9, %p1464_p8 }
  0x1b   :  { %1472 = shalt.err (!%p1469_p10)
}
  0x1c   :  { %s1473_s15 = scalar_lea.vmem %s64_s28, 16  ;;  %s1477_s16 = scalar_lea.vmem %s64_s28, 32 }
  0x1d   :  { %p1474_p11 = scmp.ne.s32.totalorder %s64_s28, %s1473_s15  ;;  %p1478_p12 = scmp.lt.s32.totalorder %s64_s28, %s64_s28 }
  0x1e   :  { %p1479_p13 = scmp.lt.s32.totalorder %s1477_s16, %s1473_s15 }
  0x20   :  { %p1480_p0 = por %p1479_p13, %p1478_p12 }
  0x22   :  { %p1481_p1 = pnand %p1480_p0, %p1474_p11 }
  0x24   :  { %1484 = shalt.err (!%p1481_p1)
}
  0x25   :  { %66 = dma.hbm_to_vmem [thread:$0]  %s2311_s4, 16, %s64_s28, [#allocation8]  }
  0x26   :  { %s1651_s17 = smov [#allocation10]   ;;  %s1652_s19 = smov [#allocation13]  }
  0x27   :  { %s87_s18 = sshll.u32 %s1651_s17, 4  ;;  %s107_s20 = sshll.u32 %s1652_s19, 4  ;;  %s88_s18 = int_to_ptr.vmem [resolvable:$true] %s87_s18  ;;  %s108_s20 = int_to_ptr.vmem [resolvable:$true] %s107_s20 }
  0x28   :  { %s1485_s23 = scalar_lea.hbm %s2315_s8, 32 }
  0x29   :  { %p1486_p2 = scmp.ne.s32.totalorder %s2315_s8, %s1485_s23  ;;  %p1489_p3 = scmp.lt.u32.totalorder %s1485_s23, %s2315_s8 }
  0x2b   :  { %p1491_p4 = pnand %p1489_p3, %p1486_p2 }
  0x2d   :  { %1494 = shalt.err (!%p1491_p4)
}
  0x2e   :  { %s1495_s4 = scalar_lea.vmem %s88_s18, 32  ;;  %p1500_p6 = scmp.lt.s32.totalorder %s88_s18, %s88_s18 }
  0x2f   :  { %p1496_p5 = scmp.ne.s32.totalorder %s88_s18, %s1495_s4  ;;  %p1501_p7 = scmp.lt.s32.totalorder %s1495_s4, %s1495_s4 }
  0x31   :  { %p1502_p8 = por %p1501_p7, %p1500_p6 }
  0x33   :  { %p1503_p9 = pnand %p1502_p8, %p1496_p5 }
  0x35   :  { %1506 = shalt.err (!%p1503_p9)
}
  0x36   :  { %90 = dma.hbm_to_vmem [thread:$0]  %s2315_s8, 32, %s88_s18, [#allocation11]  }
  0x37   :  { %s1507_s16 = scalar_lea.hbm %s2317_s10, 32 }
  0x38   :  { %p1508_p10 = scmp.ne.s32.totalorder %s2317_s10, %s1507_s16  ;;  %p1511_p11 = scmp.lt.u32.totalorder %s1507_s16, %s2317_s10 }
  0x3a   :  { %p1513_p12 = pnand %p1511_p11, %p1508_p10 }
  0x3c   :  { %1516 = shalt.err (!%p1513_p12)
}
  0x3d   :  { %s1517_s21 = scalar_lea.vmem %s108_s20, 32  ;;  %p1522_p0 = scmp.lt.s32.totalorder %s108_s20, %s108_s20 }
  0x3e   :  { %p1518_p13 = scmp.ne.s32.totalorder %s108_s20, %s1517_s21  ;;  %p1523_p1 = scmp.lt.s32.totalorder %s1517_s21, %s1517_s21 }
  0x40   :  { %p1524_p2 = por %p1523_p1, %p1522_p0 }
  0x42   :  { %p1525_p3 = pnand %p1524_p2, %p1518_p13 }
  0x44   :  { %1528 = shalt.err (!%p1525_p3)
}
  0x45   :  { %110 = dma.hbm_to_vmem [thread:$0]  %s2317_s10, 32, %s108_s20, [#allocation14]  }
  0x46   :  { %s1653_s22 = smov [#allocation2]   ;;  %s1529_s27 = scalar_lea.hbm %s2308_s1, 128 }
  0x47   :  { %s30_s23 = sshll.u32 %s1653_s22, 4  ;;  %p1530_p4 = scmp.ne.s32.totalorder %s2308_s1, %s1529_s27  ;;  %s31_s23 = int_to_ptr.vmem [resolvable:$true] %s30_s23 }
  0x48   :  { %p1533_p5 = scmp.lt.u32.totalorder %s1529_s27, %s2308_s1 }
  0x4a   :  { %p1535_p6 = pnand %p1533_p5, %p1530_p4 }
  0x4c   :  { %1538 = shalt.err (!%p1535_p6)
}
  0x4d   :  { %s1539_s14 = scalar_lea.vmem %s31_s23, 128  ;;  %p1544_p8 = scmp.lt.s32.totalorder %s31_s23, %s31_s23 }
  0x4e   :  { %p1540_p7 = scmp.ne.s32.totalorder %s31_s23, %s1539_s14  ;;  %p1545_p9 = scmp.lt.s32.totalorder %s1539_s14, %s1539_s14 }
  0x50   :  { %p1546_p10 = por %p1545_p9, %p1544_p8 }
  0x52   :  { %p1547_p11 = pnand %p1546_p10, %p1540_p7 }
  0x54   :  { %1550 = shalt.err (!%p1547_p11)
}
  0x55   :  { %s1654_s10 = smov 64   ;;  %s1655_s20 = smov 4  }
  0x56   :  { %36 = dma.hbm_to_vmem [thread:$0]  %s2308_s1, 128, %s31_s23, [#allocation3], %s1654_s10, %s1654_s10, %s1655_s20  }
  0x57   :  { %s1656_s2 = smov [#allocation6]   ;;  %s1657_s17 = smov [#allocation9]  }
  0x58   :  { %s53_s26 = sshll.u32 %s1656_s2, 4  ;;  %s75_s19 = sshll.u32 %s1657_s17, 4  ;;  %s54_s26 = int_to_ptr.vmem [resolvable:$true] %s53_s26  ;;  %s76_s19 = int_to_ptr.vmem [resolvable:$true] %s75_s19 }
  0x59   :  { %s1551_s18 = scalar_lea.hbm %s2310_s3, 16 }
  0x5a   :  { %p1552_p12 = scmp.ne.s32.totalorder %s2310_s3, %s1551_s18  ;;  %p1555_p13 = scmp.lt.u32.totalorder %s1551_s18, %s2310_s3 }
  0x5c   :  { %p1557_p0 = pnand %p1555_p13, %p1552_p12 }
  0x5e   :  { %1560 = shalt.err (!%p1557_p0)
}
  0x5f   :  { %s1561_s1 = scalar_lea.vmem %s54_s26, 16  ;;  %s1565_s23 = scalar_lea.vmem %s54_s26, 32 }
  0x60   :  { %p1562_p1 = scmp.ne.s32.totalorder %s54_s26, %s1561_s1  ;;  %p1566_p2 = scmp.lt.s32.totalorder %s54_s26, %s54_s26 }
  0x61   :  { %p1567_p3 = scmp.lt.s32.totalorder %s1565_s23, %s1561_s1 }
  0x63   :  { %p1568_p4 = por %p1567_p3, %p1566_p2 }
  0x65   :  { %p1569_p5 = pnand %p1568_p4, %p1562_p1 }
  0x67   :  { %1572 = shalt.err (!%p1569_p5)
}
  0x68   :  { %56 = dma.hbm_to_vmem [thread:$0]  %s2310_s3, 16, %s54_s26, [#allocation5]  }
  0x69   :  { %s1573_s14 = scalar_lea.hbm %s2313_s6, 16 }
  0x6a   :  { %p1574_p6 = scmp.ne.s32.totalorder %s2313_s6, %s1573_s14  ;;  %p1577_p7 = scmp.lt.u32.totalorder %s1573_s14, %s2313_s6 }
  0x6c   :  { %p1579_p8 = pnand %p1577_p7, %p1574_p6 }
  0x6e   :  { %1582 = shalt.err (!%p1579_p8)
}
  0x6f   :  { %s1583_s2 = scalar_lea.vmem %s76_s19, 16  ;;  %s1587_s17 = scalar_lea.vmem %s76_s19, 32 }
  0x70   :  { %p1584_p9 = scmp.ne.s32.totalorder %s76_s19, %s1583_s2  ;;  %p1588_p10 = scmp.lt.s32.totalorder %s76_s19, %s76_s19 }
  0x71   :  { %p1589_p11 = scmp.lt.s32.totalorder %s1587_s17, %s1583_s2 }
  0x73   :  { %p1590_p12 = por %p1589_p11, %p1588_p10 }
  0x75   :  { %p1591_p13 = pnand %p1590_p12, %p1584_p9 }
  0x77   :  { %1594 = shalt.err (!%p1591_p13)
}
  0x78   :  { %78 = dma.hbm_to_vmem [thread:$0]  %s2313_s6, 16, %s76_s19, [#allocation8]  }
  0x79   :  { %s1658_s21 = smov [#allocation12]   ;;  %s1659_s18 = smov [#allocation15]  }
  0x7a   :  { %s97_s8 = sshll.u32 %s1658_s21, 4  ;;  %s119_s22 = sshll.u32 %s1659_s18, 4  ;;  %s98_s8 = int_to_ptr.vmem [resolvable:$true] %s97_s8  ;;  %s120_s22 = int_to_ptr.vmem [resolvable:$true] %s119_s22 }
  0x7b   :  { %s1595_s27 = scalar_lea.hbm %s2316_s9, 32 }
  0x7c   :  { %p1596_p0 = scmp.ne.s32.totalorder %s2316_s9, %s1595_s27  ;;  %p1599_p1 = scmp.lt.u32.totalorder %s1595_s27, %s2316_s9 }
  0x7e   :  { %p1601_p2 = pnand %p1599_p1, %p1596_p0 }
  0x80   :  { %1604 = shalt.err (!%p1601_p2)
}
  0x81   :  { %s1605_s6 = scalar_lea.vmem %s98_s8, 32  ;;  %p1610_p4 = scmp.lt.s32.totalorder %s98_s8, %s98_s8 }
  0x82   :  { %p1606_p3 = scmp.ne.s32.totalorder %s98_s8, %s1605_s6  ;;  %p1611_p5 = scmp.lt.s32.totalorder %s1605_s6, %s1605_s6 }
  0x84   :  { %p1612_p6 = por %p1611_p5, %p1610_p4 }
  0x86   :  { %p1613_p7 = pnand %p1612_p6, %p1606_p3 }
  0x88   :  { %1616 = shalt.err (!%p1613_p7)
}
  0x89   :  { %100 = dma.hbm_to_vmem [thread:$0]  %s2316_s9, 32, %s98_s8, [#allocation11]  }
  0x8a   :  { %s1617_s10 = scalar_lea.hbm %s2319_s12, 16 }
  0x8b   :  { %p1618_p8 = scmp.ne.s32.totalorder %s2319_s12, %s1617_s10  ;;  %p1621_p9 = scmp.lt.u32.totalorder %s1617_s10, %s2319_s12 }
  0x8d   :  { %p1623_p10 = pnand %p1621_p9, %p1618_p8 }
  0x8f   :  { %1626 = shalt.err (!%p1623_p10)
}
  0x90   :  { %s1627_s17 = scalar_lea.vmem %s120_s22, 16  ;;  %s1631_s3 = scalar_lea.vmem %s120_s22, 32 }
  0x91   :  { %p1628_p11 = scmp.ne.s32.totalorder %s120_s22, %s1627_s17  ;;  %p1632_p12 = scmp.lt.s32.totalorder %s120_s22, %s120_s22 }
  0x92   :  { %p1633_p13 = scmp.lt.s32.totalorder %s1631_s3, %s1627_s17 }
  0x94   :  { %p1634_p0 = por %p1633_p13, %p1632_p12 }
  0x96   :  { %p1635_p1 = pnand %p1634_p0, %p1628_p11 }
  0x98   :  { %1638 = shalt.err (!%p1635_p1)
}
  0x99   :  { %122 = dma.hbm_to_vmem [thread:$0]  %s2319_s12, 16, %s120_s22, [#allocation14]  }
  0x9a   :  { %1639 = dma.done.wait [#allocation3], 128  }
  0x9b   :  { %1640 = vsyncadd [#allocation3], 4294967168 }
  0x9c   :  { %1641 = dma.done.wait [#allocation5], 32  }
  0x9d   :  { %1642 = vsyncadd [#allocation5], 4294967264 }
  0x9e   :  { %1643 = dma.done.wait [#allocation8], 32  }
  0x9f   :  { %1644 = vsyncadd [#allocation8], 4294967264 }
  0xa0   :  { %1645 = dma.done.wait [#allocation11], 64  }
  0xa1   :  { %1646 = vsyncadd [#allocation11], 4294967232 }
  0xa2   :  { %1647 = dma.done.wait [#allocation14], 48  }
  0xa3   :  { %1648 = vsyncadd [#allocation14], 4294967248  ;;  %v1420_v0 = vld [vmem:[#allocation2] sm:$0xff]   ;;  %v152_v2 = vld [vmem:[%s2307_s0 + $0x8] sm:$0xff]  ;;  %vm190_vm0 = vcmask 130048   ;;  %vm670_vm1 = vcmask 1043456  }
  0xa4   :  { %v151_v1 = vld [vmem:[%s2307_s0] sm:$0xff]  ;;  %v153_v3 = vld [vmem:[%s2307_s0 + $0x10] sm:$0xff]  ;;  %1344 = vmatprep.subr.bf16.mxu0 %v1420_v0  ;;  %v154_v5 = vld [vmem:[%s2307_s0 + $0x18] sm:$0xff]  ;;  %vm485_vm2 = vcmask 785408   ;;  %vm645_vm3 = vcmask 195584  }
  0xa5   :  { %v170_v4 = vpack.c.bf16 %v152_v2, %v151_v1  ;;  %v155_v6 = vld [vmem:[%s2307_s0 + $0x20] sm:$0xff]  ;;  %v156_v7 = vld [vmem:[%s2307_s0 + $0x28] sm:$0xff]  ;;  %1345 = vmatpush3.bf16.msra.mxu0 %v1420_v0  ;;  %v171_v8 = vpack.c.bf16 %v154_v5, %v153_v3  ;;  %v157_v10 = vld [vmem:[%s2307_s0 + $0x30] sm:$0xff] }
  0xa6   :  { %v172_v9 = vpack.c.bf16 %v156_v7, %v155_v6  ;;  %v158_v11 = vld [vmem:[%s2307_s0 + $0x38] sm:$0xff]  ;;  %v159_v12 = vld [vmem:[%s2307_s0 + $0x40] sm:$0xff]  ;;  %v160_v13 = vld [vmem:[%s2307_s0 + $0x48] sm:$0xff] }
  0xa7   :  { %1346 = vmatprep.mubr.msk.bf16.mxu0 %vm190_vm0, %v170_v4  ;;  %v1421_v14 = vld [vmem:[%s2312_s5] sm:$0xff]   ;;  %v173_v15 = vpack.c.bf16 %v158_v11, %v157_v10  ;;  %v174_v16 = vpack.c.bf16 %v160_v13, %v159_v12  ;;  %v161_v17 = vld [vmem:[%s2307_s0 + $0x50] sm:$0xff]  ;;  %v162_v18 = vld [vmem:[%s2307_s0 + $0x58] sm:$0xff] }
  0xa8   :  { %1347 = vmatmul.mubr.msk.bf16.vlgmr.msra.gmra.mrb[0].mxu0 %vm190_vm0, %v171_v8  ;;  %1362 = vmatprep.subr.bf16.mxu1 %v1421_v14  ;;  %v163_v19 = vld [vmem:[%s2307_s0 + $0x60] sm:$0xff]  ;;  %v164_v20 = vld [vmem:[%s2307_s0 + $0x68] sm:$0xff]  ;;  %v175_v21 = vpack.c.bf16 %v162_v18, %v161_v17  ;;  %v165_v23 = vld [vmem:[%s2307_s0 + $0x70] sm:$0xff] }
  0xa9   :  { %1350 = vmatprep.mubr.msk.bf16.mxu0 %vm190_vm0, %v172_v9  ;;  %1363 = vmatpush3.bf16.msra.mxu1 %v1421_v14  ;;  %v176_v22 = vpack.c.bf16 %v164_v20, %v163_v19  ;;  %v166_v24 = vld [vmem:[%s2307_s0 + $0x78] sm:$0xff]  ;;  %v1422_v26 = vld [vmem:[%s2312_s5 + $0x8] sm:$0xff]   ;;  %v1423_v27 = vld [vmem:[%s2312_s5 + $0x10] sm:$0xff]  }
  0xaa   :  { %v177_v25 = vpack.c.bf16 %v166_v24, %v165_v23  ;;  %1364 = vmatprep.subr.bf16.mxu1 %v1422_v26  ;;  %v1424_v28 = vld [vmem:[%s2312_s5 + $0x18] sm:$0xff]   ;;  %v1425_v29 = vld [vmem:[%s2312_s5 + $0x20] sm:$0xff]   ;;  %v1426_v30 = vld [vmem:[%s2312_s5 + $0x28] sm:$0xff]  }
  0xab   :  { %v1427_v31 = vld [vmem:[%s2314_s7] ss:$8 sps:$4 sm:$0xff]   ;;  %v1429_v32 = vld [vmem:[%s2314_s7 + $0x4] ss:$8 sps:$4 sm:$0xff]   ;;  %v609_v33 = vld [vmem:[%s2314_s7 + $0x10] sm:$0xff] }
  0xac   :  { %v1293_v34 = vcombine.high %v609_v33, %v609_v33  ;;  %v1292_v35 = vcombine.low %v609_v33, %v609_v33  ;;  %677 = vmatprep.subr.bf16.mxu0 %v1429_v32  ;;  %v1922_v37 = vld [vmem:[#allocation4] ss:$0 sm:$0xff]  ;;  %v1927_v46 = vld [vmem:[#allocation6] ss:$0 sm:$0xff]  ;;  %v1930_v51 = vld [vmem:[#allocation7] ss:$0 sm:$0xff] }
  0xad   :  { %1365 = vmatpush3.bf16.msra.mxu1 %v1422_v26  ;;  %678 = vmatpush1.bf16.msra.mxu0 %v1427_v31 }
  0xae   :  { %1366 = vmatprep.subr.bf16.mxu1 %v1423_v27  ;;  %1294 = vmatprep.subr.msk.bf16.mxu0 %vm670_vm1, %v1293_v34  ;;  %v672_v36 = vsel %vm670_vm1, %v1292_v35, 0 }
  0xb0   :  { %1351 = vmatmul.mubr.msk.bf16.gmra.mrb[4].mxu0 %vm190_vm0, %v173_v15 }
  0xb1   :  { %1354 = vmatprep.mubr.msk.bf16.mxu0 %vm190_vm0, %v174_v16  ;;  %1367 = vmatpush3.bf16.msra.mxu1 %v1423_v27 }
  0xb2   :  { %1368 = vmatprep.subr.bf16.mxu1 %v1424_v28  ;;  %680 = vmatpush1.bf16.msra.mxu0 %v672_v36 }
  0xb5   :  { %1369 = vmatpush3.bf16.msra.mxu1 %v1424_v28 }
  0xb6   :  { %1370 = vmatprep.subr.bf16.mxu1 %v1425_v29 }
  0xb8   :  { %1355 = vmatmul.mubr.msk.bf16.gmra.mrb[8].mxu0 %vm190_vm0, %v175_v21 }
  0xb9   :  { %1358 = vmatprep.mubr.msk.bf16.mxu0 %vm190_vm0, %v176_v22  ;;  %1371 = vmatpush3.bf16.msra.mxu1 %v1425_v29 }
  0xba   :  { %1372 = vmatprep.subr.bf16.mxu1 %v1426_v30 }
  0xbd   :  { %1373 = vmatpush3.bf16.msra.mxu1 %v1426_v30 }
  0xc0   :  { %1359 = vmatmul.mubr.msk.bf16.gmra.mrb[12].mxu0 %vm190_vm0, %v177_v25 }
 0x17b   :  { %v1348_v38 = vpop.f32.mrb[0].mxu0 }
 0x17c   :  { %v258_v39 = vadd.f32 %v1348_v38, %v1922_v37  ;;  %v249_v40 = vpop.f32.mrb[1].mxu0 }
 0x17d   :  { %v250_v41 = vadd.f32 %v1922_v37, %v249_v40  ;;  %v1349_v42 = vpop.f32.mrb[2].mxu0 }
 0x17e   :  { %v314_v43 = vmax.f32 %v258_v39, 0.0  ;;  %v261_v44 = vadd.f32 %v1349_v42, %v1922_v37  ;;  %v252_v45 = vpop.f32.mrb[3].mxu0 }
 0x17f   :  { %v312_v47 = vmax.f32 %v250_v41, 0.0  ;;  %v253_v48 = vadd.f32 %v1922_v37, %v252_v45 }
 0x180   :  { %v330_v49 = vmin.f32 %v314_v43, 6.0  ;;  %v315_v50 = vmax.f32 %v261_v44, 0.0 }
 0x181   :  { %v328_v52 = vmin.f32 %v312_v47, 6.0  ;;  %v313_v53 = vmax.f32 %v253_v48, 0.0 }
 0x182   :  { %v354_v54 = vmul.f32 %v1927_v46, %v330_v49  ;;  %v331_v55 = vmin.f32 %v315_v50, 6.0 }
 0x183   :  { %v352_v56 = vmul.f32 %v1927_v46, %v328_v52  ;;  %v329_v57 = vmin.f32 %v313_v53, 6.0  ;;  %v1352_v58 = vpop.f32.mrb[4].mxu0 }
 0x184   :  { %v376_v59 = vadd.f32 %v1930_v51, %v354_v54  ;;  %v355_v60 = vmul.f32 %v1927_v46, %v331_v55  ;;  %v274_v61 = vadd.f32 %v1352_v58, %v1922_v37  ;;  %v265_v62 = vpop.f32.mrb[5].mxu0 }
 0x185   :  { %v353_v63 = vmul.f32 %v1927_v46, %v329_v57  ;;  %v266_v0 = vadd.f32 %v1922_v37, %v265_v62  ;;  %v1353_v1 = vpop.f32.mrb[6].mxu0  ;;  %v374_v2 = vadd.f32 %v1930_v51, %v352_v56 }
 0x186   :  { %v392_v3 = vmax.f32 %v376_v59, 0.0  ;;  %v377_v4 = vadd.f32 %v1930_v51, %v355_v60  ;;  %v318_v5 = vmax.f32 %v274_v61, 0.0  ;;  %v277_v6 = vadd.f32 %v1353_v1, %v1922_v37  ;;  %v268_v7 = vpop.f32.mrb[7].mxu0 }
 0x187   :  { %v316_v8 = vmax.f32 %v266_v0, 0.0  ;;  %v269_v9 = vadd.f32 %v1922_v37, %v268_v7  ;;  %v375_v10 = vadd.f32 %v1930_v51, %v353_v63  ;;  %v390_v11 = vmax.f32 %v374_v2, 0.0 }
 0x188   :  { %v393_v12 = vmax.f32 %v377_v4, 0.0  ;;  %v334_v13 = vmin.f32 %v318_v5, 6.0  ;;  %v319_v14 = vmax.f32 %v277_v6, 0.0  ;;  %v408_v18 = vmin.f32 %v392_v3, 6.0 }
 0x189   :  { %v332_v15 = vmin.f32 %v316_v8, 6.0  ;;  %v317_v16 = vmax.f32 %v269_v9, 0.0  ;;  %v391_v17 = vmax.f32 %v375_v10, 0.0  ;;  %v406_v24 = vmin.f32 %v390_v11, 6.0 }
 0x18a   :  { %v409_v19 = vmin.f32 %v393_v12, 6.0  ;;  %v358_v20 = vmul.f32 %v1927_v46, %v334_v13  ;;  %v335_v21 = vmin.f32 %v319_v14, 6.0 }
 0x18b   :  { %v356_v22 = vmul.f32 %v1927_v46, %v332_v15  ;;  %v333_v23 = vmin.f32 %v317_v16, 6.0  ;;  %v407_v25 = vmin.f32 %v391_v17, 6.0  ;;  %v1356_v26 = vpop.f32.mrb[8].mxu0 }
 0x18c   :  { %v380_v27 = vadd.f32 %v1930_v51, %v358_v20  ;;  %v359_v28 = vmul.f32 %v1927_v46, %v335_v21  ;;  %v436_v29 = vpack.c.bf16 %v409_v19, %v408_v18  ;;  %v290_v30 = vadd.f32 %v1356_v26, %v1922_v37  ;;  %v281_v31 = vpop.f32.mrb[9].mxu0 }
 0x18d   :  { %v378_v32 = vadd.f32 %v1930_v51, %v356_v22  ;;  %v357_v33 = vmul.f32 %v1927_v46, %v333_v23  ;;  %v435_v34 = vpack.c.bf16 %v407_v25, %v406_v24  ;;  %v282_v35 = vadd.f32 %v1922_v37, %v281_v31  ;;  %v1357_v36 = vpop.f32.mrb[10].mxu0 }
 0x18e   :  { %v396_v38 = vmax.f32 %v380_v27, 0.0  ;;  %v381_v39 = vadd.f32 %v1930_v51, %v359_v28  ;;  %v322_v40 = vmax.f32 %v290_v30, 0.0  ;;  %v293_v41 = vadd.f32 %v1357_v36, %v1922_v37  ;;  %v284_v42 = vpop.f32.mrb[11].mxu0 }
 0x18f   :  { %v394_v43 = vmax.f32 %v378_v32, 0.0  ;;  %v379_v44 = vadd.f32 %v1930_v51, %v357_v33  ;;  %1374 = vmatprep.mubr.msk.bf16.mxu1 %vm485_vm2, %v435_v34  ;;  %v320_v45 = vmax.f32 %v282_v35, 0.0  ;;  %v285_v47 = vadd.f32 %v1922_v37, %v284_v42 }
 0x190   :  { %v412_v48 = vmin.f32 %v396_v38, 6.0  ;;  %v397_v49 = vmax.f32 %v381_v39, 0.0  ;;  %1375 = vmatmul.mubr.msk.bf16.vlgmr.msra.gmra.mrb[0].mxu1 %vm485_vm2, %v436_v29  ;;  %v338_v50 = vmin.f32 %v322_v40, 6.0  ;;  %v323_v52 = vmax.f32 %v293_v41, 0.0 }
 0x191   :  { %v410_v53 = vmin.f32 %v394_v43, 6.0  ;;  %v395_v54 = vmax.f32 %v379_v44, 0.0  ;;  %v336_v55 = vmin.f32 %v320_v45, 6.0  ;;  %v321_v56 = vmax.f32 %v285_v47, 0.0 }
 0x192   :  { %v413_v57 = vmin.f32 %v397_v49, 6.0  ;;  %v362_v58 = vmul.f32 %v1927_v46, %v338_v50  ;;  %v339_v59 = vmin.f32 %v323_v52, 6.0 }
 0x193   :  { %v411_v60 = vmin.f32 %v395_v54, 6.0  ;;  %v360_v61 = vmul.f32 %v1927_v46, %v336_v55  ;;  %v337_v62 = vmin.f32 %v321_v56, 6.0  ;;  %v1360_v63 = vpop.f32.mrb[12].mxu0  ;;  %v1434_v54 = vld [vmem:[%s2318_s11 + $0x10] sm:$0xff]   ;;  %v1435_v55 = vld [vmem:[%s2318_s11 + $0x18] sm:$0xff]  }
 0x194   :  { %v384_v0 = vadd.f32 %v1930_v51, %v362_v58  ;;  %v363_v1 = vmul.f32 %v1927_v46, %v339_v59  ;;  %v438_v2 = vpack.c.bf16 %v413_v57, %v412_v48  ;;  %v306_v3 = vadd.f32 %v1360_v63, %v1922_v37  ;;  %v297_v4 = vpop.f32.mrb[13].mxu0  ;;  %v1275_v57 = vld [vmem:[#allocation9] ss:$0 sm:$0xff] }
 0x195   :  { %v382_v5 = vadd.f32 %v1930_v51, %v360_v61  ;;  %v361_v6 = vmul.f32 %v1927_v46, %v337_v62  ;;  %v437_v7 = vpack.c.bf16 %v411_v60, %v410_v53  ;;  %v298_v8 = vadd.f32 %v1922_v37, %v297_v4  ;;  %v1361_v9 = vpop.f32.mrb[14].mxu0  ;;  %v1433_v53 = vld [vmem:[%s2318_s11 + $0x8] sm:$0xff]  }
 0x196   :  { %v400_v10 = vmax.f32 %v384_v0, 0.0  ;;  %v385_v11 = vadd.f32 %v1930_v51, %v363_v1  ;;  %v326_v12 = vmax.f32 %v306_v3, 0.0  ;;  %v309_v13 = vadd.f32 %v1361_v9, %v1922_v37  ;;  %v300_v14 = vpop.f32.mrb[15].mxu0 }
 0x197   :  { %v398_v15 = vmax.f32 %v382_v5, 0.0  ;;  %v383_v16 = vadd.f32 %v1930_v51, %v361_v6  ;;  %1378 = vmatprep.mubr.msk.bf16.mxu1 %vm485_vm2, %v437_v7  ;;  %v324_v17 = vmax.f32 %v298_v8, 0.0  ;;  %v301_v18 = vadd.f32 %v1922_v37, %v300_v14 }
 0x198   :  { %v416_v19 = vmin.f32 %v400_v10, 6.0  ;;  %v401_v20 = vmax.f32 %v385_v11, 0.0  ;;  %1379 = vmatmul.mubr.msk.bf16.gmra.mrb[4].mxu1 %vm485_vm2, %v438_v2  ;;  %v342_v21 = vmin.f32 %v326_v12, 6.0  ;;  %v327_v22 = vmax.f32 %v309_v13, 0.0 }
 0x199   :  { %v414_v23 = vmin.f32 %v398_v15, 6.0  ;;  %v399_v24 = vmax.f32 %v383_v16, 0.0  ;;  %v340_v25 = vmin.f32 %v324_v17, 6.0  ;;  %v325_v26 = vmax.f32 %v301_v18, 0.0 }
 0x19a   :  { %v417_v27 = vmin.f32 %v401_v20, 6.0  ;;  %v366_v28 = vmul.f32 %v1927_v46, %v342_v21  ;;  %v343_v29 = vmin.f32 %v327_v22, 6.0 }
 0x19b   :  { %v415_v30 = vmin.f32 %v399_v24, 6.0  ;;  %v364_v31 = vmul.f32 %v1927_v46, %v340_v25  ;;  %v341_v32 = vmin.f32 %v325_v26, 6.0 }
 0x19c   :  { %v388_v37 = vadd.f32 %v1930_v51, %v366_v28  ;;  %v367_v33 = vmul.f32 %v1927_v46, %v343_v29  ;;  %v440_v34 = vpack.c.bf16 %v417_v27, %v416_v19 }
 0x19d   :  { %v386_v35 = vadd.f32 %v1930_v51, %v364_v31  ;;  %v365_v36 = vmul.f32 %v1927_v46, %v341_v32  ;;  %v439_v38 = vpack.c.bf16 %v415_v30, %v414_v23  ;;  %v1660_v46 = vmov 0  }
 0x19e   :  { %v404_v39 = vmax.f32 %v388_v37, 0.0  ;;  %v389_v40 = vadd.f32 %v1930_v51, %v367_v33  ;;  %709 = vmatprep.mubr.bf16.mxu0 %v1660_v46  ;;  %1125 = vmatprep.subr.bf16.mxu0 %v1660_v46  ;;  %v1436_v37 = vld [vmem:[%s2318_s11 + $0x20] sm:$0xff]   ;;  %v1437_v33 = vld [vmem:[%s2318_s11 + $0x28] sm:$0xff]  }
 0x19f   :  { %v402_v41 = vmax.f32 %v386_v35, 0.0  ;;  %v387_v42 = vadd.f32 %v1930_v51, %v365_v36  ;;  %1382 = vmatprep.mubr.msk.bf16.mxu1 %vm485_vm2, %v439_v38  ;;  %1390 = vmatprep.subr.bf16.mxu1 %v1660_v46  ;;  %v1432_v51 = vld [vmem:[%s2318_s11] sm:$0xff]   ;;  %v1439_v35 = vld [vmem:[%s2318_s11 + $0x38] sm:$0xff]   ;;  %v620_v38 = vlaneseq }
 0x1a0   :  { %v420_v43 = vmin.f32 %v404_v39, 6.0  ;;  %v405_v44 = vmax.f32 %v389_v40, 0.0  ;;  %1383 = vmatmul.mubr.msk.bf16.gmra.mrb[8].mxu1 %vm485_vm2, %v440_v34  ;;  %v1438_v34 = vld [vmem:[%s2318_s11 + $0x30] sm:$0xff]   ;;  %v1440_v36 = vld [vmem:[%s2318_s11 + $0x40] sm:$0xff]  }
 0x1a1   :  { %v418_v45 = vmin.f32 %v402_v41, 6.0  ;;  %v403_v47 = vmax.f32 %v387_v42, 0.0  ;;  %1399 = vmatpush1.bf16.msra.mxu1 %v1432_v51  ;;  %v621_v39 = vshrl.u32 %v620_v38, 7  ;;  %v610_v41 = vld [vmem:[#allocation10] sm:$0x3] }
 0x1a2   :  { %v421_v48 = vmin.f32 %v405_v44, 6.0  ;;  %1391 = vmatprep.subr.bf16.mxu1 %v1660_v46 }
 0x1a3   :  { %v419_v49 = vmin.f32 %v403_v47, 6.0  ;;  %v622_v40 = vsub.s32 0, %v621_v39  ;;  %v626_v42 = vsub.s32 1, %v621_v39  ;;  %v854_v47 = vld [vmem:[#allocation12] sm:$0x3] }
 0x1a4   :  { %v442_v50 = vpack.c.bf16 %v421_v48, %v420_v43 }
 0x1a5   :  { %v441_v52 = vpack.c.bf16 %v419_v49, %v418_v45  ;;  %1400 = vmatpush1.bf16.msra.mxu1 %v1433_v53  ;;  %v2093_v43 = vrot.slane %v610_v41, %v622_v40  ;;  %v2095_v44 = vrot.slane %v610_v41, %v626_v42 }
 0x1a6   :  { %1392 = vmatprep.subr.bf16.mxu1 %v1660_v46 }
 0x1a7   :  { %1386 = vmatprep.mubr.msk.bf16.mxu1 %vm485_vm2, %v441_v52 }
 0x1a8   :  { %1387 = vmatmul.mubr.msk.bf16.gmra.mrb[12].mxu1 %vm485_vm2, %v442_v50  ;;  %v855_v50 = vld [vmem:[#allocation13] sm:$0x3] }
 0x1a9   :  { %1401 = vmatpush1.bf16.msra.mxu1 %v1434_v54 }
 0x1aa   :  { %1393 = vmatprep.subr.bf16.mxu1 %v1660_v46 }
 0x1ad   :  { %1402 = vmatpush1.bf16.msra.mxu1 %v1435_v55 }
 0x1ae   :  { %1394 = vmatprep.subr.bf16.mxu1 %v1660_v46 }
 0x1b1   :  { %1403 = vmatpush1.bf16.msra.mxu1 %v1436_v37 }
 0x1b2   :  { %1395 = vmatprep.subr.bf16.mxu1 %v1660_v46 }
 0x1b5   :  { %1404 = vmatpush1.bf16.msra.mxu1 %v1437_v33 }
 0x1b6   :  { %1396 = vmatprep.subr.bf16.mxu1 %v1660_v46 }
 0x1b9   :  { %1405 = vmatpush1.bf16.msra.mxu1 %v1438_v34 }
 0x1ba   :  { %1397 = vmatprep.subr.bf16.mxu1 %v1660_v46 }
 0x1bd   :  { %1406 = vmatpush1.bf16.msra.mxu1 %v1439_v35 }
 0x1be   :  { %1398 = vmatprep.subr.bf16.mxu1 %v1660_v46 }
 0x1c1   :  { %1407 = vmatpush1.bf16.msra.mxu1 %v1440_v36 }
 0x263   :  { %v1376_v56 = vpop.f32.mrb[0].mxu1 }
 0x264   :  { %v544_v58 = vpop.f32.mrb[1].mxu1  ;;  %v2014_v5 = vadd.f32 %v1376_v56, %v1275_v57 }
 0x265   :  { %v1377_v59 = vpop.f32.mrb[2].mxu1  ;;  %v2003_v61 = vadd.f32 %v1275_v57, %v544_v58 }
 0x266   :  { %v547_v60 = vpop.f32.mrb[3].mxu1  ;;  %v2011_v2 = vadd.f32 %v1377_v59, %v1275_v57 }
 0x267   :  { %v2005_v62 = vadd.f32 %v1275_v57, %v547_v60  ;;  %v2105_v60 = vrot.slane %v855_v50, %v622_v40 }
 0x268   :  { %v612_v6 = vpack.c.bf16 %v2011_v2, %v2014_v5 }
 0x269   :  { %v611_v63 = vpack.c.bf16 %v2005_v62, %v2003_v61 }
 0x26b   :  { %1295 = vmatmul.mubr.msk.bf16.vlgmr.msra.gmra.mrb[16].mxu0 %vm645_vm3, %v611_v63  ;;  %v1380_v0 = vpop.f32.mrb[4].mxu1 }
 0x26c   :  { %v560_v1 = vpop.f32.mrb[5].mxu1  ;;  %719 = vmatprep.mubr.bf16.mxu0 %v1660_v46  ;;  %1126 = vmatpush1.bf16.msra.mxu0 %v1432_v51  ;;  %v2031_v16 = vadd.f32 %v1380_v0, %v1275_v57 }
 0x26d   :  { %v1381_v3 = vpop.f32.mrb[6].mxu1  ;;  %1127 = vmatprep.subr.bf16.mxu0 %v1660_v46  ;;  %v2021_v9 = vadd.f32 %v1275_v57, %v560_v1  ;;  %v2107_v1 = vrot.slane %v855_v50, %v626_v42 }
 0x26e   :  { %v563_v4 = vpop.f32.mrb[7].mxu1  ;;  %v2033_v17 = vadd.f32 %v1381_v3, %v1275_v57 }
 0x26f   :  { %v2023_v10 = vadd.f32 %v1275_v57, %v563_v4 }
 0x270   :  { %1128 = vmatpush1.bf16.msra.mxu0 %v1433_v53  ;;  %v614_v20 = vpack.c.bf16 %v2033_v17, %v2031_v16  ;;  %v2099_v53 = vrot.slane %v854_v47, %v622_v40 }
 0x271   :  { %1129 = vmatprep.subr.bf16.mxu0 %v1660_v46  ;;  %v613_v13 = vpack.c.bf16 %v2023_v10, %v2021_v9 }
 0x273   :  { %1296 = vmatmul.mubr.msk.bf16.gmra.mrb[20].mxu0 %vm645_vm3, %v612_v6  ;;  %v1384_v7 = vpop.f32.mrb[8].mxu1 }
 0x274   :  { %729 = vmatprep.mubr.bf16.mxu0 %v1660_v46  ;;  %v576_v8 = vpop.f32.mrb[9].mxu1  ;;  %1130 = vmatpush1.bf16.msra.mxu0 %v1434_v54  ;;  %v2047_v24 = vadd.f32 %v1384_v7, %v1275_v57 }
 0x275   :  { %v1385_v11 = vpop.f32.mrb[10].mxu1  ;;  %1131 = vmatprep.subr.bf16.mxu0 %v1660_v46  ;;  %v2039_v21 = vadd.f32 %v1275_v57, %v576_v8 }
 0x276   :  { %v579_v12 = vpop.f32.mrb[11].mxu1  ;;  %v2049_v25 = vadd.f32 %v1385_v11, %v1275_v57 }
 0x277   :  { %v2041_v22 = vadd.f32 %v1275_v57, %v579_v12 }
 0x278   :  { %1132 = vmatpush1.bf16.msra.mxu0 %v1435_v55  ;;  %v616_v26 = vpack.c.bf16 %v2049_v25, %v2047_v24 }
 0x279   :  { %1133 = vmatprep.subr.bf16.mxu0 %v1660_v46  ;;  %v615_v23 = vpack.c.bf16 %v2041_v22, %v2039_v21 }
 0x27b   :  { %1297 = vmatmul.mubr.msk.bf16.gmra.mrb[24].mxu0 %vm645_vm3, %v613_v13  ;;  %v1388_v14 = vpop.f32.mrb[12].mxu1 }
 0x27c   :  { %739 = vmatprep.mubr.bf16.mxu0 %v1660_v46  ;;  %v592_v15 = vpop.f32.mrb[13].mxu1  ;;  %v2063_v30 = vadd.f32 %v1388_v14, %v1275_v57  ;;  %1134 = vmatpush1.bf16.msra.mxu0 %v1436_v37 }
 0x27d   :  { %v1389_v18 = vpop.f32.mrb[14].mxu1  ;;  %v2055_v27 = vadd.f32 %v1275_v57, %v592_v15  ;;  %1135 = vmatprep.subr.bf16.mxu0 %v1660_v46 }
 0x27e   :  { %v595_v19 = vpop.f32.mrb[15].mxu1  ;;  %v2065_v31 = vadd.f32 %v1389_v18, %v1275_v57 }
 0x27f   :  { %v2057_v28 = vadd.f32 %v1275_v57, %v595_v19  ;;  %v2102_v57 = vrot.slane %v854_v47, %v626_v42 }
 0x280   :  { %v618_v32 = vpack.c.bf16 %v2065_v31, %v2063_v30  ;;  %1136 = vmatpush1.bf16.msra.mxu0 %v1437_v33 }
 0x281   :  { %v617_v29 = vpack.c.bf16 %v2057_v28, %v2055_v27  ;;  %1137 = vmatprep.subr.bf16.mxu0 %v1660_v46 }
 0x283   :  { %1298 = vmatmul.mubr.msk.bf16.gmra.mrb[28].mxu0 %vm645_vm3, %v614_v20 }
 0x284   :  { %749 = vmatprep.mubr.bf16.mxu0 %v1660_v46  ;;  %1138 = vmatpush1.bf16.msra.mxu0 %v1438_v34 }
 0x285   :  { %1139 = vmatprep.subr.bf16.mxu0 %v1660_v46 }
 0x288   :  { %1140 = vmatpush1.bf16.msra.mxu0 %v1439_v35 }
 0x289   :  { %1141 = vmatprep.subr.bf16.mxu0 %v1660_v46 }
 0x28b   :  { %1299 = vmatmul.mubr.msk.bf16.gmra.mrb[32].mxu0 %vm645_vm3, %v615_v23 }
 0x28c   :  { %759 = vmatprep.mubr.bf16.mxu0 %v1660_v46  ;;  %1142 = vmatpush1.bf16.msra.mxu0 %v1440_v36 }
 0x293   :  { %1300 = vmatmul.mubr.msk.bf16.gmra.mrb[36].mxu0 %vm645_vm3, %v616_v26 }
 0x294   :  { %769 = vmatprep.mubr.bf16.mxu0 %v1660_v46 }
 0x29b   :  { %1301 = vmatmul.mubr.msk.bf16.gmra.mrb[40].mxu0 %vm645_vm3, %v617_v29 }
 0x29c   :  { %779 = vmatprep.mubr.bf16.mxu0 %v1660_v46 }
 0x2a3   :  { %1302 = vmatmul.mubr.msk.bf16.gmra.mrb[44].mxu0 %vm645_vm3, %v618_v32 }
 0x33e   :  { %v711_v45 = vpop.f32.mrb[16].mxu0 }
 0x33f   :  { %v712_v48 = vadd.f32 %v711_v45, %v2093_v43  ;;  %v713_v49 = vpop.f32.mrb[17].mxu0 }
 0x340   :  { %v714_v52 = vadd.f32 %v713_v49, %v2095_v44  ;;  %v715_v46 = vpop.f32.mrb[18].mxu0 }
 0x341   :  { %v790_v51 = vmax.f32 %v712_v48, 0.0  ;;  %v716_v54 = vadd.f32 %v715_v46, %v2093_v43  ;;  %v717_v55 = vpop.f32.mrb[19].mxu0 }
 0x342   :  { %v791_v56 = vmax.f32 %v714_v52, 0.0  ;;  %v718_v58 = vadd.f32 %v717_v55, %v2095_v44 }
 0x343   :  { %v822_v59 = vmin.f32 %v790_v51, 6.0  ;;  %v792_v63 = vmax.f32 %v716_v54, 0.0 }
 0x344   :  { %v823_v0 = vmin.f32 %v791_v56, 6.0  ;;  %v793_v3 = vmax.f32 %v718_v58, 0.0 }
 0x345   :  { %v867_v4 = vmul.f32 %v2099_v53, %v822_v59  ;;  %v824_v6 = vmin.f32 %v792_v63, 6.0 }
 0x346   :  { %v868_v7 = vmul.f32 %v2102_v57, %v823_v0  ;;  %v825_v8 = vmin.f32 %v793_v3, 6.0  ;;  %v721_v11 = vpop.f32.mrb[20].mxu0 }
 0x347   :  { %v910_v12 = vadd.f32 %v2105_v60, %v867_v4  ;;  %v869_v13 = vmul.f32 %v2099_v53, %v824_v6  ;;  %v722_v14 = vadd.f32 %v721_v11, %v2093_v43  ;;  %v723_v15 = vpop.f32.mrb[21].mxu0 }
 0x348   :  { %v911_v18 = vadd.f32 %v2107_v1, %v868_v7  ;;  %v870_v19 = vmul.f32 %v2102_v57, %v825_v8  ;;  %v724_v20 = vadd.f32 %v723_v15, %v2095_v44  ;;  %v725_v23 = vpop.f32.mrb[22].mxu0 }
 0x349   :  { %v942_v26 = vmax.f32 %v910_v12, 0.0  ;;  %v912_v29 = vadd.f32 %v2105_v60, %v869_v13  ;;  %v794_v32 = vmax.f32 %v722_v14, 0.0  ;;  %v726_v37 = vadd.f32 %v725_v23, %v2093_v43  ;;  %v727_v33 = vpop.f32.mrb[23].mxu0 }
 0x34a   :  { %v943_v34 = vmax.f32 %v911_v18, 0.0  ;;  %v913_v35 = vadd.f32 %v2107_v1, %v870_v19  ;;  %v795_v36 = vmax.f32 %v724_v20, 0.0  ;;  %v728_v38 = vadd.f32 %v727_v33, %v2095_v44 }
 0x34b   :  { %v944_v39 = vmax.f32 %v912_v29, 0.0  ;;  %v826_v40 = vmin.f32 %v794_v32, 6.0  ;;  %v796_v41 = vmax.f32 %v726_v37, 0.0  ;;  %v974_v48 = vmin.f32 %v942_v26, 6.0 }
 0x34c   :  { %v945_v42 = vmax.f32 %v913_v35, 0.0  ;;  %v827_v45 = vmin.f32 %v795_v36, 6.0  ;;  %v797_v47 = vmax.f32 %v728_v38, 0.0  ;;  %v975_v46 = vmin.f32 %v943_v34, 6.0 }
 0x34d   :  { %v976_v49 = vmin.f32 %v944_v39, 6.0  ;;  %v871_v50 = vmul.f32 %v2099_v53, %v826_v40  ;;  %v828_v52 = vmin.f32 %v796_v41, 6.0 }
 0x34e   :  { %v977_v51 = vmin.f32 %v945_v42, 6.0  ;;  %v872_v54 = vmul.f32 %v2102_v57, %v827_v45  ;;  %v829_v55 = vmin.f32 %v797_v47, 6.0  ;;  %v731_v56 = vpop.f32.mrb[24].mxu0 }
 0x34f   :  { %v1025_v58 = vpack.c.bf16 %v976_v49, %v974_v48  ;;  %v914_v59 = vadd.f32 %v2105_v60, %v871_v50  ;;  %v873_v63 = vmul.f32 %v2099_v53, %v828_v52  ;;  %v732_v0 = vadd.f32 %v731_v56, %v2093_v43  ;;  %v733_v3 = vpop.f32.mrb[25].mxu0 }
 0x350   :  { %v915_v4 = vadd.f32 %v2107_v1, %v872_v54  ;;  %v874_v6 = vmul.f32 %v2102_v57, %v829_v55  ;;  %v734_v7 = vadd.f32 %v733_v3, %v2095_v44  ;;  %v735_v8 = vpop.f32.mrb[26].mxu0  ;;  %v1026_v11 = vpack.c.bf16 %v977_v51, %v975_v46 }
 0x351   :  { %v946_v12 = vmax.f32 %v914_v59, 0.0  ;;  %v916_v13 = vadd.f32 %v2105_v60, %v873_v63  ;;  %v798_v14 = vmax.f32 %v732_v0, 0.0  ;;  %v736_v15 = vadd.f32 %v735_v8, %v2093_v43  ;;  %v737_v18 = vpop.f32.mrb[27].mxu0 }
 0x352   :  { %v947_v19 = vmax.f32 %v915_v4, 0.0  ;;  %v917_v20 = vadd.f32 %v2107_v1, %v874_v6  ;;  %v799_v23 = vmax.f32 %v734_v7, 0.0  ;;  %v738_v26 = vadd.f32 %v737_v18, %v2095_v44  ;;  %1313 = vmatprep.mubr.msk.bf16.mxu0 %vm190_vm0, %v1026_v11 }
 0x353   :  { %v948_v29 = vmax.f32 %v916_v13, 0.0  ;;  %v830_v32 = vmin.f32 %v798_v14, 6.0  ;;  %v800_v37 = vmax.f32 %v736_v15, 0.0  ;;  %1158 = vmatmul.mubr.bf16.vlgmr.msra.gmra.mrb[48].mxu0 %v1025_v58  ;;  %v978_v36 = vmin.f32 %v946_v12, 6.0 }
 0x354   :  { %v949_v33 = vmax.f32 %v917_v20, 0.0  ;;  %v831_v34 = vmin.f32 %v799_v23, 6.0  ;;  %v801_v35 = vmax.f32 %v738_v26, 0.0  ;;  %v979_v41 = vmin.f32 %v947_v19, 6.0 }
 0x355   :  { %v980_v38 = vmin.f32 %v948_v29, 6.0  ;;  %v875_v39 = vmul.f32 %v2099_v53, %v830_v32  ;;  %v832_v40 = vmin.f32 %v800_v37, 6.0 }
 0x356   :  { %v981_v42 = vmin.f32 %v949_v33, 6.0  ;;  %v876_v45 = vmul.f32 %v2102_v57, %v831_v34  ;;  %v833_v47 = vmin.f32 %v801_v35, 6.0  ;;  %v741_v48 = vpop.f32.mrb[28].mxu0 }
 0x357   :  { %v1027_v49 = vpack.c.bf16 %v980_v38, %v978_v36  ;;  %v918_v50 = vadd.f32 %v2105_v60, %v875_v39  ;;  %v877_v52 = vmul.f32 %v2099_v53, %v832_v40  ;;  %v742_v46 = vadd.f32 %v741_v48, %v2093_v43  ;;  %v743_v51 = vpop.f32.mrb[29].mxu0 }
 0x358   :  { %v919_v54 = vadd.f32 %v2107_v1, %v876_v45  ;;  %v878_v55 = vmul.f32 %v2102_v57, %v833_v47  ;;  %v744_v56 = vadd.f32 %v743_v51, %v2095_v44  ;;  %v745_v58 = vpop.f32.mrb[30].mxu0  ;;  %v1028_v59 = vpack.c.bf16 %v981_v42, %v979_v41 }
 0x359   :  { %v950_v63 = vmax.f32 %v918_v50, 0.0  ;;  %v920_v0 = vadd.f32 %v2105_v60, %v877_v52  ;;  %v802_v3 = vmax.f32 %v742_v46, 0.0  ;;  %v746_v4 = vadd.f32 %v745_v58, %v2093_v43  ;;  %v747_v6 = vpop.f32.mrb[31].mxu0 }
 0x35a   :  { %v951_v7 = vmax.f32 %v919_v54, 0.0  ;;  %v921_v8 = vadd.f32 %v2107_v1, %v878_v55  ;;  %v803_v11 = vmax.f32 %v744_v56, 0.0  ;;  %v748_v12 = vadd.f32 %v747_v6, %v2095_v44  ;;  %1314 = vmatprep.mubr.msk.bf16.mxu1 %vm190_vm0, %v1028_v59 }
 0x35b   :  { %v952_v13 = vmax.f32 %v920_v0, 0.0  ;;  %v834_v14 = vmin.f32 %v802_v3, 6.0  ;;  %v804_v15 = vmax.f32 %v746_v4, 0.0  ;;  %1166 = vmatmul.mubr.bf16.vlgmr.msra.gmra.mrb[16].mxu1 %v1027_v49  ;;  %v982_v29 = vmin.f32 %v950_v63, 6.0 }
 0x35c   :  { %v953_v18 = vmax.f32 %v921_v8, 0.0  ;;  %v835_v19 = vmin.f32 %v803_v11, 6.0  ;;  %v805_v20 = vmax.f32 %v748_v12, 0.0  ;;  %v983_v37 = vmin.f32 %v951_v7, 6.0 }
 0x35d   :  { %v879_v23 = vmul.f32 %v2099_v53, %v834_v14  ;;  %v836_v26 = vmin.f32 %v804_v15, 6.0  ;;  %v984_v32 = vmin.f32 %v952_v13, 6.0 }
 0x35e   :  { %v985_v33 = vmin.f32 %v953_v18, 6.0  ;;  %v880_v34 = vmul.f32 %v2102_v57, %v835_v19  ;;  %v837_v35 = vmin.f32 %v805_v20, 6.0  ;;  %v751_v36 = vpop.f32.mrb[32].mxu0 }
 0x35f   :  { %v922_v38 = vadd.f32 %v2105_v60, %v879_v23  ;;  %v881_v39 = vmul.f32 %v2099_v53, %v836_v26  ;;  %v752_v40 = vadd.f32 %v751_v36, %v2093_v43  ;;  %v753_v41 = vpop.f32.mrb[33].mxu0  ;;  %v1029_v42 = vpack.c.bf16 %v984_v32, %v982_v29 }
 0x360   :  { %v923_v45 = vadd.f32 %v2107_v1, %v880_v34  ;;  %v882_v47 = vmul.f32 %v2102_v57, %v837_v35  ;;  %v754_v48 = vadd.f32 %v753_v41, %v2095_v44  ;;  %v755_v49 = vpop.f32.mrb[34].mxu0  ;;  %v1030_v50 = vpack.c.bf16 %v985_v33, %v983_v37 }
 0x361   :  { %v954_v52 = vmax.f32 %v922_v38, 0.0  ;;  %v924_v46 = vadd.f32 %v2105_v60, %v881_v39  ;;  %v806_v51 = vmax.f32 %v752_v40, 0.0  ;;  %v756_v54 = vadd.f32 %v755_v49, %v2093_v43  ;;  %v757_v55 = vpop.f32.mrb[35].mxu0 }
 0x362   :  { %v955_v56 = vmax.f32 %v923_v45, 0.0  ;;  %v925_v58 = vadd.f32 %v2107_v1, %v882_v47  ;;  %v807_v59 = vmax.f32 %v754_v48, 0.0  ;;  %v758_v63 = vadd.f32 %v757_v55, %v2095_v44  ;;  %1315 = vmatprep.mubr.msk.bf16.mxu1 %vm190_vm0, %v1030_v50 }
 0x363   :  { %v956_v0 = vmax.f32 %v924_v46, 0.0  ;;  %v838_v3 = vmin.f32 %v806_v51, 6.0  ;;  %v808_v4 = vmax.f32 %v756_v54, 0.0  ;;  %1174 = vmatmul.mubr.bf16.gmra.mrb[20].mxu1 %v1029_v42  ;;  %v986_v13 = vmin.f32 %v954_v52, 6.0 }
 0x364   :  { %v957_v6 = vmax.f32 %v925_v58, 0.0  ;;  %v839_v7 = vmin.f32 %v807_v59, 6.0  ;;  %v809_v8 = vmax.f32 %v758_v63, 0.0  ;;  %v987_v15 = vmin.f32 %v955_v56, 6.0 }
 0x365   :  { %v883_v11 = vmul.f32 %v2099_v53, %v838_v3  ;;  %v840_v12 = vmin.f32 %v808_v4, 6.0  ;;  %v988_v14 = vmin.f32 %v956_v0, 6.0 }
 0x366   :  { %v989_v18 = vmin.f32 %v957_v6, 6.0  ;;  %v884_v19 = vmul.f32 %v2102_v57, %v839_v7  ;;  %v841_v20 = vmin.f32 %v809_v8, 6.0  ;;  %v761_v23 = vpop.f32.mrb[36].mxu0 }
 0x367   :  { %v926_v26 = vadd.f32 %v2105_v60, %v883_v11  ;;  %v885_v29 = vmul.f32 %v2099_v53, %v840_v12  ;;  %v762_v32 = vadd.f32 %v761_v23, %v2093_v43  ;;  %v763_v37 = vpop.f32.mrb[37].mxu0  ;;  %v1031_v33 = vpack.c.bf16 %v988_v14, %v986_v13 }
 0x368   :  { %v927_v34 = vadd.f32 %v2107_v1, %v884_v19  ;;  %v886_v35 = vmul.f32 %v2102_v57, %v841_v20  ;;  %v764_v36 = vadd.f32 %v763_v37, %v2095_v44  ;;  %v765_v38 = vpop.f32.mrb[38].mxu0  ;;  %v1032_v39 = vpack.c.bf16 %v989_v18, %v987_v15 }
 0x369   :  { %v958_v40 = vmax.f32 %v926_v26, 0.0  ;;  %v928_v41 = vadd.f32 %v2105_v60, %v885_v29  ;;  %v810_v42 = vmax.f32 %v762_v32, 0.0  ;;  %v766_v45 = vadd.f32 %v765_v38, %v2093_v43  ;;  %v767_v47 = vpop.f32.mrb[39].mxu0 }
 0x36a   :  { %v959_v48 = vmax.f32 %v927_v34, 0.0  ;;  %v929_v49 = vadd.f32 %v2107_v1, %v886_v35  ;;  %v811_v50 = vmax.f32 %v764_v36, 0.0  ;;  %v768_v52 = vadd.f32 %v767_v47, %v2095_v44  ;;  %1316 = vmatprep.mubr.msk.bf16.mxu1 %vm190_vm0, %v1032_v39 }
 0x36b   :  { %v960_v46 = vmax.f32 %v928_v41, 0.0  ;;  %v842_v51 = vmin.f32 %v810_v42, 6.0  ;;  %v812_v54 = vmax.f32 %v766_v45, 0.0  ;;  %1182 = vmatmul.mubr.bf16.gmra.mrb[24].mxu1 %v1031_v33  ;;  %v990_v0 = vmin.f32 %v958_v40, 6.0 }
 0x36c   :  { %v961_v55 = vmax.f32 %v929_v49, 0.0  ;;  %v843_v56 = vmin.f32 %v811_v50, 6.0  ;;  %v813_v58 = vmax.f32 %v768_v52, 0.0  ;;  %v991_v4 = vmin.f32 %v959_v48, 6.0 }
 0x36d   :  { %v887_v59 = vmul.f32 %v2099_v53, %v842_v51  ;;  %v844_v63 = vmin.f32 %v812_v54, 6.0  ;;  %v992_v3 = vmin.f32 %v960_v46, 6.0 }
 0x36e   :  { %v993_v6 = vmin.f32 %v961_v55, 6.0  ;;  %v888_v7 = vmul.f32 %v2102_v57, %v843_v56  ;;  %v845_v8 = vmin.f32 %v813_v58, 6.0  ;;  %v771_v11 = vpop.f32.mrb[40].mxu0 }
 0x36f   :  { %v930_v12 = vadd.f32 %v2105_v60, %v887_v59  ;;  %v889_v13 = vmul.f32 %v2099_v53, %v844_v63  ;;  %v772_v14 = vadd.f32 %v771_v11, %v2093_v43  ;;  %v773_v15 = vpop.f32.mrb[41].mxu0  ;;  %v1033_v18 = vpack.c.bf16 %v992_v3, %v990_v0 }
 0x370   :  { %v931_v19 = vadd.f32 %v2107_v1, %v888_v7  ;;  %v890_v20 = vmul.f32 %v2102_v57, %v845_v8  ;;  %v774_v23 = vadd.f32 %v773_v15, %v2095_v44  ;;  %v775_v26 = vpop.f32.mrb[42].mxu0  ;;  %v1034_v29 = vpack.c.bf16 %v993_v6, %v991_v4 }
 0x371   :  { %v962_v32 = vmax.f32 %v930_v12, 0.0  ;;  %v932_v37 = vadd.f32 %v2105_v60, %v889_v13  ;;  %v814_v33 = vmax.f32 %v772_v14, 0.0  ;;  %v776_v34 = vadd.f32 %v775_v26, %v2093_v43  ;;  %v777_v35 = vpop.f32.mrb[43].mxu0 }
 0x372   :  { %v963_v36 = vmax.f32 %v931_v19, 0.0  ;;  %v933_v38 = vadd.f32 %v2107_v1, %v890_v20  ;;  %v815_v39 = vmax.f32 %v774_v23, 0.0  ;;  %v778_v40 = vadd.f32 %v777_v35, %v2095_v44  ;;  %1317 = vmatprep.mubr.msk.bf16.mxu1 %vm190_vm0, %v1034_v29 }
 0x373   :  { %v964_v41 = vmax.f32 %v932_v37, 0.0  ;;  %v846_v42 = vmin.f32 %v814_v33, 6.0  ;;  %v816_v45 = vmax.f32 %v776_v34, 0.0  ;;  %1190 = vmatmul.mubr.bf16.gmra.mrb[28].mxu1 %v1033_v18  ;;  %v994_v46 = vmin.f32 %v962_v32, 6.0 }
 0x374   :  { %v965_v47 = vmax.f32 %v933_v38, 0.0  ;;  %v847_v48 = vmin.f32 %v815_v39, 6.0  ;;  %v817_v49 = vmax.f32 %v778_v40, 0.0  ;;  %v995_v54 = vmin.f32 %v963_v36, 6.0 }
 0x375   :  { %v891_v50 = vmul.f32 %v2099_v53, %v846_v42  ;;  %v848_v52 = vmin.f32 %v816_v45, 6.0  ;;  %v996_v51 = vmin.f32 %v964_v41, 6.0 }
 0x376   :  { %v997_v55 = vmin.f32 %v965_v47, 6.0  ;;  %v892_v56 = vmul.f32 %v2102_v57, %v847_v48  ;;  %v849_v58 = vmin.f32 %v817_v49, 6.0  ;;  %v781_v59 = vpop.f32.mrb[44].mxu0 }
 0x377   :  { %v934_v63 = vadd.f32 %v2105_v60, %v891_v50  ;;  %v893_v0 = vmul.f32 %v2099_v53, %v848_v52  ;;  %v782_v3 = vadd.f32 %v781_v59, %v2093_v43  ;;  %v783_v4 = vpop.f32.mrb[45].mxu0  ;;  %v1035_v6 = vpack.c.bf16 %v996_v51, %v994_v46 }
 0x378   :  { %v935_v7 = vadd.f32 %v2107_v1, %v892_v56  ;;  %v894_v8 = vmul.f32 %v2102_v57, %v849_v58  ;;  %v784_v11 = vadd.f32 %v783_v4, %v2095_v44  ;;  %v785_v12 = vpop.f32.mrb[46].mxu0  ;;  %v1036_v13 = vpack.c.bf16 %v997_v55, %v995_v54 }
 0x379   :  { %v966_v14 = vmax.f32 %v934_v63, 0.0  ;;  %v936_v15 = vadd.f32 %v2105_v60, %v893_v0  ;;  %v818_v18 = vmax.f32 %v782_v3, 0.0  ;;  %v786_v19 = vadd.f32 %v785_v12, %v2093_v43  ;;  %v787_v20 = vpop.f32.mrb[47].mxu0 }
 0x37a   :  { %v967_v23 = vmax.f32 %v935_v7, 0.0  ;;  %v937_v26 = vadd.f32 %v2107_v1, %v894_v8  ;;  %v819_v29 = vmax.f32 %v784_v11, 0.0  ;;  %v788_v32 = vadd.f32 %v787_v20, %v2095_v44  ;;  %1318 = vmatprep.mubr.msk.bf16.mxu1 %vm190_vm0, %v1036_v13 }
 0x37b   :  { %v968_v37 = vmax.f32 %v936_v15, 0.0  ;;  %v850_v33 = vmin.f32 %v818_v18, 6.0  ;;  %v820_v34 = vmax.f32 %v786_v19, 0.0  ;;  %1198 = vmatmul.mubr.bf16.gmra.mrb[32].mxu1 %v1035_v6  ;;  %v998_v43 = vmin.f32 %v966_v14, 6.0 }
 0x37c   :  { %v969_v35 = vmax.f32 %v937_v26, 0.0  ;;  %v851_v36 = vmin.f32 %v819_v29, 6.0  ;;  %v821_v38 = vmax.f32 %v788_v32, 0.0  ;;  %v999_v42 = vmin.f32 %v967_v23, 6.0 }
 0x37d   :  { %v895_v39 = vmul.f32 %v2099_v53, %v850_v33  ;;  %v852_v40 = vmin.f32 %v820_v34, 6.0  ;;  %v1000_v41 = vmin.f32 %v968_v37, 6.0 }
 0x37e   :  { %v1001_v45 = vmin.f32 %v969_v35, 6.0  ;;  %v896_v47 = vmul.f32 %v2102_v57, %v851_v36  ;;  %v853_v48 = vmin.f32 %v821_v38, 6.0 }
 0x37f   :  { %v938_v44 = vadd.f32 %v2105_v60, %v895_v39  ;;  %v897_v49 = vmul.f32 %v2099_v53, %v852_v40  ;;  %v1037_v50 = vpack.c.bf16 %v1000_v41, %v998_v43 }
 0x380   :  { %v939_v52 = vadd.f32 %v2107_v1, %v896_v47  ;;  %v898_v46 = vmul.f32 %v2102_v57, %v853_v48  ;;  %v1038_v51 = vpack.c.bf16 %v1001_v45, %v999_v42  ;;  %v2209_v57 = vld [vmem:[#allocation15] ss:$0 sm:$0xff] }
 0x381   :  { %v970_v54 = vmax.f32 %v938_v44, 0.0  ;;  %v940_v55 = vadd.f32 %v2105_v60, %v897_v49 }
 0x382   :  { %v971_v56 = vmax.f32 %v939_v52, 0.0  ;;  %v941_v58 = vadd.f32 %v2107_v1, %v898_v46  ;;  %1319 = vmatprep.mubr.msk.bf16.mxu1 %vm190_vm0, %v1038_v51 }
 0x383   :  { %v972_v59 = vmax.f32 %v940_v55, 0.0  ;;  %1206 = vmatmul.mubr.bf16.gmra.mrb[36].mxu1 %v1037_v50  ;;  %v1002_v0 = vmin.f32 %v970_v54, 6.0 }
 0x384   :  { %v973_v63 = vmax.f32 %v941_v58, 0.0  ;;  %v1003_v53 = vmin.f32 %v971_v56, 6.0 }
 0x385   :  { %v1004_v3 = vmin.f32 %v972_v59, 6.0 }
 0x386   :  { %v1005_v4 = vmin.f32 %v973_v63, 6.0 }
 0x387   :  { %v1039_v6 = vpack.c.bf16 %v1004_v3, %v1002_v0 }
 0x388   :  { %v1040_v7 = vpack.c.bf16 %v1005_v4, %v1003_v53 }
 0x38a   :  { %1320 = vmatprep.mubr.msk.bf16.mxu1 %vm190_vm0, %v1040_v7 }
 0x38b   :  { %1214 = vmatmul.mubr.bf16.gmra.mrb[40].mxu1 %v1039_v6 }
 0x426   :  { %v1159_v60 = vpop.f32.mrb[48].mxu0 }
 0x427   :  { %v1160_v8 = vadd.f32 %v2209_v57, %v1159_v60  ;;  %v1161_v1 = vpop.f32.mrb[49].mxu0 }
 0x428   :  { %v1162_v11 = vpop.f32.mrb[50].mxu0 }
 0x429   :  { %v1222_v12 = vadd.f32 %v1160_v8, %v2003_v61  ;;  %v1163_v13 = vadd.f32 %v2209_v57, %v1162_v11  ;;  %v1164_v14 = vpop.f32.mrb[51].mxu0 }
 0x42b   :  { %1238 = vst.msk [vmem:[%s2320_s13] sm:$0xff] %vm645_vm3, %v1222_v12  ;;  %v1223_v15 = vadd.f32 %v1163_v13, %v2005_v62 }
 0x42d   :  { %1239 = vst.msk [vmem:[%s2320_s13 + $0x8] sm:$0xff] %vm645_vm3, %v1223_v15 }
 0x42e   :  { %v1167_v18 = vpop.f32.mrb[16].mxu1 }
 0x42f   :  { %v1168_v19 = vadd.f32 %v2209_v57, %v1167_v18  ;;  %v1169_v20 = vpop.f32.mrb[17].mxu1 }
 0x430   :  { %v1170_v61 = vpop.f32.mrb[18].mxu1 }
 0x431   :  { %v1224_v23 = vadd.f32 %v1168_v19, %v2014_v5  ;;  %v1171_v26 = vadd.f32 %v2209_v57, %v1170_v61  ;;  %v1172_v29 = vpop.f32.mrb[19].mxu1 }
 0x433   :  { %1240 = vst.msk [vmem:[%s2320_s13 + $0x10] sm:$0xff] %vm645_vm3, %v1224_v23  ;;  %v1225_v62 = vadd.f32 %v1171_v26, %v2011_v2 }
 0x435   :  { %1241 = vst.msk [vmem:[%s2320_s13 + $0x18] sm:$0xff] %vm645_vm3, %v1225_v62 }
 0x436   :  { %v1175_v32 = vpop.f32.mrb[20].mxu1 }
 0x437   :  { %v1176_v37 = vadd.f32 %v2209_v57, %v1175_v32  ;;  %v1177_v33 = vpop.f32.mrb[21].mxu1 }
 0x438   :  { %v1178_v5 = vpop.f32.mrb[22].mxu1 }
 0x439   :  { %v1226_v34 = vadd.f32 %v1176_v37, %v2021_v9  ;;  %v1179_v35 = vadd.f32 %v2209_v57, %v1178_v5  ;;  %v1180_v36 = vpop.f32.mrb[23].mxu1 }
 0x43b   :  { %1242 = vst.msk [vmem:[%s2320_s13 + $0x20] sm:$0xff] %vm645_vm3, %v1226_v34  ;;  %v1227_v2 = vadd.f32 %v1179_v35, %v2023_v10 }
 0x43d   :  { %1243 = vst.msk [vmem:[%s2320_s13 + $0x28] sm:$0xff] %vm645_vm3, %v1227_v2 }
 0x43e   :  { %v1183_v38 = vpop.f32.mrb[24].mxu1 }
 0x43f   :  { %v1184_v39 = vadd.f32 %v2209_v57, %v1183_v38  ;;  %v1185_v40 = vpop.f32.mrb[25].mxu1 }
 0x440   :  { %v1186_v9 = vpop.f32.mrb[26].mxu1 }
 0x441   :  { %v1228_v43 = vadd.f32 %v1184_v39, %v2031_v16  ;;  %v1187_v41 = vadd.f32 %v2209_v57, %v1186_v9  ;;  %v1188_v42 = vpop.f32.mrb[27].mxu1 }
 0x443   :  { %1244 = vst.msk [vmem:[%s2320_s13 + $0x30] sm:$0xff] %vm645_vm3, %v1228_v43  ;;  %v1229_v10 = vadd.f32 %v1187_v41, %v2033_v17 }
 0x445   :  { %1245 = vst.msk [vmem:[%s2320_s13 + $0x38] sm:$0xff] %vm645_vm3, %v1229_v10 }
 0x446   :  { %v1191_v45 = vpop.f32.mrb[28].mxu1 }
 0x447   :  { %v1192_v47 = vadd.f32 %v2209_v57, %v1191_v45  ;;  %v1193_v48 = vpop.f32.mrb[29].mxu1 }
 0x448   :  { %v1194_v16 = vpop.f32.mrb[30].mxu1 }
 0x449   :  { %v1230_v44 = vadd.f32 %v1192_v47, %v2039_v21  ;;  %v1195_v49 = vadd.f32 %v2209_v57, %v1194_v16  ;;  %v1196_v50 = vpop.f32.mrb[31].mxu1 }
 0x44b   :  { %1246 = vst.msk [vmem:[%s2320_s13 + $0x40] sm:$0xff] %vm645_vm3, %v1230_v44  ;;  %v1231_v17 = vadd.f32 %v1195_v49, %v2041_v22 }
 0x44d   :  { %1247 = vst.msk [vmem:[%s2320_s13 + $0x48] sm:$0xff] %vm645_vm3, %v1231_v17 }
 0x44e   :  { %v1199_v52 = vpop.f32.mrb[32].mxu1 }
 0x44f   :  { %v1200_v46 = vadd.f32 %v2209_v57, %v1199_v52  ;;  %v1201_v51 = vpop.f32.mrb[33].mxu1 }
 0x450   :  { %v1202_v21 = vpop.f32.mrb[34].mxu1 }
 0x451   :  { %v1232_v54 = vadd.f32 %v1200_v46, %v2047_v24  ;;  %v1203_v55 = vadd.f32 %v2209_v57, %v1202_v21  ;;  %v1204_v56 = vpop.f32.mrb[35].mxu1 }
 0x453   :  { %1248 = vst.msk [vmem:[%s2320_s13 + $0x50] sm:$0xff] %vm645_vm3, %v1232_v54  ;;  %v1233_v22 = vadd.f32 %v1203_v55, %v2049_v25 }
 0x455   :  { %1249 = vst.msk [vmem:[%s2320_s13 + $0x58] sm:$0xff] %vm645_vm3, %v1233_v22 }
 0x456   :  { %v1207_v58 = vpop.f32.mrb[36].mxu1 }
 0x457   :  { %v1208_v59 = vadd.f32 %v2209_v57, %v1207_v58  ;;  %v1209_v63 = vpop.f32.mrb[37].mxu1 }
 0x458   :  { %v1210_v24 = vpop.f32.mrb[38].mxu1 }
 0x459   :  { %v1234_v0 = vadd.f32 %v1208_v59, %v2055_v27  ;;  %v1211_v3 = vadd.f32 %v2209_v57, %v1210_v24  ;;  %v1212_v53 = vpop.f32.mrb[39].mxu1 }
 0x45b   :  { %1250 = vst.msk [vmem:[%s2320_s13 + $0x60] sm:$0xff] %vm645_vm3, %v1234_v0  ;;  %v1235_v25 = vadd.f32 %v1211_v3, %v2057_v28 }
 0x45d   :  { %1251 = vst.msk [vmem:[%s2320_s13 + $0x68] sm:$0xff] %vm645_vm3, %v1235_v25 }
 0x45e   :  { %v1215_v4 = vpop.f32.mrb[40].mxu1 }
 0x45f   :  { %v1216_v6 = vadd.f32 %v2209_v57, %v1215_v4  ;;  %v1217_v7 = vpop.f32.mrb[41].mxu1 }
 0x460   :  { %v1218_v27 = vpop.f32.mrb[42].mxu1 }
 0x461   :  { %v1236_v60 = vadd.f32 %v1216_v6, %v2063_v30  ;;  %v1219_v8 = vadd.f32 %v2209_v57, %v1218_v27  ;;  %v1220_v1 = vpop.f32.mrb[43].mxu1 }
 0x463   :  { %1252 = vst.msk [vmem:[%s2320_s13 + $0x70] sm:$0xff] %vm645_vm3, %v1236_v60  ;;  %v1237_v28 = vadd.f32 %v1219_v8, %v2065_v31 }
 0x465   :  { %1253 = vst.msk [vmem:[%s2320_s13 + $0x78] sm:$0xff] %vm645_vm3, %v1237_v28 }
 0x466   :  { %1258 = vsyncpa [#allocation3], 1 }
 0x467   :  { %1259 = vsyncpa [#allocation5], 1 }
 0x468   :  { %1260 = vsyncpa [#allocation8], 1 }
 0x469   :  { %1261 = vsyncpa [#allocation11], 1 }
 0x46a   :  { %1262 = vsyncpa [#allocation14], 1 }

// kernel: _lambda_.9
= control target key start
LH: loop header
LB: loop body
LE: loop exit
PB: predicated region body
PF: predicated region fallthrough
CT: control target
= control target key end

     0   :  { %15 = vsyncpa [#allocation3], 0  ;;  %s2784_s0 = inlined_call_operand.vmem [shape: f32[512,48], index: 0, kind: input, shape index: {}]   ;;  %s2785_s1 = inlined_call_operand.vmem [shape: bf16[48,32], index: 1, kind: input, shape index: {}]   ;;  %s2786_s2 = inlined_call_operand.hbm [shape: f32[1,32], index: 2, kind: input, shape index: {}]   ;;  %s2787_s3 = inlined_call_operand.hbm [shape: f32[1,32], index: 3, kind: input, shape index: {}]   ;;  %s2788_s4 = inlined_call_operand.hbm [shape: f32[1,32], index: 4, kind: input, shape index: {}]   ;;  %s2789_s5 = inlined_call_operand.vmem [shape: bf16[32,16], index: 5, kind: input, shape index: {}]   ;;  %s2790_s6 = inlined_call_operand.hbm [shape: f32[1,16], index: 6, kind: input, shape index: {}]   ;;  %s2791_s7 = inlined_call_operand.vmem [shape: bf16[16,64], index: 7, kind: input, shape index: {}]   ;;  %s2792_s8 = inlined_call_operand.vmem [shape: f32[512,16], index: 8, kind: output, shape index: {0}]   ;;  %s2793_s9 = inlined_call_operand.hbm [shape: f32[512,64], index: 9, kind: output, shape index: {1}]  }
   0x1   :  { %16 = vsyncpa [#allocation6], 0 }
   0x2   :  { %17 = vsyncpa [#allocation9], 0 }
   0x3   :  { %18 = vsyncpa [#allocation4], 0 }
   0x4   :  { %20 = vsyncpa [#allocation4 + $0x1], 0  ;;  %s2174_s30 = smov 0   ;;  %s2176_s10 = smov 0  }
   0x5   :  { %s2178_s11 = smov 0   ;;  %s2180_s12 = smov 0  }
   0x6 LB: > { %2800 = sst [smem:[#allocation15_spill]] %s2111_s11  ;;  %s2195_s13 = sadd.s32 4294967295, %s2115_s12   ;;  %s2115_s12 = sphi %s2180_s12, %s2817_s12   ;;  %s2111_s11 = sphi %s2178_s11, %s2819_s11   ;;  %s2107_s10 = sphi %s2176_s10, %s2821_s10   ;;  %s2103_s30 = sphi %s2174_s30, %s2820_s30  }
   0x7   : > { %s1594_s14 = sadd.s32 4294967294, %s2115_s12   ;;  %s2199_s15 = sadd.s32 1, %s2115_s12  }
   0x8   : > { %2801 = sst [smem:[#allocation16_spill]] %s2199_s15  ;;  %s232_s16 = sadd.s32 1, %s2111_s11 }
   0x9   : > { %s229_s17 = ssub.s32 %s2115_s12, %s2199_s15  ;;  %p242_p0 = scmp.ne.s32.totalorder %s2111_s11, %s2107_s10 }
   0xa   : > { %p230_p1 = scmp.eq.s32.totalorder %s229_s17, 0  ;;  %p243_p2 = scmp.eq.s32.totalorder %s2195_s13, 1 }
   0xb   : > { %p248_p3 = scmp.ne.s32.totalorder %s2107_s10, %s2103_s30  ;;  %p249_p4 = scmp.eq.s32.totalorder %s1594_s14, 1 }
   0xc   : > { %s2210_s18 = scalar_select %p230_p1, %s2111_s11, %s232_s16  }
   0xd   : > { %p2212_p5 = por %p243_p2, %p242_p0  ;;  %p2216_p6 = por %p249_p4, %p248_p3 }
   0xe   : > { %2802 = sst [smem:[#allocation17_spill]] %s2210_s18  ;;  %p1595_p7 = scmp.ge.s32.totalorder %s2115_s12, 1 }
   0xf   : > { %s2803_s19 = scalar_select %p2212_p5, 1, 0 }
  0x10   : > { %s2804_s20 = scalar_select %p2216_p6, 1, 0 }
  0x11   : > { %p256_p8 = scmp.lt.s32.totalorder %s2115_s12, 3  ;;  %p2794_p9 = scmp.eq.s32.totalorder %s2195_s13, 0 }
  0x12   : > { %s2117_s22 = smov [#allocation5]   ;;  %s2118_s24 = smov [#allocation2]  }
  0x13   : > { %p2223_p10 = pnand %p1595_p7, %p256_p8  ;;  %s283_s23 = sshll.u32 %s2117_s22, 4  ;;  %s284_s23 = int_to_ptr.vmem [resolvable:$true] %s283_s23 }
  0x14   : > { %s272_s25 = sshll.u32 %s2118_s24, 4  ;;  %s2119_s27 = smov [#allocation7]   ;;  %s2235_s25 = int_to_ptr.vmem [resolvable:$true] %s272_s25 }
  0x15   : > { %s2805_s21 = scalar_select %p2223_p10, 1, 0 }
  0x16   : > { %p1859_p11 = pneg %p2223_p10  ;;  %s294_s28 = sshll.u32 %s2119_s27, 4  ;;  %s2237_s28 = int_to_ptr.vmem [resolvable:$true] %s294_s28 }
  0x17   : > { %s1929_s16 = scalar_lea.hbm %s2787_s3, 16 }
  0x18   : > { %p2231_p12 = pnand %p2794_p9, %p1859_p11  ;;  %p1930_p13 = scmp.ne.s32.totalorder %s2787_s3, %s1929_s16 }
  0x19   : > { %p1936_p3 = scmp.lt.u32.totalorder %s1929_s16, %s2787_s3 }
  0x1a   : > { %p2247_p0 = pneg %p2231_p12 }
  0x1c   : > { %p1932_p1 = pnand %p2247_p0, %p1930_p13 }
  0x1e   : > { %p1933_p2 = pneg %p1932_p1 }
  0x20   : > { %p1938_p4 = pnand %p1936_p3, %p1933_p2 }
  0x22   : > { %1941 = shalt.err (!%p1938_p4)
}
  0x23   : > { %s1942_s29 = scalar_lea.vmem %s284_s23, 16  ;;  %s1949_s14 = scalar_lea.vmem %s284_s23, 32 }
  0x24   : > { %p1943_p7 = scmp.ne.s32.totalorder %s284_s23, %s1942_s29  ;;  %p1950_p9 = scmp.lt.s32.totalorder %s284_s23, %s284_s23 }
  0x25   : > { %p1951_p6 = scmp.lt.s32.totalorder %s1949_s14, %s1942_s29 }
  0x26   : > { %p1945_p8 = pnand %p1943_p7, %p2247_p0 }
  0x27   : > { %p1952_p5 = por %p1951_p6, %p1950_p9 }
  0x28   : > { %p1946_p11 = pneg %p1945_p8 }
  0x2a   : > { %p1953_p10 = pnand %p1952_p5, %p1946_p11 }
  0x2c   : > { %1956 = shalt.err (!%p1953_p10)
}
  0x2d   : > { %1865 = dma.hbm_to_vmem [thread:$0]  (!%p2231_p12), %s2787_s3, 16, %s284_s23, [#allocation6]  }
  0x2e   : > { %s1957_s27 = scalar_lea.hbm %s2786_s2, 16 }
  0x2f   : > { %p1958_p13 = scmp.ne.s32.totalorder %s2786_s2, %s1957_s27  ;;  %p1964_p5 = scmp.lt.u32.totalorder %s1957_s27, %s2786_s2 }
  0x31   : > { %p1960_p1 = pnand %p1958_p13, %p2247_p0 }
  0x33   : > { %p1961_p6 = pneg %p1960_p1 }
  0x35   : > { %p1966_p9 = pnand %p1964_p5, %p1961_p6 }
  0x37   : > { %1969 = shalt.err (!%p1966_p9)
}
  0x38   : > { %s1970_s23 = scalar_lea.vmem %s2235_s25, 16  ;;  %s1977_s11 = scalar_lea.vmem %s2235_s25, 32 }
  0x39   : > { %p1971_p10 = scmp.ne.s32.totalorder %s2235_s25, %s1970_s23  ;;  %p1978_p4 = scmp.lt.s32.totalorder %s2235_s25, %s2235_s25 }
  0x3a   : > { %p1979_p7 = scmp.lt.s32.totalorder %s1977_s11, %s1970_s23 }
  0x3b   : > { %p1973_p2 = pnand %p1971_p10, %p2247_p0 }
  0x3c   : > { %p1980_p8 = por %p1979_p7, %p1978_p4 }
  0x3d   : > { %p1974_p3 = pneg %p1973_p2 }
  0x3f   : > { %p1981_p11 = pnand %p1980_p8, %p1974_p3 }
  0x41   : > { %1984 = shalt.err (!%p1981_p11)
}
  0x42   : > { %1862 = dma.hbm_to_vmem [thread:$0]  (!%p2231_p12), %s2786_s2, 16, %s2235_s25, [#allocation3]  }
  0x43   : > { %s1985_s16 = scalar_lea.hbm %s2788_s4, 16 }
  0x44   : > { %p1986_p13 = scmp.ne.s32.totalorder %s2788_s4, %s1985_s16  ;;  %p1992_p5 = scmp.lt.u32.totalorder %s1985_s16, %s2788_s4 }
  0x46   : > { %p1988_p1 = pnand %p1986_p13, %p2247_p0 }
  0x48   : > { %p1989_p6 = pneg %p1988_p1 }
  0x4a   : > { %p1994_p9 = pnand %p1992_p5, %p1989_p6 }
  0x4c   : > { %1997 = shalt.err (!%p1994_p9)
}
  0x4d   : > { %s1998_s25 = scalar_lea.vmem %s2237_s28, 16  ;;  %s2005_s11 = scalar_lea.vmem %s2237_s28, 32 }
  0x4e   : > { %p1999_p10 = scmp.ne.s32.totalorder %s2237_s28, %s1998_s25  ;;  %p2006_p4 = scmp.lt.s32.totalorder %s2237_s28, %s2237_s28 }
  0x4f   : > { %p2007_p7 = scmp.lt.s32.totalorder %s2005_s11, %s1998_s25 }
  0x50   : > { %p2001_p2 = pnand %p1999_p10, %p2247_p0 }
  0x51   : > { %p2008_p8 = por %p2007_p7, %p2006_p4 }
  0x52   : > { %p2002_p3 = pneg %p2001_p2 }
  0x54   : > { %p2009_p11 = pnand %p2008_p8, %p2002_p3 }
  0x56   : > { %2012 = shalt.err (!%p2009_p11)
}
  0x57   : > { %1868 = dma.hbm_to_vmem [thread:$0]  (!%p2231_p12), %s2788_s4, 16, %s2237_s28, [#allocation6]  }
  0x58   : > { %s2120_s22 = smov [#allocation8]   ;;  %s2013_s29 = scalar_lea.hbm %s2790_s6, 16 }
  0x59   : > { %s308_s18 = sshll.u32 %s2120_s22, 4  ;;  %p2014_p13 = scmp.ne.s32.totalorder %s2790_s6, %s2013_s29  ;;  %s309_s18 = int_to_ptr.vmem [resolvable:$true] %s308_s18 }
  0x5a   : > { %p2020_p5 = scmp.lt.u32.totalorder %s2013_s29, %s2790_s6 }
  0x5b   : > { %p2016_p1 = pnand %p2014_p13, %p2247_p0 }
  0x5d   : > { %p2017_p6 = pneg %p2016_p1 }
  0x5f   : > { %p2022_p9 = pnand %p2020_p5, %p2017_p6 }
  0x61   : > { %2025 = shalt.err (!%p2022_p9)
}
  0x62   : > { %s2026_s28 = scalar_lea.vmem %s309_s18, 16  ;;  %s2033_s15 = scalar_lea.vmem %s309_s18, 32 }
  0x63   : > { %p2027_p10 = scmp.ne.s32.totalorder %s309_s18, %s2026_s28  ;;  %p2034_p4 = scmp.lt.s32.totalorder %s309_s18, %s309_s18 }
  0x64   : > { %p2035_p7 = scmp.lt.s32.totalorder %s2033_s15, %s2026_s28 }
  0x65   : > { %p2029_p2 = pnand %p2027_p10, %p2247_p0 }
  0x66   : > { %p2036_p8 = por %p2035_p7, %p2034_p4 }
  0x67   : > { %p2030_p3 = pneg %p2029_p2 }
  0x69   : > { %p2037_p11 = pnand %p2036_p8, %p2030_p3 }
  0x6b   : > { %2040 = shalt.err (!%p2037_p11)
}
  0x6c   : > { %1871 = dma.hbm_to_vmem [thread:$0]  (!%p2231_p12), %s2790_s6, 16, %s309_s18, [#allocation9]  }
  0x6d   : > { %p2808_p13 = scmp.ne.s32.totalorder %s2805_s21, 0 }
  0x6e   : > { %p2809_p1 = scmp.eq.s32.totalorder (!%p2808_p13), %s2195_s13, 0 }
  0x6f   : > { %333 = sbr.rel (%p2808_p13) target bundleno = 877 (0x36d), region = 52 }
  0x76   : > { %2086 = dma.done.wait (%p2809_p1), [#allocation3], 16   ;;  %p2810_p0 = pmov %p2809_p1 }
  0x78   : > { %2088 = vsyncadd (%p2810_p0), [#allocation3], 4294967280  ;;  %p2811_p6 = pmov %p2810_p0 }
  0x79   : > { %p2812_p5 = pmov %p2810_p0 }
  0x7a   : > { %2090 = dma.done.wait (%p2811_p6), [#allocation6], 32  }
  0x7b   : > { %2092 = vsyncadd (%p2812_p5), [#allocation6], 4294967264  ;;  %p2813_p9 = pmov %p2810_p0 }
  0x7c   : > { %p2814_p12 = pmov %p2810_p0 }
  0x7d   : > { %2094 = dma.done.wait (%p2813_p9), [#allocation9], 16  }
  0x7e   : > { %2096 = vsyncadd (%p2814_p12), [#allocation9], 4294967280  ;;  %s1607_s21 = sshll.u32 %s2195_s13, 5  ;;  %v1923_v0 = vld [vmem:[%s2785_s1] sm:$0xff]   ;;  %v1924_v1 = vld [vmem:[%s2785_s1 + $0x8] sm:$0xff]   ;;  %vm479_vm0 = vcmask 392192  }
  0x7f   : > { %p387_p10 = scmp.lt.s32.totalorder %s1607_s21, 63  ;;  %1729 = vmatprep.subr.bf16.mxu0 %v1923_v0  ;;  %v1925_v4 = vld [vmem:[%s2785_s1 + $0x10] sm:$0xff]   ;;  %v1926_v14 = vld [vmem:[%s2789_s5] sm:$0xff]   ;;  %v1927_v15 = vld [vmem:[%s2789_s5 + $0x8] sm:$0xff]   ;;  %vm934_vm1 = vcmask 261120   ;;  %vm1168_vm2 = vcmask 130048  }
  0x80   : > { %1730 = vmatpush3.bf16.msra.mxu0 %v1923_v0  ;;  %1837 = vmatprep.subr.bf16.mxu1 %v1926_v14  ;;  %v2420_v53 = vld [vmem:[%s2791_s7] sm:$0xff]   ;;  %vm1378_vm3 = vcmask 523264   ;;  %s1674_s23 = sshll.u32 %s2195_s13, 12  ;;  %p2815_p3 = scmp.ne.s32.totalorder %s2803_s19, 0 }
  0x81   : > { %s2823_s21 = smov (!%p387_p10, %s1607_s21), 63  ;;  %1731 = vmatprep.subr.bf16.mxu0 %v1924_v1  ;;  %1839 = vmatpush3.bf16.msra.mxu1 %v1926_v14  ;;  %v2423_v54 = vld [vmem:[#allocation2] ss:$0 sm:$0xff]  ;;  %v2428_v63 = vld [vmem:[#allocation5] ss:$0 sm:$0xff]  ;;  %s2731_s15 = scalar_lea.hbm %s2793_s9, %s1674_s23 }
  0x82   : > { %s1608_s26 = sshll.u32 %s2823_s21, 3  ;;  %1838 = vmatprep.subr.bf16.mxu1 %v1927_v15  ;;  %s383_s21 = sand.u32 1, %s2107_s10  }
  0x83   : > { %s2355_s29 = scalar_lea.vmem %s2784_s0, %s1608_s26  ;;  %s2743_s13 = scalar_lea.sflag [#allocation4], %s383_s21 }
  0x84   : > { %v400_v2 = vld [vmem:[%s2355_s29] sm:$0xff]  ;;  %v401_v3 = vld [vmem:[%s2355_s29 + $0x8] sm:$0xff]  ;;  %1732 = vmatpush3.bf16.msra.mxu0 %v1924_v1  ;;  %v402_v6 = vld [vmem:[%s2355_s29 + $0x10] sm:$0xff]  ;;  %s2121_s22 = smov [#allocation10]  }
  0x85   : > { %v439_v5 = vpack.c.bf16 %v401_v3, %v400_v2  ;;  %v403_v7 = vld [vmem:[%s2355_s29 + $0x18] sm:$0xff]  ;;  %1733 = vmatprep.subr.bf16.mxu0 %v1925_v4  ;;  %v404_v8 = vld [vmem:[%s2355_s29 + $0x20] sm:$0xff]  ;;  %v405_v9 = vld [vmem:[%s2355_s29 + $0x28] sm:$0xff]  ;;  %1840 = vmatpush3.bf16.msra.mxu1 %v1927_v15  ;;  %s2045_s24 = sshll.u32 %s2121_s22, 4  ;;  %s2046_s24 = int_to_ptr.vmem [resolvable:$false] %s2045_s24 }
  0x86   : > { %v440_v10 = vpack.c.bf16 %v403_v7, %v402_v6  ;;  %v441_v11 = vpack.c.bf16 %v405_v9, %v404_v8  ;;  %v406_v12 = vld [vmem:[%s2355_s29 + $0x30] sm:$0xff]  ;;  %v407_v13 = vld [vmem:[%s2355_s29 + $0x38] sm:$0xff]  ;;  %v408_v16 = vld [vmem:[%s2355_s29 + $0x40] sm:$0xff]  ;;  %1803 = vmatprep.subr.bf16.mxu1 %v2420_v53  ;;  %s2047_s18 = scalar_lea.vmem %s2046_s24, 8192 }
  0x87   : > { %1735 = vmatprep.mubr.msk.bf16.mxu0 %vm479_vm0, %v439_v5  ;;  %v409_v17 = vld [vmem:[%s2355_s29 + $0x48] sm:$0xff]  ;;  %v442_v18 = vpack.c.bf16 %v407_v13, %v406_v12  ;;  %v410_v20 = vld [vmem:[%s2355_s29 + $0x50] sm:$0xff]  ;;  %v411_v21 = vld [vmem:[%s2355_s29 + $0x58] sm:$0xff] }
  0x88   : > { %1734 = vmatpush3.bf16.msra.mxu0 %v1925_v4  ;;  %v443_v19 = vpack.c.bf16 %v409_v17, %v408_v16  ;;  %v412_v22 = vld [vmem:[%s2355_s29 + $0x60] sm:$0xff]  ;;  %v413_v23 = vld [vmem:[%s2355_s29 + $0x68] sm:$0xff]  ;;  %v444_v24 = vpack.c.bf16 %v411_v21, %v410_v20  ;;  %v414_v26 = vld [vmem:[%s2355_s29 + $0x70] sm:$0xff] }
  0x89   : > { %1767 = vmatprep.subr.bf16.mxu0 %v1926_v14  ;;  %v445_v25 = vpack.c.bf16 %v413_v23, %v412_v22  ;;  %v415_v27 = vld [vmem:[%s2355_s29 + $0x78] sm:$0xff]  ;;  %v416_v28 = vld [vmem:[%s2355_s29 + $0x80] sm:$0xff]  ;;  %v417_v29 = vld [vmem:[%s2355_s29 + $0x88] sm:$0xff] }
  0x8a   : > { %v446_v30 = vpack.c.bf16 %v415_v27, %v414_v26  ;;  %v447_v31 = vpack.c.bf16 %v417_v29, %v416_v28  ;;  %v418_v32 = vld [vmem:[%s2355_s29 + $0x90] sm:$0xff]  ;;  %v419_v33 = vld [vmem:[%s2355_s29 + $0x98] sm:$0xff]  ;;  %v420_v34 = vld [vmem:[%s2355_s29 + $0xa0] sm:$0xff] }
  0x8b   : > { %1736 = vmatmul.mubr.msk.bf16.vlgmr.msra.gmra.mrb[0].mxu0 %vm479_vm0, %v440_v10  ;;  %v421_v35 = vld [vmem:[%s2355_s29 + $0xa8] sm:$0xff]  ;;  %v448_v36 = vpack.c.bf16 %v419_v33, %v418_v32  ;;  %v422_v38 = vld [vmem:[%s2355_s29 + $0xb0] sm:$0xff]  ;;  %v423_v39 = vld [vmem:[%s2355_s29 + $0xb8] sm:$0xff] }
  0x8c   : > { %1739 = vmatprep.mubr.msk.bf16.mxu0 %vm479_vm0, %v441_v11  ;;  %1768 = vmatpush3.bf16.msra.mxu0 %v1926_v14  ;;  %v449_v37 = vpack.c.bf16 %v421_v35, %v420_v34  ;;  %v424_v40 = vld [vmem:[%s2355_s29 + $0xc0] sm:$0xff]  ;;  %v425_v41 = vld [vmem:[%s2355_s29 + $0xc8] sm:$0xff]  ;;  %v450_v42 = vpack.c.bf16 %v423_v39, %v422_v38  ;;  %v426_v44 = vld [vmem:[%s2355_s29 + $0xd0] sm:$0xff] }
  0x8d   : > { %1769 = vmatprep.subr.bf16.mxu0 %v1927_v15  ;;  %v451_v43 = vpack.c.bf16 %v425_v41, %v424_v40  ;;  %v427_v45 = vld [vmem:[%s2355_s29 + $0xd8] sm:$0xff]  ;;  %v428_v46 = vld [vmem:[%s2355_s29 + $0xe0] sm:$0xff]  ;;  %v429_v47 = vld [vmem:[%s2355_s29 + $0xe8] sm:$0xff] }
  0x8e   : > { %v452_v48 = vpack.c.bf16 %v427_v45, %v426_v44  ;;  %v453_v49 = vpack.c.bf16 %v429_v47, %v428_v46  ;;  %v430_v50 = vld [vmem:[%s2355_s29 + $0xf0] sm:$0xff]  ;;  %v431_v51 = vld [vmem:[%s2355_s29 + $0xf8] sm:$0xff]  ;;  %v2431_v4 = vld [vmem:[#allocation7] ss:$0 sm:$0xff]  ;;  %s2549_s29 = scalar_lea.vmem %s2792_s8, %s1608_s26  ;;  %s1606_s26 = sshll.u32 %s383_s21, 8 }
  0x8f   : > { %v454_v52 = vpack.c.bf16 %v431_v51, %v430_v50  ;;  %s2666_s14 = scalar_lea.vmem [#allocation10], %s1606_s26 }
  0x90   : > { %1770 = vmatpush3.bf16.msra.mxu0 %v1927_v15  ;;  %s1466_s25 = sshll.u32 %s2666_s14, 4  ;;  %s2733_s25 = int_to_ptr.vmem [resolvable:$true] %s1466_s25 }
  0x91   : > { %s2041_s17 = scalar_lea.vmem %s2733_s25, 4096  ;;  %p2048_p8 = scmp.lt.s32.totalorder %s2733_s25, %s2046_s24 }
  0x92   : > { %p2042_p2 = scmp.ne.s32.totalorder %s2733_s25, %s2041_s17  ;;  %p2049_p11 = scmp.lt.s32.totalorder %s2047_s18, %s2041_s17 }
  0x93   : > { %1740 = vmatmul.mubr.msk.bf16.gmra.mrb[4].mxu0 %vm479_vm0, %v442_v18 }
  0x94   : > { %1743 = vmatprep.mubr.msk.bf16.mxu0 %vm479_vm0, %v443_v19  ;;  %p2043_p4 = pnand %p2042_p2, %p2815_p3  ;;  %p2050_p13 = por %p2049_p11, %p2048_p8 }
  0x96   : > { %p2044_p7 = pneg %p2043_p4 }
  0x98   : > { %p2051_p1 = pnand %p2050_p13, %p2044_p7 }
  0x9b   : > { %1744 = vmatmul.mubr.msk.bf16.gmra.mrb[8].mxu0 %vm479_vm0, %v444_v24 }
  0x9c   : > { %1747 = vmatprep.mubr.msk.bf16.mxu0 %vm479_vm0, %v445_v25 }
  0xa3   : > { %1748 = vmatmul.mubr.msk.bf16.gmra.mrb[12].mxu0 %vm479_vm0, %v446_v30 }
  0xa4   : > { %1751 = vmatprep.mubr.msk.bf16.mxu0 %vm479_vm0, %v447_v31 }
  0xab   : > { %1752 = vmatmul.mubr.msk.bf16.gmra.mrb[16].mxu0 %vm479_vm0, %v448_v36 }
  0xac   : > { %1755 = vmatprep.mubr.msk.bf16.mxu0 %vm479_vm0, %v449_v37 }
  0xb3   : > { %1756 = vmatmul.mubr.msk.bf16.gmra.mrb[20].mxu0 %vm479_vm0, %v450_v42 }
  0xb4   : > { %1759 = vmatprep.mubr.msk.bf16.mxu0 %vm479_vm0, %v451_v43 }
  0xbb   : > { %1760 = vmatmul.mubr.msk.bf16.gmra.mrb[24].mxu0 %vm479_vm0, %v452_v48 }
  0xbc   : > { %1763 = vmatprep.mubr.msk.bf16.mxu0 %vm479_vm0, %v453_v49 }
  0xc3   : > { %1764 = vmatmul.mubr.msk.bf16.gmra.mrb[28].mxu0 %vm479_vm0, %v454_v52 }
 0x15e   : > { %v1737_v55 = vpop.f32.mrb[0].mxu0 }
 0x15f   : > { %v571_v56 = vadd.f32 %v1737_v55, %v2423_v54  ;;  %v562_v57 = vpop.f32.mrb[1].mxu0 }
 0x160   : > { %v563_v58 = vadd.f32 %v2423_v54, %v562_v57  ;;  %v1738_v59 = vpop.f32.mrb[2].mxu0 }
 0x161   : > { %v691_v60 = vmax.f32 %v571_v56, 0.0  ;;  %v574_v61 = vadd.f32 %v1738_v59, %v2423_v54  ;;  %v565_v62 = vpop.f32.mrb[3].mxu0 }
 0x162   : > { %v689_v0 = vmax.f32 %v563_v58, 0.0  ;;  %v566_v1 = vadd.f32 %v2423_v54, %v565_v62 }
 0x163   : > { %v723_v2 = vmin.f32 %v691_v60, 6.0  ;;  %v692_v3 = vmax.f32 %v574_v61, 0.0 }
 0x164   : > { %v721_v5 = vmin.f32 %v689_v0, 6.0  ;;  %v690_v6 = vmax.f32 %v566_v1, 0.0 }
 0x165   : > { %v763_v7 = vmul.f32 %v2428_v63, %v723_v2  ;;  %v724_v8 = vmin.f32 %v692_v3, 6.0 }
 0x166   : > { %v761_v9 = vmul.f32 %v2428_v63, %v721_v5  ;;  %v722_v10 = vmin.f32 %v690_v6, 6.0  ;;  %v1741_v11 = vpop.f32.mrb[4].mxu0 }
 0x167   : > { %v801_v12 = vadd.f32 %v2431_v4, %v763_v7  ;;  %v764_v13 = vmul.f32 %v2428_v63, %v724_v8  ;;  %v587_v14 = vadd.f32 %v1741_v11, %v2423_v54  ;;  %v578_v15 = vpop.f32.mrb[5].mxu0 }
 0x168   : > { %v799_v16 = vadd.f32 %v2431_v4, %v761_v9  ;;  %v762_v17 = vmul.f32 %v2428_v63, %v722_v10  ;;  %v579_v18 = vadd.f32 %v2423_v54, %v578_v15  ;;  %v1742_v19 = vpop.f32.mrb[6].mxu0 }
 0x169   : > { %v833_v20 = vmax.f32 %v801_v12, 0.0  ;;  %v802_v21 = vadd.f32 %v2431_v4, %v764_v13  ;;  %v695_v22 = vmax.f32 %v587_v14, 0.0  ;;  %v590_v23 = vadd.f32 %v1742_v19, %v2423_v54  ;;  %v581_v24 = vpop.f32.mrb[7].mxu0 }
 0x16a   : > { %v831_v25 = vmax.f32 %v799_v16, 0.0  ;;  %v800_v26 = vadd.f32 %v2431_v4, %v762_v17  ;;  %v693_v27 = vmax.f32 %v579_v18, 0.0  ;;  %v582_v28 = vadd.f32 %v2423_v54, %v581_v24 }
 0x16b   : > { %v834_v29 = vmax.f32 %v802_v21, 0.0  ;;  %v727_v30 = vmin.f32 %v695_v22, 6.0  ;;  %v696_v31 = vmax.f32 %v590_v23, 0.0  ;;  %v865_v35 = vmin.f32 %v833_v20, 6.0 }
 0x16c   : > { %v832_v32 = vmax.f32 %v800_v26, 0.0  ;;  %v725_v33 = vmin.f32 %v693_v27, 6.0  ;;  %v694_v34 = vmax.f32 %v582_v28, 0.0  ;;  %v863_v39 = vmin.f32 %v831_v25, 6.0 }
 0x16d   : > { %v866_v36 = vmin.f32 %v834_v29, 6.0  ;;  %v767_v37 = vmul.f32 %v2428_v63, %v727_v30  ;;  %v728_v38 = vmin.f32 %v696_v31, 6.0 }
 0x16e   : > { %v864_v40 = vmin.f32 %v832_v32, 6.0  ;;  %v765_v41 = vmul.f32 %v2428_v63, %v725_v33  ;;  %v726_v42 = vmin.f32 %v694_v34, 6.0  ;;  %v1745_v43 = vpop.f32.mrb[8].mxu0 }
 0x16f   : > { %v901_v44 = vpack.c.bf16 %v866_v36, %v865_v35  ;;  %v805_v45 = vadd.f32 %v2431_v4, %v767_v37  ;;  %v768_v46 = vmul.f32 %v2428_v63, %v728_v38  ;;  %v603_v47 = vadd.f32 %v1745_v43, %v2423_v54  ;;  %v594_v48 = vpop.f32.mrb[9].mxu0 }
 0x170   : > { %v803_v49 = vadd.f32 %v2431_v4, %v765_v41  ;;  %v766_v50 = vmul.f32 %v2428_v63, %v726_v42  ;;  %v595_v51 = vadd.f32 %v2423_v54, %v594_v48  ;;  %v1746_v52 = vpop.f32.mrb[10].mxu0  ;;  %v900_v55 = vpack.c.bf16 %v864_v40, %v863_v39 }
 0x171   : > { %v837_v56 = vmax.f32 %v805_v45, 0.0  ;;  %v806_v57 = vadd.f32 %v2431_v4, %v768_v46  ;;  %v699_v58 = vmax.f32 %v603_v47, 0.0  ;;  %v606_v59 = vadd.f32 %v1746_v52, %v2423_v54  ;;  %v597_v60 = vpop.f32.mrb[11].mxu0 }
 0x172   : > { %v835_v61 = vmax.f32 %v803_v49, 0.0  ;;  %v804_v62 = vadd.f32 %v2431_v4, %v766_v50  ;;  %v697_v0 = vmax.f32 %v595_v51, 0.0  ;;  %v598_v1 = vadd.f32 %v2423_v54, %v597_v60  ;;  %1771 = vmatprep.mubr.msk.bf16.mxu0 %vm934_vm1, %v900_v55 }
 0x173   : > { %v838_v2 = vmax.f32 %v806_v57, 0.0  ;;  %v731_v3 = vmin.f32 %v699_v58, 6.0  ;;  %v700_v5 = vmax.f32 %v606_v59, 0.0  ;;  %1772 = vmatmul.mubr.msk.bf16.vlgmr.msra.gmra.mrb[32].mxu0 %vm934_vm1, %v901_v44  ;;  %v869_v9 = vmin.f32 %v837_v56, 6.0 }
 0x174   : > { %v836_v6 = vmax.f32 %v804_v62, 0.0  ;;  %v729_v7 = vmin.f32 %v697_v0, 6.0  ;;  %v698_v8 = vmax.f32 %v598_v1, 0.0  ;;  %v867_v13 = vmin.f32 %v835_v61, 6.0 }
 0x175   : > { %v870_v10 = vmin.f32 %v838_v2, 6.0  ;;  %v771_v11 = vmul.f32 %v2428_v63, %v731_v3  ;;  %v732_v12 = vmin.f32 %v700_v5, 6.0 }
 0x176   : > { %v868_v14 = vmin.f32 %v836_v6, 6.0  ;;  %v769_v15 = vmul.f32 %v2428_v63, %v729_v7  ;;  %v730_v16 = vmin.f32 %v698_v8, 6.0  ;;  %v1749_v17 = vpop.f32.mrb[12].mxu0 }
 0x177   : > { %v809_v18 = vadd.f32 %v2431_v4, %v771_v11  ;;  %v772_v19 = vmul.f32 %v2428_v63, %v732_v12  ;;  %v619_v20 = vadd.f32 %v1749_v17, %v2423_v54  ;;  %v610_v21 = vpop.f32.mrb[13].mxu0  ;;  %v903_v22 = vpack.c.bf16 %v870_v10, %v869_v9 }
 0x178   : > { %v807_v23 = vadd.f32 %v2431_v4, %v769_v15  ;;  %v770_v24 = vmul.f32 %v2428_v63, %v730_v16  ;;  %v611_v25 = vadd.f32 %v2423_v54, %v610_v21  ;;  %v1750_v26 = vpop.f32.mrb[14].mxu0  ;;  %v902_v27 = vpack.c.bf16 %v868_v14, %v867_v13 }
 0x179   : > { %v841_v28 = vmax.f32 %v809_v18, 0.0  ;;  %v810_v29 = vadd.f32 %v2431_v4, %v772_v19  ;;  %v703_v30 = vmax.f32 %v619_v20, 0.0  ;;  %v622_v31 = vadd.f32 %v1750_v26, %v2423_v54  ;;  %v613_v32 = vpop.f32.mrb[15].mxu0 }
 0x17a   : > { %v839_v33 = vmax.f32 %v807_v23, 0.0  ;;  %v808_v34 = vadd.f32 %v2431_v4, %v770_v24  ;;  %v701_v35 = vmax.f32 %v611_v25, 0.0  ;;  %v614_v36 = vadd.f32 %v2423_v54, %v613_v32  ;;  %1775 = vmatprep.mubr.msk.bf16.mxu0 %vm934_vm1, %v902_v27 }
 0x17b   : > { %v842_v37 = vmax.f32 %v810_v29, 0.0  ;;  %v735_v38 = vmin.f32 %v703_v30, 6.0  ;;  %v704_v39 = vmax.f32 %v622_v31, 0.0  ;;  %1776 = vmatmul.mubr.msk.bf16.gmra.mrb[36].mxu0 %vm934_vm1, %v903_v22  ;;  %v873_v43 = vmin.f32 %v841_v28, 6.0 }
 0x17c   : > { %v840_v40 = vmax.f32 %v808_v34, 0.0  ;;  %v733_v41 = vmin.f32 %v701_v35, 6.0  ;;  %v702_v42 = vmax.f32 %v614_v36, 0.0  ;;  %v871_v47 = vmin.f32 %v839_v33, 6.0 }
 0x17d   : > { %v874_v44 = vmin.f32 %v842_v37, 6.0  ;;  %v775_v45 = vmul.f32 %v2428_v63, %v735_v38  ;;  %v736_v46 = vmin.f32 %v704_v39, 6.0 }
 0x17e   : > { %v872_v48 = vmin.f32 %v840_v40, 6.0  ;;  %v773_v49 = vmul.f32 %v2428_v63, %v733_v41  ;;  %v734_v50 = vmin.f32 %v702_v42, 6.0  ;;  %v1753_v51 = vpop.f32.mrb[16].mxu0 }
 0x17f   : > { %v813_v52 = vadd.f32 %v2431_v4, %v775_v45  ;;  %v776_v55 = vmul.f32 %v2428_v63, %v736_v46  ;;  %v635_v56 = vadd.f32 %v1753_v51, %v2423_v54  ;;  %v626_v57 = vpop.f32.mrb[17].mxu0  ;;  %v905_v58 = vpack.c.bf16 %v874_v44, %v873_v43 }
 0x180   : > { %v774_v59 = vmul.f32 %v2428_v63, %v734_v50  ;;  %v627_v60 = vadd.f32 %v2423_v54, %v626_v57  ;;  %v1754_v61 = vpop.f32.mrb[18].mxu0  ;;  %v904_v62 = vpack.c.bf16 %v872_v48, %v871_v47  ;;  %v811_v0 = vadd.f32 %v2431_v4, %v773_v49 }
 0x181   : > { %v845_v1 = vmax.f32 %v813_v52, 0.0  ;;  %v814_v2 = vadd.f32 %v2431_v4, %v776_v55  ;;  %v707_v3 = vmax.f32 %v635_v56, 0.0  ;;  %v638_v5 = vadd.f32 %v1754_v61, %v2423_v54  ;;  %v629_v6 = vpop.f32.mrb[19].mxu0 }
 0x182   : > { %v705_v7 = vmax.f32 %v627_v60, 0.0  ;;  %v630_v8 = vadd.f32 %v2423_v54, %v629_v6  ;;  %1779 = vmatprep.mubr.msk.bf16.mxu0 %vm934_vm1, %v904_v62  ;;  %v812_v9 = vadd.f32 %v2431_v4, %v774_v59  ;;  %v843_v10 = vmax.f32 %v811_v0, 0.0 }
 0x183   : > { %v846_v11 = vmax.f32 %v814_v2, 0.0  ;;  %v739_v12 = vmin.f32 %v707_v3, 6.0  ;;  %v708_v13 = vmax.f32 %v638_v5, 0.0  ;;  %1780 = vmatmul.mubr.msk.bf16.gmra.mrb[40].mxu0 %vm934_vm1, %v905_v58  ;;  %v877_v17 = vmin.f32 %v845_v1, 6.0 }
 0x184   : > { %v737_v14 = vmin.f32 %v705_v7, 6.0  ;;  %v706_v15 = vmax.f32 %v630_v8, 0.0  ;;  %v844_v16 = vmax.f32 %v812_v9, 0.0  ;;  %v875_v24 = vmin.f32 %v843_v10, 6.0 }
 0x185   : > { %v878_v18 = vmin.f32 %v846_v11, 6.0  ;;  %v779_v19 = vmul.f32 %v2428_v63, %v739_v12  ;;  %v740_v20 = vmin.f32 %v708_v13, 6.0 }
 0x186   : > { %v777_v21 = vmul.f32 %v2428_v63, %v737_v14  ;;  %v738_v22 = vmin.f32 %v706_v15, 6.0  ;;  %v1757_v23 = vpop.f32.mrb[20].mxu0  ;;  %v876_v25 = vmin.f32 %v844_v16, 6.0 }
 0x187   : > { %v817_v26 = vadd.f32 %v2431_v4, %v779_v19  ;;  %v780_v27 = vmul.f32 %v2428_v63, %v740_v20  ;;  %v651_v28 = vadd.f32 %v1757_v23, %v2423_v54  ;;  %v642_v29 = vpop.f32.mrb[21].mxu0  ;;  %v907_v30 = vpack.c.bf16 %v878_v18, %v877_v17 }
 0x188   : > { %v815_v31 = vadd.f32 %v2431_v4, %v777_v21  ;;  %v778_v32 = vmul.f32 %v2428_v63, %v738_v22  ;;  %v643_v33 = vadd.f32 %v2423_v54, %v642_v29  ;;  %v1758_v34 = vpop.f32.mrb[22].mxu0  ;;  %v906_v35 = vpack.c.bf16 %v876_v25, %v875_v24 }
 0x189   : > { %v849_v36 = vmax.f32 %v817_v26, 0.0  ;;  %v818_v37 = vadd.f32 %v2431_v4, %v780_v27  ;;  %v711_v38 = vmax.f32 %v651_v28, 0.0  ;;  %v654_v39 = vadd.f32 %v1758_v34, %v2423_v54  ;;  %v645_v40 = vpop.f32.mrb[23].mxu0 }
 0x18a   : > { %v847_v41 = vmax.f32 %v815_v31, 0.0  ;;  %v816_v42 = vadd.f32 %v2431_v4, %v778_v32  ;;  %v709_v43 = vmax.f32 %v643_v33, 0.0  ;;  %v646_v44 = vadd.f32 %v2423_v54, %v645_v40  ;;  %1783 = vmatprep.mubr.msk.bf16.mxu1 %vm934_vm1, %v906_v35 }
 0x18b   : > { %v850_v45 = vmax.f32 %v818_v37, 0.0  ;;  %v743_v46 = vmin.f32 %v711_v38, 6.0  ;;  %v712_v47 = vmax.f32 %v654_v39, 0.0  ;;  %1784 = vmatmul.mubr.msk.bf16.vlgmr.msra.gmra.mrb[0].mxu1 %vm934_vm1, %v907_v30  ;;  %v881_v51 = vmin.f32 %v849_v36, 6.0 }
 0x18c   : > { %v848_v48 = vmax.f32 %v816_v42, 0.0  ;;  %v741_v49 = vmin.f32 %v709_v43, 6.0  ;;  %v710_v50 = vmax.f32 %v646_v44, 0.0  ;;  %1804 = vmatpush3.bf16.msra.mxu1 %v2420_v53  ;;  %v879_v57 = vmin.f32 %v847_v41, 6.0 }
 0x18d   : > { %v882_v52 = vmin.f32 %v850_v45, 6.0  ;;  %v783_v55 = vmul.f32 %v2428_v63, %v743_v46  ;;  %v744_v56 = vmin.f32 %v712_v47, 6.0 }
 0x18e   : > { %v880_v58 = vmin.f32 %v848_v48, 6.0  ;;  %v781_v59 = vmul.f32 %v2428_v63, %v741_v49  ;;  %v742_v60 = vmin.f32 %v710_v50, 6.0  ;;  %v1761_v61 = vpop.f32.mrb[24].mxu0 }
 0x18f   : > { %v821_v62 = vadd.f32 %v2431_v4, %v783_v55  ;;  %v784_v0 = vmul.f32 %v2428_v63, %v744_v56  ;;  %v667_v1 = vadd.f32 %v1761_v61, %v2423_v54  ;;  %v658_v2 = vpop.f32.mrb[25].mxu0  ;;  %v909_v3 = vpack.c.bf16 %v882_v52, %v881_v51 }
 0x190   : > { %v819_v53 = vadd.f32 %v2431_v4, %v781_v59  ;;  %v782_v5 = vmul.f32 %v2428_v63, %v742_v60  ;;  %v659_v6 = vadd.f32 %v2423_v54, %v658_v2  ;;  %v1762_v7 = vpop.f32.mrb[26].mxu0  ;;  %v908_v8 = vpack.c.bf16 %v880_v58, %v879_v57 }
 0x191   : > { %v853_v9 = vmax.f32 %v821_v62, 0.0  ;;  %v822_v10 = vadd.f32 %v2431_v4, %v784_v0  ;;  %v715_v11 = vmax.f32 %v667_v1, 0.0  ;;  %v670_v12 = vadd.f32 %v1762_v7, %v2423_v54  ;;  %v661_v13 = vpop.f32.mrb[27].mxu0 }
 0x192   : > { %v851_v14 = vmax.f32 %v819_v53, 0.0  ;;  %v820_v15 = vadd.f32 %v2431_v4, %v782_v5  ;;  %v713_v16 = vmax.f32 %v659_v6, 0.0  ;;  %v662_v17 = vadd.f32 %v2423_v54, %v661_v13  ;;  %1787 = vmatprep.mubr.msk.bf16.mxu1 %vm934_vm1, %v908_v8 }
 0x193   : > { %v854_v18 = vmax.f32 %v822_v10, 0.0  ;;  %v747_v19 = vmin.f32 %v715_v11, 6.0  ;;  %v716_v20 = vmax.f32 %v670_v12, 0.0  ;;  %1788 = vmatmul.mubr.msk.bf16.gmra.mrb[4].mxu1 %vm934_vm1, %v909_v3  ;;  %v885_v24 = vmin.f32 %v853_v9, 6.0 }
 0x194   : > { %v852_v21 = vmax.f32 %v820_v15, 0.0  ;;  %v745_v22 = vmin.f32 %v713_v16, 6.0  ;;  %v714_v23 = vmax.f32 %v662_v17, 0.0  ;;  %v883_v28 = vmin.f32 %v851_v14, 6.0 }
 0x195   : > { %v886_v25 = vmin.f32 %v854_v18, 6.0  ;;  %v787_v26 = vmul.f32 %v2428_v63, %v747_v19  ;;  %v748_v27 = vmin.f32 %v716_v20, 6.0 }
 0x196   : > { %v884_v29 = vmin.f32 %v852_v21, 6.0  ;;  %v785_v30 = vmul.f32 %v2428_v63, %v745_v22  ;;  %v746_v31 = vmin.f32 %v714_v23, 6.0  ;;  %v1765_v32 = vpop.f32.mrb[28].mxu0  ;;  %v2542_v21 = vld [vmem:[#allocation8] ss:$0 sm:$0xff] }
 0x197   : > { %v825_v33 = vadd.f32 %v2431_v4, %v787_v26  ;;  %v788_v34 = vmul.f32 %v2428_v63, %v748_v27  ;;  %v683_v35 = vadd.f32 %v1765_v32, %v2423_v54  ;;  %v674_v36 = vpop.f32.mrb[29].mxu0  ;;  %v911_v37 = vpack.c.bf16 %v886_v25, %v885_v24 }
 0x198   : > { %v823_v38 = vadd.f32 %v2431_v4, %v785_v30  ;;  %v786_v39 = vmul.f32 %v2428_v63, %v746_v31  ;;  %v675_v40 = vadd.f32 %v2423_v54, %v674_v36  ;;  %v1766_v41 = vpop.f32.mrb[30].mxu0  ;;  %v910_v42 = vpack.c.bf16 %v884_v29, %v883_v28 }
 0x199   : > { %v857_v43 = vmax.f32 %v825_v33, 0.0  ;;  %v826_v44 = vadd.f32 %v2431_v4, %v788_v34  ;;  %v719_v45 = vmax.f32 %v683_v35, 0.0  ;;  %v686_v46 = vadd.f32 %v1766_v41, %v2423_v54  ;;  %v677_v47 = vpop.f32.mrb[31].mxu0 }
 0x19a   : > { %v855_v48 = vmax.f32 %v823_v38, 0.0  ;;  %v824_v49 = vadd.f32 %v2431_v4, %v786_v39  ;;  %v717_v50 = vmax.f32 %v675_v40, 0.0  ;;  %v678_v51 = vadd.f32 %v2423_v54, %v677_v47  ;;  %1791 = vmatprep.mubr.msk.bf16.mxu1 %vm934_vm1, %v910_v42 }
 0x19b   : > { %v858_v52 = vmax.f32 %v826_v44, 0.0  ;;  %v751_v55 = vmin.f32 %v719_v45, 6.0  ;;  %v720_v56 = vmax.f32 %v686_v46, 0.0  ;;  %1792 = vmatmul.mubr.msk.bf16.gmra.mrb[8].mxu1 %vm934_vm1, %v911_v37  ;;  %v889_v60 = vmin.f32 %v857_v43, 6.0 }
 0x19c   : > { %v856_v57 = vmax.f32 %v824_v49, 0.0  ;;  %v749_v58 = vmin.f32 %v717_v50, 6.0  ;;  %v718_v59 = vmax.f32 %v678_v51, 0.0  ;;  %v887_v1 = vmin.f32 %v855_v48, 6.0 }
 0x19d   : > { %v890_v61 = vmin.f32 %v858_v52, 6.0  ;;  %v791_v62 = vmul.f32 %v2428_v63, %v751_v55  ;;  %v752_v0 = vmin.f32 %v720_v56, 6.0 }
 0x19e   : > { %v888_v2 = vmin.f32 %v856_v57, 6.0  ;;  %v789_v3 = vmul.f32 %v2428_v63, %v749_v58  ;;  %v750_v54 = vmin.f32 %v718_v59, 6.0 }
 0x19f   : > { %v829_v53 = vadd.f32 %v2431_v4, %v791_v62  ;;  %v792_v5 = vmul.f32 %v2428_v63, %v752_v0  ;;  %v913_v6 = vpack.c.bf16 %v890_v61, %v889_v60 }
 0x1a0   : > { %v827_v7 = vadd.f32 %v2431_v4, %v789_v3  ;;  %v790_v8 = vmul.f32 %v2428_v63, %v750_v54  ;;  %v912_v9 = vpack.c.bf16 %v888_v2, %v887_v1 }
 0x1a1   : > { %v861_v10 = vmax.f32 %v829_v53, 0.0  ;;  %v830_v11 = vadd.f32 %v2431_v4, %v792_v5 }
 0x1a2   : > { %v859_v12 = vmax.f32 %v827_v7, 0.0  ;;  %v828_v13 = vadd.f32 %v2431_v4, %v790_v8  ;;  %1795 = vmatprep.mubr.msk.bf16.mxu1 %vm934_vm1, %v912_v9 }
 0x1a3   : > { %v862_v14 = vmax.f32 %v830_v11, 0.0  ;;  %1796 = vmatmul.mubr.msk.bf16.gmra.mrb[12].mxu1 %vm934_vm1, %v913_v6  ;;  %v893_v16 = vmin.f32 %v861_v10, 6.0 }
 0x1a4   : > { %v860_v15 = vmax.f32 %v828_v13, 0.0  ;;  %v891_v18 = vmin.f32 %v859_v12, 6.0 }
 0x1a5   : > { %v894_v17 = vmin.f32 %v862_v14, 6.0 }
 0x1a6   : > { %v892_v19 = vmin.f32 %v860_v15, 6.0 }
 0x1a7   : > { %v915_v20 = vpack.c.bf16 %v894_v17, %v893_v16 }
 0x1a8   : > { %v914_v63 = vpack.c.bf16 %v892_v19, %v891_v18 }
 0x1aa   : > { %1799 = vmatprep.mubr.msk.bf16.mxu1 %vm934_vm1, %v914_v63 }
 0x1ab   : > { %1800 = vmatmul.mubr.msk.bf16.gmra.mrb[16].mxu1 %vm934_vm1, %v915_v20 }
 0x246   : > { %v1773_v4 = vpop.f32.mrb[32].mxu0 }
 0x247   : > { %v1026_v22 = vadd.f32 %v1773_v4, %v2542_v21  ;;  %v1017_v23 = vpop.f32.mrb[33].mxu0 }
 0x248   : > { %v1018_v24 = vadd.f32 %v2542_v21, %v1017_v23  ;;  %v1774_v25 = vpop.f32.mrb[34].mxu0 }
 0x249   : > { %1413 = vst.msk [vmem:[%s2549_s29 + $0x10] sm:$0xff] %vm1168_vm2, %v1026_v22  ;;  %v1029_v26 = vadd.f32 %v1774_v25, %v2542_v21  ;;  %v1020_v27 = vpop.f32.mrb[35].mxu0 }
 0x24a   : > { %1411 = vst.msk [vmem:[%s2549_s29] sm:$0xff] %vm1168_vm2, %v1018_v24  ;;  %v1021_v28 = vadd.f32 %v2542_v21, %v1020_v27 }
 0x24b   : > { %v1147_v29 = vpack.c.bf16 %v1029_v26, %v1026_v22  ;;  %1414 = vst.msk [vmem:[%s2549_s29 + $0x18] sm:$0xff] %vm1168_vm2, %v1029_v26 }
 0x24c   : > { %v1146_v30 = vpack.c.bf16 %v1021_v28, %v1018_v24  ;;  %1412 = vst.msk [vmem:[%s2549_s29 + $0x8] sm:$0xff] %vm1168_vm2, %v1021_v28 }
 0x24e   : > { %v1777_v31 = vpop.f32.mrb[36].mxu0  ;;  %1805 = vmatprep.mubr.msk.bf16.mxu1 %vm1168_vm2, %v1146_v30 }
 0x24f   : > { %v1042_v32 = vadd.f32 %v1777_v31, %v2542_v21  ;;  %v1033_v33 = vpop.f32.mrb[37].mxu0  ;;  %1806 = vmatmul.mubr.msk.bf16.vlgmr.msra.gmra.mrb[20].mxu1 %vm1168_vm2, %v1147_v29 }
 0x250   : > { %v1034_v34 = vadd.f32 %v2542_v21, %v1033_v33  ;;  %v1778_v35 = vpop.f32.mrb[38].mxu0 }
 0x251   : > { %1417 = vst.msk [vmem:[%s2549_s29 + $0x30] sm:$0xff] %vm1168_vm2, %v1042_v32  ;;  %v1045_v36 = vadd.f32 %v1778_v35, %v2542_v21  ;;  %v1036_v37 = vpop.f32.mrb[39].mxu0 }
 0x252   : > { %1415 = vst.msk [vmem:[%s2549_s29 + $0x20] sm:$0xff] %vm1168_vm2, %v1034_v34  ;;  %v1037_v38 = vadd.f32 %v2542_v21, %v1036_v37 }
 0x253   : > { %v1149_v39 = vpack.c.bf16 %v1045_v36, %v1042_v32  ;;  %1418 = vst.msk [vmem:[%s2549_s29 + $0x38] sm:$0xff] %vm1168_vm2, %v1045_v36 }
 0x254   : > { %v1148_v40 = vpack.c.bf16 %v1037_v38, %v1034_v34  ;;  %1416 = vst.msk [vmem:[%s2549_s29 + $0x28] sm:$0xff] %vm1168_vm2, %v1037_v38 }
 0x256   : > { %v1781_v41 = vpop.f32.mrb[40].mxu0  ;;  %1809 = vmatprep.mubr.msk.bf16.mxu1 %vm1168_vm2, %v1148_v40 }
 0x257   : > { %v1058_v42 = vadd.f32 %v1781_v41, %v2542_v21  ;;  %v1049_v43 = vpop.f32.mrb[41].mxu0  ;;  %1810 = vmatmul.mubr.msk.bf16.gmra.mrb[24].mxu1 %vm1168_vm2, %v1149_v39 }
 0x258   : > { %v1050_v44 = vadd.f32 %v2542_v21, %v1049_v43  ;;  %v1782_v45 = vpop.f32.mrb[42].mxu0 }
 0x259   : > { %1421 = vst.msk [vmem:[%s2549_s29 + $0x50] sm:$0xff] %vm1168_vm2, %v1058_v42  ;;  %v1061_v46 = vadd.f32 %v1782_v45, %v2542_v21  ;;  %v1052_v47 = vpop.f32.mrb[43].mxu0 }
 0x25a   : > { %1419 = vst.msk [vmem:[%s2549_s29 + $0x40] sm:$0xff] %vm1168_vm2, %v1050_v44  ;;  %v1053_v48 = vadd.f32 %v2542_v21, %v1052_v47 }
 0x25b   : > { %v1151_v49 = vpack.c.bf16 %v1061_v46, %v1058_v42  ;;  %1422 = vst.msk [vmem:[%s2549_s29 + $0x58] sm:$0xff] %vm1168_vm2, %v1061_v46 }
 0x25c   : > { %v1150_v50 = vpack.c.bf16 %v1053_v48, %v1050_v44  ;;  %1420 = vst.msk [vmem:[%s2549_s29 + $0x48] sm:$0xff] %vm1168_vm2, %v1053_v48 }
 0x25e   : > { %v1785_v51 = vpop.f32.mrb[0].mxu1  ;;  %1813 = vmatprep.mubr.msk.bf16.mxu1 %vm1168_vm2, %v1150_v50 }
 0x25f   : > { %v1074_v52 = vadd.f32 %v1785_v51, %v2542_v21  ;;  %v1065_v55 = vpop.f32.mrb[1].mxu1  ;;  %1814 = vmatmul.mubr.msk.bf16.gmra.mrb[28].mxu1 %vm1168_vm2, %v1151_v49 }
 0x260   : > { %v1066_v56 = vadd.f32 %v2542_v21, %v1065_v55  ;;  %v1786_v57 = vpop.f32.mrb[2].mxu1 }
 0x261   : > { %1425 = vst.msk [vmem:[%s2549_s29 + $0x70] sm:$0xff] %vm1168_vm2, %v1074_v52  ;;  %v1077_v58 = vadd.f32 %v1786_v57, %v2542_v21  ;;  %v1068_v59 = vpop.f32.mrb[3].mxu1 }
 0x262   : > { %1423 = vst.msk [vmem:[%s2549_s29 + $0x60] sm:$0xff] %vm1168_vm2, %v1066_v56  ;;  %v1069_v60 = vadd.f32 %v2542_v21, %v1068_v59 }
 0x263   : > { %v1153_v61 = vpack.c.bf16 %v1077_v58, %v1074_v52  ;;  %1426 = vst.msk [vmem:[%s2549_s29 + $0x78] sm:$0xff] %vm1168_vm2, %v1077_v58 }
 0x264   : > { %v1152_v62 = vpack.c.bf16 %v1069_v60, %v1066_v56  ;;  %1424 = vst.msk [vmem:[%s2549_s29 + $0x68] sm:$0xff] %vm1168_vm2, %v1069_v60 }
 0x266   : > { %v1789_v0 = vpop.f32.mrb[4].mxu1  ;;  %1817 = vmatprep.mubr.msk.bf16.mxu1 %vm1168_vm2, %v1152_v62 }
 0x267   : > { %v1090_v1 = vadd.f32 %v1789_v0, %v2542_v21  ;;  %v1081_v2 = vpop.f32.mrb[5].mxu1  ;;  %1818 = vmatmul.mubr.msk.bf16.gmra.mrb[32].mxu1 %vm1168_vm2, %v1153_v61 }
 0x268   : > { %v1082_v3 = vadd.f32 %v2542_v21, %v1081_v2  ;;  %v1790_v54 = vpop.f32.mrb[6].mxu1 }
 0x269   : > { %1429 = vst.msk [vmem:[%s2549_s29 + $0x90] sm:$0xff] %vm1168_vm2, %v1090_v1  ;;  %v1093_v53 = vadd.f32 %v1790_v54, %v2542_v21  ;;  %v1084_v5 = vpop.f32.mrb[7].mxu1 }
 0x26a   : > { %1427 = vst.msk [vmem:[%s2549_s29 + $0x80] sm:$0xff] %vm1168_vm2, %v1082_v3  ;;  %v1085_v6 = vadd.f32 %v2542_v21, %v1084_v5 }
 0x26b   : > { %v1155_v7 = vpack.c.bf16 %v1093_v53, %v1090_v1  ;;  %1430 = vst.msk [vmem:[%s2549_s29 + $0x98] sm:$0xff] %vm1168_vm2, %v1093_v53 }
 0x26c   : > { %v1154_v8 = vpack.c.bf16 %v1085_v6, %v1082_v3  ;;  %1428 = vst.msk [vmem:[%s2549_s29 + $0x88] sm:$0xff] %vm1168_vm2, %v1085_v6 }
 0x26e   : > { %v1793_v9 = vpop.f32.mrb[8].mxu1  ;;  %1821 = vmatprep.mubr.msk.bf16.mxu1 %vm1168_vm2, %v1154_v8 }
 0x26f   : > { %v1106_v10 = vadd.f32 %v1793_v9, %v2542_v21  ;;  %v1097_v11 = vpop.f32.mrb[9].mxu1  ;;  %1822 = vmatmul.mubr.msk.bf16.gmra.mrb[36].mxu1 %vm1168_vm2, %v1155_v7 }
 0x270   : > { %v1098_v12 = vadd.f32 %v2542_v21, %v1097_v11  ;;  %v1794_v13 = vpop.f32.mrb[10].mxu1 }
 0x271   : > { %1433 = vst.msk [vmem:[%s2549_s29 + $0xb0] sm:$0xff] %vm1168_vm2, %v1106_v10  ;;  %v1109_v14 = vadd.f32 %v1794_v13, %v2542_v21  ;;  %v1100_v15 = vpop.f32.mrb[11].mxu1 }
 0x272   : > { %1431 = vst.msk [vmem:[%s2549_s29 + $0xa0] sm:$0xff] %vm1168_vm2, %v1098_v12  ;;  %v1101_v16 = vadd.f32 %v2542_v21, %v1100_v15 }
 0x273   : > { %v1157_v17 = vpack.c.bf16 %v1109_v14, %v1106_v10  ;;  %1434 = vst.msk [vmem:[%s2549_s29 + $0xb8] sm:$0xff] %vm1168_vm2, %v1109_v14 }
 0x274   : > { %v1156_v18 = vpack.c.bf16 %v1101_v16, %v1098_v12  ;;  %1432 = vst.msk [vmem:[%s2549_s29 + $0xa8] sm:$0xff] %vm1168_vm2, %v1101_v16 }
 0x276   : > { %v1797_v19 = vpop.f32.mrb[12].mxu1  ;;  %1825 = vmatprep.mubr.msk.bf16.mxu1 %vm1168_vm2, %v1156_v18 }
 0x277   : > { %v1122_v20 = vadd.f32 %v1797_v19, %v2542_v21  ;;  %v1113_v63 = vpop.f32.mrb[13].mxu1  ;;  %1826 = vmatmul.mubr.msk.bf16.gmra.mrb[40].mxu1 %vm1168_vm2, %v1157_v17 }
 0x278   : > { %v1114_v4 = vadd.f32 %v2542_v21, %v1113_v63  ;;  %v1798_v22 = vpop.f32.mrb[14].mxu1 }
 0x279   : > { %1437 = vst.msk [vmem:[%s2549_s29 + $0xd0] sm:$0xff] %vm1168_vm2, %v1122_v20  ;;  %v1125_v23 = vadd.f32 %v1798_v22, %v2542_v21  ;;  %v1116_v24 = vpop.f32.mrb[15].mxu1 }
 0x27a   : > { %1435 = vst.msk [vmem:[%s2549_s29 + $0xc0] sm:$0xff] %vm1168_vm2, %v1114_v4  ;;  %v1117_v25 = vadd.f32 %v2542_v21, %v1116_v24 }
 0x27b   : > { %v1159_v26 = vpack.c.bf16 %v1125_v23, %v1122_v20  ;;  %1438 = vst.msk [vmem:[%s2549_s29 + $0xd8] sm:$0xff] %vm1168_vm2, %v1125_v23 }
 0x27c   : > { %v1158_v27 = vpack.c.bf16 %v1117_v25, %v1114_v4  ;;  %1436 = vst.msk [vmem:[%s2549_s29 + $0xc8] sm:$0xff] %vm1168_vm2, %v1117_v25 }
 0x27e   : > { %v1801_v28 = vpop.f32.mrb[16].mxu1  ;;  %1829 = vmatprep.mubr.msk.bf16.mxu1 %vm1168_vm2, %v1158_v27 }
 0x27f   : > { %v1138_v29 = vadd.f32 %v1801_v28, %v2542_v21  ;;  %v1129_v30 = vpop.f32.mrb[17].mxu1  ;;  %1830 = vmatmul.mubr.msk.bf16.gmra.mrb[44].mxu1 %vm1168_vm2, %v1159_v26 }
 0x280   : > { %v1130_v31 = vadd.f32 %v2542_v21, %v1129_v30  ;;  %v1802_v32 = vpop.f32.mrb[18].mxu1 }
 0x281   : > { %1441 = vst.msk [vmem:[%s2549_s29 + $0xf0] sm:$0xff] %vm1168_vm2, %v1138_v29  ;;  %v1141_v33 = vadd.f32 %v1802_v32, %v2542_v21  ;;  %v1132_v34 = vpop.f32.mrb[19].mxu1 }
 0x282   : > { %1439 = vst.msk [vmem:[%s2549_s29 + $0xe0] sm:$0xff] %vm1168_vm2, %v1130_v31  ;;  %v1133_v35 = vadd.f32 %v2542_v21, %v1132_v34 }
 0x283   : > { %v1161_v36 = vpack.c.bf16 %v1141_v33, %v1138_v29  ;;  %1442 = vst.msk [vmem:[%s2549_s29 + $0xf8] sm:$0xff] %vm1168_vm2, %v1141_v33 }
 0x284   : > { %v1160_v37 = vpack.c.bf16 %v1133_v35, %v1130_v31  ;;  %1440 = vst.msk [vmem:[%s2549_s29 + $0xe8] sm:$0xff] %vm1168_vm2, %v1133_v35 }
 0x286   : > { %1833 = vmatprep.mubr.msk.bf16.mxu1 %vm1168_vm2, %v1160_v37 }
 0x287   : > { %1834 = vmatmul.mubr.msk.bf16.gmra.mrb[48].mxu1 %vm1168_vm2, %v1161_v36 }
 0x322   : > { %v1807_v38 = vpop.f32.mrb[20].mxu1 }
 0x323   : > { %1381 = vst.msk [vmem:[%s2666_s14 + $0x10] sm:$0xff] %vm1378_vm3, %v1807_v38  ;;  %v1251_v21 = vpop.f32.mrb[21].mxu1 }
 0x324   : > { %1379 = vst.msk [vmem:[%s2666_s14] sm:$0xff] %vm1378_vm3, %v1251_v21  ;;  %v1808_v39 = vpop.f32.mrb[22].mxu1 }
 0x325   : > { %1382 = vst.msk [vmem:[%s2666_s14 + $0x18] sm:$0xff] %vm1378_vm3, %v1808_v39  ;;  %v1254_v40 = vpop.f32.mrb[23].mxu1 }
 0x326   : > { %1380 = vst.msk [vmem:[%s2666_s14 + $0x8] sm:$0xff] %vm1378_vm3, %v1254_v40 }
 0x32a   : > { %v1811_v41 = vpop.f32.mrb[24].mxu1 }
 0x32b   : > { %1385 = vst.msk [vmem:[%s2666_s14 + $0x30] sm:$0xff] %vm1378_vm3, %v1811_v41  ;;  %v1267_v42 = vpop.f32.mrb[25].mxu1 }
 0x32c   : > { %1383 = vst.msk [vmem:[%s2666_s14 + $0x20] sm:$0xff] %vm1378_vm3, %v1267_v42  ;;  %v1812_v43 = vpop.f32.mrb[26].mxu1 }
 0x32d   : > { %1386 = vst.msk [vmem:[%s2666_s14 + $0x38] sm:$0xff] %vm1378_vm3, %v1812_v43  ;;  %v1270_v44 = vpop.f32.mrb[27].mxu1 }
 0x32e   : > { %1384 = vst.msk [vmem:[%s2666_s14 + $0x28] sm:$0xff] %vm1378_vm3, %v1270_v44 }
 0x332   : > { %v1815_v45 = vpop.f32.mrb[28].mxu1 }
 0x333   : > { %1389 = vst.msk [vmem:[%s2666_s14 + $0x50] sm:$0xff] %vm1378_vm3, %v1815_v45  ;;  %v1283_v46 = vpop.f32.mrb[29].mxu1 }
 0x334   : > { %1387 = vst.msk [vmem:[%s2666_s14 + $0x40] sm:$0xff] %vm1378_vm3, %v1283_v46  ;;  %v1816_v47 = vpop.f32.mrb[30].mxu1 }
 0x335   : > { %1390 = vst.msk [vmem:[%s2666_s14 + $0x58] sm:$0xff] %vm1378_vm3, %v1816_v47  ;;  %v1286_v48 = vpop.f32.mrb[31].mxu1 }
 0x336   : > { %1388 = vst.msk [vmem:[%s2666_s14 + $0x48] sm:$0xff] %vm1378_vm3, %v1286_v48 }
 0x33a   : > { %v1819_v49 = vpop.f32.mrb[32].mxu1 }
 0x33b   : > { %1393 = vst.msk [vmem:[%s2666_s14 + $0x70] sm:$0xff] %vm1378_vm3, %v1819_v49  ;;  %v1299_v50 = vpop.f32.mrb[33].mxu1 }
 0x33c   : > { %1391 = vst.msk [vmem:[%s2666_s14 + $0x60] sm:$0xff] %vm1378_vm3, %v1299_v50  ;;  %v1820_v51 = vpop.f32.mrb[34].mxu1 }
 0x33d   : > { %1394 = vst.msk [vmem:[%s2666_s14 + $0x78] sm:$0xff] %vm1378_vm3, %v1820_v51  ;;  %v1302_v52 = vpop.f32.mrb[35].mxu1 }
 0x33e   : > { %1392 = vst.msk [vmem:[%s2666_s14 + $0x68] sm:$0xff] %vm1378_vm3, %v1302_v52 }
 0x342   : > { %v1823_v55 = vpop.f32.mrb[36].mxu1 }
 0x343   : > { %1397 = vst.msk [vmem:[%s2666_s14 + $0x90] sm:$0xff] %vm1378_vm3, %v1823_v55  ;;  %v1315_v56 = vpop.f32.mrb[37].mxu1 }
 0x344   : > { %1395 = vst.msk [vmem:[%s2666_s14 + $0x80] sm:$0xff] %vm1378_vm3, %v1315_v56  ;;  %v1824_v57 = vpop.f32.mrb[38].mxu1 }
 0x345   : > { %1398 = vst.msk [vmem:[%s2666_s14 + $0x98] sm:$0xff] %vm1378_vm3, %v1824_v57  ;;  %v1318_v58 = vpop.f32.mrb[39].mxu1 }
 0x346   : > { %1396 = vst.msk [vmem:[%s2666_s14 + $0x88] sm:$0xff] %vm1378_vm3, %v1318_v58 }
 0x34a   : > { %v1827_v59 = vpop.f32.mrb[40].mxu1 }
 0x34b   : > { %1401 = vst.msk [vmem:[%s2666_s14 + $0xb0] sm:$0xff] %vm1378_vm3, %v1827_v59  ;;  %v1331_v60 = vpop.f32.mrb[41].mxu1 }
 0x34c   : > { %1399 = vst.msk [vmem:[%s2666_s14 + $0xa0] sm:$0xff] %vm1378_vm3, %v1331_v60  ;;  %v1828_v61 = vpop.f32.mrb[42].mxu1 }
 0x34d   : > { %1402 = vst.msk [vmem:[%s2666_s14 + $0xb8] sm:$0xff] %vm1378_vm3, %v1828_v61  ;;  %v1334_v62 = vpop.f32.mrb[43].mxu1 }
 0x34e   : > { %1400 = vst.msk [vmem:[%s2666_s14 + $0xa8] sm:$0xff] %vm1378_vm3, %v1334_v62 }
 0x352   : > { %v1831_v0 = vpop.f32.mrb[44].mxu1 }
 0x353   : > { %1405 = vst.msk [vmem:[%s2666_s14 + $0xd0] sm:$0xff] %vm1378_vm3, %v1831_v0  ;;  %v1347_v1 = vpop.f32.mrb[45].mxu1 }
 0x354   : > { %1403 = vst.msk [vmem:[%s2666_s14 + $0xc0] sm:$0xff] %vm1378_vm3, %v1347_v1  ;;  %v1832_v2 = vpop.f32.mrb[46].mxu1 }
 0x355   : > { %1406 = vst.msk [vmem:[%s2666_s14 + $0xd8] sm:$0xff] %vm1378_vm3, %v1832_v2  ;;  %v1350_v3 = vpop.f32.mrb[47].mxu1 }
 0x356   : > { %1404 = vst.msk [vmem:[%s2666_s14 + $0xc8] sm:$0xff] %vm1378_vm3, %v1350_v3 }
 0x35a   : > { %v1835_v54 = vpop.f32.mrb[48].mxu1 }
 0x35b   : > { %1409 = vst.msk [vmem:[%s2666_s14 + $0xf0] sm:$0xff] %vm1378_vm3, %v1835_v54  ;;  %v1363_v53 = vpop.f32.mrb[49].mxu1 }
 0x35c   : > { %1407 = vst.msk [vmem:[%s2666_s14 + $0xe0] sm:$0xff] %vm1378_vm3, %v1363_v53  ;;  %v1836_v5 = vpop.f32.mrb[50].mxu1 }
 0x35d   : > { %1410 = vst.msk [vmem:[%s2666_s14 + $0xf8] sm:$0xff] %vm1378_vm3, %v1836_v5  ;;  %v1366_v6 = vpop.f32.mrb[51].mxu1 }
 0x35e   : > { %1408 = vst.msk [vmem:[%s2666_s14 + $0xe8] sm:$0xff] %vm1378_vm3, %v1366_v6 }
 0x35f   : > { %2054 = shalt.err (!%p2051_p1)
}
 0x360   : > { %s2055_s16 = scalar_lea.hbm %s2731_s15, 4096  ;;  %s2059_s21 = scalar_lea.hbm %s2793_s9, 8192 }
 0x361   : > { %p2056_p0 = scmp.ne.s32.totalorder %s2731_s15, %s2055_s16  ;;  %p2060_p9 = scmp.lt.u32.totalorder %s2731_s15, %s2793_s9 }
 0x362   : > { %p2061_p12 = scmp.lt.u32.totalorder %s2059_s21, %s2055_s16  ;;  %p2063_p2 = scmp.lt.u32.totalorder %s2055_s16, %s2731_s15 }
 0x363   : > { %p2057_p6 = pnand %p2056_p0, %p2815_p3 }
 0x364   : > { %p2062_p10 = por %p2061_p12, %p2060_p9 }
 0x365   : > { %p2058_p5 = pneg %p2057_p6 }
 0x366   : > { %p2064_p4 = por %p2063_p2, %p2062_p10 }
 0x368   : > { %p2065_p7 = pnand %p2064_p4, %p2058_p5 }
 0x36a   : > { %2068 = shalt.err (!%p2065_p7)
}
 0x36b   : > { %s2122_s23 = smov 128   ;;  %s2123_s11 = smov 8  }
 0x36c   : > { %1857 = dma.vmem_to_hbm [thread:$0]  (%p2815_p3), %s2733_s25, 4096, %s2731_s15, %s2743_s13, %s2122_s23, %s2122_s23, %s2123_s11  }
 0x36d PF: > { %p1884_p8 = scmp.ge.s32.totalorder %s2115_s12, 2  ;;  %s1489_s28 = sand.u32 1, %s2103_s30  }
 0x36e   : > { %p2816_p11 = scmp.ne.s32.totalorder %s2804_s20, 0  ;;  %s1490_s17 = scalar_lea.sflag [#allocation4], %s1489_s28 }
 0x370   : > { %p1873_p13 = pnand %p1884_p8, %p2816_p11 }
 0x372   : > { %2098 = dma.done.wait (!%p1873_p13), %s1490_s17, 4096  }
 0x373   : > { %2100 = vsyncadd (!%p1873_p13), %s1490_s17, 4294963200  ;;  %s2817_s12 = sld [smem:[#allocation16_spill]]  ;;  %s2818_s22 = sld [smem:[#allocation15_spill]] }
 0x374   : > { %s2819_s11 = sld [smem:[#allocation17_spill]]  ;;  %s2820_s30 = smov %s2107_s10 }
 0x379   : > { %p23_p1 = scmp.ge.s32.totalorder %s2817_s12, 4   ;;  %s2821_s10 = smov %s2818_s22 }
 0x37b   :  { %25 = sbr.rel (!%p23_p1) target bundleno = 6 (0x6), region = 116 }
 0x382   :  { %1495 = vsyncpa [#allocation3], 1 }
 0x383   :  { %1497 = vsyncpa [#allocation3 + $0x1], 1 }
 0x384   :  { %1498 = vsyncpa [#allocation6], 1 }
 0x385   :  { %1499 = vsyncpa [#allocation9], 1 }
 0x386   :  { %1500 = vsyncpa [#allocation4], 1 }
 0x387   :  { %1502 = vsyncpa [#allocation4 + $0x1], 1 }

// kernel: _lambda_.12
= control target key start
LH: loop header
LB: loop body
LE: loop exit
PB: predicated region body
PF: predicated region fallthrough
CT: control target
= control target key end

     0   :  { %s3816_s0 = inlined_call_operand.vmem [shape: f32[8,32], index: 0, kind: input, shape index: {}]   ;;  %s3817_s1 = inlined_call_operand.vmem [shape: bf16[32,192], index: 1, kind: input, shape index: {}]   ;;  %s3818_s2 = inlined_call_operand.hbm [shape: f32[1,192], index: 2, kind: input, shape index: {}]   ;;  %s3819_s3 = inlined_call_operand.hbm [shape: f32[1,192], index: 3, kind: input, shape index: {}]   ;;  %s3820_s4 = inlined_call_operand.hbm [shape: f32[1,192], index: 4, kind: input, shape index: {}]   ;;  %s3821_s5 = inlined_call_operand.vmem [shape: bf16[192,64], index: 5, kind: input, shape index: {}]   ;;  %s3822_s6 = inlined_call_operand.hbm [shape: f32[1,64], index: 6, kind: input, shape index: {}]   ;;  %s3823_s7 = inlined_call_operand.vmem [shape: bf16[64,384], index: 7, kind: input, shape index: {}]   ;;  %s3824_s8 = inlined_call_operand.hbm [shape: f32[1,384], index: 8, kind: input, shape index: {}]   ;;  %s3825_s9 = inlined_call_operand.hbm [shape: f32[1,384], index: 9, kind: input, shape index: {}]   ;;  %s3826_s10 = inlined_call_operand.hbm [shape: f32[1,384], index: 10, kind: input, shape index: {}]   ;;  %s3827_s11 = inlined_call_operand.vmem [shape: bf16[384,64], index: 11, kind: input, shape index: {}]   ;;  %s3828_s12 = inlined_call_operand.hbm [shape: f32[1,64], index: 12, kind: input, shape index: {}]   ;;  %s3829_s13 = inlined_call_operand.vmem [shape: bf16[64,384], index: 13, kind: input, shape index: {}]   ;;  %s3830_s14 = inlined_call_operand.hbm [shape: f32[1,384], index: 14, kind: input, shape index: {}]   ;;  %s3831_s15 = inlined_call_operand.hbm [shape: f32[1,384], index: 15, kind: input, shape index: {}]   ;;  %s3832_s16 = inlined_call_operand.hbm [shape: f32[1,384], index: 16, kind: input, shape index: {}]   ;;  %s3833_s17 = inlined_call_operand.vmem [shape: bf16[384,64], index: 17, kind: input, shape index: {}]   ;;  %s3834_s18 = inlined_call_operand.hbm [shape: f32[1,64], index: 18, kind: input, shape index: {}]   ;;  %s3835_s19 = inlined_call_operand.vmem [shape: bf16[64,384], index: 19, kind: input, shape index: {}]   ;;  %s3836_s20 = inlined_call_operand.hbm [shape: f32[1,384], index: 20, kind: input, shape index: {}]   ;;  %s3837_s21 = inlined_call_operand.hbm [shape: f32[1,384], index: 21, kind: input, shape index: {}]   ;;  %s3838_s22 = inlined_call_operand.hbm [shape: f32[1,384], index: 22, kind: input, shape index: {}]   ;;  %s3839_s23 = inlined_call_operand.vmem [shape: bf16[384,64], index: 23, kind: input, shape index: {}]   ;;  %s3840_s24 = inlined_call_operand.hbm [shape: f32[1,64], index: 24, kind: input, shape index: {}]   ;;  %s3841_s25 = inlined_call_operand.vmem [shape: f32[8,64], index: 25, kind: output, shape index: {}]  }
   0x1   :  { %3851 = sst [smem:[#allocation36_spill]] %s3816_s0 }
   0x2   :  { %3852 = sst [smem:[#allocation37_spill]] %s3817_s1 }
   0x3   :  { %3853 = sst [smem:[#allocation38_spill]] %s3818_s2 }
   0x4   :  { %3854 = sst [smem:[#allocation39_spill]] %s3819_s3 }
   0x5   :  { %3855 = sst [smem:[#allocation40_spill]] %s3820_s4 }
   0x6   :  { %3856 = sst [smem:[#allocation41_spill]] %s3821_s5 }
   0x7   :  { %3857 = sst [smem:[#allocation42_spill]] %s3822_s6 }
   0x8   :  { %3858 = sst [smem:[#allocation43_spill]] %s3823_s7 }
   0x9   :  { %3859 = sst [smem:[#allocation44_spill]] %s3824_s8 }
   0xa   :  { %3860 = sst [smem:[#allocation45_spill]] %s3825_s9 }
   0xb   :  { %3861 = sst [smem:[#allocation46_spill]] %s3841_s25 }
   0xc   :  { %30 = vsyncpa [#allocation3], 0 }
   0xd   :  { %31 = vsyncpa [#allocation5], 0 }
   0xe   :  { %32 = vsyncpa [#allocation8], 0 }
   0xf   :  { %33 = vsyncpa [#allocation11], 0 }
  0x10   :  { %34 = vsyncpa [#allocation14], 0 }
  0x11   :  { %35 = vsyncpa [#allocation17], 0 }
  0x12   :  { %36 = vsyncpa [#allocation20], 0 }
  0x13   :  { %37 = vsyncpa [#allocation23], 0 }
  0x14   :  { %38 = vsyncpa [#allocation26], 0  ;;  %s2966_s29 = smov [#allocation4]   ;;  %s2967_s6 = smov [#allocation7]  }
  0x15   :  { %s59_s2 = sshll.u32 %s2966_s29, 4  ;;  %s81_s30 = sshll.u32 %s2967_s6, 4  ;;  %s60_s2 = int_to_ptr.vmem [resolvable:$true] %s59_s2  ;;  %s82_s30 = int_to_ptr.vmem [resolvable:$true] %s81_s30 }
  0x16   :  { %s3862_s26 = sld [smem:[#allocation39_spill]] }
  0x1c   :  { %s2596_s1 = scalar_lea.hbm %s3862_s26, 32 }
  0x1d   :  { %p2597_p0 = scmp.ne.s32.totalorder %s3862_s26, %s2596_s1  ;;  %p2600_p1 = scmp.lt.u32.totalorder %s2596_s1, %s3862_s26 }
  0x1f   :  { %p2602_p2 = pnand %p2600_p1, %p2597_p0 }
  0x21   :  { %2605 = shalt.err (!%p2602_p2)
}
  0x22   :  { %s2606_s9 = scalar_lea.vmem %s60_s2, 32  ;;  %p2611_p4 = scmp.lt.s32.totalorder %s60_s2, %s60_s2 }
  0x23   :  { %p2607_p3 = scmp.ne.s32.totalorder %s60_s2, %s2606_s9  ;;  %p2612_p5 = scmp.lt.s32.totalorder %s2606_s9, %s2606_s9 }
  0x25   :  { %p2613_p6 = por %p2612_p5, %p2611_p4 }
  0x27   :  { %p2614_p7 = pnand %p2613_p6, %p2607_p3 }
  0x29   :  { %2617 = shalt.err (!%p2614_p7)
}
  0x2a   :  { %62 = dma.hbm_to_vmem [thread:$0]  %s3862_s26, 32, %s60_s2, [#allocation5]  }
  0x2b   :  { %s3863_s7 = sld [smem:[#allocation42_spill]] }
  0x31   :  { %s2618_s3 = scalar_lea.hbm %s3863_s7, 16 }
  0x32   :  { %p2619_p8 = scmp.ne.s32.totalorder %s3863_s7, %s2618_s3  ;;  %p2622_p9 = scmp.lt.u32.totalorder %s2618_s3, %s3863_s7 }
  0x34   :  { %p2624_p10 = pnand %p2622_p9, %p2619_p8 }
  0x36   :  { %2627 = shalt.err (!%p2624_p10)
}
  0x37   :  { %s2628_s28 = scalar_lea.vmem %s82_s30, 16  ;;  %s2632_s9 = scalar_lea.vmem %s82_s30, 32 }
  0x38   :  { %p2629_p11 = scmp.ne.s32.totalorder %s82_s30, %s2628_s28  ;;  %p2633_p12 = scmp.lt.s32.totalorder %s82_s30, %s82_s30 }
  0x39   :  { %p2634_p13 = scmp.lt.s32.totalorder %s2632_s9, %s2628_s28 }
  0x3b   :  { %p2635_p0 = por %p2634_p13, %p2633_p12 }
  0x3d   :  { %p2636_p1 = pnand %p2635_p0, %p2629_p11 }
  0x3f   :  { %2639 = shalt.err (!%p2636_p1)
}
  0x40   :  { %84 = dma.hbm_to_vmem [thread:$0]  %s3863_s7, 16, %s82_s30, [#allocation8]  }
  0x41   :  { %s2968_s5 = smov [#allocation10]   ;;  %s2969_s29 = smov [#allocation13]  }
  0x42   :  { %s103_s0 = sshll.u32 %s2968_s5, 4  ;;  %s125_s6 = sshll.u32 %s2969_s29, 4  ;;  %s104_s0 = int_to_ptr.vmem [resolvable:$true] %s103_s0  ;;  %s126_s6 = int_to_ptr.vmem [resolvable:$true] %s125_s6 }
  0x43   :  { %s3864_s27 = sld [smem:[#allocation45_spill]] }
  0x49   :  { %s2640_s1 = scalar_lea.hbm %s3864_s27, 48 }
  0x4a   :  { %p2641_p2 = scmp.ne.s32.totalorder %s3864_s27, %s2640_s1  ;;  %p2644_p3 = scmp.lt.u32.totalorder %s2640_s1, %s3864_s27 }
  0x4c   :  { %p2646_p4 = pnand %p2644_p3, %p2641_p2 }
  0x4e   :  { %2649 = shalt.err (!%p2646_p4)
}
  0x4f   :  { %s2650_s30 = scalar_lea.vmem %s104_s0, 48  ;;  %s2654_s7 = scalar_lea.vmem %s104_s0, 64 }
  0x50   :  { %p2651_p5 = scmp.ne.s32.totalorder %s104_s0, %s2650_s30  ;;  %p2655_p6 = scmp.lt.s32.totalorder %s104_s0, %s104_s0 }
  0x51   :  { %p2656_p7 = scmp.lt.s32.totalorder %s2654_s7, %s2650_s30 }
  0x53   :  { %p2657_p8 = por %p2656_p7, %p2655_p6 }
  0x55   :  { %p2658_p9 = pnand %p2657_p8, %p2651_p5 }
  0x57   :  { %2661 = shalt.err (!%p2658_p9)
}
  0x58   :  { %106 = dma.hbm_to_vmem [thread:$0]  %s3864_s27, 48, %s104_s0, [#allocation11]  }
  0x59   :  { %s2662_s29 = scalar_lea.hbm %s3828_s12, 16 }
  0x5a   :  { %p2663_p10 = scmp.ne.s32.totalorder %s3828_s12, %s2662_s29  ;;  %p2666_p11 = scmp.lt.u32.totalorder %s2662_s29, %s3828_s12 }
  0x5c   :  { %p2668_p12 = pnand %p2666_p11, %p2663_p10 }
  0x5e   :  { %2671 = shalt.err (!%p2668_p12)
}
  0x5f   :  { %s2672_s28 = scalar_lea.vmem %s126_s6, 16  ;;  %s2676_s9 = scalar_lea.vmem %s126_s6, 32 }
  0x60   :  { %p2673_p13 = scmp.ne.s32.totalorder %s126_s6, %s2672_s28  ;;  %p2677_p0 = scmp.lt.s32.totalorder %s126_s6, %s126_s6 }
  0x61   :  { %p2678_p1 = scmp.lt.s32.totalorder %s2676_s9, %s2672_s28 }
  0x63   :  { %p2679_p2 = por %p2678_p1, %p2677_p0 }
  0x65   :  { %p2680_p3 = pnand %p2679_p2, %p2673_p13 }
  0x67   :  { %2683 = shalt.err (!%p2680_p3)
}
  0x68   :  { %128 = dma.hbm_to_vmem [thread:$0]  %s3828_s12, 16, %s126_s6, [#allocation14]  }
  0x69   :  { %s2970_s30 = smov [#allocation16]   ;;  %s2971_s2 = smov [#allocation19]  }
  0x6a   :  { %s147_s7 = sshll.u32 %s2970_s30, 4  ;;  %s169_s26 = sshll.u32 %s2971_s2, 4  ;;  %s148_s7 = int_to_ptr.vmem [resolvable:$true] %s147_s7  ;;  %s170_s26 = int_to_ptr.vmem [resolvable:$true] %s169_s26 }
  0x6b   :  { %s2684_s29 = scalar_lea.hbm %s3831_s15, 48 }
  0x6c   :  { %p2685_p4 = scmp.ne.s32.totalorder %s3831_s15, %s2684_s29  ;;  %p2688_p5 = scmp.lt.u32.totalorder %s2684_s29, %s3831_s15 }
  0x6e   :  { %p2690_p6 = pnand %p2688_p5, %p2685_p4 }
  0x70   :  { %2693 = shalt.err (!%p2690_p6)
}
  0x71   :  { %s2694_s12 = scalar_lea.vmem %s148_s7, 48  ;;  %s2698_s6 = scalar_lea.vmem %s148_s7, 64 }
  0x72   :  { %p2695_p7 = scmp.ne.s32.totalorder %s148_s7, %s2694_s12  ;;  %p2699_p8 = scmp.lt.s32.totalorder %s148_s7, %s148_s7 }
  0x73   :  { %p2700_p9 = scmp.lt.s32.totalorder %s2698_s6, %s2694_s12 }
  0x75   :  { %p2701_p10 = por %p2700_p9, %p2699_p8 }
  0x77   :  { %p2702_p11 = pnand %p2701_p10, %p2695_p7 }
  0x79   :  { %2705 = shalt.err (!%p2702_p11)
}
  0x7a   :  { %150 = dma.hbm_to_vmem [thread:$0]  %s3831_s15, 48, %s148_s7, [#allocation17]  }
  0x7b   :  { %s2706_s30 = scalar_lea.hbm %s3834_s18, 16 }
  0x7c   :  { %p2707_p12 = scmp.ne.s32.totalorder %s3834_s18, %s2706_s30  ;;  %p2710_p13 = scmp.lt.u32.totalorder %s2706_s30, %s3834_s18 }
  0x7e   :  { %p2712_p0 = pnand %p2710_p13, %p2707_p12 }
  0x80   :  { %2715 = shalt.err (!%p2712_p0)
}
  0x81   :  { %s2716_s3 = scalar_lea.vmem %s170_s26, 16  ;;  %s2720_s8 = scalar_lea.vmem %s170_s26, 32 }
  0x82   :  { %p2717_p1 = scmp.ne.s32.totalorder %s170_s26, %s2716_s3  ;;  %p2721_p2 = scmp.lt.s32.totalorder %s170_s26, %s170_s26 }
  0x83   :  { %p2722_p3 = scmp.lt.s32.totalorder %s2720_s8, %s2716_s3 }
  0x85   :  { %p2723_p4 = por %p2722_p3, %p2721_p2 }
  0x87   :  { %p2724_p5 = pnand %p2723_p4, %p2717_p1 }
  0x89   :  { %2727 = shalt.err (!%p2724_p5)
}
  0x8a   :  { %172 = dma.hbm_to_vmem [thread:$0]  %s3834_s18, 16, %s170_s26, [#allocation20]  }
  0x8b   :  { %s2972_s1 = smov [#allocation22]   ;;  %s2973_s12 = smov [#allocation2]  }
  0x8c   :  { %s191_s4 = sshll.u32 %s2972_s1, 4  ;;  %s49_s6 = sshll.u32 %s2973_s12, 4  ;;  %s192_s4 = int_to_ptr.vmem [resolvable:$true] %s191_s4  ;;  %s50_s6 = int_to_ptr.vmem [resolvable:$true] %s49_s6 }
  0x8d   :  { %s2728_s0 = scalar_lea.hbm %s3837_s21, 48 }
  0x8e   :  { %p2729_p6 = scmp.ne.s32.totalorder %s3837_s21, %s2728_s0  ;;  %p2732_p7 = scmp.lt.u32.totalorder %s2728_s0, %s3837_s21 }
  0x90   :  { %p2734_p8 = pnand %p2732_p7, %p2729_p6 }
  0x92   :  { %2737 = shalt.err (!%p2734_p8)
}
  0x93   :  { %s2738_s18 = scalar_lea.vmem %s192_s4, 48  ;;  %s2742_s26 = scalar_lea.vmem %s192_s4, 64 }
  0x94   :  { %p2739_p9 = scmp.ne.s32.totalorder %s192_s4, %s2738_s18  ;;  %p2743_p10 = scmp.lt.s32.totalorder %s192_s4, %s192_s4 }
  0x95   :  { %p2744_p11 = scmp.lt.s32.totalorder %s2742_s26, %s2738_s18 }
  0x97   :  { %p2745_p12 = por %p2744_p11, %p2743_p10 }
  0x99   :  { %p2746_p13 = pnand %p2745_p12, %p2739_p9 }
  0x9b   :  { %2749 = shalt.err (!%p2746_p13)
}
  0x9c   :  { %194 = dma.hbm_to_vmem [thread:$0]  %s3837_s21, 48, %s192_s4, [#allocation23]  }
  0x9d   :  { %s3865_s15 = sld [smem:[#allocation38_spill]] }
  0xa3   :  { %s2750_s7 = scalar_lea.hbm %s3865_s15, 32 }
  0xa4   :  { %p2751_p0 = scmp.ne.s32.totalorder %s3865_s15, %s2750_s7  ;;  %p2754_p1 = scmp.lt.u32.totalorder %s2750_s7, %s3865_s15 }
  0xa6   :  { %p2756_p2 = pnand %p2754_p1, %p2751_p0 }
  0xa8   :  { %2759 = shalt.err (!%p2756_p2)
}
  0xa9   :  { %s2760_s0 = scalar_lea.vmem %s50_s6, 32  ;;  %p2765_p4 = scmp.lt.s32.totalorder %s50_s6, %s50_s6 }
  0xaa   :  { %p2761_p3 = scmp.ne.s32.totalorder %s50_s6, %s2760_s0  ;;  %p2766_p5 = scmp.lt.s32.totalorder %s2760_s0, %s2760_s0 }
  0xac   :  { %p2767_p6 = por %p2766_p5, %p2765_p4 }
  0xae   :  { %p2768_p7 = pnand %p2767_p6, %p2761_p3 }
  0xb0   :  { %2771 = shalt.err (!%p2768_p7)
}
  0xb1   :  { %52 = dma.hbm_to_vmem [thread:$0]  %s3865_s15, 32, %s50_s6, [#allocation3]  }
  0xb2   :  { %s2974_s27 = smov [#allocation6]   ;;  %s2975_s2 = smov [#allocation9]  }
  0xb3   :  { %s69_s30 = sshll.u32 %s2974_s27, 4  ;;  %s93_s25 = sshll.u32 %s2975_s2, 4  ;;  %s70_s30 = int_to_ptr.vmem [resolvable:$true] %s69_s30  ;;  %s94_s25 = int_to_ptr.vmem [resolvable:$true] %s93_s25 }
  0xb4   :  { %s3866_s5 = sld [smem:[#allocation40_spill]] }
  0xba   :  { %s2772_s29 = scalar_lea.hbm %s3866_s5, 32 }
  0xbb   :  { %p2773_p8 = scmp.ne.s32.totalorder %s3866_s5, %s2772_s29  ;;  %p2776_p9 = scmp.lt.u32.totalorder %s2772_s29, %s3866_s5 }
  0xbd   :  { %p2778_p10 = pnand %p2776_p9, %p2773_p8 }
  0xbf   :  { %2781 = shalt.err (!%p2778_p10)
}
  0xc0   :  { %s2782_s6 = scalar_lea.vmem %s70_s30, 32  ;;  %p2787_p12 = scmp.lt.s32.totalorder %s70_s30, %s70_s30 }
  0xc1   :  { %p2783_p11 = scmp.ne.s32.totalorder %s70_s30, %s2782_s6  ;;  %p2788_p13 = scmp.lt.s32.totalorder %s2782_s6, %s2782_s6 }
  0xc3   :  { %p2789_p0 = por %p2788_p13, %p2787_p12 }
  0xc5   :  { %p2790_p1 = pnand %p2789_p0, %p2783_p11 }
  0xc7   :  { %2793 = shalt.err (!%p2790_p1)
}
  0xc8   :  { %72 = dma.hbm_to_vmem [thread:$0]  %s3866_s5, 32, %s70_s30, [#allocation5]  }
  0xc9   :  { %s3867_s0 = sld [smem:[#allocation44_spill]] }
  0xcf   :  { %s2794_s21 = scalar_lea.hbm %s3867_s0, 48 }
  0xd0   :  { %p2795_p2 = scmp.ne.s32.totalorder %s3867_s0, %s2794_s21  ;;  %p2798_p3 = scmp.lt.u32.totalorder %s2794_s21, %s3867_s0 }
  0xd2   :  { %p2800_p4 = pnand %p2798_p3, %p2795_p2 }
  0xd4   :  { %2803 = shalt.err (!%p2800_p4)
}
  0xd5   :  { %s2804_s26 = scalar_lea.vmem %s94_s25, 48  ;;  %s2808_s29 = scalar_lea.vmem %s94_s25, 64 }
  0xd6   :  { %p2805_p5 = scmp.ne.s32.totalorder %s94_s25, %s2804_s26  ;;  %p2809_p6 = scmp.lt.s32.totalorder %s94_s25, %s94_s25 }
  0xd7   :  { %p2810_p7 = scmp.lt.s32.totalorder %s2808_s29, %s2804_s26 }
  0xd9   :  { %p2811_p8 = por %p2810_p7, %p2809_p6 }
  0xdb   :  { %p2812_p9 = pnand %p2811_p8, %p2805_p5 }
  0xdd   :  { %2815 = shalt.err (!%p2812_p9)
}
  0xde   :  { %96 = dma.hbm_to_vmem [thread:$0]  %s3867_s0, 48, %s94_s25, [#allocation8]  }
  0xdf   :  { %s2976_s3 = smov [#allocation12]   ;;  %s2977_s7 = smov [#allocation15]  }
  0xe0   :  { %s113_s8 = sshll.u32 %s2976_s3, 4  ;;  %s137_s1 = sshll.u32 %s2977_s7, 4  ;;  %s114_s8 = int_to_ptr.vmem [resolvable:$true] %s113_s8  ;;  %s138_s1 = int_to_ptr.vmem [resolvable:$true] %s137_s1 }
  0xe1   :  { %s2816_s12 = scalar_lea.hbm %s3826_s10, 48 }
  0xe2   :  { %p2817_p10 = scmp.ne.s32.totalorder %s3826_s10, %s2816_s12  ;;  %p2820_p11 = scmp.lt.u32.totalorder %s2816_s12, %s3826_s10 }
  0xe4   :  { %p2822_p12 = pnand %p2820_p11, %p2817_p10 }
  0xe6   :  { %2825 = shalt.err (!%p2822_p12)
}
  0xe7   :  { %s2826_s25 = scalar_lea.vmem %s114_s8, 48  ;;  %s2830_s0 = scalar_lea.vmem %s114_s8, 64 }
  0xe8   :  { %p2827_p13 = scmp.ne.s32.totalorder %s114_s8, %s2826_s25  ;;  %p2831_p0 = scmp.lt.s32.totalorder %s114_s8, %s114_s8 }
  0xe9   :  { %p2832_p1 = scmp.lt.s32.totalorder %s2830_s0, %s2826_s25 }
  0xeb   :  { %p2833_p2 = por %p2832_p1, %p2831_p0 }
  0xed   :  { %p2834_p3 = pnand %p2833_p2, %p2827_p13 }
  0xef   :  { %2837 = shalt.err (!%p2834_p3)
}
  0xf0   :  { %116 = dma.hbm_to_vmem [thread:$0]  %s3826_s10, 48, %s114_s8, [#allocation11]  }
  0xf1   :  { %s2838_s29 = scalar_lea.hbm %s3830_s14, 48 }
  0xf2   :  { %p2839_p4 = scmp.ne.s32.totalorder %s3830_s14, %s2838_s29  ;;  %p2842_p5 = scmp.lt.u32.totalorder %s2838_s29, %s3830_s14 }
  0xf4   :  { %p2844_p6 = pnand %p2842_p5, %p2839_p4 }
  0xf6   :  { %2847 = shalt.err (!%p2844_p6)
}
  0xf7   :  { %s2848_s6 = scalar_lea.vmem %s138_s1, 48  ;;  %s2852_s15 = scalar_lea.vmem %s138_s1, 64 }
  0xf8   :  { %p2849_p7 = scmp.ne.s32.totalorder %s138_s1, %s2848_s6  ;;  %p2853_p8 = scmp.lt.s32.totalorder %s138_s1, %s138_s1 }
  0xf9   :  { %p2854_p9 = scmp.lt.s32.totalorder %s2852_s15, %s2848_s6 }
  0xfb   :  { %p2855_p10 = por %p2854_p9, %p2853_p8 }
  0xfd   :  { %p2856_p11 = pnand %p2855_p10, %p2849_p7 }
  0xff   :  { %2859 = shalt.err (!%p2856_p11)
}
 0x100   :  { %140 = dma.hbm_to_vmem [thread:$0]  %s3830_s14, 48, %s138_s1, [#allocation14]  }
 0x101   :  { %s2978_s12 = smov [#allocation18]   ;;  %s2979_s9 = smov [#allocation21]  }
 0x102   :  { %s157_s28 = sshll.u32 %s2978_s12, 4  ;;  %s181_s21 = sshll.u32 %s2979_s9, 4  ;;  %s158_s28 = int_to_ptr.vmem [resolvable:$true] %s157_s28  ;;  %s182_s21 = int_to_ptr.vmem [resolvable:$true] %s181_s21 }
 0x103   :  { %s2860_s0 = scalar_lea.hbm %s3832_s16, 48 }
 0x104   :  { %p2861_p12 = scmp.ne.s32.totalorder %s3832_s16, %s2860_s0  ;;  %p2864_p13 = scmp.lt.u32.totalorder %s2860_s0, %s3832_s16 }
 0x106   :  { %p2866_p0 = pnand %p2864_p13, %p2861_p12 }
 0x108   :  { %2869 = shalt.err (!%p2866_p0)
}
 0x109   :  { %s2870_s14 = scalar_lea.vmem %s158_s28, 48  ;;  %s2874_s1 = scalar_lea.vmem %s158_s28, 64 }
 0x10a   :  { %p2871_p1 = scmp.ne.s32.totalorder %s158_s28, %s2870_s14  ;;  %p2875_p2 = scmp.lt.s32.totalorder %s158_s28, %s158_s28 }
 0x10b   :  { %p2876_p3 = scmp.lt.s32.totalorder %s2874_s1, %s2870_s14 }
 0x10d   :  { %p2877_p4 = por %p2876_p3, %p2875_p2 }
 0x10f   :  { %p2878_p5 = pnand %p2877_p4, %p2871_p1 }
 0x111   :  { %2881 = shalt.err (!%p2878_p5)
}
 0x112   :  { %160 = dma.hbm_to_vmem [thread:$0]  %s3832_s16, 48, %s158_s28, [#allocation17]  }
 0x113   :  { %s2882_s7 = scalar_lea.hbm %s3836_s20, 48 }
 0x114   :  { %p2883_p6 = scmp.ne.s32.totalorder %s3836_s20, %s2882_s7  ;;  %p2886_p7 = scmp.lt.u32.totalorder %s2882_s7, %s3836_s20 }
 0x116   :  { %p2888_p8 = pnand %p2886_p7, %p2883_p6 }
 0x118   :  { %2891 = shalt.err (!%p2888_p8)
}
 0x119   :  { %s2892_s12 = scalar_lea.vmem %s182_s21, 48  ;;  %s2896_s9 = scalar_lea.vmem %s182_s21, 64 }
 0x11a   :  { %p2893_p9 = scmp.ne.s32.totalorder %s182_s21, %s2892_s12  ;;  %p2897_p10 = scmp.lt.s32.totalorder %s182_s21, %s182_s21 }
 0x11b   :  { %p2898_p11 = scmp.lt.s32.totalorder %s2896_s9, %s2892_s12 }
 0x11d   :  { %p2899_p12 = por %p2898_p11, %p2897_p10 }
 0x11f   :  { %p2900_p13 = pnand %p2899_p12, %p2893_p9 }
 0x121   :  { %2903 = shalt.err (!%p2900_p13)
}
 0x122   :  { %184 = dma.hbm_to_vmem [thread:$0]  %s3836_s20, 48, %s182_s21, [#allocation20]  }
 0x123   :  { %s2980_s4 = smov [#allocation24]   ;;  %s2981_s0 = smov [#allocation25]  }
 0x124   :  { %s201_s25 = sshll.u32 %s2980_s4, 4  ;;  %s213_s27 = sshll.u32 %s2981_s0, 4  ;;  %s202_s25 = int_to_ptr.vmem [resolvable:$true] %s201_s25  ;;  %s214_s27 = int_to_ptr.vmem [resolvable:$true] %s213_s27 }
 0x125   :  { %s2904_s26 = scalar_lea.hbm %s3838_s22, 48 }
 0x126   :  { %p2905_p0 = scmp.ne.s32.totalorder %s3838_s22, %s2904_s26  ;;  %p2908_p1 = scmp.lt.u32.totalorder %s2904_s26, %s3838_s22 }
 0x128   :  { %p2910_p2 = pnand %p2908_p1, %p2905_p0 }
 0x12a   :  { %2913 = shalt.err (!%p2910_p2)
}
 0x12b   :  { %s2914_s20 = scalar_lea.vmem %s202_s25, 48  ;;  %s2918_s21 = scalar_lea.vmem %s202_s25, 64 }
 0x12c   :  { %p2915_p3 = scmp.ne.s32.totalorder %s202_s25, %s2914_s20  ;;  %p2919_p4 = scmp.lt.s32.totalorder %s202_s25, %s202_s25 }
 0x12d   :  { %p2920_p5 = scmp.lt.s32.totalorder %s2918_s21, %s2914_s20 }
 0x12f   :  { %p2921_p6 = por %p2920_p5, %p2919_p4 }
 0x131   :  { %p2922_p7 = pnand %p2921_p6, %p2915_p3 }
 0x133   :  { %2925 = shalt.err (!%p2922_p7)
}
 0x134   :  { %204 = dma.hbm_to_vmem [thread:$0]  %s3838_s22, 48, %s202_s25, [#allocation23]  }
 0x135   :  { %s2926_s15 = scalar_lea.hbm %s3840_s24, 16 }
 0x136   :  { %p2927_p8 = scmp.ne.s32.totalorder %s3840_s24, %s2926_s15  ;;  %p2930_p9 = scmp.lt.u32.totalorder %s2926_s15, %s3840_s24 }
 0x138   :  { %p2932_p10 = pnand %p2930_p9, %p2927_p8 }
 0x13a   :  { %2935 = shalt.err (!%p2932_p10)
}
 0x13b   :  { %s2936_s16 = scalar_lea.vmem %s214_s27, 16  ;;  %s2940_s28 = scalar_lea.vmem %s214_s27, 32 }
 0x13c   :  { %p2937_p11 = scmp.ne.s32.totalorder %s214_s27, %s2936_s16  ;;  %p2941_p12 = scmp.lt.s32.totalorder %s214_s27, %s214_s27 }
 0x13d   :  { %p2942_p13 = scmp.lt.s32.totalorder %s2940_s28, %s2936_s16 }
 0x13f   :  { %p2943_p0 = por %p2942_p13, %p2941_p12 }
 0x141   :  { %p2944_p1 = pnand %p2943_p0, %p2937_p11 }
 0x143   :  { %2947 = shalt.err (!%p2944_p1)
}
 0x144   :  { %216 = dma.hbm_to_vmem [thread:$0]  %s3840_s24, 16, %s214_s27, [#allocation26]  }
 0x145   :  { %2948 = dma.done.wait [#allocation3], 32  }
 0x146   :  { %2949 = vsyncadd [#allocation3], 4294967264 }
 0x147   :  { %2950 = dma.done.wait [#allocation5], 64  }
 0x148   :  { %2951 = vsyncadd [#allocation5], 4294967232 }
 0x149   :  { %2952 = dma.done.wait [#allocation8], 64  }
 0x14a   :  { %2953 = vsyncadd [#allocation8], 4294967232 }
 0x14b   :  { %2954 = dma.done.wait [#allocation11], 96  }
 0x14c   :  { %2955 = vsyncadd [#allocation11], 4294967200 }
 0x14d   :  { %2956 = dma.done.wait [#allocation14], 64  }
 0x14e   :  { %2957 = vsyncadd [#allocation14], 4294967232 }
 0x14f   :  { %2958 = dma.done.wait [#allocation17], 96  }
 0x150   :  { %2959 = vsyncadd [#allocation17], 4294967200 }
 0x151   :  { %2960 = dma.done.wait [#allocation20], 64  }
 0x152   :  { %2961 = vsyncadd [#allocation20], 4294967232 }
 0x153   :  { %2962 = dma.done.wait [#allocation23], 96  }
 0x154   :  { %2963 = vsyncadd [#allocation23], 4294967200 }
 0x155   :  { %2964 = dma.done.wait [#allocation26], 16  }
 0x156   :  { %2965 = vsyncadd [#allocation26], 4294967280  ;;  %v2982_v0 = vmov 0   ;;  %s3868_s0 = sld [smem:[#allocation37_spill]]  ;;  %s3869_s20 = sld [smem:[#allocation36_spill]]  ;;  %vm304_vm0 = vcmask 261120   ;;  %v274_v25 = vlaneseq }
 0x157   :  { %340 = vmatprep.mubr.bf16.mxu0 %v2982_v0  ;;  %494 = vmatprep.subr.bf16.mxu1 %v2982_v0  ;;  %s3870_s3 = sld [smem:[#allocation41_spill]]  ;;  %s3871_s5 = sld [smem:[#allocation43_spill]]  ;;  %v271_v28 = vld [vmem:[#allocation2] sm:$0x3]  ;;  %v353_v33 = vld [vmem:[#allocation4] sm:$0x3] }
 0x158   :  { %v3390_v26 = vshrl.u32 %v274_v25, 7  ;;  %v354_v38 = vld [vmem:[#allocation6] sm:$0x3]  ;;  %vm490_vm1 = vcmask 523264   ;;  %v2983_v60 = vmov 0.0   ;;  %vm2984_vm2 = vmmov 0  }
 0x159   :  { %v2104_v61 = vld [vmem:[#allocation7] ss:$0 sm:$0xff]  ;;  %v2508_v25 = vld [vmem:[%s3827_s11 + $0x30] sm:$0xff]  }
 0x15a   :  { %v3393_v27 = vsub.s32 0, %v3390_v26  ;;  %v3396_v29 = vsub.s32 1, %v3390_v26 }
 0x15c   :  { %v2458_v1 = vld [vmem:[%s3868_s0 + $0x4] ss:$8 sps:$4 sm:$0xff]   ;;  %v2460_v2 = vld [vmem:[%s3868_s0] ss:$8 sps:$4 sm:$0xff]   ;;  %v2461_v3 = vld [vmem:[%s3868_s0 + $0x14] ss:$8 sps:$4 sm:$0xff]   ;;  %v277_v30 = vrot.slane %v271_v28, %v3393_v27  ;;  %v281_v31 = vrot.slane %v271_v28, %v3396_v29  ;;  %v359_v40 = vrot.slane %v353_v33, %v3393_v27  ;;  %v363_v43 = vrot.slane %v353_v33, %v3396_v29 }
 0x15d   :  { %308 = vmatprep.subr.bf16.mxu0 %v2458_v1  ;;  %v2463_v4 = vld [vmem:[%s3868_s0 + $0x10] ss:$8 sps:$4 sm:$0xff]   ;;  %v266_v5 = vld [vmem:[%s3869_s20] sm:$0xff]  ;;  %v2465_v7 = vld [vmem:[%s3870_s3 + $0x8] sm:$0xff]   ;;  %v372_v45 = vrot.slane %v354_v38, %v3393_v27  ;;  %v376_v47 = vrot.slane %v354_v38, %v3396_v29 }
 0x15e   :  { %309 = vmatpush1.bf16.msra.mxu0 %v2460_v2  ;;  %v2464_v6 = vld [vmem:[%s3870_s3] sm:$0xff]   ;;  %v272_v8 = vpack.c.bf16 %v266_v5, %v266_v5  ;;  %v2466_v9 = vld [vmem:[%s3870_s3 + $0x10] sm:$0xff]   ;;  %v2467_v10 = vld [vmem:[%s3870_s3 + $0x18] sm:$0xff]  }
 0x15f   :  { %310 = vmatprep.subr.bf16.mxu0 %v2461_v3  ;;  %495 = vmatpush1.bf16.msra.mxu1 %v2464_v6  ;;  %v2468_v11 = vld [vmem:[%s3870_s3 + $0x20] sm:$0xff]   ;;  %v2469_v12 = vld [vmem:[%s3870_s3 + $0x28] sm:$0xff]   ;;  %v2470_v13 = vld [vmem:[%s3870_s3 + $0x30] sm:$0xff]  }
 0x160   :  { %496 = vmatprep.subr.bf16.mxu1 %v2982_v0  ;;  %v2471_v14 = vld [vmem:[%s3870_s3 + $0x38] sm:$0xff]   ;;  %v2472_v15 = vld [vmem:[%s3870_s3 + $0x40] sm:$0xff]   ;;  %v2473_v16 = vld [vmem:[%s3870_s3 + $0x48] sm:$0xff]  }
 0x161   :  { %v2474_v17 = vld [vmem:[%s3870_s3 + $0x50] sm:$0xff]   ;;  %v2475_v18 = vld [vmem:[%s3870_s3 + $0x58] sm:$0xff]   ;;  %v2476_v19 = vld [vmem:[%s3871_s5] ss:$12 sps:$4 sm:$0xff]  }
 0x162   :  { %311 = vmatpush1.bf16.msra.mxu0 %v2463_v4  ;;  %v2478_v20 = vld [vmem:[%s3871_s5 + $0x4] ss:$12 sps:$4 sm:$0xff]   ;;  %v2481_v21 = vld [vmem:[%s3871_s5 + $0x1c] ss:$12 sps:$4 sm:$0xff]   ;;  %v2484_v23 = vld [vmem:[%s3871_s5 + $0x34] ss:$12 sps:$4 sm:$0xff]  }
 0x163   :  { %497 = vmatpush1.bf16.msra.mxu1 %v2465_v7  ;;  %635 = vmatprep.subr.bf16.mxu0 %v2478_v20  ;;  %v2479_v22 = vld [vmem:[%s3871_s5 + $0x18] ss:$12 sps:$4 sm:$0xff]   ;;  %v2482_v24 = vld [vmem:[%s3871_s5 + $0x30] ss:$12 sps:$4 sm:$0xff]   ;;  %v2485_v59 = vld [vmem:[%s3871_s5 + $0x48] ss:$12 sps:$4 sm:$0xff]  }
 0x164   :  { %498 = vmatprep.subr.bf16.mxu1 %v2982_v0  ;;  %v2487_v58 = vld [vmem:[%s3871_s5 + $0x4c] ss:$12 sps:$4 sm:$0xff]   ;;  %v2488_v3 = vld [vmem:[%s3871_s5 + $0x8] ss:$12 sps:$4 sm:$0xff]  }
 0x165   :  { %2103 = vmatmul.mubr.msk.bf16.vlgmr.msra.gmra.mrb[0].mxu0 %vm304_vm0, %v272_v8  ;;  %v2489_v6 = vld [vmem:[%s3871_s5 + $0x20] ss:$12 sps:$4 sm:$0xff]   ;;  %v2490_v7 = vld [vmem:[%s3871_s5 + $0x38] ss:$12 sps:$4 sm:$0xff]   ;;  %v2491_v8 = vld [vmem:[%s3871_s5 + $0x50] ss:$12 sps:$4 sm:$0xff]  }
 0x166   :  { %667 = vmatprep.mubr.bf16.mxu0 %v2982_v0  ;;  %636 = vmatpush1.bf16.msra.mxu0 %v2476_v19  ;;  %v2502_v19 = vld [vmem:[%s3827_s11 + $0x20] sm:$0xff]   ;;  %v2503_v20 = vld [vmem:[%s3827_s11 + $0x88] sm:$0xff]   ;;  %v2509_v28 = vld [vmem:[%s3827_s11 + $0x98] sm:$0xff]  }
 0x167   :  { %499 = vmatpush1.bf16.msra.mxu1 %v2466_v9  ;;  %637 = vmatprep.subr.bf16.mxu0 %v2481_v21  ;;  %v2492_v9 = vld [vmem:[%s3827_s11 + $0x40] sm:$0xff]   ;;  %v2504_v21 = vld [vmem:[%s3827_s11 + $0x68] sm:$0xff]  }
 0x168   :  { %500 = vmatprep.subr.bf16.mxu1 %v2982_v0  ;;  %v2513_v33 = vld [vmem:[%s3827_s11 + $0xa8] sm:$0xff]  }
 0x16a   :  { %638 = vmatpush1.bf16.msra.mxu0 %v2479_v22  ;;  %v2505_v22 = vld [vmem:[%s3827_s11 + $0x28] sm:$0xff]  }
 0x16b   :  { %501 = vmatpush1.bf16.msra.mxu1 %v2467_v10  ;;  %639 = vmatprep.subr.bf16.mxu0 %v2484_v23  ;;  %v2493_v10 = vld [vmem:[%s3827_s11] sm:$0xff]   ;;  %v2506_v23 = vld [vmem:[%s3827_s11 + $0x90] sm:$0xff]  }
 0x16c   :  { %502 = vmatprep.subr.bf16.mxu1 %v2982_v0 }
 0x16e   :  { %640 = vmatpush1.bf16.msra.mxu0 %v2482_v24  ;;  %v2507_v24 = vld [vmem:[%s3827_s11 + $0x70] sm:$0xff]  }
 0x16f   :  { %503 = vmatpush1.bf16.msra.mxu1 %v2468_v11  ;;  %641 = vmatprep.subr.bf16.mxu0 %v2487_v58  ;;  %v2494_v11 = vld [vmem:[%s3827_s11 + $0x48] sm:$0xff]   ;;  %v3525_v58 = vsub.s32 2, %v3390_v26 }
 0x170   :  { %504 = vmatprep.subr.bf16.mxu1 %v2982_v0 }
 0x172   :  { %642 = vmatpush1.bf16.msra.mxu0 %v2485_v59 }
 0x173   :  { %505 = vmatpush1.bf16.msra.mxu1 %v2469_v12  ;;  %2343 = vmatprep.subr.bf16.mxu0 %v2983_v60  ;;  %v2495_v12 = vld [vmem:[%s3827_s11 + $0x8] sm:$0xff]  }
 0x174   :  { %506 = vmatprep.subr.bf16.mxu1 %v2982_v0 }
 0x177   :  { %507 = vmatpush1.bf16.msra.mxu1 %v2470_v13  ;;  %v2496_v13 = vld [vmem:[%s3827_s11 + $0x50] sm:$0xff]  }
 0x178   :  { %508 = vmatprep.subr.bf16.mxu1 %v2982_v0 }
 0x17b   :  { %509 = vmatpush1.bf16.msra.mxu1 %v2471_v14  ;;  %v2497_v14 = vld [vmem:[%s3827_s11 + $0x10] sm:$0xff]  }
 0x17c   :  { %510 = vmatprep.subr.bf16.mxu1 %v2982_v0 }
 0x17f   :  { %511 = vmatpush1.bf16.msra.mxu1 %v2472_v15  ;;  %v2498_v15 = vld [vmem:[%s3827_s11 + $0x58] sm:$0xff]  }
 0x180   :  { %512 = vmatprep.subr.bf16.mxu1 %v2982_v0 }
 0x183   :  { %513 = vmatpush1.bf16.msra.mxu1 %v2473_v16  ;;  %v2499_v16 = vld [vmem:[%s3827_s11 + $0x18] sm:$0xff]  }
 0x184   :  { %514 = vmatprep.subr.bf16.mxu1 %v2982_v0 }
 0x187   :  { %515 = vmatpush1.bf16.msra.mxu1 %v2474_v17  ;;  %v2500_v17 = vld [vmem:[%s3827_s11 + $0x80] sm:$0xff]  }
 0x188   :  { %516 = vmatprep.subr.bf16.mxu1 %v2982_v0 }
 0x18b   :  { %517 = vmatpush1.bf16.msra.mxu1 %v2475_v18  ;;  %v2501_v18 = vld [vmem:[%s3827_s11 + $0x60] sm:$0xff]  }
 0x18c   :  { %2355 = vmatprep.subr.bf16.mxu1 %v2983_v60 }
 0x238   :  { %v342_v32 = vpop.f32.mrb[0].mxu0 }
 0x239   :  { %v343_v34 = vadd.f32 %v342_v32, %v277_v30  ;;  %v344_v35 = vpop.f32.mrb[1].mxu0  ;;  %v2510_v30 = vld [vmem:[%s3827_s11 + $0x78] sm:$0xff]   ;;  %v2512_v32 = vld [vmem:[%s3827_s11 + $0xa0] sm:$0xff]  }
 0x23a   :  { %v345_v36 = vadd.f32 %v344_v35, %v281_v31  ;;  %v346_v37 = vpop.f32.mrb[2].mxu0  ;;  %v2511_v31 = vld [vmem:[%s3827_s11 + $0x38] sm:$0xff]  }
 0x23b   :  { %v349_v39 = vmax.f32 %v343_v34, 0.0  ;;  %v347_v41 = vpop.f32.mrb[3].mxu0  ;;  %v2514_v34 = vld [vmem:[%s3827_s11 + $0xb0] sm:$0xff]   ;;  %v2515_v35 = vld [vmem:[%s3827_s11 + $0xb8] sm:$0xff]   ;;  %s3872_s11 = sld [smem:[#allocation46_spill]] }
 0x23c   :  { %v350_v42 = vmax.f32 %v345_v36, 0.0  ;;  %v550_v36 = vld [vmem:[#allocation9] sm:$0x7] }
 0x23d   :  { %v351_v44 = vmin.f32 %v349_v39, 6.0  ;;  %v556_v37 = vrot.slane %v550_v36, %v3393_v27  ;;  %v560_v38 = vrot.slane %v550_v36, %v3396_v29 }
 0x23e   :  { %v352_v46 = vmin.f32 %v350_v42, 6.0 }
 0x23f   :  { %v366_v48 = vmul.f32 %v359_v40, %v351_v44  ;;  %v722_v40 = vld [vmem:[#allocation10] sm:$0x7] }
 0x240   :  { %v367_v49 = vmul.f32 %v363_v43, %v352_v46  ;;  %v723_v43 = vld [vmem:[#allocation12] sm:$0x7] }
 0x241   :  { %v379_v50 = vadd.f32 %v372_v45, %v366_v48 }
 0x242   :  { %v380_v51 = vadd.f32 %v376_v47, %v367_v49  ;;  %v728_v47 = vrot.slane %v722_v40, %v3393_v27 }
 0x243   :  { %v381_v52 = vmax.f32 %v379_v50, 0.0  ;;  %v732_v50 = vrot.slane %v722_v40, %v3396_v29 }
 0x244   :  { %v382_v53 = vmax.f32 %v380_v51, 0.0 }
 0x245   :  { %v383_v54 = vmin.f32 %v381_v52, 6.0  ;;  %v747_v52 = vrot.slane %v723_v43, %v3393_v27 }
 0x246   :  { %v384_v55 = vmin.f32 %v382_v53, 6.0 }
 0x247   :  { %v410_v57 = vpack.c.bf16 %v383_v54, %v383_v54  ;;  %v751_v54 = vrot.slane %v723_v43, %v3396_v29 }
 0x248   :  { %v411_v56 = vpack.c.bf16 %v384_v55, %v384_v55 }
 0x24a   :  { %2117 = vmatprep.mubr.msk.bf16.mxu1 %vm490_vm1, %v411_v56 }
 0x24b   :  { %527 = vmatmul.mubr.bf16.vlgmr.msra.gmra.mrb[0].mxu1 %v410_v57 }
 0x24c   :  { %2371 = vmatprep.mubr.msk.bf16.mxu1 %vm2984_vm2, %v2983_v60  ;;  %2356 = vmatpush3.bf16.msra.mxu1 %v2500_v17 }
 0x24d   :  { %2357 = vmatprep.subr.bf16.mxu1 %v2983_v60 }
 0x250   :  { %2358 = vmatpush3.bf16.msra.mxu1 %v2503_v20  ;;  %v2518_v20 = vld [vmem:[%s3829_s13 + $0x4] ss:$12 sps:$4 sm:$0xff]  }
 0x251   :  { %2359 = vmatprep.subr.bf16.mxu1 %v2983_v60 }
 0x254   :  { %2360 = vmatpush3.bf16.msra.mxu1 %v2506_v23  ;;  %v2523_v23 = vld [vmem:[%s3829_s13 + $0x20] ss:$12 sps:$4 sm:$0xff]  }
 0x255   :  { %2361 = vmatprep.subr.bf16.mxu1 %v2983_v60 }
 0x258   :  { %2362 = vmatpush3.bf16.msra.mxu1 %v2509_v28  ;;  %v2524_v28 = vld [vmem:[%s3829_s13 + $0x30] ss:$12 sps:$4 sm:$0xff]  }
 0x259   :  { %2363 = vmatprep.subr.bf16.mxu1 %v2983_v60 }
 0x25c   :  { %2364 = vmatpush3.bf16.msra.mxu1 %v2512_v32  ;;  %v2528_v32 = vld [vmem:[%s3829_s13 + $0x48] ss:$12 sps:$4 sm:$0xff]  }
 0x25d   :  { %2365 = vmatprep.subr.bf16.mxu1 %v2983_v60 }
 0x260   :  { %2366 = vmatpush3.bf16.msra.mxu1 %v2513_v33  ;;  %v2531_v33 = vld [vmem:[%s3829_s13 + $0x50] ss:$12 sps:$4 sm:$0xff]  }
 0x261   :  { %2367 = vmatprep.subr.bf16.mxu1 %v2983_v60 }
 0x264   :  { %2368 = vmatpush3.bf16.msra.mxu1 %v2514_v34  ;;  %v2533_v34 = vld [vmem:[%s3833_s17 + $0x40] sm:$0xff]  }
 0x265   :  { %2369 = vmatprep.subr.bf16.mxu1 %v2983_v60 }
 0x268   :  { %2370 = vmatpush3.bf16.msra.mxu1 %v2515_v35 }
 0x269   :  { %2375 = vmatprep.subr.bf16.mxu1 %v2983_v60 }
 0x31e   :  { %v528_v62 = vpop.f32.mrb[0].mxu1 }
 0x31f   :  { %v3415_v63 = vadd.f32 %v2104_v61, %v528_v62  ;;  %v530_v1 = vpop.f32.mrb[1].mxu1 }
 0x320   :  { %v531_v2 = vpop.f32.mrb[2].mxu1 }
 0x321   :  { %v551_v4 = vpack.c.bf16 %v3415_v63, %v3415_v63  ;;  %v532_v5 = vpop.f32.mrb[3].mxu1  ;;  %v564_v2 = vrot.slane %v550_v36, %v3525_v58 }
 0x323   :  { %2130 = vmatmul.mubr.msk.bf16.vlgmr.msra.gmra.mrb[4].mxu0 %vm490_vm1, %v551_v4 }
 0x324   :  { %2344 = vmatpush3.bf16.msra.mxu0 %v2488_v3  ;;  %2351 = vmatprep.mubr.msk.bf16.mxu0 %vm2984_vm2, %v2983_v60 }
 0x325   :  { %2345 = vmatprep.subr.bf16.mxu0 %v2983_v60 }
 0x328   :  { %2346 = vmatpush3.bf16.msra.mxu0 %v2489_v6 }
 0x329   :  { %2347 = vmatprep.subr.bf16.mxu0 %v2983_v60 }
 0x32c   :  { %2348 = vmatpush3.bf16.msra.mxu0 %v2490_v7 }
 0x32d   :  { %2349 = vmatprep.subr.bf16.mxu0 %v2983_v60 }
 0x330   :  { %2350 = vmatpush3.bf16.msra.mxu0 %v2491_v8 }
 0x331   :  { %2240 = vmatprep.subr.bf16.mxu0 %v2492_v9 }
 0x333   :  { %2352 = vmatmul.mubr.msk.bf16.vlgmr.msra.gmra.mrb[8].mxu0 %vm490_vm1, %v551_v4 }
 0x334   :  { %2241 = vmatpush3.bf16.msra.mxu0 %v2493_v10 }
 0x335   :  { %2242 = vmatprep.subr.bf16.mxu0 %v2494_v11  ;;  %v736_v11 = vrot.slane %v722_v40, %v3525_v58  ;;  %v2132_v40 = vld [vmem:[#allocation13] ss:$0 sm:$0xff] }
 0x338   :  { %2243 = vmatpush3.bf16.msra.mxu0 %v2495_v12 }
 0x339   :  { %2244 = vmatprep.subr.bf16.mxu0 %v2496_v13  ;;  %v755_v13 = vrot.slane %v723_v43, %v3525_v58 }
 0x33c   :  { %2245 = vmatpush3.bf16.msra.mxu0 %v2497_v14 }
 0x33d   :  { %2246 = vmatprep.subr.bf16.mxu0 %v2498_v15 }
 0x340   :  { %2247 = vmatpush3.bf16.msra.mxu0 %v2499_v16 }
 0x341   :  { %2248 = vmatprep.subr.bf16.mxu0 %v2501_v18 }
 0x344   :  { %2249 = vmatpush3.bf16.msra.mxu0 %v2502_v19  ;;  %v2516_v19 = vld [vmem:[%s3829_s13] ss:$12 sps:$4 sm:$0xff]  }
 0x345   :  { %2250 = vmatprep.subr.bf16.mxu0 %v2504_v21  ;;  %v2519_v21 = vld [vmem:[%s3829_s13 + $0x8] ss:$12 sps:$4 sm:$0xff]  }
 0x348   :  { %2251 = vmatpush3.bf16.msra.mxu0 %v2505_v22  ;;  %v2522_v22 = vld [vmem:[%s3829_s13 + $0x1c] ss:$12 sps:$4 sm:$0xff]  }
 0x349   :  { %2252 = vmatprep.subr.bf16.mxu0 %v2507_v24  ;;  %v2520_v24 = vld [vmem:[%s3829_s13 + $0x18] ss:$12 sps:$4 sm:$0xff]  }
 0x34c   :  { %2253 = vmatpush3.bf16.msra.mxu0 %v2508_v25  ;;  %v2526_v25 = vld [vmem:[%s3829_s13 + $0x34] ss:$12 sps:$4 sm:$0xff]  }
 0x34d   :  { %2254 = vmatprep.subr.bf16.mxu0 %v2510_v30  ;;  %v2527_v30 = vld [vmem:[%s3829_s13 + $0x38] ss:$12 sps:$4 sm:$0xff]  }
 0x350   :  { %2255 = vmatpush3.bf16.msra.mxu0 %v2511_v31  ;;  %v2530_v31 = vld [vmem:[%s3829_s13 + $0x4c] ss:$12 sps:$4 sm:$0xff]  }
 0x351   :  { %1152 = vmatprep.subr.bf16.mxu0 %v2518_v20 }
 0x3f6   :  { %v669_v39 = vpop.f32.mrb[4].mxu0 }
 0x3f7   :  { %v670_v41 = vadd.f32 %v669_v39, %v556_v37  ;;  %v671_v42 = vpop.f32.mrb[5].mxu0 }
 0x3f8   :  { %v672_v44 = vadd.f32 %v671_v42, %v560_v38  ;;  %v673_v45 = vpop.f32.mrb[6].mxu0 }
 0x3f9   :  { %v716_v46 = vmax.f32 %v670_v41, 0.0  ;;  %v674_v48 = vpop.f32.mrb[7].mxu0 }
 0x3fa   :  { %v717_v49 = vmax.f32 %v672_v44, 0.0  ;;  %v2532_v48 = vld [vmem:[%s3833_s17 + $0x80] sm:$0xff]  }
 0x3fb   :  { %v719_v51 = vmin.f32 %v716_v46, 6.0 }
 0x3fc   :  { %v720_v53 = vmin.f32 %v717_v49, 6.0  ;;  %v2534_v49 = vld [vmem:[%s3833_s17] sm:$0xff]  }
 0x3fd   :  { %v740_v55 = vmul.f32 %v728_v47, %v719_v51  ;;  %v2536_v51 = vld [vmem:[%s3833_s17 + $0x48] sm:$0xff]  }
 0x3fe   :  { %v741_v56 = vmul.f32 %v732_v50, %v720_v53  ;;  %v2539_v53 = vld [vmem:[%s3833_s17 + $0x50] sm:$0xff]  }
 0x3ff   :  { %v759_v57 = vadd.f32 %v747_v52, %v740_v55  ;;  %v2537_v52 = vld [vmem:[%s3833_s17 + $0x8] sm:$0xff]   ;;  %v2540_v55 = vld [vmem:[%s3833_s17 + $0x10] sm:$0xff]  }
 0x400   :  { %v760_v59 = vadd.f32 %v751_v54, %v741_v56  ;;  %v2538_v54 = vld [vmem:[%s3833_s17 + $0x90] sm:$0xff]   ;;  %v2542_v56 = vld [vmem:[%s3833_s17 + $0x58] sm:$0xff]  }
 0x401   :  { %v762_v61 = vmax.f32 %v759_v57, 0.0  ;;  %v2541_v57 = vld [vmem:[%s3833_s17 + $0x98] sm:$0xff]  }
 0x402   :  { %v763_v62 = vmax.f32 %v760_v59, 0.0  ;;  %v2543_v59 = vld [vmem:[%s3833_s17 + $0x18] sm:$0xff]  }
 0x403   :  { %v765_v1 = vmin.f32 %v762_v61, 6.0  ;;  %v2544_v61 = vld [vmem:[%s3833_s17 + $0xa0] sm:$0xff]  }
 0x404   :  { %v766_v3 = vmin.f32 %v763_v62, 6.0  ;;  %v2545_v62 = vld [vmem:[%s3833_s17 + $0x60] sm:$0xff]  }
 0x405   :  { %v817_v6 = vpack.c.bf16 %v765_v1, %v765_v1  ;;  %v2546_v1 = vld [vmem:[%s3833_s17 + $0x20] sm:$0xff]  }
 0x406   :  { %v710_v4 = vpop.f32.mrb[8].mxu0  ;;  %v818_v5 = vpack.c.bf16 %v766_v3, %v766_v3  ;;  %v2548_v3 = vld [vmem:[%s3833_s17 + $0x68] sm:$0xff]  }
 0x407   :  { %v711_v7 = vadd.f32 %v710_v4, %v564_v2  ;;  %v2353_v8 = vpop.f32.mrb[9].mxu0  ;;  %v2547_v2 = vld [vmem:[%s3833_s17 + $0xa8] sm:$0xff]  }
 0x408   :  { %v713_v9 = vpop.f32.mrb[10].mxu0  ;;  %1002 = vmatprep.mubr.bf16.mxu0 %v818_v5  ;;  %v2549_v4 = vld [vmem:[%s3833_s17 + $0x28] sm:$0xff]   ;;  %v2550_v5 = vld [vmem:[%s3833_s17 + $0xb0] sm:$0xff]   ;;  %v2553_v8 = vld [vmem:[%s3833_s17 + $0xb8] sm:$0xff]  }
 0x409   :  { %v718_v10 = vmax.f32 %v711_v7, 0.0  ;;  %v2354_v12 = vpop.f32.mrb[11].mxu0  ;;  %1003 = vmatmul.mubr.bf16.vlgmr.msra.gmra.mrb[12].mxu0 %v817_v6  ;;  %v2551_v6 = vld [vmem:[%s3833_s17 + $0x70] sm:$0xff]   ;;  %v2554_v9 = vld [vmem:[%s3833_s17 + $0x78] sm:$0xff]  }
 0x40a   :  { %1184 = vmatprep.mubr.bf16.mxu0 %v2982_v0  ;;  %1153 = vmatpush1.bf16.msra.mxu0 %v2516_v19  ;;  %v2552_v7 = vld [vmem:[%s3833_s17 + $0x30] sm:$0xff]  }
 0x40b   :  { %v721_v26 = vmin.f32 %v718_v10, 6.0  ;;  %1154 = vmatprep.subr.bf16.mxu0 %v2522_v22  ;;  %v2555_v10 = vld [vmem:[%s3833_s17 + $0x38] sm:$0xff]  }
 0x40c   :  { %v1067_v12 = vld [vmem:[#allocation15] sm:$0x7]  ;;  %v1240_v22 = vld [vmem:[#allocation18] sm:$0x7] }
 0x40d   :  { %v742_v14 = vmul.f32 %v736_v11, %v721_v26  ;;  %v2558_v11 = vld [vmem:[%s3835_s19 + $0x4] ss:$12 sps:$4 sm:$0xff]   ;;  %v1073_v26 = vrot.slane %v1067_v12, %v3393_v27 }
 0x40e   :  { %1155 = vmatpush1.bf16.msra.mxu0 %v2520_v24 }
 0x40f   :  { %v761_v15 = vadd.f32 %v755_v13, %v742_v14  ;;  %1156 = vmatprep.subr.bf16.mxu0 %v2526_v25  ;;  %v1081_v13 = vrot.slane %v1067_v12, %v3525_v58  ;;  %v1077_v14 = vrot.slane %v1067_v12, %v3396_v29 }
 0x411   :  { %v764_v16 = vmax.f32 %v761_v15, 0.0 }
 0x412   :  { %1157 = vmatpush1.bf16.msra.mxu0 %v2524_v28 }
 0x413   :  { %v767_v17 = vmin.f32 %v764_v16, 6.0  ;;  %1158 = vmatprep.subr.bf16.mxu0 %v2530_v31  ;;  %v1239_v16 = vld [vmem:[#allocation16] sm:$0x7] }
 0x415   :  { %v819_v18 = vpack.c.bf16 %v767_v17, %v767_v17 }
 0x416   :  { %1159 = vmatpush1.bf16.msra.mxu0 %v2528_v32  ;;  %v1253_v32 = vrot.slane %v1239_v16, %v3525_v58 }
 0x417   :  { %2372 = vmatmul.mubr.bf16.vlgmr.msra.gmra.mrb[4].mxu1 %v819_v18  ;;  %2276 = vmatprep.subr.bf16.mxu0 %v2533_v34 }
 0x418   :  { %2383 = vmatprep.mubr.msk.bf16.mxu1 %vm2984_vm2, %v2983_v60  ;;  %2376 = vmatpush3.bf16.msra.mxu1 %v2519_v21 }
 0x419   :  { %2377 = vmatprep.subr.bf16.mxu1 %v2983_v60 }
 0x41c   :  { %2378 = vmatpush3.bf16.msra.mxu1 %v2523_v23 }
 0x41d   :  { %2379 = vmatprep.subr.bf16.mxu1 %v2983_v60 }
 0x420   :  { %2380 = vmatpush3.bf16.msra.mxu1 %v2527_v30  ;;  %v1245_v30 = vrot.slane %v1239_v16, %v3393_v27 }
 0x421   :  { %2381 = vmatprep.subr.bf16.mxu1 %v2983_v60 }
 0x424   :  { %2382 = vmatpush3.bf16.msra.mxu1 %v2531_v33 }
 0x425   :  { %2387 = vmatprep.subr.bf16.mxu1 %v2983_v60 }
 0x4dc   :  { %v2256_v35 = vpop.f32.mrb[12].mxu0 }
 0x4dd   :  { %v2257_v36 = vpop.f32.mrb[13].mxu0 }
 0x4de   :  { %v2258_v37 = vadd.f32 %v2257_v36, %v2256_v35  ;;  %v2259_v38 = vpop.f32.mrb[14].mxu0  ;;  %v1249_v36 = vrot.slane %v1239_v16, %v3396_v29 }
 0x4df   :  { %v2260_v39 = vpop.f32.mrb[15].mxu0  ;;  %v1264_v38 = vrot.slane %v1240_v22, %v3393_v27 }
 0x4e0   :  { %v1005_v41 = vadd.f32 %v2258_v37, %v2132_v40  ;;  %v1272_v40 = vrot.slane %v1240_v22, %v3525_v58 }
 0x4ea   :  { %v1044_v42 = vpop.f32.mrb[4].mxu1 }
 0x4eb   :  { %v1045_v43 = vadd.f32 %v1044_v42, %v1005_v41  ;;  %v2373_v44 = vpop.f32.mrb[5].mxu1  ;;  %v1268_v42 = vrot.slane %v1240_v22, %v3396_v29  ;;  %v2574_v22 = vld [vmem:[%s3839_s23] sm:$0xff]  }
 0x4ec   :  { %v1047_v45 = vpop.f32.mrb[6].mxu1 }
 0x4ed   :  { %v3577_v46 = vadd.f32 %v1045_v43, %v3415_v63  ;;  %v2374_v47 = vpop.f32.mrb[7].mxu1  ;;  %v2535_v63 = vld [vmem:[%s3833_s17 + $0x88] sm:$0xff]  }
 0x4ef   :  { %v1068_v50 = vpack.c.bf16 %v3577_v46, %v3577_v46 }
 0x4f1   :  { %2169 = vmatmul.mubr.msk.bf16.vlgmr.msra.gmra.mrb[16].mxu0 %vm490_vm1, %v1068_v50  ;;  %2384 = vmatmul.mubr.msk.bf16.vlgmr.msra.gmra.mrb[8].mxu1 %vm490_vm1, %v1068_v50 }
 0x4f2   :  { %2388 = vmatpush3.bf16.msra.mxu1 %v2532_v48  ;;  %2277 = vmatpush3.bf16.msra.mxu0 %v2534_v49 }
 0x4f3   :  { %2389 = vmatprep.subr.bf16.mxu1 %v2983_v60  ;;  %2278 = vmatprep.subr.bf16.mxu0 %v2536_v51 }
 0x4f4   :  { %2403 = vmatprep.mubr.msk.bf16.mxu1 %vm2984_vm2, %v2983_v60 }
 0x4f6   :  { %2390 = vmatpush3.bf16.msra.mxu1 %v2535_v63  ;;  %2279 = vmatpush3.bf16.msra.mxu0 %v2537_v52 }
 0x4f7   :  { %2391 = vmatprep.subr.bf16.mxu1 %v2983_v60  ;;  %2280 = vmatprep.subr.bf16.mxu0 %v2539_v53 }
 0x4fa   :  { %2392 = vmatpush3.bf16.msra.mxu1 %v2538_v54  ;;  %2281 = vmatpush3.bf16.msra.mxu0 %v2540_v55  ;;  %v2559_v55 = vld [vmem:[%s3835_s19 + $0x8] ss:$12 sps:$4 sm:$0xff]  }
 0x4fb   :  { %2393 = vmatprep.subr.bf16.mxu1 %v2983_v60  ;;  %2282 = vmatprep.subr.bf16.mxu0 %v2542_v56 }
 0x4fe   :  { %2394 = vmatpush3.bf16.msra.mxu1 %v2541_v57  ;;  %2283 = vmatpush3.bf16.msra.mxu0 %v2543_v59  ;;  %v2556_v59 = vld [vmem:[%s3835_s19] ss:$12 sps:$4 sm:$0xff]  }
 0x4ff   :  { %2395 = vmatprep.subr.bf16.mxu1 %v2983_v60  ;;  %2284 = vmatprep.subr.bf16.mxu0 %v2545_v62  ;;  %v2562_v62 = vld [vmem:[%s3835_s19 + $0x1c] ss:$12 sps:$4 sm:$0xff]  }
 0x502   :  { %2396 = vmatpush3.bf16.msra.mxu1 %v2544_v61  ;;  %2285 = vmatpush3.bf16.msra.mxu0 %v2546_v1  ;;  %v2560_v1 = vld [vmem:[%s3835_s19 + $0x18] ss:$12 sps:$4 sm:$0xff]  }
 0x503   :  { %2397 = vmatprep.subr.bf16.mxu1 %v2983_v60  ;;  %2286 = vmatprep.subr.bf16.mxu0 %v2548_v3  ;;  %v2564_v3 = vld [vmem:[%s3835_s19 + $0x30] ss:$12 sps:$4 sm:$0xff]  }
 0x506   :  { %2398 = vmatpush3.bf16.msra.mxu1 %v2547_v2  ;;  %2287 = vmatpush3.bf16.msra.mxu0 %v2549_v4  ;;  %v2563_v2 = vld [vmem:[%s3835_s19 + $0x20] ss:$12 sps:$4 sm:$0xff]   ;;  %v2567_v4 = vld [vmem:[%s3835_s19 + $0x38] ss:$12 sps:$4 sm:$0xff]  }
 0x507   :  { %2399 = vmatprep.subr.bf16.mxu1 %v2983_v60  ;;  %2288 = vmatprep.subr.bf16.mxu0 %v2551_v6  ;;  %v2568_v6 = vld [vmem:[%s3835_s19 + $0x48] ss:$12 sps:$4 sm:$0xff]  }
 0x50a   :  { %2400 = vmatpush3.bf16.msra.mxu1 %v2550_v5  ;;  %2289 = vmatpush3.bf16.msra.mxu0 %v2552_v7  ;;  %v2570_v5 = vld [vmem:[%s3835_s19 + $0x4c] ss:$12 sps:$4 sm:$0xff]   ;;  %v2571_v7 = vld [vmem:[%s3835_s19 + $0x50] ss:$12 sps:$4 sm:$0xff]  }
 0x50b   :  { %2401 = vmatprep.subr.bf16.mxu1 %v2983_v60  ;;  %2290 = vmatprep.subr.bf16.mxu0 %v2554_v9 }
 0x50e   :  { %2402 = vmatpush3.bf16.msra.mxu1 %v2553_v8  ;;  %2291 = vmatpush3.bf16.msra.mxu0 %v2555_v10  ;;  %v2573_v8 = vld [vmem:[%s3839_s23 + $0x40] sm:$0xff]  }
 0x50f   :  { %2407 = vmatprep.subr.bf16.mxu1 %v2983_v60  ;;  %1669 = vmatprep.subr.bf16.mxu0 %v2558_v11 }
 0x5c4   :  { %v1186_v15 = vpop.f32.mrb[16].mxu0  ;;  %v1227_v17 = vpop.f32.mrb[8].mxu1 }
 0x5c5   :  { %v1187_v18 = vadd.f32 %v1186_v15, %v1073_v26  ;;  %v1228_v19 = vadd.f32 %v1227_v17, %v1081_v13  ;;  %v1188_v20 = vpop.f32.mrb[17].mxu0  ;;  %v2385_v21 = vpop.f32.mrb[9].mxu1  ;;  %v2171_v26 = vld [vmem:[#allocation19] ss:$0 sm:$0xff] }
 0x5c6   :  { %v1189_v23 = vadd.f32 %v1188_v20, %v1077_v14  ;;  %v1190_v24 = vpop.f32.mrb[18].mxu0  ;;  %v1230_v25 = vpop.f32.mrb[10].mxu1  ;;  %v2572_v21 = vld [vmem:[%s3839_s23 + $0x80] sm:$0xff]  }
 0x5c7   :  { %v1233_v28 = vmax.f32 %v1187_v18, 0.0  ;;  %v1235_v31 = vmax.f32 %v1228_v19, 0.0  ;;  %v1191_v33 = vpop.f32.mrb[19].mxu0  ;;  %v2386_v34 = vpop.f32.mrb[11].mxu1  ;;  %v2576_v24 = vld [vmem:[%s3839_s23 + $0x48] sm:$0xff]  }
 0x5c8   :  { %v1234_v35 = vmax.f32 %v1189_v23, 0.0  ;;  %v2577_v25 = vld [vmem:[%s3839_s23 + $0x8] sm:$0xff]   ;;  %v2581_v33 = vld [vmem:[%s3839_s23 + $0x98] sm:$0xff]  }
 0x5c9   :  { %v1236_v37 = vmin.f32 %v1233_v28, 6.0  ;;  %v1238_v39 = vmin.f32 %v1235_v31, 6.0  ;;  %v2579_v28 = vld [vmem:[%s3839_s23 + $0x50] sm:$0xff]   ;;  %v2583_v34 = vld [vmem:[%s3839_s23 + $0x18] sm:$0xff]  }
 0x5ca   :  { %v1237_v41 = vmin.f32 %v1234_v35, 6.0  ;;  %v2580_v31 = vld [vmem:[%s3839_s23 + $0x10] sm:$0xff]   ;;  %v2584_v35 = vld [vmem:[%s3839_s23 + $0xa0] sm:$0xff]  }
 0x5cb   :  { %v1257_v43 = vmul.f32 %v1245_v30, %v1236_v37  ;;  %v1259_v44 = vmul.f32 %v1253_v32, %v1238_v39  ;;  %v2578_v30 = vld [vmem:[%s3839_s23 + $0x90] sm:$0xff]   ;;  %v2582_v32 = vld [vmem:[%s3839_s23 + $0x58] sm:$0xff]   ;;  %v2586_v37 = vld [vmem:[%s3839_s23 + $0x20] sm:$0xff]  }
 0x5cc   :  { %v1258_v45 = vmul.f32 %v1249_v36, %v1237_v41  ;;  %v2585_v36 = vld [vmem:[%s3839_s23 + $0x60] sm:$0xff]   ;;  %v2588_v39 = vld [vmem:[%s3839_s23 + $0x68] sm:$0xff]   ;;  %v2590_v41 = vld [vmem:[%s3839_s23 + $0xb0] sm:$0xff]  }
 0x5cd   :  { %v1276_v47 = vadd.f32 %v1264_v38, %v1257_v43  ;;  %v1278_v48 = vadd.f32 %v1272_v40, %v1259_v44  ;;  %v2587_v38 = vld [vmem:[%s3839_s23 + $0xa8] sm:$0xff]   ;;  %v2592_v43 = vld [vmem:[%s3839_s23 + $0x30] sm:$0xff]   ;;  %v2593_v44 = vld [vmem:[%s3839_s23 + $0xb8] sm:$0xff]  }
 0x5ce   :  { %v1277_v49 = vadd.f32 %v1268_v42, %v1258_v45  ;;  %v2589_v40 = vld [vmem:[%s3839_s23 + $0x28] sm:$0xff]   ;;  %v2591_v42 = vld [vmem:[%s3839_s23 + $0x70] sm:$0xff]   ;;  %v2594_v45 = vld [vmem:[%s3839_s23 + $0x78] sm:$0xff]  }
 0x5cf   :  { %v1279_v50 = vmax.f32 %v1276_v47, 0.0  ;;  %v1281_v51 = vmax.f32 %v1278_v48, 0.0  ;;  %v2595_v47 = vld [vmem:[%s3839_s23 + $0x38] sm:$0xff]   ;;  %v1584_v48 = vld [vmem:[#allocation21] sm:$0x7] }
 0x5d0   :  { %v1280_v63 = vmax.f32 %v1277_v49, 0.0  ;;  %v1590_v49 = vrot.slane %v1584_v48, %v3393_v27 }
 0x5d1   :  { %v1282_v52 = vmin.f32 %v1279_v50, 6.0  ;;  %v1284_v53 = vmin.f32 %v1281_v51, 6.0  ;;  %v1594_v50 = vrot.slane %v1584_v48, %v3396_v29 }
 0x5d2   :  { %v1283_v54 = vmin.f32 %v1280_v63, 6.0  ;;  %v1756_v63 = vld [vmem:[#allocation22] sm:$0x7] }
 0x5d3   :  { %v1336_v56 = vpack.c.bf16 %v1284_v53, %v1284_v53  ;;  %v1334_v61 = vpack.c.bf16 %v1282_v52, %v1282_v52 }
 0x5d4   :  { %v1335_v57 = vpack.c.bf16 %v1283_v54, %v1283_v54 }
 0x5d5   :  { %2404 = vmatmul.mubr.bf16.vlgmr.msra.gmra.mrb[12].mxu1 %v1336_v56 }
 0x5d6   :  { %1519 = vmatprep.mubr.bf16.mxu0 %v1335_v57  ;;  %2408 = vmatpush3.bf16.msra.mxu1 %v2559_v55  ;;  %v1757_v57 = vld [vmem:[#allocation24] sm:$0x7] }
 0x5d7   :  { %1520 = vmatmul.mubr.bf16.vlgmr.msra.gmra.mrb[20].mxu0 %v1334_v61  ;;  %2409 = vmatprep.subr.bf16.mxu1 %v2983_v60 }
 0x5d8   :  { %1670 = vmatpush1.bf16.msra.mxu0 %v2556_v59  ;;  %1701 = vmatprep.mubr.bf16.mxu0 %v2982_v0  ;;  %v2566_v0 = vld [vmem:[%s3835_s19 + $0x34] ss:$12 sps:$4 sm:$0xff]  }
 0x5d9   :  { %2415 = vmatprep.mubr.msk.bf16.mxu1 %vm2984_vm2, %v2983_v60  ;;  %1671 = vmatprep.subr.bf16.mxu0 %v2562_v62 }
 0x5da   :  { %2410 = vmatpush3.bf16.msra.mxu1 %v2563_v2  ;;  %v1762_v2 = vrot.slane %v1756_v63, %v3393_v27 }
 0x5db   :  { %2411 = vmatprep.subr.bf16.mxu1 %v2983_v60 }
 0x5dc   :  { %1672 = vmatpush1.bf16.msra.mxu0 %v2560_v1 }
 0x5dd   :  { %1673 = vmatprep.subr.bf16.mxu0 %v2566_v0 }
 0x5de   :  { %2412 = vmatpush3.bf16.msra.mxu1 %v2567_v4 }
 0x5df   :  { %2413 = vmatprep.subr.bf16.mxu1 %v2983_v60 }
 0x5e0   :  { %1674 = vmatpush1.bf16.msra.mxu0 %v2564_v3  ;;  %v1770_v3 = vrot.slane %v1756_v63, %v3525_v58 }
 0x5e1   :  { %1675 = vmatprep.subr.bf16.mxu0 %v2570_v5 }
 0x5e2   :  { %2414 = vmatpush3.bf16.msra.mxu1 %v2571_v7  ;;  %v1766_v7 = vrot.slane %v1756_v63, %v3396_v29 }
 0x5e3   :  { %2419 = vmatprep.subr.bf16.mxu1 %v2983_v60 }
 0x5e4   :  { %1676 = vmatpush1.bf16.msra.mxu0 %v2568_v6 }
 0x5e5   :  { %2312 = vmatprep.subr.bf16.mxu0 %v2573_v8 }
 0x6a8   :  { %v1561_v9 = vpop.f32.mrb[12].mxu1 }
 0x6a9   :  { %v2405_v10 = vpop.f32.mrb[13].mxu1 }
 0x6aa   :  { %v2292_v11 = vpop.f32.mrb[20].mxu0  ;;  %v1564_v12 = vpop.f32.mrb[14].mxu1 }
 0x6ab   :  { %v2293_v13 = vpop.f32.mrb[21].mxu0  ;;  %v2406_v14 = vpop.f32.mrb[15].mxu1 }
 0x6ac   :  { %v2294_v15 = vadd.f32 %v2293_v13, %v2292_v11  ;;  %v2295_v16 = vpop.f32.mrb[22].mxu0  ;;  %v1789_v11 = vrot.slane %v1757_v57, %v3525_v58 }
 0x6ad   :  { %v2296_v17 = vpop.f32.mrb[23].mxu0 }
 0x6ae   :  { %v1522_v18 = vadd.f32 %v2294_v15, %v2171_v26  ;;  %v1785_v26 = vrot.slane %v1757_v57, %v3396_v29 }
 0x6b0   :  { %v1562_v19 = vadd.f32 %v1561_v9, %v1522_v18  ;;  %v1781_v9 = vrot.slane %v1757_v57, %v3393_v27 }
 0x6b2   :  { %v3718_v20 = vadd.f32 %v1562_v19, %v3577_v46  ;;  %v2575_v46 = vld [vmem:[%s3839_s23 + $0x88] sm:$0xff]  }
 0x6b4   :  { %v1585_v23 = vpack.c.bf16 %v3718_v20, %v3718_v20 }
 0x6b6   :  { %2208 = vmatmul.mubr.msk.bf16.vlgmr.msra.gmra.mrb[24].mxu0 %vm490_vm1, %v1585_v23  ;;  %2416 = vmatmul.mubr.msk.bf16.vlgmr.msra.gmra.mrb[16].mxu1 %vm490_vm1, %v1585_v23 }
 0x6b7   :  { %2420 = vmatpush3.bf16.msra.mxu1 %v2572_v21  ;;  %2313 = vmatpush3.bf16.msra.mxu0 %v2574_v22 }
 0x6b8   :  { %2421 = vmatprep.subr.bf16.mxu1 %v2983_v60  ;;  %2314 = vmatprep.subr.bf16.mxu0 %v2576_v24 }
 0x6b9   :  { %2435 = vmatprep.mubr.msk.bf16.mxu1 %vm2984_vm2, %v2983_v60 }
 0x6bb   :  { %2422 = vmatpush3.bf16.msra.mxu1 %v2575_v46  ;;  %2315 = vmatpush3.bf16.msra.mxu0 %v2577_v25 }
 0x6bc   :  { %2423 = vmatprep.subr.bf16.mxu1 %v2983_v60  ;;  %2316 = vmatprep.subr.bf16.mxu0 %v2579_v28 }
 0x6bf   :  { %2424 = vmatpush3.bf16.msra.mxu1 %v2578_v30  ;;  %2317 = vmatpush3.bf16.msra.mxu0 %v2580_v31 }
 0x6c0   :  { %2425 = vmatprep.subr.bf16.mxu1 %v2983_v60  ;;  %2318 = vmatprep.subr.bf16.mxu0 %v2582_v32  ;;  %v2210_v32 = vld [vmem:[#allocation25] ss:$0 sm:$0xff] }
 0x6c3   :  { %2426 = vmatpush3.bf16.msra.mxu1 %v2581_v33  ;;  %2319 = vmatpush3.bf16.msra.mxu0 %v2583_v34 }
 0x6c4   :  { %2427 = vmatprep.subr.bf16.mxu1 %v2983_v60  ;;  %2320 = vmatprep.subr.bf16.mxu0 %v2585_v36 }
 0x6c7   :  { %2428 = vmatpush3.bf16.msra.mxu1 %v2584_v35  ;;  %2321 = vmatpush3.bf16.msra.mxu0 %v2586_v37 }
 0x6c8   :  { %2429 = vmatprep.subr.bf16.mxu1 %v2983_v60  ;;  %2322 = vmatprep.subr.bf16.mxu0 %v2588_v39 }
 0x6cb   :  { %2430 = vmatpush3.bf16.msra.mxu1 %v2587_v38  ;;  %2323 = vmatpush3.bf16.msra.mxu0 %v2589_v40 }
 0x6cc   :  { %2431 = vmatprep.subr.bf16.mxu1 %v2983_v60  ;;  %2324 = vmatprep.subr.bf16.mxu0 %v2591_v42 }
 0x6cf   :  { %2432 = vmatpush3.bf16.msra.mxu1 %v2590_v41  ;;  %2325 = vmatpush3.bf16.msra.mxu0 %v2592_v43 }
 0x6d0   :  { %2433 = vmatprep.subr.bf16.mxu1 %v2983_v60  ;;  %2326 = vmatprep.subr.bf16.mxu0 %v2594_v45  ;;  %v1598_v60 = vrot.slane %v1584_v48, %v3525_v58 }
 0x6d3   :  { %2434 = vmatpush3.bf16.msra.mxu1 %v2593_v44  ;;  %2327 = vmatpush3.bf16.msra.mxu0 %v2595_v47 }
 0x789   :  { %v1703_v51 = vpop.f32.mrb[24].mxu0  ;;  %v1744_v52 = vpop.f32.mrb[16].mxu1 }
 0x78a   :  { %v1704_v53 = vadd.f32 %v1703_v51, %v1590_v49  ;;  %v1745_v54 = vadd.f32 %v1744_v52, %v1598_v60  ;;  %v1705_v55 = vpop.f32.mrb[25].mxu0  ;;  %v2417_v56 = vpop.f32.mrb[17].mxu1 }
 0x78b   :  { %v1706_v59 = vadd.f32 %v1705_v55, %v1594_v50  ;;  %v1707_v61 = vpop.f32.mrb[26].mxu0  ;;  %v1747_v62 = vpop.f32.mrb[18].mxu1 }
 0x78c   :  { %v1750_v1 = vmax.f32 %v1704_v53, 0.0  ;;  %v1752_v0 = vmax.f32 %v1745_v54, 0.0  ;;  %v1708_v4 = vpop.f32.mrb[27].mxu0  ;;  %v2418_v5 = vpop.f32.mrb[19].mxu1 }
 0x78d   :  { %v1751_v6 = vmax.f32 %v1706_v59, 0.0 }
 0x78e   :  { %v1753_v8 = vmin.f32 %v1750_v1, 6.0  ;;  %v1755_v10 = vmin.f32 %v1752_v0, 6.0 }
 0x78f   :  { %v1754_v12 = vmin.f32 %v1751_v6, 6.0 }
 0x790   :  { %v1774_v13 = vmul.f32 %v1762_v2, %v1753_v8  ;;  %v1776_v14 = vmul.f32 %v1770_v3, %v1755_v10 }
 0x791   :  { %v1775_v15 = vmul.f32 %v1766_v7, %v1754_v12 }
 0x792   :  { %v1793_v16 = vadd.f32 %v1781_v9, %v1774_v13  ;;  %v1795_v17 = vadd.f32 %v1789_v11, %v1776_v14 }
 0x793   :  { %v1794_v18 = vadd.f32 %v1785_v26, %v1775_v15 }
 0x794   :  { %v1796_v19 = vmax.f32 %v1793_v16, 0.0  ;;  %v1798_v21 = vmax.f32 %v1795_v17, 0.0 }
 0x795   :  { %v1797_v22 = vmax.f32 %v1794_v18, 0.0 }
 0x796   :  { %v1799_v23 = vmin.f32 %v1796_v19, 6.0  ;;  %v1801_v24 = vmin.f32 %v1798_v21, 6.0 }
 0x797   :  { %v1800_v46 = vmin.f32 %v1797_v22, 6.0 }
 0x798   :  { %v1853_v25 = vpack.c.bf16 %v1801_v24, %v1801_v24  ;;  %v1851_v28 = vpack.c.bf16 %v1799_v23, %v1799_v23 }
 0x799   :  { %v1852_v27 = vpack.c.bf16 %v1800_v46, %v1800_v46 }
 0x79a   :  { %2436 = vmatmul.mubr.bf16.vlgmr.msra.gmra.mrb[20].mxu1 %v1853_v25 }
 0x79b   :  { %2036 = vmatprep.mubr.bf16.mxu0 %v1852_v27 }
 0x79c   :  { %2037 = vmatmul.mubr.bf16.vlgmr.msra.gmra.mrb[28].mxu0 %v1851_v28 }
 0x86d   :  { %v2078_v58 = vpop.f32.mrb[20].mxu1 }
 0x86e   :  { %v2437_v29 = vpop.f32.mrb[21].mxu1 }
 0x86f   :  { %v2328_v30 = vpop.f32.mrb[28].mxu0  ;;  %v2081_v31 = vpop.f32.mrb[22].mxu1 }
 0x870   :  { %v2329_v33 = vpop.f32.mrb[29].mxu0  ;;  %v2438_v34 = vpop.f32.mrb[23].mxu1 }
 0x871   :  { %v2330_v35 = vadd.f32 %v2329_v33, %v2328_v30  ;;  %v2331_v36 = vpop.f32.mrb[30].mxu0 }
 0x872   :  { %v2332_v37 = vpop.f32.mrb[31].mxu0 }
 0x873   :  { %v2039_v38 = vadd.f32 %v2330_v35, %v2210_v32 }
 0x875   :  { %v2079_v39 = vadd.f32 %v2078_v58, %v2039_v38 }
 0x877   :  { %v2084_v40 = vadd.f32 %v2079_v39, %v3718_v20 }
 0x879   :  { %2085 = vst.msk [vmem:[%s3872_s11] sm:$0xff] %vm490_vm1, %v2084_v40 }
 0x87a   :  { %2090 = vsyncpa [#allocation3], 1 }
 0x87b   :  { %2091 = vsyncpa [#allocation5], 1 }
 0x87c   :  { %2092 = vsyncpa [#allocation8], 1 }
 0x87d   :  { %2093 = vsyncpa [#allocation11], 1 }
 0x87e   :  { %2094 = vsyncpa [#allocation14], 1 }
 0x87f   :  { %2095 = vsyncpa [#allocation17], 1 }
 0x880   :  { %2096 = vsyncpa [#allocation20], 1 }
 0x881   :  { %2097 = vsyncpa [#allocation23], 1 }
 0x882   :  { %2098 = vsyncpa [#allocation26], 1 }

// kernel: _lambda_.15
= control target key start
LH: loop header
LB: loop body
LE: loop exit
PB: predicated region body
PF: predicated region fallthrough
CT: control target
= control target key end

     0   :  { %10 = vsyncpa [#allocation3], 0  ;;  %s330_s18 = smov [#allocation2]   ;;  %s420_s0 = inlined_call_operand.vmem [shape: f32[8,64], index: 0, kind: input, shape index: {}]   ;;  %s421_s1 = inlined_call_operand.vmem [shape: f32[8,128], index: 1, kind: input, shape index: {}]   ;;  %s422_s2 = inlined_call_operand.vmem [shape: bf16[64,128], index: 2, kind: input, shape index: {}]   ;;  %s423_s3 = inlined_call_operand.vmem [shape: bf16[128,128], index: 3, kind: input, shape index: {}]   ;;  %s424_s4 = inlined_call_operand.hbm [shape: f32[1,128], index: 4, kind: input, shape index: {}]   ;;  %s425_s5 = inlined_call_operand.vmem [shape: f32[8,128], index: 5, kind: output, shape index: {}]  }
   0x1   :  { %s25_s19 = sshll.u32 %s330_s18, 4  ;;  %s306_s22 = scalar_lea.hbm %s424_s4, 16  ;;  %s26_s19 = int_to_ptr.vmem [resolvable:$true] %s25_s19 }
   0x2   :  { %p307_p0 = scmp.ne.s32.totalorder %s424_s4, %s306_s22  ;;  %p310_p1 = scmp.lt.u32.totalorder %s306_s22, %s424_s4 }
   0x4   :  { %p312_p2 = pnand %p310_p1, %p307_p0 }
   0x6   :  { %315 = shalt.err (!%p312_p2)
}
   0x7   :  { %s316_s27 = scalar_lea.vmem %s26_s19, 16  ;;  %s320_s28 = scalar_lea.vmem %s26_s19, 32 }
   0x8   :  { %p317_p3 = scmp.ne.s32.totalorder %s26_s19, %s316_s27  ;;  %p321_p4 = scmp.lt.s32.totalorder %s26_s19, %s26_s19 }
   0x9   :  { %p322_p5 = scmp.lt.s32.totalorder %s320_s28, %s316_s27 }
   0xb   :  { %p323_p6 = por %p322_p5, %p321_p4 }
   0xd   :  { %p324_p7 = pnand %p323_p6, %p317_p3 }
   0xf   :  { %327 = shalt.err (!%p324_p7)
}
  0x10   :  { %28 = dma.hbm_to_vmem [thread:$0]  %s424_s4, 16, %s26_s19, [#allocation3]  }
  0x11   :  { %328 = dma.done.wait [#allocation3], 16  }
  0x12   :  { %329 = vsyncadd [#allocation3], 4294967280  ;;  %v331_v0 = vmov 0.0   ;;  %vm332_vm0 = vmmov 0   ;;  %v294_v1 = vld [vmem:[%s422_s2] sm:$0xff]   ;;  %v295_v2 = vld [vmem:[%s422_s2 + $0x8] sm:$0xff]  }
  0x13   :  { %259 = vmatprep.subr.bf16.mxu0 %v331_v0  ;;  %267 = vmatprep.mubr.msk.bf16.mxu0 %vm332_vm0, %v331_v0  ;;  %v298_v3 = vld [vmem:[%s423_s3] sm:$0xff]   ;;  %v296_v4 = vld [vmem:[%s422_s2 + $0x10] sm:$0xff]   ;;  %v299_v5 = vld [vmem:[%s423_s3 + $0x8] sm:$0xff]   ;;  %vm68_vm1 = vcmask 523264  }
  0x14   :  { %271 = vmatprep.subr.bf16.mxu1 %v331_v0  ;;  %287 = vmatprep.mubr.msk.bf16.mxu1 %vm332_vm0, %v331_v0  ;;  %v297_v6 = vld [vmem:[%s422_s2 + $0x18] sm:$0xff]   ;;  %v33_v7 = vld [vmem:[%s420_s0] sm:$0xff]  ;;  %v300_v8 = vld [vmem:[%s423_s3 + $0x10] sm:$0xff]  }
  0x15   :  { %260 = vmatpush3.bf16.msra.mxu0 %v294_v1  ;;  %272 = vmatpush3.bf16.msra.mxu1 %v298_v3  ;;  %v34_v9 = vpack.c.bf16 %v33_v7, %v33_v7  ;;  %v301_v10 = vld [vmem:[%s423_s3 + $0x18] sm:$0xff]   ;;  %v302_v11 = vld [vmem:[%s423_s3 + $0x20] sm:$0xff]   ;;  %v303_v12 = vld [vmem:[%s423_s3 + $0x28] sm:$0xff]  }
  0x16   :  { %261 = vmatprep.subr.bf16.mxu0 %v331_v0  ;;  %273 = vmatprep.subr.bf16.mxu1 %v331_v0  ;;  %v304_v13 = vld [vmem:[%s423_s3 + $0x30] sm:$0xff]   ;;  %v305_v14 = vld [vmem:[%s423_s3 + $0x38] sm:$0xff]   ;;  %v43_v15 = vld [vmem:[%s421_s1] sm:$0xff] }
  0x17   :  { %v236_v22 = vld [vmem:[#allocation2] ss:$0 sm:$0xff] }
  0x19   :  { %262 = vmatpush3.bf16.msra.mxu0 %v295_v2  ;;  %274 = vmatpush3.bf16.msra.mxu1 %v299_v5 }
  0x1a   :  { %263 = vmatprep.subr.bf16.mxu0 %v331_v0  ;;  %275 = vmatprep.subr.bf16.mxu1 %v331_v0 }
  0x1d   :  { %264 = vmatpush3.bf16.msra.mxu0 %v296_v4  ;;  %276 = vmatpush3.bf16.msra.mxu1 %v300_v8 }
  0x1e   :  { %265 = vmatprep.subr.bf16.mxu0 %v331_v0  ;;  %277 = vmatprep.subr.bf16.mxu1 %v331_v0 }
  0x21   :  { %266 = vmatpush3.bf16.msra.mxu0 %v297_v6  ;;  %278 = vmatpush3.bf16.msra.mxu1 %v301_v10 }
  0x22   :  { %279 = vmatprep.subr.bf16.mxu1 %v331_v0 }
  0x24   :  { %268 = vmatmul.mubr.msk.bf16.vlgmr.msra.gmra.mrb[0].mxu0 %vm68_vm1, %v34_v9 }
  0x25   :  { %280 = vmatpush3.bf16.msra.mxu1 %v302_v11 }
  0x26   :  { %281 = vmatprep.subr.bf16.mxu1 %v331_v0 }
  0x29   :  { %282 = vmatpush3.bf16.msra.mxu1 %v303_v12 }
  0x2a   :  { %283 = vmatprep.subr.bf16.mxu1 %v331_v0 }
  0x2d   :  { %284 = vmatpush3.bf16.msra.mxu1 %v304_v13 }
  0x2e   :  { %285 = vmatprep.subr.bf16.mxu1 %v331_v0 }
  0x31   :  { %286 = vmatpush3.bf16.msra.mxu1 %v305_v14 }
  0xf7   :  { %v106_v16 = vpop.f32.mrb[0].mxu0 }
  0xf8   :  { %v107_v17 = vadd.f32 %v106_v16, %v43_v15  ;;  %v269_v18 = vpop.f32.mrb[1].mxu0 }
  0xf9   :  { %v109_v19 = vpop.f32.mrb[2].mxu0 }
  0xfa   :  { %v112_v20 = vpack.c.bf16 %v107_v17, %v107_v17  ;;  %v270_v21 = vpop.f32.mrb[3].mxu0 }
  0xfc   :  { %288 = vmatmul.mubr.bf16.vlgmr.msra.gmra.mrb[0].mxu1 %v112_v20 }
 0x1cf   :  { %v218_v23 = vpop.f32.mrb[0].mxu1 }
 0x1d0   :  { %v219_v24 = vadd.f32 %v236_v22, %v218_v23  ;;  %v289_v25 = vpop.f32.mrb[1].mxu1 }
 0x1d1   :  { %v221_v26 = vpop.f32.mrb[2].mxu1 }
 0x1d2   :  { %v224_v27 = vmax.f32 %v219_v24, 0.0  ;;  %v290_v28 = vpop.f32.mrb[3].mxu1 }
 0x1d4   :  { %225 = vst [vmem:[%s425_s5] sm:$0xff] %v224_v27 }
 0x1d5   :  { %230 = vsyncpa [#allocation3], 1 }

// kernel: _lambda_.13
= control target key start
LH: loop header
LB: loop body
LE: loop exit
PB: predicated region body
PF: predicated region fallthrough
CT: control target
= control target key end

     0   :  { %s4282_s0 = inlined_call_operand.vmem [shape: f32[8,64], index: 0, kind: input, shape index: {}]   ;;  %s4283_s1 = inlined_call_operand.vmem [shape: bf16[64,384], index: 1, kind: input, shape index: {}]   ;;  %s4284_s2 = inlined_call_operand.hbm [shape: f32[1,384], index: 2, kind: input, shape index: {}]   ;;  %s4285_s3 = inlined_call_operand.hbm [shape: f32[1,384], index: 3, kind: input, shape index: {}]   ;;  %s4286_s4 = inlined_call_operand.hbm [shape: f32[1,384], index: 4, kind: input, shape index: {}]   ;;  %s4287_s5 = inlined_call_operand.vmem [shape: bf16[384,96], index: 5, kind: input, shape index: {}]   ;;  %s4288_s6 = inlined_call_operand.hbm [shape: f32[1,96], index: 6, kind: input, shape index: {}]   ;;  %s4289_s7 = inlined_call_operand.vmem [shape: bf16[96,576], index: 7, kind: input, shape index: {}]   ;;  %s4290_s8 = inlined_call_operand.hbm [shape: f32[1,576], index: 8, kind: input, shape index: {}]   ;;  %s4291_s9 = inlined_call_operand.hbm [shape: f32[1,576], index: 9, kind: input, shape index: {}]   ;;  %s4292_s10 = inlined_call_operand.hbm [shape: f32[1,576], index: 10, kind: input, shape index: {}]   ;;  %s4293_s11 = inlined_call_operand.vmem [shape: bf16[576,96], index: 11, kind: input, shape index: {}]   ;;  %s4294_s12 = inlined_call_operand.hbm [shape: f32[1,96], index: 12, kind: input, shape index: {}]   ;;  %s4295_s13 = inlined_call_operand.vmem [shape: bf16[96,576], index: 13, kind: input, shape index: {}]   ;;  %s4296_s14 = inlined_call_operand.hbm [shape: f32[1,576], index: 14, kind: input, shape index: {}]   ;;  %s4297_s15 = inlined_call_operand.hbm [shape: f32[1,576], index: 15, kind: input, shape index: {}]   ;;  %s4298_s16 = inlined_call_operand.hbm [shape: f32[1,576], index: 16, kind: input, shape index: {}]   ;;  %s4299_s17 = inlined_call_operand.vmem [shape: bf16[576,96], index: 17, kind: input, shape index: {}]   ;;  %s4300_s18 = inlined_call_operand.hbm [shape: f32[1,96], index: 18, kind: input, shape index: {}]   ;;  %s4301_s19 = inlined_call_operand.vmem [shape: f32[8,96], index: 19, kind: output, shape index: {}]  }
   0x1   :  { %4305 = sst [smem:[#allocation28_spill]] %s4282_s0 }
   0x2   :  { %4306 = sst [smem:[#allocation29_spill]] %s4283_s1 }
   0x3   :  { %4307 = sst [smem:[#allocation30_spill]] %s4284_s2 }
   0x4   :  { %4308 = sst [smem:[#allocation31_spill]] %s4285_s3 }
   0x5   :  { %24 = vsyncpa [#allocation3], 0 }
   0x6   :  { %25 = vsyncpa [#allocation5], 0 }
   0x7   :  { %26 = vsyncpa [#allocation8], 0 }
   0x8   :  { %27 = vsyncpa [#allocation11], 0 }
   0x9   :  { %28 = vsyncpa [#allocation14], 0 }
   0xa   :  { %29 = vsyncpa [#allocation17], 0 }
   0xb   :  { %30 = vsyncpa [#allocation20], 0  ;;  %s3345_s0 = smov [#allocation4]   ;;  %s3346_s20 = smov [#allocation7]  }
   0xc   :  { %s51_s30 = sshll.u32 %s3345_s0, 4  ;;  %s73_s21 = sshll.u32 %s3346_s20, 4  ;;  %s52_s30 = int_to_ptr.vmem [resolvable:$true] %s51_s30  ;;  %s74_s21 = int_to_ptr.vmem [resolvable:$true] %s73_s21 }
   0xd   :  { %s4309_s2 = sld [smem:[#allocation31_spill]] }
  0x13   :  { %s3067_s23 = scalar_lea.hbm %s4309_s2, 48 }
  0x14   :  { %p3068_p0 = scmp.ne.s32.totalorder %s4309_s2, %s3067_s23  ;;  %p3071_p1 = scmp.lt.u32.totalorder %s3067_s23, %s4309_s2 }
  0x16   :  { %p3073_p2 = pnand %p3071_p1, %p3068_p0 }
  0x18   :  { %3076 = shalt.err (!%p3073_p2)
}
  0x19   :  { %s3077_s27 = scalar_lea.vmem %s52_s30, 48  ;;  %s3081_s28 = scalar_lea.vmem %s52_s30, 64 }
  0x1a   :  { %p3078_p3 = scmp.ne.s32.totalorder %s52_s30, %s3077_s27  ;;  %p3082_p4 = scmp.lt.s32.totalorder %s52_s30, %s52_s30 }
  0x1b   :  { %p3083_p5 = scmp.lt.s32.totalorder %s3081_s28, %s3077_s27 }
  0x1d   :  { %p3084_p6 = por %p3083_p5, %p3082_p4 }
  0x1f   :  { %p3085_p7 = pnand %p3084_p6, %p3078_p3 }
  0x21   :  { %3088 = shalt.err (!%p3085_p7)
}
  0x22   :  { %54 = dma.hbm_to_vmem [thread:$0]  %s4309_s2, 48, %s52_s30, [#allocation5]  }
  0x23   :  { %s3089_s22 = scalar_lea.hbm %s4288_s6, 16 }
  0x24   :  { %p3090_p8 = scmp.ne.s32.totalorder %s4288_s6, %s3089_s22  ;;  %p3093_p9 = scmp.lt.u32.totalorder %s3089_s22, %s4288_s6 }
  0x26   :  { %p3095_p10 = pnand %p3093_p9, %p3090_p8 }
  0x28   :  { %3098 = shalt.err (!%p3095_p10)
}
  0x29   :  { %s3099_s26 = scalar_lea.vmem %s74_s21, 16  ;;  %s3103_s27 = scalar_lea.vmem %s74_s21, 32 }
  0x2a   :  { %p3100_p11 = scmp.ne.s32.totalorder %s74_s21, %s3099_s26  ;;  %p3104_p12 = scmp.lt.s32.totalorder %s74_s21, %s74_s21 }
  0x2b   :  { %p3105_p13 = scmp.lt.s32.totalorder %s3103_s27, %s3099_s26 }
  0x2d   :  { %p3106_p0 = por %p3105_p13, %p3104_p12 }
  0x2f   :  { %p3107_p1 = pnand %p3106_p0, %p3100_p11 }
  0x31   :  { %3110 = shalt.err (!%p3107_p1)
}
  0x32   :  { %76 = dma.hbm_to_vmem [thread:$0]  %s4288_s6, 16, %s74_s21, [#allocation8]  }
  0x33   :  { %s3347_s28 = smov [#allocation10]   ;;  %s3348_s0 = smov [#allocation13]  }
  0x34   :  { %s95_s29 = sshll.u32 %s3347_s28, 4  ;;  %s117_s20 = sshll.u32 %s3348_s0, 4  ;;  %s96_s29 = int_to_ptr.vmem [resolvable:$true] %s95_s29  ;;  %s118_s20 = int_to_ptr.vmem [resolvable:$true] %s117_s20 }
  0x35   :  { %s3111_s24 = scalar_lea.hbm %s4291_s9, 80 }
  0x36   :  { %p3112_p2 = scmp.ne.s32.totalorder %s4291_s9, %s3111_s24  ;;  %p3115_p3 = scmp.lt.u32.totalorder %s3111_s24, %s4291_s9 }
  0x38   :  { %p3117_p4 = pnand %p3115_p3, %p3112_p2 }
  0x3a   :  { %3120 = shalt.err (!%p3117_p4)
}
  0x3b   :  { %s3121_s6 = scalar_lea.vmem %s96_s29, 80  ;;  %s3125_s21 = scalar_lea.vmem %s96_s29, 96 }
  0x3c   :  { %p3122_p5 = scmp.ne.s32.totalorder %s96_s29, %s3121_s6  ;;  %p3126_p6 = scmp.lt.s32.totalorder %s96_s29, %s96_s29 }
  0x3d   :  { %p3127_p7 = scmp.lt.s32.totalorder %s3125_s21, %s3121_s6 }
  0x3f   :  { %p3128_p8 = por %p3127_p7, %p3126_p6 }
  0x41   :  { %p3129_p9 = pnand %p3128_p8, %p3122_p5 }
  0x43   :  { %3132 = shalt.err (!%p3129_p9)
}
  0x44   :  { %98 = dma.hbm_to_vmem [thread:$0]  %s4291_s9, 80, %s96_s29, [#allocation11]  }
  0x45   :  { %s3133_s0 = scalar_lea.hbm %s4294_s12, 16 }
  0x46   :  { %p3134_p10 = scmp.ne.s32.totalorder %s4294_s12, %s3133_s0  ;;  %p3137_p11 = scmp.lt.u32.totalorder %s3133_s0, %s4294_s12 }
  0x48   :  { %p3139_p12 = pnand %p3137_p11, %p3134_p10 }
  0x4a   :  { %3142 = shalt.err (!%p3139_p12)
}
  0x4b   :  { %s3143_s25 = scalar_lea.vmem %s118_s20, 16  ;;  %s3147_s3 = scalar_lea.vmem %s118_s20, 32 }
  0x4c   :  { %p3144_p13 = scmp.ne.s32.totalorder %s118_s20, %s3143_s25  ;;  %p3148_p0 = scmp.lt.s32.totalorder %s118_s20, %s118_s20 }
  0x4d   :  { %p3149_p1 = scmp.lt.s32.totalorder %s3147_s3, %s3143_s25 }
  0x4f   :  { %p3150_p2 = por %p3149_p1, %p3148_p0 }
  0x51   :  { %p3151_p3 = pnand %p3150_p2, %p3144_p13 }
  0x53   :  { %3154 = shalt.err (!%p3151_p3)
}
  0x54   :  { %120 = dma.hbm_to_vmem [thread:$0]  %s4294_s12, 16, %s118_s20, [#allocation14]  }
  0x55   :  { %s3349_s26 = smov [#allocation16]   ;;  %s3350_s21 = smov [#allocation2]  }
  0x56   :  { %s139_s6 = sshll.u32 %s3349_s26, 4  ;;  %s41_s27 = sshll.u32 %s3350_s21, 4  ;;  %s140_s6 = int_to_ptr.vmem [resolvable:$true] %s139_s6  ;;  %s42_s27 = int_to_ptr.vmem [resolvable:$true] %s41_s27 }
  0x57   :  { %s3155_s28 = scalar_lea.hbm %s4297_s15, 80 }
  0x58   :  { %p3156_p4 = scmp.ne.s32.totalorder %s4297_s15, %s3155_s28  ;;  %p3159_p5 = scmp.lt.u32.totalorder %s3155_s28, %s4297_s15 }
  0x5a   :  { %p3161_p6 = pnand %p3159_p5, %p3156_p4 }
  0x5c   :  { %3164 = shalt.err (!%p3161_p6)
}
  0x5d   :  { %s3165_s12 = scalar_lea.vmem %s140_s6, 80  ;;  %s3169_s20 = scalar_lea.vmem %s140_s6, 96 }
  0x5e   :  { %p3166_p7 = scmp.ne.s32.totalorder %s140_s6, %s3165_s12  ;;  %p3170_p8 = scmp.lt.s32.totalorder %s140_s6, %s140_s6 }
  0x5f   :  { %p3171_p9 = scmp.lt.s32.totalorder %s3169_s20, %s3165_s12 }
  0x61   :  { %p3172_p10 = por %p3171_p9, %p3170_p8 }
  0x63   :  { %p3173_p11 = pnand %p3172_p10, %p3166_p7 }
  0x65   :  { %3176 = shalt.err (!%p3173_p11)
}
  0x66   :  { %142 = dma.hbm_to_vmem [thread:$0]  %s4297_s15, 80, %s140_s6, [#allocation17]  }
  0x67   :  { %s4310_s29 = sld [smem:[#allocation30_spill]] }
  0x6d   :  { %s3177_s26 = scalar_lea.hbm %s4310_s29, 48 }
  0x6e   :  { %p3178_p12 = scmp.ne.s32.totalorder %s4310_s29, %s3177_s26  ;;  %p3181_p13 = scmp.lt.u32.totalorder %s3177_s26, %s4310_s29 }
  0x70   :  { %p3183_p0 = pnand %p3181_p13, %p3178_p12 }
  0x72   :  { %3186 = shalt.err (!%p3183_p0)
}
  0x73   :  { %s3187_s0 = scalar_lea.vmem %s42_s27, 48  ;;  %s3191_s1 = scalar_lea.vmem %s42_s27, 64 }
  0x74   :  { %p3188_p1 = scmp.ne.s32.totalorder %s42_s27, %s3187_s0  ;;  %p3192_p2 = scmp.lt.s32.totalorder %s42_s27, %s42_s27 }
  0x75   :  { %p3193_p3 = scmp.lt.s32.totalorder %s3191_s1, %s3187_s0 }
  0x77   :  { %p3194_p4 = por %p3193_p3, %p3192_p2 }
  0x79   :  { %p3195_p5 = pnand %p3194_p4, %p3188_p1 }
  0x7b   :  { %3198 = shalt.err (!%p3195_p5)
}
  0x7c   :  { %44 = dma.hbm_to_vmem [thread:$0]  %s4310_s29, 48, %s42_s27, [#allocation3]  }
  0x7d   :  { %s3351_s22 = smov [#allocation6]   ;;  %s3352_s12 = smov [#allocation9]  }
  0x7e   :  { %s61_s24 = sshll.u32 %s3351_s22, 4  ;;  %s85_s20 = sshll.u32 %s3352_s12, 4  ;;  %s62_s24 = int_to_ptr.vmem [resolvable:$true] %s61_s24  ;;  %s86_s20 = int_to_ptr.vmem [resolvable:$true] %s85_s20 }
  0x7f   :  { %s3199_s3 = scalar_lea.hbm %s4286_s4, 48 }
  0x80   :  { %p3200_p6 = scmp.ne.s32.totalorder %s4286_s4, %s3199_s3  ;;  %p3203_p7 = scmp.lt.u32.totalorder %s3199_s3, %s4286_s4 }
  0x82   :  { %p3205_p8 = pnand %p3203_p7, %p3200_p6 }
  0x84   :  { %3208 = shalt.err (!%p3205_p8)
}
  0x85   :  { %s3209_s27 = scalar_lea.vmem %s62_s24, 48  ;;  %s3213_s29 = scalar_lea.vmem %s62_s24, 64 }
  0x86   :  { %p3210_p9 = scmp.ne.s32.totalorder %s62_s24, %s3209_s27  ;;  %p3214_p10 = scmp.lt.s32.totalorder %s62_s24, %s62_s24 }
  0x87   :  { %p3215_p11 = scmp.lt.s32.totalorder %s3213_s29, %s3209_s27 }
  0x89   :  { %p3216_p12 = por %p3215_p11, %p3214_p10 }
  0x8b   :  { %p3217_p13 = pnand %p3216_p12, %p3210_p9 }
  0x8d   :  { %3220 = shalt.err (!%p3217_p13)
}
  0x8e   :  { %64 = dma.hbm_to_vmem [thread:$0]  %s4286_s4, 48, %s62_s24, [#allocation5]  }
  0x8f   :  { %s3221_s15 = scalar_lea.hbm %s4290_s8, 80 }
  0x90   :  { %p3222_p0 = scmp.ne.s32.totalorder %s4290_s8, %s3221_s15  ;;  %p3225_p1 = scmp.lt.u32.totalorder %s3221_s15, %s4290_s8 }
  0x92   :  { %p3227_p2 = pnand %p3225_p1, %p3222_p0 }
  0x94   :  { %3230 = shalt.err (!%p3227_p2)
}
  0x95   :  { %s3231_s25 = scalar_lea.vmem %s86_s20, 80  ;;  %s3235_s3 = scalar_lea.vmem %s86_s20, 96 }
  0x96   :  { %p3232_p3 = scmp.ne.s32.totalorder %s86_s20, %s3231_s25  ;;  %p3236_p4 = scmp.lt.s32.totalorder %s86_s20, %s86_s20 }
  0x97   :  { %p3237_p5 = scmp.lt.s32.totalorder %s3235_s3, %s3231_s25 }
  0x99   :  { %p3238_p6 = por %p3237_p5, %p3236_p4 }
  0x9b   :  { %p3239_p7 = pnand %p3238_p6, %p3232_p3 }
  0x9d   :  { %3242 = shalt.err (!%p3239_p7)
}
  0x9e   :  { %88 = dma.hbm_to_vmem [thread:$0]  %s4290_s8, 80, %s86_s20, [#allocation8]  }
  0x9f   :  { %s3353_s9 = smov [#allocation12]   ;;  %s3354_s21 = smov [#allocation15]  }
  0xa0   :  { %s105_s26 = sshll.u32 %s3353_s9, 4  ;;  %s129_s30 = sshll.u32 %s3354_s21, 4  ;;  %s106_s26 = int_to_ptr.vmem [resolvable:$true] %s105_s26  ;;  %s130_s30 = int_to_ptr.vmem [resolvable:$true] %s129_s30 }
  0xa1   :  { %s3243_s2 = scalar_lea.hbm %s4292_s10, 80 }
  0xa2   :  { %p3244_p8 = scmp.ne.s32.totalorder %s4292_s10, %s3243_s2  ;;  %p3247_p9 = scmp.lt.u32.totalorder %s3243_s2, %s4292_s10 }
  0xa4   :  { %p3249_p10 = pnand %p3247_p9, %p3244_p8 }
  0xa6   :  { %3252 = shalt.err (!%p3249_p10)
}
  0xa7   :  { %s3253_s8 = scalar_lea.vmem %s106_s26, 80  ;;  %s3257_s20 = scalar_lea.vmem %s106_s26, 96 }
  0xa8   :  { %p3254_p11 = scmp.ne.s32.totalorder %s106_s26, %s3253_s8  ;;  %p3258_p12 = scmp.lt.s32.totalorder %s106_s26, %s106_s26 }
  0xa9   :  { %p3259_p13 = scmp.lt.s32.totalorder %s3257_s20, %s3253_s8 }
  0xab   :  { %p3260_p0 = por %p3259_p13, %p3258_p12 }
  0xad   :  { %p3261_p1 = pnand %p3260_p0, %p3254_p11 }
  0xaf   :  { %3264 = shalt.err (!%p3261_p1)
}
  0xb0   :  { %108 = dma.hbm_to_vmem [thread:$0]  %s4292_s10, 80, %s106_s26, [#allocation11]  }
  0xb1   :  { %s3265_s25 = scalar_lea.hbm %s4296_s14, 80 }
  0xb2   :  { %p3266_p2 = scmp.ne.s32.totalorder %s4296_s14, %s3265_s25  ;;  %p3269_p3 = scmp.lt.u32.totalorder %s3265_s25, %s4296_s14 }
  0xb4   :  { %p3271_p4 = pnand %p3269_p3, %p3266_p2 }
  0xb6   :  { %3274 = shalt.err (!%p3271_p4)
}
  0xb7   :  { %s3275_s21 = scalar_lea.vmem %s130_s30, 80  ;;  %s3279_s27 = scalar_lea.vmem %s130_s30, 96 }
  0xb8   :  { %p3276_p5 = scmp.ne.s32.totalorder %s130_s30, %s3275_s21  ;;  %p3280_p6 = scmp.lt.s32.totalorder %s130_s30, %s130_s30 }
  0xb9   :  { %p3281_p7 = scmp.lt.s32.totalorder %s3279_s27, %s3275_s21 }
  0xbb   :  { %p3282_p8 = por %p3281_p7, %p3280_p6 }
  0xbd   :  { %p3283_p9 = pnand %p3282_p8, %p3276_p5 }
  0xbf   :  { %3286 = shalt.err (!%p3283_p9)
}
  0xc0   :  { %132 = dma.hbm_to_vmem [thread:$0]  %s4296_s14, 80, %s130_s30, [#allocation14]  }
  0xc1   :  { %s3355_s29 = smov [#allocation18]   ;;  %s3356_s28 = smov [#allocation19]  }
  0xc2   :  { %s149_s2 = sshll.u32 %s3355_s29, 4  ;;  %s161_s0 = sshll.u32 %s3356_s28, 4  ;;  %s150_s2 = int_to_ptr.vmem [resolvable:$true] %s149_s2  ;;  %s162_s0 = int_to_ptr.vmem [resolvable:$true] %s161_s0 }
  0xc3   :  { %s3287_s8 = scalar_lea.hbm %s4298_s16, 80 }
  0xc4   :  { %p3288_p10 = scmp.ne.s32.totalorder %s4298_s16, %s3287_s8  ;;  %p3291_p11 = scmp.lt.u32.totalorder %s3287_s8, %s4298_s16 }
  0xc6   :  { %p3293_p12 = pnand %p3291_p11, %p3288_p10 }
  0xc8   :  { %3296 = shalt.err (!%p3293_p12)
}
  0xc9   :  { %s3297_s14 = scalar_lea.vmem %s150_s2, 80  ;;  %s3301_s30 = scalar_lea.vmem %s150_s2, 96 }
  0xca   :  { %p3298_p13 = scmp.ne.s32.totalorder %s150_s2, %s3297_s14  ;;  %p3302_p0 = scmp.lt.s32.totalorder %s150_s2, %s150_s2 }
  0xcb   :  { %p3303_p1 = scmp.lt.s32.totalorder %s3301_s30, %s3297_s14 }
  0xcd   :  { %p3304_p2 = por %p3303_p1, %p3302_p0 }
  0xcf   :  { %p3305_p3 = pnand %p3304_p2, %p3298_p13 }
  0xd1   :  { %3308 = shalt.err (!%p3305_p3)
}
  0xd2   :  { %152 = dma.hbm_to_vmem [thread:$0]  %s4298_s16, 80, %s150_s2, [#allocation17]  }
  0xd3   :  { %s3309_s24 = scalar_lea.hbm %s4300_s18, 16 }
  0xd4   :  { %p3310_p4 = scmp.ne.s32.totalorder %s4300_s18, %s3309_s24  ;;  %p3313_p5 = scmp.lt.u32.totalorder %s3309_s24, %s4300_s18 }
  0xd6   :  { %p3315_p6 = pnand %p3313_p5, %p3310_p4 }
  0xd8   :  { %3318 = shalt.err (!%p3315_p6)
}
  0xd9   :  { %s3319_s26 = scalar_lea.vmem %s162_s0, 16  ;;  %s3323_s29 = scalar_lea.vmem %s162_s0, 32 }
  0xda   :  { %p3320_p7 = scmp.ne.s32.totalorder %s162_s0, %s3319_s26  ;;  %p3324_p8 = scmp.lt.s32.totalorder %s162_s0, %s162_s0 }
  0xdb   :  { %p3325_p9 = scmp.lt.s32.totalorder %s3323_s29, %s3319_s26 }
  0xdd   :  { %p3326_p10 = por %p3325_p9, %p3324_p8 }
  0xdf   :  { %p3327_p11 = pnand %p3326_p10, %p3320_p7 }
  0xe1   :  { %3330 = shalt.err (!%p3327_p11)
}
  0xe2   :  { %164 = dma.hbm_to_vmem [thread:$0]  %s4300_s18, 16, %s162_s0, [#allocation20]  }
  0xe3   :  { %3331 = dma.done.wait [#allocation3], 48  }
  0xe4   :  { %3332 = vsyncadd [#allocation3], 4294967248 }
  0xe5   :  { %3333 = dma.done.wait [#allocation5], 96  }
  0xe6   :  { %3334 = vsyncadd [#allocation5], 4294967200 }
  0xe7   :  { %3335 = dma.done.wait [#allocation8], 96  }
  0xe8   :  { %3336 = vsyncadd [#allocation8], 4294967200 }
  0xe9   :  { %3337 = dma.done.wait [#allocation11], 160  }
  0xea   :  { %3338 = vsyncadd [#allocation11], 4294967136 }
  0xeb   :  { %3339 = dma.done.wait [#allocation14], 96  }
  0xec   :  { %3340 = vsyncadd [#allocation14], 4294967200 }
  0xed   :  { %3341 = dma.done.wait [#allocation17], 160  }
  0xee   :  { %3342 = vsyncadd [#allocation17], 4294967136 }
  0xef   :  { %3343 = dma.done.wait [#allocation20], 16  }
  0xf0   :  { %3344 = vsyncadd [#allocation20], 4294967280  ;;  %v3357_v0 = vmov 0.0   ;;  %v3358_v1 = vmov 0   ;;  %vm3359_vm0 = vmmov 0   ;;  %s4311_s0 = sld [smem:[#allocation29_spill]]  ;;  %v222_v42 = vlaneseq }
  0xf1   :  { %2768 = vmatprep.subr.bf16.mxu1 %v3357_v0  ;;  %337 = vmatprep.mubr.bf16.mxu0 %v3358_v1  ;;  %s4312_s18 = sld [smem:[#allocation28_spill]]  ;;  %v2887_v14 = vld [vmem:[%s4287_s5 + $0x40] sm:$0xff]   ;;  %vm301_vm1 = vcmask 523264   ;;  %v2890_v18 = vld [vmem:[%s4287_s5 + $0x48] sm:$0xff]   ;;  %v2893_v22 = vld [vmem:[%s4287_s5 + $0x50] sm:$0xff]   ;;  %vm940_vm2 = vcmask 785408  }
  0xf2   :  { %2776 = vmatprep.mubr.msk.bf16.mxu1 %vm3359_vm0, %v3357_v0  ;;  %v2888_v17 = vld [vmem:[%s4287_s5] sm:$0xff]   ;;  %v2891_v20 = vld [vmem:[%s4287_s5 + $0x8] sm:$0xff]   ;;  %v2894_v23 = vld [vmem:[%s4287_s5 + $0x10] sm:$0xff]   ;;  %v3740_v43 = vshrl.u32 %v222_v42, 7 }
  0xf3   :  { %v2889_v19 = vld [vmem:[%s4287_s5 + $0x80] sm:$0xff]   ;;  %v2892_v21 = vld [vmem:[%s4287_s5 + $0x88] sm:$0xff]   ;;  %v2896_v24 = vld [vmem:[%s4287_s5 + $0x58] sm:$0xff]  }
  0xf4   :  { %v2895_v25 = vld [vmem:[%s4287_s5 + $0x90] sm:$0xff]   ;;  %v2897_v26 = vld [vmem:[%s4287_s5 + $0x18] sm:$0xff]   ;;  %v2899_v28 = vld [vmem:[%s4287_s5 + $0x60] sm:$0xff]   ;;  %v3743_v44 = vsub.s32 0, %v3740_v43  ;;  %v3746_v46 = vsub.s32 1, %v3740_v43  ;;  %v3749_v47 = vsub.s32 2, %v3740_v43 }
  0xf5   :  { %v2898_v27 = vld [vmem:[%s4287_s5 + $0x98] sm:$0xff]   ;;  %v2900_v29 = vld [vmem:[%s4287_s5 + $0x20] sm:$0xff]   ;;  %v2902_v31 = vld [vmem:[%s4287_s5 + $0x68] sm:$0xff]  }
  0xf6   :  { %v2871_v2 = vld [vmem:[%s4311_s0 + $0x4] ss:$12 sps:$4 sm:$0xff]   ;;  %v2873_v3 = vld [vmem:[%s4311_s0] ss:$12 sps:$4 sm:$0xff]   ;;  %v2874_v4 = vld [vmem:[%s4311_s0 + $0x1c] ss:$12 sps:$4 sm:$0xff]  }
  0xf7   :  { %305 = vmatprep.subr.bf16.mxu0 %v2871_v2  ;;  %v2876_v5 = vld [vmem:[%s4311_s0 + $0x18] ss:$12 sps:$4 sm:$0xff]   ;;  %v2877_v6 = vld [vmem:[%s4311_s0 + $0x8] ss:$12 sps:$4 sm:$0xff]   ;;  %v2881_v8 = vld [vmem:[%s4311_s0 + $0x20] ss:$12 sps:$4 sm:$0xff]  }
  0xf8   :  { %306 = vmatpush1.bf16.msra.mxu0 %v2873_v3  ;;  %v2878_v7 = vld [vmem:[%s4311_s0 + $0x34] ss:$12 sps:$4 sm:$0xff]   ;;  %2769 = vmatpush3.bf16.msra.mxu1 %v2877_v6  ;;  %v2880_v9 = vld [vmem:[%s4311_s0 + $0x30] ss:$12 sps:$4 sm:$0xff]   ;;  %v2882_v10 = vld [vmem:[%s4311_s0 + $0x4c] ss:$12 sps:$4 sm:$0xff]  }
  0xf9   :  { %307 = vmatprep.subr.bf16.mxu0 %v2874_v4  ;;  %2770 = vmatprep.subr.bf16.mxu1 %v3357_v0  ;;  %v2885_v11 = vld [vmem:[%s4311_s0 + $0x38] ss:$12 sps:$4 sm:$0xff]   ;;  %v2884_v12 = vld [vmem:[%s4311_s0 + $0x48] ss:$12 sps:$4 sm:$0xff]   ;;  %v2886_v15 = vld [vmem:[%s4311_s0 + $0x50] ss:$12 sps:$4 sm:$0xff]  }
  0xfa   :  { %v202_v13 = vld [vmem:[%s4312_s18] sm:$0xff]  ;;  %v2903_v32 = vld [vmem:[%s4287_s5 + $0x28] sm:$0xff]   ;;  %v2905_v34 = vld [vmem:[%s4287_s5 + $0x70] sm:$0xff]  }
  0xfb   :  { %v220_v16 = vpack.c.bf16 %v202_v13, %v202_v13  ;;  %v2901_v30 = vld [vmem:[%s4287_s5 + $0xa0] sm:$0xff]   ;;  %v2904_v33 = vld [vmem:[%s4287_s5 + $0xa8] sm:$0xff]   ;;  %v2906_v35 = vld [vmem:[%s4287_s5 + $0x30] sm:$0xff]  }
  0xfc   :  { %308 = vmatpush1.bf16.msra.mxu0 %v2876_v5  ;;  %2771 = vmatpush3.bf16.msra.mxu1 %v2881_v8  ;;  %v2907_v36 = vld [vmem:[%s4287_s5 + $0xb0] sm:$0xff]   ;;  %v2908_v37 = vld [vmem:[%s4287_s5 + $0x78] sm:$0xff]   ;;  %v2916_v41 = vld [vmem:[%s4289_s7 + $0xc] ss:$20 sps:$4 sm:$0xff]  }
  0xfd   :  { %309 = vmatprep.subr.bf16.mxu0 %v2878_v7  ;;  %2772 = vmatprep.subr.bf16.mxu1 %v3357_v0  ;;  %v2909_v38 = vld [vmem:[%s4287_s5 + $0x38] sm:$0xff]   ;;  %v219_v45 = vld [vmem:[#allocation2] sm:$0x7]  ;;  %v392_v52 = vld [vmem:[#allocation4] sm:$0x7] }
  0xfe   :  { %v2910_v39 = vld [vmem:[%s4287_s5 + $0xb8] sm:$0xff]   ;;  %v225_v48 = vrot.slane %v219_v45, %v3743_v44  ;;  %v229_v49 = vrot.slane %v219_v45, %v3746_v46  ;;  %v233_v50 = vrot.slane %v219_v45, %v3749_v47  ;;  %v393_v55 = vld [vmem:[#allocation6] sm:$0x7]  ;;  %v398_v60 = vrot.slane %v392_v52, %v3743_v44  ;;  %v2932_v42 = vld [vmem:[%s4289_s7 + $0x80] ss:$20 sps:$4 sm:$0xff]  }
  0xff   :  { %v2913_v40 = vld [vmem:[%s4289_s7 + $0x4] ss:$20 sps:$4 sm:$0xff]   ;;  %v402_v3 = vrot.slane %v392_v52, %v3746_v46  ;;  %v417_v6 = vrot.slane %v393_v55, %v3743_v44  ;;  %v406_v8 = vrot.slane %v392_v52, %v3749_v47  ;;  %v2941_v52 = vld [vmem:[%s4289_s7 + $0xc8] ss:$20 sps:$4 sm:$0xff]  }
 0x100   :  { %310 = vmatpush1.bf16.msra.mxu0 %v2880_v9  ;;  %2773 = vmatpush3.bf16.msra.mxu1 %v2885_v11  ;;  %v421_v11 = vrot.slane %v393_v55, %v3746_v46  ;;  %v2937_v45 = vld [vmem:[%s4289_s7 + $0xa4] ss:$20 sps:$4 sm:$0xff]  }
 0x101   :  { %311 = vmatprep.subr.bf16.mxu0 %v2882_v10  ;;  %2774 = vmatprep.subr.bf16.mxu1 %v3357_v0 }
 0x104   :  { %312 = vmatpush1.bf16.msra.mxu0 %v2884_v12  ;;  %2775 = vmatpush3.bf16.msra.mxu1 %v2886_v15 }
 0x105   :  { %2625 = vmatprep.subr.bf16.mxu0 %v2887_v14  ;;  %2780 = vmatprep.subr.bf16.mxu1 %v3357_v0  ;;  %v425_v14 = vrot.slane %v393_v55, %v3749_v47  ;;  %v2953_v55 = vld [vmem:[%s4293_s11 + $0x40] sm:$0xff]  }
 0x107   :  { %2451 = vmatmul.mubr.msk.bf16.vlgmr.msra.gmra.mrb[0].mxu0 %vm301_vm1, %v220_v16  ;;  %2777 = vmatmul.mubr.msk.bf16.vlgmr.msra.gmra.mrb[0].mxu1 %vm301_vm1, %v220_v16 }
 0x108   :  { %2626 = vmatpush3.bf16.msra.mxu0 %v2888_v17  ;;  %2781 = vmatpush3.bf16.msra.mxu1 %v2889_v19 }
 0x109   :  { %2627 = vmatprep.subr.bf16.mxu0 %v2890_v18  ;;  %2796 = vmatprep.mubr.msk.bf16.mxu1 %vm3359_vm0, %v3357_v0 }
 0x10a   :  { %2782 = vmatprep.subr.bf16.mxu1 %v3357_v0 }
 0x10c   :  { %2628 = vmatpush3.bf16.msra.mxu0 %v2891_v20  ;;  %2783 = vmatpush3.bf16.msra.mxu1 %v2892_v21 }
 0x10d   :  { %2629 = vmatprep.subr.bf16.mxu0 %v2893_v22  ;;  %2784 = vmatprep.subr.bf16.mxu1 %v3357_v0 }
 0x110   :  { %2630 = vmatpush3.bf16.msra.mxu0 %v2894_v23  ;;  %2785 = vmatpush3.bf16.msra.mxu1 %v2895_v25 }
 0x111   :  { %2631 = vmatprep.subr.bf16.mxu0 %v2896_v24  ;;  %2786 = vmatprep.subr.bf16.mxu1 %v3357_v0 }
 0x114   :  { %2632 = vmatpush3.bf16.msra.mxu0 %v2897_v26  ;;  %2787 = vmatpush3.bf16.msra.mxu1 %v2898_v27  ;;  %v2911_v27 = vld [vmem:[%s4289_s7] ss:$20 sps:$4 sm:$0xff]  }
 0x115   :  { %2633 = vmatprep.subr.bf16.mxu0 %v2899_v28  ;;  %2788 = vmatprep.subr.bf16.mxu1 %v3357_v0  ;;  %v2914_v28 = vld [vmem:[%s4289_s7 + $0x8] ss:$20 sps:$4 sm:$0xff]  }
 0x118   :  { %2634 = vmatpush3.bf16.msra.mxu0 %v2900_v29  ;;  %2789 = vmatpush3.bf16.msra.mxu1 %v2901_v30 }
 0x119   :  { %2635 = vmatprep.subr.bf16.mxu0 %v2902_v31  ;;  %2790 = vmatprep.subr.bf16.mxu1 %v3357_v0  ;;  %v2919_v31 = vld [vmem:[%s4289_s7 + $0x2c] ss:$20 sps:$4 sm:$0xff]  }
 0x11c   :  { %2636 = vmatpush3.bf16.msra.mxu0 %v2903_v32  ;;  %2791 = vmatpush3.bf16.msra.mxu1 %v2904_v33  ;;  %v2922_v32 = vld [vmem:[%s4289_s7 + $0x34] ss:$20 sps:$4 sm:$0xff]  }
 0x11d   :  { %2637 = vmatprep.subr.bf16.mxu0 %v2905_v34  ;;  %2792 = vmatprep.subr.bf16.mxu1 %v3357_v0  ;;  %v2917_v33 = vld [vmem:[%s4289_s7 + $0x28] ss:$20 sps:$4 sm:$0xff]   ;;  %v2920_v34 = vld [vmem:[%s4289_s7 + $0x30] ss:$20 sps:$4 sm:$0xff]  }
 0x120   :  { %2638 = vmatpush3.bf16.msra.mxu0 %v2906_v35  ;;  %2793 = vmatpush3.bf16.msra.mxu1 %v2907_v36  ;;  %v2925_v35 = vld [vmem:[%s4289_s7 + $0x54] ss:$20 sps:$4 sm:$0xff]   ;;  %v2928_v36 = vld [vmem:[%s4289_s7 + $0x5c] ss:$20 sps:$4 sm:$0xff]  }
 0x121   :  { %2639 = vmatprep.subr.bf16.mxu0 %v2908_v37  ;;  %2794 = vmatprep.subr.bf16.mxu1 %v3357_v0  ;;  %v2923_v37 = vld [vmem:[%s4289_s7 + $0x50] ss:$20 sps:$4 sm:$0xff]  }
 0x124   :  { %2640 = vmatpush3.bf16.msra.mxu0 %v2909_v38  ;;  %2795 = vmatpush3.bf16.msra.mxu1 %v2910_v39  ;;  %v2926_v38 = vld [vmem:[%s4289_s7 + $0x58] ss:$20 sps:$4 sm:$0xff]   ;;  %v2931_v39 = vld [vmem:[%s4289_s7 + $0x7c] ss:$20 sps:$4 sm:$0xff]  }
 0x125   :  { %944 = vmatprep.subr.bf16.mxu0 %v2913_v40  ;;  %985 = vmatprep.subr.bf16.mxu1 %v2916_v41  ;;  %v2934_v40 = vld [vmem:[%s4289_s7 + $0x84] ss:$20 sps:$4 sm:$0xff]  }
 0x126   :  { %v2929_v41 = vld [vmem:[%s4289_s7 + $0x78] ss:$20 sps:$4 sm:$0xff]  }
 0x1da   :  { %v339_v51 = vpop.f32.mrb[0].mxu0  ;;  %v380_v58 = vpop.f32.mrb[0].mxu1 }
 0x1db   :  { %v340_v53 = vadd.f32 %v339_v51, %v225_v48  ;;  %v341_v54 = vpop.f32.mrb[1].mxu0  ;;  %v381_v62 = vadd.f32 %v380_v58, %v233_v50  ;;  %v2778_v63 = vpop.f32.mrb[1].mxu1  ;;  %v2935_v48 = vld [vmem:[%s4289_s7 + $0xa0] ss:$20 sps:$4 sm:$0xff]   ;;  %v2938_v50 = vld [vmem:[%s4289_s7 + $0xa8] ss:$20 sps:$4 sm:$0xff]  }
 0x1dc   :  { %v342_v56 = vadd.f32 %v341_v54, %v229_v49  ;;  %v343_v57 = vpop.f32.mrb[2].mxu0  ;;  %v383_v4 = vpop.f32.mrb[2].mxu1  ;;  %v2940_v49 = vld [vmem:[%s4289_s7 + $0xac] ss:$20 sps:$4 sm:$0xff]   ;;  %v2944_v54 = vld [vmem:[%s4289_s7 + $0xd0] ss:$20 sps:$4 sm:$0xff]  }
 0x1dd   :  { %v386_v59 = vmax.f32 %v340_v53, 0.0  ;;  %v344_v61 = vpop.f32.mrb[3].mxu0  ;;  %v388_v7 = vmax.f32 %v381_v62, 0.0  ;;  %v2779_v9 = vpop.f32.mrb[3].mxu1  ;;  %v2943_v51 = vld [vmem:[%s4289_s7 + $0xcc] ss:$20 sps:$4 sm:$0xff]  }
 0x1de   :  { %v387_v2 = vmax.f32 %v342_v56, 0.0  ;;  %v2946_v53 = vld [vmem:[%s4289_s7 + $0xd4] ss:$20 sps:$4 sm:$0xff]  }
 0x1df   :  { %v389_v5 = vmin.f32 %v386_v59, 6.0  ;;  %v391_v13 = vmin.f32 %v388_v7, 6.0  ;;  %v2453_v59 = vld [vmem:[#allocation7] ss:$0 sm:$0xff] }
 0x1e0   :  { %v390_v10 = vmin.f32 %v387_v2, 6.0  ;;  %v2957_v9 = vld [vmem:[%s4293_s11 + $0x48] sm:$0xff]  }
 0x1e1   :  { %v410_v12 = vmul.f32 %v398_v60, %v389_v5  ;;  %v412_v17 = vmul.f32 %v406_v8, %v391_v13  ;;  %v2955_v8 = vld [vmem:[%s4293_s11] sm:$0xff]  }
 0x1e2   :  { %v411_v15 = vmul.f32 %v402_v3, %v390_v10  ;;  %v2948_v10 = vld [vmem:[%s4289_s7 + $0x38] ss:$20 sps:$4 sm:$0xff]   ;;  %v2949_v13 = vld [vmem:[%s4289_s7 + $0x60] ss:$20 sps:$4 sm:$0xff]  }
 0x1e3   :  { %v429_v16 = vadd.f32 %v417_v6, %v410_v12  ;;  %v431_v20 = vadd.f32 %v425_v14, %v412_v17  ;;  %v2947_v6 = vld [vmem:[%s4289_s7 + $0x10] ss:$20 sps:$4 sm:$0xff]  }
 0x1e4   :  { %v430_v18 = vadd.f32 %v421_v11, %v411_v15  ;;  %v2959_v11 = vld [vmem:[%s4293_s11 + $0x8] sm:$0xff]   ;;  %v2961_v12 = vld [vmem:[%s4293_s11 + $0x50] sm:$0xff]   ;;  %v2965_v15 = vld [vmem:[%s4293_s11 + $0x58] sm:$0xff]  }
 0x1e5   :  { %v432_v19 = vmax.f32 %v429_v16, 0.0  ;;  %v434_v23 = vmax.f32 %v431_v20, 0.0  ;;  %v2963_v14 = vld [vmem:[%s4293_s11 + $0x10] sm:$0xff]   ;;  %v2950_v16 = vld [vmem:[%s4289_s7 + $0x88] ss:$20 sps:$4 sm:$0xff]   ;;  %v2956_v20 = vld [vmem:[%s4293_s11 + $0x80] sm:$0xff]  }
 0x1e6   :  { %v433_v21 = vmax.f32 %v430_v18, 0.0  ;;  %v2951_v17 = vld [vmem:[%s4289_s7 + $0xb0] ss:$20 sps:$4 sm:$0xff]   ;;  %v2952_v18 = vld [vmem:[%s4289_s7 + $0xd8] ss:$20 sps:$4 sm:$0xff]  }
 0x1e7   :  { %v435_v22 = vmin.f32 %v432_v19, 6.0  ;;  %v437_v25 = vmin.f32 %v434_v23, 6.0  ;;  %v2954_v19 = vld [vmem:[%s4293_s11 + $0xc0] sm:$0xff]   ;;  %v2962_v23 = vld [vmem:[%s4293_s11 + $0xd0] sm:$0xff]  }
 0x1e8   :  { %v436_v24 = vmin.f32 %v433_v21, 6.0  ;;  %v2958_v21 = vld [vmem:[%s4293_s11 + $0xc8] sm:$0xff]  }
 0x1e9   :  { %v487_v29 = vpack.c.bf16 %v435_v22, %v435_v22  ;;  %v489_v30 = vpack.c.bf16 %v437_v25, %v437_v25  ;;  %v2960_v22 = vld [vmem:[%s4293_s11 + $0x88] sm:$0xff]   ;;  %v2966_v25 = vld [vmem:[%s4293_s11 + $0xd8] sm:$0xff]  }
 0x1ea   :  { %v488_v26 = vpack.c.bf16 %v436_v24, %v436_v24  ;;  %v2964_v24 = vld [vmem:[%s4293_s11 + $0x90] sm:$0xff]  }
 0x1eb   :  { %2797 = vmatmul.mubr.bf16.vlgmr.msra.gmra.mrb[4].mxu1 %v489_v30  ;;  %v2971_v30 = vld [vmem:[%s4293_s11 + $0x20] sm:$0xff]  }
 0x1ec   :  { %672 = vmatprep.mubr.bf16.mxu0 %v488_v26  ;;  %986 = vmatpush1.bf16.msra.mxu1 %v2914_v28  ;;  %v2967_v26 = vld [vmem:[%s4293_s11 + $0x18] sm:$0xff]   ;;  %v2969_v28 = vld [vmem:[%s4293_s11 + $0x60] sm:$0xff]  }
 0x1ed   :  { %673 = vmatmul.mubr.bf16.vlgmr.msra.gmra.mrb[4].mxu0 %v487_v29  ;;  %987 = vmatprep.subr.bf16.mxu1 %v2922_v32  ;;  %v2970_v29 = vld [vmem:[%s4293_s11 + $0xe0] sm:$0xff]   ;;  %v2973_v32 = vld [vmem:[%s4293_s11 + $0x68] sm:$0xff]  }
 0x1ee   :  { %945 = vmatpush1.bf16.msra.mxu0 %v2911_v27  ;;  %976 = vmatprep.mubr.bf16.mxu0 %v3358_v1  ;;  %v2968_v27 = vld [vmem:[%s4293_s11 + $0x98] sm:$0xff]  }
 0x1ef   :  { %946 = vmatprep.subr.bf16.mxu0 %v2919_v31  ;;  %1017 = vmatprep.mubr.bf16.mxu1 %v3358_v1  ;;  %v2972_v31 = vld [vmem:[%s4293_s11 + $0xa0] sm:$0xff]  }
 0x1f0   :  { %988 = vmatpush1.bf16.msra.mxu1 %v2920_v34  ;;  %v2975_v34 = vld [vmem:[%s4293_s11 + $0x28] sm:$0xff]  }
 0x1f1   :  { %989 = vmatprep.subr.bf16.mxu1 %v2928_v36  ;;  %v2977_v36 = vld [vmem:[%s4293_s11 + $0x70] sm:$0xff]  }
 0x1f2   :  { %947 = vmatpush1.bf16.msra.mxu0 %v2917_v33  ;;  %v2974_v33 = vld [vmem:[%s4293_s11 + $0xe8] sm:$0xff]  }
 0x1f3   :  { %948 = vmatprep.subr.bf16.mxu0 %v2925_v35  ;;  %v2976_v35 = vld [vmem:[%s4293_s11 + $0xa8] sm:$0xff]  }
 0x1f4   :  { %990 = vmatpush1.bf16.msra.mxu1 %v2926_v38  ;;  %v2979_v38 = vld [vmem:[%s4293_s11 + $0x30] sm:$0xff]  }
 0x1f5   :  { %991 = vmatprep.subr.bf16.mxu1 %v2934_v40  ;;  %v2981_v40 = vld [vmem:[%s4293_s11 + $0x78] sm:$0xff]  }
 0x1f6   :  { %949 = vmatpush1.bf16.msra.mxu0 %v2923_v37  ;;  %v2978_v37 = vld [vmem:[%s4293_s11 + $0xf0] sm:$0xff]  }
 0x1f7   :  { %950 = vmatprep.subr.bf16.mxu0 %v2931_v39  ;;  %v2980_v39 = vld [vmem:[%s4293_s11 + $0xb0] sm:$0xff]  }
 0x1f8   :  { %992 = vmatpush1.bf16.msra.mxu1 %v2932_v42  ;;  %v2983_v42 = vld [vmem:[%s4293_s11 + $0x38] sm:$0xff]  }
 0x1f9   :  { %993 = vmatprep.subr.bf16.mxu1 %v2940_v49  ;;  %v3961_v49 = vsub.s32 3, %v3740_v43 }
 0x1fa   :  { %951 = vmatpush1.bf16.msra.mxu0 %v2929_v41  ;;  %v2982_v41 = vld [vmem:[%s4293_s11 + $0xf8] sm:$0xff]  }
 0x1fb   :  { %952 = vmatprep.subr.bf16.mxu0 %v2937_v45  ;;  %v2984_v45 = vld [vmem:[%s4293_s11 + $0xb8] sm:$0xff]  }
 0x1fc   :  { %994 = vmatpush1.bf16.msra.mxu1 %v2938_v50 }
 0x1fd   :  { %995 = vmatprep.subr.bf16.mxu1 %v2946_v53 }
 0x1fe   :  { %953 = vmatpush1.bf16.msra.mxu0 %v2935_v48  ;;  %v3958_v48 = vld [vmem:[#allocation9] sm:$0x1f] }
 0x1ff   :  { %954 = vmatprep.subr.bf16.mxu0 %v2943_v51  ;;  %v762_v50 = vrot.slane %v3958_v48, %v3743_v44  ;;  %v770_v51 = vrot.slane %v3958_v48, %v3749_v47  ;;  %v774_v53 = vrot.slane %v3958_v48, %v3961_v49 }
 0x200   :  { %996 = vmatpush1.bf16.msra.mxu1 %v2944_v54 }
 0x201   :  { %2663 = vmatprep.subr.bf16.mxu1 %v2953_v55  ;;  %v3971_v55 = vld [vmem:[#allocation10] sm:$0x1f] }
 0x202   :  { %955 = vmatpush1.bf16.msra.mxu0 %v2941_v52  ;;  %v766_v52 = vrot.slane %v3958_v48, %v3746_v46 }
 0x203   :  { %2800 = vmatprep.subr.bf16.mxu0 %v3357_v0 }
 0x2be   :  { %v714_v57 = vpop.f32.mrb[4].mxu1 }
 0x2bf   :  { %v2798_v60 = vpop.f32.mrb[5].mxu1 }
 0x2c0   :  { %v2641_v56 = vpop.f32.mrb[4].mxu0  ;;  %v717_v63 = vpop.f32.mrb[6].mxu1 }
 0x2c1   :  { %v2642_v58 = vpop.f32.mrb[5].mxu0  ;;  %v2799_v3 = vpop.f32.mrb[7].mxu1 }
 0x2c2   :  { %v2643_v61 = vadd.f32 %v2642_v58, %v2641_v56  ;;  %v2644_v62 = vpop.f32.mrb[6].mxu0 }
 0x2c3   :  { %v2645_v2 = vpop.f32.mrb[7].mxu0 }
 0x2c4   :  { %v675_v4 = vadd.f32 %v2643_v61, %v2453_v59  ;;  %v3973_v61 = vld [vmem:[#allocation12] sm:$0x1f] }
 0x2c6   :  { %v3832_v5 = vadd.f32 %v714_v57, %v675_v4 }
 0x2c8   :  { %v757_v7 = vpack.c.bf16 %v3832_v5, %v3832_v5 }
 0x2ca   :  { %2508 = vmatmul.mubr.msk.bf16.vlgmr.msra.gmra.mrb[8].mxu0 %vm940_vm2, %v757_v7  ;;  %2509 = vmatmul.mubr.msk.bf16.vlgmr.msra.gmra.mrb[8].mxu1 %vm940_vm2, %v757_v7 }
 0x2cb   :  { %2801 = vmatpush3.bf16.msra.mxu0 %v2947_v6  ;;  %2812 = vmatprep.mubr.msk.bf16.mxu0 %vm3359_vm0, %v3357_v0  ;;  %v1082_v6 = vrot.slane %v3971_v55, %v3743_v44 }
 0x2cc   :  { %2802 = vmatprep.subr.bf16.mxu0 %v3357_v0  ;;  %2664 = vmatpush3.bf16.msra.mxu1 %v2955_v8  ;;  %v1090_v8 = vrot.slane %v3971_v55, %v3749_v47 }
 0x2cd   :  { %2665 = vmatprep.subr.bf16.mxu1 %v2957_v9 }
 0x2cf   :  { %2803 = vmatpush3.bf16.msra.mxu0 %v2948_v10 }
 0x2d0   :  { %2804 = vmatprep.subr.bf16.mxu0 %v3357_v0  ;;  %2666 = vmatpush3.bf16.msra.mxu1 %v2959_v11 }
 0x2d1   :  { %2667 = vmatprep.subr.bf16.mxu1 %v2961_v12  ;;  %v1086_v12 = vrot.slane %v3971_v55, %v3746_v46 }
 0x2d3   :  { %2805 = vmatpush3.bf16.msra.mxu0 %v2949_v13 }
 0x2d4   :  { %2806 = vmatprep.subr.bf16.mxu0 %v3357_v0  ;;  %2668 = vmatpush3.bf16.msra.mxu1 %v2963_v14  ;;  %v1094_v14 = vrot.slane %v3971_v55, %v3961_v49 }
 0x2d5   :  { %2669 = vmatprep.subr.bf16.mxu1 %v2965_v15 }
 0x2d7   :  { %2807 = vmatpush3.bf16.msra.mxu0 %v2950_v16  ;;  %v1113_v16 = vrot.slane %v3973_v61, %v3743_v44 }
 0x2d8   :  { %2808 = vmatprep.subr.bf16.mxu0 %v3357_v0  ;;  %2670 = vmatpush3.bf16.msra.mxu1 %v2967_v26 }
 0x2d9   :  { %2671 = vmatprep.subr.bf16.mxu1 %v2969_v28 }
 0x2db   :  { %2809 = vmatpush3.bf16.msra.mxu0 %v2951_v17 }
 0x2dc   :  { %2810 = vmatprep.subr.bf16.mxu0 %v3357_v0  ;;  %2672 = vmatpush3.bf16.msra.mxu1 %v2971_v30 }
 0x2dd   :  { %2673 = vmatprep.subr.bf16.mxu1 %v2973_v32 }
 0x2df   :  { %2811 = vmatpush3.bf16.msra.mxu0 %v2952_v18  ;;  %v1121_v18 = vrot.slane %v3973_v61, %v3749_v47 }
 0x2e0   :  { %2685 = vmatprep.subr.bf16.mxu0 %v2954_v19  ;;  %2674 = vmatpush3.bf16.msra.mxu1 %v2975_v34 }
 0x2e1   :  { %2675 = vmatprep.subr.bf16.mxu1 %v2977_v36 }
 0x2e2   :  { %2813 = vmatmul.mubr.msk.bf16.vlgmr.msra.gmra.mrb[12].mxu0 %vm940_vm2, %v757_v7 }
 0x2e3   :  { %2686 = vmatpush3.bf16.msra.mxu0 %v2956_v20 }
 0x2e4   :  { %2687 = vmatprep.subr.bf16.mxu0 %v2958_v21  ;;  %2676 = vmatpush3.bf16.msra.mxu1 %v2979_v38  ;;  %v1117_v21 = vrot.slane %v3973_v61, %v3746_v46 }
 0x2e5   :  { %2677 = vmatprep.subr.bf16.mxu1 %v2981_v40 }
 0x2e7   :  { %2688 = vmatpush3.bf16.msra.mxu0 %v2960_v22  ;;  %v1125_v22 = vrot.slane %v3973_v61, %v3961_v49 }
 0x2e8   :  { %2689 = vmatprep.subr.bf16.mxu0 %v2962_v23  ;;  %2678 = vmatpush3.bf16.msra.mxu1 %v2983_v42 }
 0x2e9   :  { %2816 = vmatprep.subr.bf16.mxu1 %v3357_v0 }
 0x2eb   :  { %2690 = vmatpush3.bf16.msra.mxu0 %v2964_v24 }
 0x2ec   :  { %2691 = vmatprep.subr.bf16.mxu0 %v2966_v25 }
 0x2ef   :  { %2692 = vmatpush3.bf16.msra.mxu0 %v2968_v27 }
 0x2f0   :  { %2693 = vmatprep.subr.bf16.mxu0 %v2970_v29 }
 0x2f3   :  { %2694 = vmatpush3.bf16.msra.mxu0 %v2972_v31 }
 0x2f4   :  { %2695 = vmatprep.subr.bf16.mxu0 %v2974_v33 }
 0x2f7   :  { %2696 = vmatpush3.bf16.msra.mxu0 %v2976_v35 }
 0x2f8   :  { %2697 = vmatprep.subr.bf16.mxu0 %v2978_v37 }
 0x2fb   :  { %2698 = vmatpush3.bf16.msra.mxu0 %v2980_v39 }
 0x2fc   :  { %2699 = vmatprep.subr.bf16.mxu0 %v2982_v41  ;;  %v2985_v41 = vld [vmem:[%s4293_s11 + $0x100] sm:$0xff]  }
 0x2ff   :  { %2700 = vmatpush3.bf16.msra.mxu0 %v2984_v45 }
 0x39d   :  { %v978_v54 = vpop.f32.mrb[8].mxu0  ;;  %v1019_v56 = vpop.f32.mrb[8].mxu1 }
 0x39e   :  { %v979_v57 = vadd.f32 %v978_v54, %v762_v50  ;;  %v1020_v58 = vadd.f32 %v1019_v56, %v770_v51  ;;  %v980_v59 = vpop.f32.mrb[9].mxu0  ;;  %v1021_v60 = vpop.f32.mrb[9].mxu1  ;;  %v3995_v50 = vsub.s32 4, %v3740_v43  ;;  %v2986_v51 = vld [vmem:[%s4293_s11 + $0x108] sm:$0xff]  }
 0x39f   :  { %v981_v62 = vadd.f32 %v980_v59, %v766_v52  ;;  %v1022_v63 = vadd.f32 %v1021_v60, %v774_v53  ;;  %v982_v2 = vpop.f32.mrb[10].mxu0  ;;  %v1023_v3 = vpop.f32.mrb[10].mxu1  ;;  %v2987_v53 = vld [vmem:[%s4293_s11 + $0x110] sm:$0xff]   ;;  %v2988_v60 = vld [vmem:[%s4293_s11 + $0x118] sm:$0xff]  }
 0x3a0   :  { %v1066_v4 = vmax.f32 %v979_v57, 0.0  ;;  %v1068_v7 = vmax.f32 %v1020_v58, 0.0  ;;  %v983_v9 = vpop.f32.mrb[11].mxu0  ;;  %v1024_v10 = vpop.f32.mrb[11].mxu1  ;;  %v778_v52 = vrot.slane %v3958_v48, %v3995_v50  ;;  %v1098_v59 = vrot.slane %v3971_v55, %v3995_v50  ;;  %v2991_v55 = vld [vmem:[%s4295_s13 + $0x4] ss:$20 sps:$4 sm:$0xff]  }
 0x3a1   :  { %v1067_v11 = vmax.f32 %v981_v62, 0.0  ;;  %v1069_v13 = vmax.f32 %v1022_v63, 0.0  ;;  %v1129_v63 = vrot.slane %v3973_v61, %v3995_v50  ;;  %v2989_v61 = vld [vmem:[%s4295_s13] ss:$20 sps:$4 sm:$0xff]   ;;  %v2992_v9 = vld [vmem:[%s4295_s13 + $0x8] ss:$20 sps:$4 sm:$0xff]  }
 0x3a2   :  { %v1071_v15 = vmin.f32 %v1066_v4, 6.0  ;;  %v1073_v17 = vmin.f32 %v1068_v7, 6.0  ;;  %v2995_v10 = vld [vmem:[%s4295_s13 + $0x28] ss:$20 sps:$4 sm:$0xff]  }
 0x3a3   :  { %v1072_v19 = vmin.f32 %v1067_v11, 6.0  ;;  %v1074_v20 = vmin.f32 %v1069_v13, 6.0  ;;  %v3000_v11 = vld [vmem:[%s4295_s13 + $0x34] ss:$20 sps:$4 sm:$0xff]  }
 0x3a4   :  { %v1104_v23 = vmul.f32 %v1082_v6, %v1071_v15  ;;  %v1106_v24 = vmul.f32 %v1090_v8, %v1073_v17  ;;  %v2994_v8 = vld [vmem:[%s4295_s13 + $0xc] ss:$20 sps:$4 sm:$0xff]   ;;  %v3003_v13 = vld [vmem:[%s4295_s13 + $0x54] ss:$20 sps:$4 sm:$0xff]   ;;  %v3001_v15 = vld [vmem:[%s4295_s13 + $0x50] ss:$20 sps:$4 sm:$0xff]  }
 0x3a5   :  { %v1105_v25 = vmul.f32 %v1086_v12, %v1072_v19  ;;  %v1107_v26 = vmul.f32 %v1094_v14, %v1074_v20  ;;  %1838 = vmatprep.subr.bf16.mxu0 %v2994_v8  ;;  %v2998_v12 = vld [vmem:[%s4295_s13 + $0x30] ss:$20 sps:$4 sm:$0xff]   ;;  %v3007_v19 = vld [vmem:[%s4295_s13 + $0x78] ss:$20 sps:$4 sm:$0xff]   ;;  %v3010_v20 = vld [vmem:[%s4295_s13 + $0x80] ss:$20 sps:$4 sm:$0xff]  }
 0x3a6   :  { %v1135_v27 = vadd.f32 %v1113_v16, %v1104_v23  ;;  %v1137_v28 = vadd.f32 %v1121_v18, %v1106_v24  ;;  %v3006_v14 = vld [vmem:[%s4295_s13 + $0x5c] ss:$20 sps:$4 sm:$0xff]   ;;  %v3004_v16 = vld [vmem:[%s4295_s13 + $0x58] ss:$20 sps:$4 sm:$0xff]   ;;  %v3013_v23 = vld [vmem:[%s4295_s13 + $0xa0] ss:$20 sps:$4 sm:$0xff]  }
 0x3a7   :  { %v1136_v29 = vadd.f32 %v1117_v21, %v1105_v25  ;;  %v1138_v30 = vadd.f32 %v1125_v22, %v1107_v26  ;;  %v3009_v17 = vld [vmem:[%s4295_s13 + $0x7c] ss:$20 sps:$4 sm:$0xff]   ;;  %v3012_v18 = vld [vmem:[%s4295_s13 + $0x84] ss:$20 sps:$4 sm:$0xff]   ;;  %v3018_v22 = vld [vmem:[%s4295_s13 + $0xac] ss:$20 sps:$4 sm:$0xff]  }
 0x3a8   :  { %v1140_v31 = vmax.f32 %v1135_v27, 0.0  ;;  %v1142_v32 = vmax.f32 %v1137_v28, 0.0  ;;  %v3015_v21 = vld [vmem:[%s4295_s13 + $0xa4] ss:$20 sps:$4 sm:$0xff]   ;;  %v3016_v24 = vld [vmem:[%s4295_s13 + $0xa8] ss:$20 sps:$4 sm:$0xff]  }
 0x3a9   :  { %v1141_v33 = vmax.f32 %v1136_v29, 0.0  ;;  %v1143_v34 = vmax.f32 %v1138_v30, 0.0  ;;  %v3021_v25 = vld [vmem:[%s4295_s13 + $0xcc] ss:$20 sps:$4 sm:$0xff]   ;;  %v3019_v26 = vld [vmem:[%s4295_s13 + $0xc8] ss:$20 sps:$4 sm:$0xff]  }
 0x3aa   :  { %v1145_v35 = vmin.f32 %v1140_v31, 6.0  ;;  %v1147_v36 = vmin.f32 %v1142_v32, 6.0  ;;  %v3024_v27 = vld [vmem:[%s4295_s13 + $0xd4] ss:$20 sps:$4 sm:$0xff]   ;;  %v3022_v28 = vld [vmem:[%s4295_s13 + $0xd0] ss:$20 sps:$4 sm:$0xff]  }
 0x3ab   :  { %v1146_v37 = vmin.f32 %v1141_v33, 6.0  ;;  %v1148_v38 = vmin.f32 %v1143_v34, 6.0  ;;  %v3031_v29 = vld [vmem:[%s4299_s17 + $0x40] sm:$0xff]   ;;  %v3038_v8 = vld [vmem:[%s4299_s17 + $0x88] sm:$0xff]  }
 0x3ac   :  { %v1223_v42 = vpack.c.bf16 %v1145_v35, %v1145_v35  ;;  %v1225_v45 = vpack.c.bf16 %v1147_v36, %v1147_v36  ;;  %v2511_v32 = vld [vmem:[#allocation13] ss:$0 sm:$0xff] }
 0x3ad   :  { %v1224_v39 = vpack.c.bf16 %v1146_v37, %v1146_v37  ;;  %v1226_v40 = vpack.c.bf16 %v1148_v38, %v1148_v38 }
 0x3af   :  { %1485 = vmatprep.mubr.bf16.mxu1 %v1224_v39  ;;  %1525 = vmatprep.mubr.bf16.mxu0 %v1226_v40 }
 0x3b0   :  { %1486 = vmatmul.mubr.bf16.vlgmr.msra.gmra.mrb[12].mxu1 %v1223_v42  ;;  %1526 = vmatmul.mubr.bf16.vlgmr.msra.gmra.mrb[16].mxu0 %v1225_v45 }
 0x3b1   :  { %2817 = vmatpush3.bf16.msra.mxu1 %v2985_v41  ;;  %2824 = vmatprep.mubr.msk.bf16.mxu1 %vm3359_vm0, %v3357_v0 }
 0x3b2   :  { %2818 = vmatprep.subr.bf16.mxu1 %v3357_v0  ;;  %1870 = vmatprep.mubr.bf16.mxu0 %v3358_v1 }
 0x3b3   :  { %1839 = vmatpush1.bf16.msra.mxu0 %v2992_v9  ;;  %v3040_v9 = vld [vmem:[%s4299_s17 + $0xd0] sm:$0xff]  }
 0x3b4   :  { %1840 = vmatprep.subr.bf16.mxu0 %v3000_v11  ;;  %v3045_v11 = vld [vmem:[%s4299_s17 + $0x18] sm:$0xff]  }
 0x3b5   :  { %v1060_v43 = vpop.f32.mrb[12].mxu0  ;;  %2819 = vmatpush3.bf16.msra.mxu1 %v2986_v51 }
 0x3b6   :  { %v1061_v54 = vadd.f32 %v1060_v43, %v778_v52  ;;  %v2814_v56 = vpop.f32.mrb[13].mxu0  ;;  %2820 = vmatprep.subr.bf16.mxu1 %v3357_v0 }
 0x3b7   :  { %v1063_v57 = vpop.f32.mrb[14].mxu0  ;;  %1841 = vmatpush1.bf16.msra.mxu0 %v2998_v12  ;;  %v3025_v56 = vld [vmem:[%s4295_s13 + $0x10] ss:$20 sps:$4 sm:$0xff]   ;;  %v3046_v12 = vld [vmem:[%s4299_s17 + $0x98] sm:$0xff]  }
 0x3b8   :  { %v1070_v58 = vmax.f32 %v1061_v54, 0.0  ;;  %v2815_v48 = vpop.f32.mrb[15].mxu0  ;;  %1842 = vmatprep.subr.bf16.mxu0 %v3006_v14  ;;  %v3048_v14 = vld [vmem:[%s4299_s17 + $0xe0] sm:$0xff]  }
 0x3b9   :  { %2821 = vmatpush3.bf16.msra.mxu1 %v2987_v53  ;;  %v3037_v48 = vld [vmem:[%s4299_s17 + $0x8] sm:$0xff]  }
 0x3ba   :  { %v1075_v62 = vmin.f32 %v1070_v58, 6.0  ;;  %2822 = vmatprep.subr.bf16.mxu1 %v3357_v0  ;;  %v3033_v58 = vld [vmem:[%s4299_s17] sm:$0xff]  }
 0x3bb   :  { %1843 = vmatpush1.bf16.msra.mxu0 %v3004_v16  ;;  %v3050_v16 = vld [vmem:[%s4299_s17 + $0xa0] sm:$0xff]  }
 0x3bc   :  { %v1108_v2 = vmul.f32 %v1098_v59, %v1075_v62  ;;  %1844 = vmatprep.subr.bf16.mxu0 %v3012_v18  ;;  %v3035_v59 = vld [vmem:[%s4299_s17 + $0x48] sm:$0xff]   ;;  %v3027_v62 = vld [vmem:[%s4295_s13 + $0x60] ss:$20 sps:$4 sm:$0xff]  }
 0x3bd   :  { %2823 = vmatpush3.bf16.msra.mxu1 %v2988_v60  ;;  %v3039_v60 = vld [vmem:[%s4299_s17 + $0x50] sm:$0xff]   ;;  %v3052_v18 = vld [vmem:[%s4299_s17 + $0xe8] sm:$0xff]  }
 0x3be   :  { %v1139_v3 = vadd.f32 %v1129_v63, %v1108_v2  ;;  %1797 = vmatprep.subr.bf16.mxu1 %v2991_v55  ;;  %v3041_v63 = vld [vmem:[%s4299_s17 + $0x10] sm:$0xff]   ;;  %v3043_v2 = vld [vmem:[%s4299_s17 + $0x58] sm:$0xff]   ;;  %v3034_v55 = vld [vmem:[%s4299_s17 + $0x80] sm:$0xff]  }
 0x3bf   :  { %1845 = vmatpush1.bf16.msra.mxu0 %v3010_v20  ;;  %v3054_v20 = vld [vmem:[%s4299_s17 + $0xa8] sm:$0xff]  }
 0x3c0   :  { %v1144_v4 = vmax.f32 %v1139_v3, 0.0  ;;  %1846 = vmatprep.subr.bf16.mxu0 %v3018_v22  ;;  %v3028_v3 = vld [vmem:[%s4295_s13 + $0x88] ss:$20 sps:$4 sm:$0xff]   ;;  %v3056_v22 = vld [vmem:[%s4299_s17 + $0xf0] sm:$0xff]  }
 0x3c2   :  { %v1149_v6 = vmin.f32 %v1144_v4, 6.0  ;;  %v3029_v4 = vld [vmem:[%s4295_s13 + $0xb0] ss:$20 sps:$4 sm:$0xff]  }
 0x3c3   :  { %1847 = vmatpush1.bf16.msra.mxu0 %v3016_v24  ;;  %v3058_v24 = vld [vmem:[%s4299_s17 + $0xb0] sm:$0xff]  }
 0x3c4   :  { %v1227_v7 = vpack.c.bf16 %v1149_v6, %v1149_v6  ;;  %1848 = vmatprep.subr.bf16.mxu0 %v3024_v27  ;;  %v3030_v6 = vld [vmem:[%s4295_s13 + $0xd8] ss:$20 sps:$4 sm:$0xff]  }
 0x3c5   :  { %v3061_v27 = vld [vmem:[%s4299_s17 + $0x38] sm:$0xff]  }
 0x3c6   :  { %2825 = vmatmul.mubr.msk.bf16.vlgmr.msra.gmra.mrb[16].mxu1 %vm301_vm1, %v1227_v7  ;;  %v3032_v7 = vld [vmem:[%s4299_s17 + $0xc0] sm:$0xff]  }
 0x3c7   :  { %1829 = vmatprep.mubr.bf16.mxu1 %v3358_v1  ;;  %v2997_v1 = vld [vmem:[%s4295_s13 + $0x2c] ss:$20 sps:$4 sm:$0xff]   ;;  %1798 = vmatpush1.bf16.msra.mxu1 %v2989_v61 }
 0x3c8   :  { %1799 = vmatprep.subr.bf16.mxu1 %v2997_v1  ;;  %1849 = vmatpush1.bf16.msra.mxu0 %v3022_v28  ;;  %v3036_v61 = vld [vmem:[%s4299_s17 + $0xc8] sm:$0xff]   ;;  %v3042_v1 = vld [vmem:[%s4299_s17 + $0x90] sm:$0xff]   ;;  %v3062_v28 = vld [vmem:[%s4299_s17 + $0xb8] sm:$0xff]  }
 0x3c9   :  { %2719 = vmatprep.subr.bf16.mxu0 %v3031_v29  ;;  %v4223_v29 = vld [vmem:[#allocation15] sm:$0x1f] }
 0x3cb   :  { %1800 = vmatpush1.bf16.msra.mxu1 %v2995_v10  ;;  %v3044_v10 = vld [vmem:[%s4299_s17 + $0xd8] sm:$0xff]  }
 0x3cc   :  { %1801 = vmatprep.subr.bf16.mxu1 %v3003_v13  ;;  %v3047_v13 = vld [vmem:[%s4299_s17 + $0x60] sm:$0xff]  }
 0x3cf   :  { %1802 = vmatpush1.bf16.msra.mxu1 %v3001_v15  ;;  %v3049_v15 = vld [vmem:[%s4299_s17 + $0x20] sm:$0xff]  }
 0x3d0   :  { %1803 = vmatprep.subr.bf16.mxu1 %v3009_v17  ;;  %v3051_v17 = vld [vmem:[%s4299_s17 + $0x68] sm:$0xff]  }
 0x3d3   :  { %1804 = vmatpush1.bf16.msra.mxu1 %v3007_v19  ;;  %v3053_v19 = vld [vmem:[%s4299_s17 + $0x28] sm:$0xff]  }
 0x3d4   :  { %1805 = vmatprep.subr.bf16.mxu1 %v3015_v21  ;;  %v3055_v21 = vld [vmem:[%s4299_s17 + $0x70] sm:$0xff]  }
 0x3d7   :  { %1806 = vmatpush1.bf16.msra.mxu1 %v3013_v23  ;;  %v3057_v23 = vld [vmem:[%s4299_s17 + $0x30] sm:$0xff]  }
 0x3d8   :  { %1807 = vmatprep.subr.bf16.mxu1 %v3021_v25  ;;  %v3059_v25 = vld [vmem:[%s4299_s17 + $0x78] sm:$0xff]  }
 0x3db   :  { %1808 = vmatpush1.bf16.msra.mxu1 %v3019_v26  ;;  %v3060_v26 = vld [vmem:[%s4299_s17 + $0xf8] sm:$0xff]  }
 0x3dc   :  { %2828 = vmatprep.subr.bf16.mxu1 %v3357_v0 }
 0x483   :  { %v2679_v30 = vpop.f32.mrb[12].mxu1  ;;  %v2701_v31 = vpop.f32.mrb[16].mxu0 }
 0x484   :  { %v2680_v33 = vpop.f32.mrb[13].mxu1  ;;  %v2702_v34 = vpop.f32.mrb[17].mxu0 }
 0x485   :  { %v2681_v35 = vadd.f32 %v2680_v33, %v2679_v30  ;;  %v2703_v36 = vadd.f32 %v2702_v34, %v2701_v31  ;;  %v2682_v37 = vpop.f32.mrb[14].mxu1  ;;  %v2704_v38 = vpop.f32.mrb[18].mxu0  ;;  %v1616_v30 = vrot.slane %v4223_v29, %v3743_v44  ;;  %v1624_v31 = vrot.slane %v4223_v29, %v3749_v47 }
 0x486   :  { %v2683_v39 = vpop.f32.mrb[15].mxu1  ;;  %v2705_v40 = vpop.f32.mrb[19].mxu0  ;;  %v1628_v33 = vrot.slane %v4223_v29, %v3961_v49 }
 0x487   :  { %v1488_v41 = vadd.f32 %v2681_v35, %v2511_v32  ;;  %v1620_v32 = vrot.slane %v4223_v29, %v3746_v46  ;;  %v4233_v35 = vld [vmem:[#allocation16] sm:$0x1f] }
 0x489   :  { %v1528_v42 = vadd.f32 %v2703_v36, %v1488_v41  ;;  %v4235_v41 = vld [vmem:[#allocation18] sm:$0x1f] }
 0x499   :  { %v1567_v45 = vpop.f32.mrb[16].mxu1 }
 0x49a   :  { %v1568_v51 = vadd.f32 %v1567_v45, %v1528_v42  ;;  %v2826_v52 = vpop.f32.mrb[17].mxu1 }
 0x49b   :  { %v1570_v43 = vpop.f32.mrb[18].mxu1 }
 0x49c   :  { %v4097_v53 = vadd.f32 %v1568_v51, %v3832_v5  ;;  %v2827_v54 = vpop.f32.mrb[19].mxu1  ;;  %v3026_v5 = vld [vmem:[%s4295_s13 + $0x38] ss:$20 sps:$4 sm:$0xff]  }
 0x49d   :  { %v1935_v54 = vrot.slane %v4233_v35, %v3743_v44 }
 0x49e   :  { %v1611_v57 = vpack.c.bf16 %v4097_v53, %v4097_v53 }
 0x4a0   :  { %2579 = vmatmul.mubr.msk.bf16.vlgmr.msra.gmra.mrb[20].mxu1 %vm940_vm2, %v1611_v57  ;;  %2580 = vmatmul.mubr.msk.bf16.vlgmr.msra.gmra.mrb[20].mxu0 %vm940_vm2, %v1611_v57 }
 0x4a1   :  { %2829 = vmatpush3.bf16.msra.mxu1 %v3025_v56  ;;  %2840 = vmatprep.mubr.msk.bf16.mxu1 %vm3359_vm0, %v3357_v0 }
 0x4a2   :  { %2830 = vmatprep.subr.bf16.mxu1 %v3357_v0  ;;  %2720 = vmatpush3.bf16.msra.mxu0 %v3033_v58 }
 0x4a3   :  { %2721 = vmatprep.subr.bf16.mxu0 %v3035_v59 }
 0x4a5   :  { %2831 = vmatpush3.bf16.msra.mxu1 %v3026_v5 }
 0x4a6   :  { %2832 = vmatprep.subr.bf16.mxu1 %v3357_v0  ;;  %2722 = vmatpush3.bf16.msra.mxu0 %v3037_v48  ;;  %v1939_v48 = vrot.slane %v4233_v35, %v3746_v46 }
 0x4a7   :  { %2723 = vmatprep.subr.bf16.mxu0 %v3039_v60 }
 0x4a9   :  { %2833 = vmatpush3.bf16.msra.mxu1 %v3027_v62  ;;  %v1947_v62 = vrot.slane %v4233_v35, %v3961_v49 }
 0x4aa   :  { %2834 = vmatprep.subr.bf16.mxu1 %v3357_v0  ;;  %2724 = vmatpush3.bf16.msra.mxu0 %v3041_v63 }
 0x4ab   :  { %2725 = vmatprep.subr.bf16.mxu0 %v3043_v2  ;;  %v1966_v2 = vrot.slane %v4235_v41, %v3743_v44 }
 0x4ad   :  { %2835 = vmatpush3.bf16.msra.mxu1 %v3028_v3 }
 0x4ae   :  { %2836 = vmatprep.subr.bf16.mxu1 %v3357_v0  ;;  %2726 = vmatpush3.bf16.msra.mxu0 %v3045_v11 }
 0x4af   :  { %2727 = vmatprep.subr.bf16.mxu0 %v3047_v13 }
 0x4b1   :  { %2837 = vmatpush3.bf16.msra.mxu1 %v3029_v4  ;;  %v1974_v4 = vrot.slane %v4235_v41, %v3749_v47 }
 0x4b2   :  { %2838 = vmatprep.subr.bf16.mxu1 %v3357_v0  ;;  %2728 = vmatpush3.bf16.msra.mxu0 %v3049_v15 }
 0x4b3   :  { %2729 = vmatprep.subr.bf16.mxu0 %v3051_v17 }
 0x4b5   :  { %2839 = vmatpush3.bf16.msra.mxu1 %v3030_v6 }
 0x4b6   :  { %2741 = vmatprep.subr.bf16.mxu1 %v3032_v7  ;;  %2730 = vmatpush3.bf16.msra.mxu0 %v3053_v19 }
 0x4b7   :  { %2731 = vmatprep.subr.bf16.mxu0 %v3055_v21 }
 0x4b8   :  { %2841 = vmatmul.mubr.msk.bf16.vlgmr.msra.gmra.mrb[24].mxu1 %vm940_vm2, %v1611_v57  ;;  %v1943_v57 = vrot.slane %v4233_v35, %v3749_v47 }
 0x4b9   :  { %2742 = vmatpush3.bf16.msra.mxu1 %v3034_v55  ;;  %v1970_v55 = vrot.slane %v4235_v41, %v3746_v46 }
 0x4ba   :  { %2743 = vmatprep.subr.bf16.mxu1 %v3036_v61  ;;  %2732 = vmatpush3.bf16.msra.mxu0 %v3057_v23  ;;  %v1978_v61 = vrot.slane %v4235_v41, %v3961_v49  ;;  %v3063_v49 = vld [vmem:[%s4299_s17 + $0x100] sm:$0xff]  }
 0x4bb   :  { %2733 = vmatprep.subr.bf16.mxu0 %v3059_v25  ;;  %v1632_v25 = vrot.slane %v4223_v29, %v3995_v50  ;;  %v3066_v29 = vld [vmem:[%s4299_s17 + $0x118] sm:$0xff]  }
 0x4bd   :  { %2744 = vmatpush3.bf16.msra.mxu1 %v3038_v8 }
 0x4be   :  { %2745 = vmatprep.subr.bf16.mxu1 %v3040_v9  ;;  %2734 = vmatpush3.bf16.msra.mxu0 %v3061_v27  ;;  %v3065_v27 = vld [vmem:[%s4299_s17 + $0x110] sm:$0xff]  }
 0x4bf   :  { %2844 = vmatprep.subr.bf16.mxu0 %v3357_v0 }
 0x4c1   :  { %2746 = vmatpush3.bf16.msra.mxu1 %v3042_v1 }
 0x4c2   :  { %2747 = vmatprep.subr.bf16.mxu1 %v3044_v10 }
 0x4c5   :  { %2748 = vmatpush3.bf16.msra.mxu1 %v3046_v12 }
 0x4c6   :  { %2749 = vmatprep.subr.bf16.mxu1 %v3048_v14 }
 0x4c9   :  { %2750 = vmatpush3.bf16.msra.mxu1 %v3050_v16 }
 0x4ca   :  { %2751 = vmatprep.subr.bf16.mxu1 %v3052_v18 }
 0x4cd   :  { %2752 = vmatpush3.bf16.msra.mxu1 %v3054_v20 }
 0x4ce   :  { %2753 = vmatprep.subr.bf16.mxu1 %v3056_v22 }
 0x4d1   :  { %2754 = vmatpush3.bf16.msra.mxu1 %v3058_v24  ;;  %v3064_v24 = vld [vmem:[%s4299_s17 + $0x108] sm:$0xff]  }
 0x4d2   :  { %2755 = vmatprep.subr.bf16.mxu1 %v3060_v26 }
 0x4d5   :  { %2756 = vmatpush3.bf16.msra.mxu1 %v3062_v28 }
 0x573   :  { %v1831_v34 = vpop.f32.mrb[20].mxu1  ;;  %v1872_v36 = vpop.f32.mrb[20].mxu0 }
 0x574   :  { %v1832_v37 = vadd.f32 %v1831_v34, %v1616_v30  ;;  %v1873_v38 = vadd.f32 %v1872_v36, %v1624_v31  ;;  %v1833_v39 = vpop.f32.mrb[21].mxu1  ;;  %v1874_v40 = vpop.f32.mrb[21].mxu0 }
 0x575   :  { %v1834_v42 = vadd.f32 %v1833_v39, %v1620_v32  ;;  %v1875_v45 = vadd.f32 %v1874_v40, %v1628_v33  ;;  %v1835_v51 = vpop.f32.mrb[22].mxu1  ;;  %v1876_v52 = vpop.f32.mrb[22].mxu0  ;;  %v1951_v33 = vrot.slane %v4233_v35, %v3995_v50 }
 0x576   :  { %v1919_v43 = vmax.f32 %v1832_v37, 0.0  ;;  %v1921_v56 = vmax.f32 %v1873_v38, 0.0  ;;  %v1836_v58 = vpop.f32.mrb[23].mxu1  ;;  %v1877_v59 = vpop.f32.mrb[23].mxu0  ;;  %v1982_v37 = vrot.slane %v4235_v41, %v3995_v50  ;;  %v2582_v52 = vld [vmem:[#allocation19] ss:$0 sm:$0xff] }
 0x577   :  { %v1920_v5 = vmax.f32 %v1834_v42, 0.0  ;;  %v1922_v60 = vmax.f32 %v1875_v45, 0.0 }
 0x578   :  { %v1924_v63 = vmin.f32 %v1919_v43, 6.0  ;;  %v1926_v3 = vmin.f32 %v1921_v56, 6.0 }
 0x579   :  { %v1925_v6 = vmin.f32 %v1920_v5, 6.0  ;;  %v1927_v7 = vmin.f32 %v1922_v60, 6.0 }
 0x57a   :  { %v1957_v8 = vmul.f32 %v1935_v54, %v1924_v63  ;;  %v1959_v9 = vmul.f32 %v1943_v57, %v1926_v3 }
 0x57b   :  { %v1958_v1 = vmul.f32 %v1939_v48, %v1925_v6  ;;  %v1960_v10 = vmul.f32 %v1947_v62, %v1927_v7 }
 0x57c   :  { %v1988_v11 = vadd.f32 %v1966_v2, %v1957_v8  ;;  %v1990_v12 = vadd.f32 %v1974_v4, %v1959_v9 }
 0x57d   :  { %v1989_v13 = vadd.f32 %v1970_v55, %v1958_v1  ;;  %v1991_v44 = vadd.f32 %v1978_v61, %v1960_v10 }
 0x57e   :  { %v1993_v14 = vmax.f32 %v1988_v11, 0.0  ;;  %v1995_v15 = vmax.f32 %v1990_v12, 0.0 }
 0x57f   :  { %v1994_v16 = vmax.f32 %v1989_v13, 0.0  ;;  %v1996_v47 = vmax.f32 %v1991_v44, 0.0 }
 0x580   :  { %v1998_v17 = vmin.f32 %v1993_v14, 6.0  ;;  %v2000_v18 = vmin.f32 %v1995_v15, 6.0 }
 0x581   :  { %v1999_v19 = vmin.f32 %v1994_v16, 6.0  ;;  %v2001_v20 = vmin.f32 %v1996_v47, 6.0 }
 0x582   :  { %v2076_v22 = vpack.c.bf16 %v1998_v17, %v1998_v17  ;;  %v2078_v23 = vpack.c.bf16 %v2000_v18, %v2000_v18 }
 0x583   :  { %v2077_v46 = vpack.c.bf16 %v1999_v19, %v1999_v19  ;;  %v2079_v21 = vpack.c.bf16 %v2001_v20, %v2001_v20 }
 0x585   :  { %2338 = vmatprep.mubr.bf16.mxu0 %v2077_v46  ;;  %2378 = vmatprep.mubr.bf16.mxu1 %v2079_v21 }
 0x586   :  { %2339 = vmatmul.mubr.bf16.vlgmr.msra.gmra.mrb[24].mxu0 %v2076_v22  ;;  %2379 = vmatmul.mubr.bf16.vlgmr.msra.gmra.mrb[28].mxu1 %v2078_v23 }
 0x587   :  { %2845 = vmatpush3.bf16.msra.mxu0 %v3063_v49  ;;  %2852 = vmatprep.mubr.msk.bf16.mxu0 %vm3359_vm0, %v3357_v0 }
 0x588   :  { %2846 = vmatprep.subr.bf16.mxu0 %v3357_v0 }
 0x58b   :  { %v1913_v26 = vpop.f32.mrb[24].mxu1  ;;  %2847 = vmatpush3.bf16.msra.mxu0 %v3064_v24 }
 0x58c   :  { %v1914_v28 = vadd.f32 %v1913_v26, %v1632_v25  ;;  %v2842_v30 = vpop.f32.mrb[25].mxu1  ;;  %2848 = vmatprep.subr.bf16.mxu0 %v3357_v0 }
 0x58d   :  { %v1916_v31 = vpop.f32.mrb[26].mxu1 }
 0x58e   :  { %v1923_v32 = vmax.f32 %v1914_v28, 0.0  ;;  %v2843_v34 = vpop.f32.mrb[27].mxu1 }
 0x58f   :  { %2849 = vmatpush3.bf16.msra.mxu0 %v3065_v27 }
 0x590   :  { %v1928_v36 = vmin.f32 %v1923_v32, 6.0  ;;  %2850 = vmatprep.subr.bf16.mxu0 %v3357_v0 }
 0x592   :  { %v1961_v38 = vmul.f32 %v1951_v33, %v1928_v36 }
 0x593   :  { %2851 = vmatpush3.bf16.msra.mxu0 %v3066_v29 }
 0x594   :  { %v1992_v39 = vadd.f32 %v1982_v37, %v1961_v38 }
 0x596   :  { %v1997_v40 = vmax.f32 %v1992_v39, 0.0 }
 0x598   :  { %v2002_v42 = vmin.f32 %v1997_v40, 6.0 }
 0x59a   :  { %v2080_v45 = vpack.c.bf16 %v2002_v42, %v2002_v42 }
 0x59c   :  { %2853 = vmatmul.mubr.msk.bf16.vlgmr.msra.gmra.mrb[28].mxu0 %vm301_vm1, %v2080_v45 }
 0x659   :  { %v2735_v35 = vpop.f32.mrb[24].mxu0  ;;  %v2757_v51 = vpop.f32.mrb[28].mxu1 }
 0x65a   :  { %v2736_v43 = vpop.f32.mrb[25].mxu0  ;;  %v2758_v54 = vpop.f32.mrb[29].mxu1 }
 0x65b   :  { %v2737_v56 = vadd.f32 %v2736_v43, %v2735_v35  ;;  %v2759_v57 = vadd.f32 %v2758_v54, %v2757_v51  ;;  %v2738_v58 = vpop.f32.mrb[26].mxu0  ;;  %v2760_v59 = vpop.f32.mrb[30].mxu1 }
 0x65c   :  { %v2739_v50 = vpop.f32.mrb[27].mxu0  ;;  %v2761_v41 = vpop.f32.mrb[31].mxu1 }
 0x65d   :  { %v2341_v0 = vadd.f32 %v2737_v56, %v2582_v52 }
 0x65f   :  { %v2381_v5 = vadd.f32 %v2759_v57, %v2341_v0 }
 0x66f   :  { %v2420_v48 = vpop.f32.mrb[28].mxu0 }
 0x670   :  { %v2421_v60 = vadd.f32 %v2420_v48, %v2381_v5  ;;  %v2854_v62 = vpop.f32.mrb[29].mxu0 }
 0x671   :  { %v2423_v63 = vpop.f32.mrb[30].mxu0 }
 0x672   :  { %v2426_v2 = vadd.f32 %v2421_v60, %v4097_v53  ;;  %v2855_v3 = vpop.f32.mrb[31].mxu0 }
 0x674   :  { %2427 = vst.msk [vmem:[%s4301_s19] sm:$0xff] %vm940_vm2, %v2426_v2 }
 0x675   :  { %2432 = vsyncpa [#allocation3], 1 }
 0x676   :  { %2433 = vsyncpa [#allocation5], 1 }
 0x677   :  { %2434 = vsyncpa [#allocation8], 1 }
 0x678   :  { %2435 = vsyncpa [#allocation11], 1 }
 0x679   :  { %2436 = vsyncpa [#allocation14], 1 }
 0x67a   :  { %2437 = vsyncpa [#allocation17], 1 }
 0x67b   :  { %2438 = vsyncpa [#allocation20], 1 }

// kernel: _lambda_.16
= control target key start
LH: loop header
LB: loop body
LE: loop exit
PB: predicated region body
PF: predicated region fallthrough
CT: control target
= control target key end

     0   :  { %10 = vsyncpa [#allocation3], 0  ;;  %s340_s18 = smov [#allocation2]   ;;  %s449_s0 = inlined_call_operand.vmem [shape: f32[32,32], index: 0, kind: input, shape index: {}]   ;;  %s450_s1 = inlined_call_operand.vmem [shape: f32[32,128], index: 1, kind: input, shape index: {}]   ;;  %s451_s2 = inlined_call_operand.vmem [shape: bf16[32,128], index: 2, kind: input, shape index: {}]   ;;  %s452_s3 = inlined_call_operand.vmem [shape: bf16[128,128], index: 3, kind: input, shape index: {}]   ;;  %s453_s4 = inlined_call_operand.hbm [shape: f32[1,128], index: 4, kind: input, shape index: {}]   ;;  %s454_s5 = inlined_call_operand.vmem [shape: f32[32,128], index: 5, kind: output, shape index: {}]  }
   0x1   :  { %s25_s19 = sshll.u32 %s340_s18, 4  ;;  %s316_s22 = scalar_lea.hbm %s453_s4, 16  ;;  %s26_s19 = int_to_ptr.vmem [resolvable:$true] %s25_s19 }
   0x2   :  { %p317_p0 = scmp.ne.s32.totalorder %s453_s4, %s316_s22  ;;  %p320_p1 = scmp.lt.u32.totalorder %s316_s22, %s453_s4 }
   0x4   :  { %p322_p2 = pnand %p320_p1, %p317_p0 }
   0x6   :  { %325 = shalt.err (!%p322_p2)
}
   0x7   :  { %s326_s27 = scalar_lea.vmem %s26_s19, 16  ;;  %s330_s28 = scalar_lea.vmem %s26_s19, 32 }
   0x8   :  { %p327_p3 = scmp.ne.s32.totalorder %s26_s19, %s326_s27  ;;  %p331_p4 = scmp.lt.s32.totalorder %s26_s19, %s26_s19 }
   0x9   :  { %p332_p5 = scmp.lt.s32.totalorder %s330_s28, %s326_s27 }
   0xb   :  { %p333_p6 = por %p332_p5, %p331_p4 }
   0xd   :  { %p334_p7 = pnand %p333_p6, %p327_p3 }
   0xf   :  { %337 = shalt.err (!%p334_p7)
}
  0x10   :  { %28 = dma.hbm_to_vmem [thread:$0]  %s453_s4, 16, %s26_s19, [#allocation3]  }
  0x11   :  { %338 = dma.done.wait [#allocation3], 16  }
  0x12   :  { %339 = vsyncadd [#allocation3], 4294967280  ;;  %v306_v0 = vld [vmem:[%s451_s2] sm:$0xff]   ;;  %v307_v1 = vld [vmem:[%s451_s2 + $0x8] sm:$0xff]   ;;  %vm59_vm0 = vcmask 261120  }
  0x13   :  { %277 = vmatprep.subr.bf16.mxu0 %v306_v0  ;;  %v33_v2 = vld [vmem:[%s449_s0] sm:$0xff]  ;;  %v34_v3 = vld [vmem:[%s449_s0 + $0x8] sm:$0xff]  ;;  %v35_v4 = vld [vmem:[%s449_s0 + $0x10] sm:$0xff] }
  0x14   :  { %278 = vmatpush3.bf16.msra.mxu0 %v306_v0  ;;  %v37_v5 = vpack.c.bf16 %v34_v3, %v33_v2  ;;  %v36_v6 = vld [vmem:[%s449_s0 + $0x18] sm:$0xff]  ;;  %v308_v7 = vld [vmem:[%s452_s3] sm:$0xff]   ;;  %v309_v8 = vld [vmem:[%s452_s3 + $0x8] sm:$0xff]  }
  0x15   :  { %279 = vmatprep.subr.bf16.mxu0 %v307_v1  ;;  %v38_v9 = vpack.c.bf16 %v36_v6, %v35_v4  ;;  %285 = vmatprep.subr.bf16.mxu1 %v308_v7  ;;  %v310_v10 = vld [vmem:[%s452_s3 + $0x10] sm:$0xff]   ;;  %v311_v11 = vld [vmem:[%s452_s3 + $0x18] sm:$0xff]   ;;  %v312_v12 = vld [vmem:[%s452_s3 + $0x20] sm:$0xff]  }
  0x16   :  { %281 = vmatprep.mubr.msk.bf16.mxu0 %vm59_vm0, %v37_v5  ;;  %286 = vmatpush3.bf16.msra.mxu1 %v308_v7  ;;  %v313_v13 = vld [vmem:[%s452_s3 + $0x28] sm:$0xff]   ;;  %v314_v14 = vld [vmem:[%s452_s3 + $0x30] sm:$0xff]   ;;  %v315_v15 = vld [vmem:[%s452_s3 + $0x38] sm:$0xff]  }
  0x17   :  { %287 = vmatprep.subr.bf16.mxu1 %v309_v8  ;;  %v45_v16 = vld [vmem:[%s450_s1 + $0x10] sm:$0xff]  ;;  %v46_v18 = vld [vmem:[%s450_s1 + $0x18] sm:$0xff]  ;;  %v43_v20 = vld [vmem:[%s450_s1] sm:$0xff] }
  0x18   :  { %280 = vmatpush3.bf16.msra.mxu0 %v307_v1  ;;  %v44_v21 = vld [vmem:[%s450_s1 + $0x8] sm:$0xff]  ;;  %v254_v30 = vld [vmem:[#allocation2] ss:$0 sm:$0xff] }
  0x1a   :  { %288 = vmatpush3.bf16.msra.mxu1 %v309_v8 }
  0x1b   :  { %282 = vmatmul.mubr.msk.bf16.vlgmr.msra.gmra.mrb[0].mxu0 %vm59_vm0, %v38_v9  ;;  %289 = vmatprep.subr.bf16.mxu1 %v310_v10 }
  0x1e   :  { %290 = vmatpush3.bf16.msra.mxu1 %v310_v10 }
  0x1f   :  { %291 = vmatprep.subr.bf16.mxu1 %v311_v11 }
  0x22   :  { %292 = vmatpush3.bf16.msra.mxu1 %v311_v11 }
  0x23   :  { %293 = vmatprep.subr.bf16.mxu1 %v312_v12 }
  0x26   :  { %294 = vmatpush3.bf16.msra.mxu1 %v312_v12 }
  0x27   :  { %295 = vmatprep.subr.bf16.mxu1 %v313_v13 }
  0x2a   :  { %296 = vmatpush3.bf16.msra.mxu1 %v313_v13 }
  0x2b   :  { %297 = vmatprep.subr.bf16.mxu1 %v314_v14 }
  0x2e   :  { %298 = vmatpush3.bf16.msra.mxu1 %v314_v14 }
  0x2f   :  { %299 = vmatprep.subr.bf16.mxu1 %v315_v15 }
  0x32   :  { %300 = vmatpush3.bf16.msra.mxu1 %v315_v15 }
  0xee   :  { %v283_v17 = vpop.f32.mrb[0].mxu0 }
  0xef   :  { %v100_v19 = vpop.f32.mrb[1].mxu0  ;;  %v109_v23 = vadd.f32 %v283_v17, %v45_v16 }
  0xf0   :  { %v284_v22 = vpop.f32.mrb[2].mxu0  ;;  %v101_v26 = vadd.f32 %v100_v19, %v43_v20 }
  0xf1   :  { %v112_v24 = vadd.f32 %v284_v22, %v46_v18  ;;  %v103_v25 = vpop.f32.mrb[3].mxu0 }
  0xf2   :  { %v104_v27 = vadd.f32 %v103_v25, %v44_v21 }
  0xf3   :  { %v116_v28 = vpack.c.bf16 %v112_v24, %v109_v23 }
  0xf4   :  { %v115_v29 = vpack.c.bf16 %v104_v27, %v101_v26 }
  0xf6   :  { %301 = vmatprep.mubr.bf16.mxu1 %v115_v29 }
  0xf7   :  { %302 = vmatmul.mubr.bf16.vlgmr.msra.gmra.mrb[0].mxu1 %v116_v28 }
 0x1ca   :  { %v303_v31 = vpop.f32.mrb[0].mxu1 }
 0x1cb   :  { %v231_v32 = vadd.f32 %v303_v31, %v254_v30  ;;  %v222_v33 = vpop.f32.mrb[1].mxu1 }
 0x1cc   :  { %v223_v34 = vadd.f32 %v254_v30, %v222_v33  ;;  %v304_v35 = vpop.f32.mrb[2].mxu1 }
 0x1cd   :  { %v239_v36 = vmax.f32 %v231_v32, 0.0  ;;  %v234_v37 = vadd.f32 %v304_v35, %v254_v30  ;;  %v225_v38 = vpop.f32.mrb[3].mxu1 }
 0x1ce   :  { %v237_v39 = vmax.f32 %v223_v34, 0.0  ;;  %v226_v40 = vadd.f32 %v254_v30, %v225_v38 }
 0x1cf   :  { %243 = vst [vmem:[%s454_s5 + $0x10] sm:$0xff] %v239_v36  ;;  %v240_v41 = vmax.f32 %v234_v37, 0.0 }
 0x1d0   :  { %241 = vst [vmem:[%s454_s5] sm:$0xff] %v237_v39  ;;  %v238_v42 = vmax.f32 %v226_v40, 0.0 }
 0x1d1   :  { %244 = vst [vmem:[%s454_s5 + $0x18] sm:$0xff] %v240_v41 }
 0x1d2   :  { %242 = vst [vmem:[%s454_s5 + $0x8] sm:$0xff] %v238_v42 }
 0x1d3   :  { %249 = vsyncpa [#allocation3], 1 }

// kernel: _lambda_.14
= control target key start
LH: loop header
LB: loop body
LE: loop exit
PB: predicated region body
PF: predicated region fallthrough
CT: control target
= control target key end

     0   :  { %21 = vsyncpa [#allocation3], 0  ;;  %s5108_s0 = inlined_call_operand.vmem [shape: f32[8,96], index: 0, kind: input, shape index: {}]   ;;  %s5109_s1 = inlined_call_operand.vmem [shape: bf16[96,576], index: 1, kind: input, shape index: {}]   ;;  %s5110_s2 = inlined_call_operand.hbm [shape: f32[1,576], index: 2, kind: input, shape index: {}]   ;;  %s5111_s3 = inlined_call_operand.hbm [shape: f32[1,576], index: 3, kind: input, shape index: {}]   ;;  %s5112_s4 = inlined_call_operand.hbm [shape: f32[1,576], index: 4, kind: input, shape index: {}]   ;;  %s5113_s5 = inlined_call_operand.vmem [shape: bf16[576,160], index: 5, kind: input, shape index: {}]   ;;  %s5114_s6 = inlined_call_operand.hbm [shape: f32[1,160], index: 6, kind: input, shape index: {}]   ;;  %s5115_s7 = inlined_call_operand.vmem [shape: bf16[160,960], index: 7, kind: input, shape index: {}]   ;;  %s5116_s8 = inlined_call_operand.vmem [shape: f32[1,960], index: 8, kind: input, shape index: {}]   ;;  %s5117_s9 = inlined_call_operand.vmem [shape: f32[1,960], index: 9, kind: input, shape index: {}]   ;;  %s5118_s10 = inlined_call_operand.vmem [shape: f32[1,960], index: 10, kind: input, shape index: {}]   ;;  %s5119_s11 = inlined_call_operand.vmem [shape: bf16[960,160], index: 11, kind: input, shape index: {}]   ;;  %s5120_s12 = inlined_call_operand.hbm [shape: f32[1,160], index: 12, kind: input, shape index: {}]   ;;  %s5121_s13 = inlined_call_operand.vmem [shape: bf16[160,128], index: 13, kind: input, shape index: {}]   ;;  %s5122_s14 = inlined_call_operand.hbm [shape: f32[8,160], index: 14, kind: output, shape index: {0}]   ;;  %s5123_s15 = inlined_call_operand.vmem [shape: f32[8,128], index: 15, kind: output, shape index: {1}]  }
   0x1   :  { %22 = vsyncpa [#allocation6], 0 }
   0x2   :  { %23 = vsyncpa [#allocation9], 0 }
   0x3   :  { %24 = vsyncpa [#allocation4], 0  ;;  %s3842_s18 = smov [#allocation5]   ;;  %s3843_s20 = smov [#allocation8]  }
   0x4   :  { %s45_s19 = sshll.u32 %s3842_s18, 4  ;;  %s67_s21 = sshll.u32 %s3843_s20, 4  ;;  %s46_s19 = int_to_ptr.vmem [resolvable:$true] %s45_s19  ;;  %s68_s21 = int_to_ptr.vmem [resolvable:$true] %s67_s21 }
   0x5   :  { %s3702_s24 = scalar_lea.hbm %s5111_s3, 80 }
   0x6   :  { %p3703_p0 = scmp.ne.s32.totalorder %s5111_s3, %s3702_s24  ;;  %p3706_p1 = scmp.lt.u32.totalorder %s3702_s24, %s5111_s3 }
   0x8   :  { %p3708_p2 = pnand %p3706_p1, %p3703_p0 }
   0xa   :  { %3711 = shalt.err (!%p3708_p2)
}
   0xb   :  { %s3712_s29 = scalar_lea.vmem %s46_s19, 80  ;;  %s3716_s30 = scalar_lea.vmem %s46_s19, 96 }
   0xc   :  { %p3713_p3 = scmp.ne.s32.totalorder %s46_s19, %s3712_s29  ;;  %p3717_p4 = scmp.lt.s32.totalorder %s46_s19, %s46_s19 }
   0xd   :  { %p3718_p5 = scmp.lt.s32.totalorder %s3716_s30, %s3712_s29 }
   0xf   :  { %p3719_p6 = por %p3718_p5, %p3717_p4 }
  0x11   :  { %p3720_p7 = pnand %p3719_p6, %p3713_p3 }
  0x13   :  { %3723 = shalt.err (!%p3720_p7)
}
  0x14   :  { %48 = dma.hbm_to_vmem [thread:$0]  %s5111_s3, 80, %s46_s19, [#allocation6]  }
  0x15   :  { %s3724_s22 = scalar_lea.hbm %s5114_s6, 32 }
  0x16   :  { %p3725_p8 = scmp.ne.s32.totalorder %s5114_s6, %s3724_s22  ;;  %p3728_p9 = scmp.lt.u32.totalorder %s3724_s22, %s5114_s6 }
  0x18   :  { %p3730_p10 = pnand %p3728_p9, %p3725_p8 }
  0x1a   :  { %3733 = shalt.err (!%p3730_p10)
}
  0x1b   :  { %s3734_s27 = scalar_lea.vmem %s68_s21, 32  ;;  %p3739_p12 = scmp.lt.s32.totalorder %s68_s21, %s68_s21 }
  0x1c   :  { %p3735_p11 = scmp.ne.s32.totalorder %s68_s21, %s3734_s27  ;;  %p3740_p13 = scmp.lt.s32.totalorder %s3734_s27, %s3734_s27 }
  0x1e   :  { %p3741_p0 = por %p3740_p13, %p3739_p12 }
  0x20   :  { %p3742_p1 = pnand %p3741_p0, %p3735_p11 }
  0x22   :  { %3745 = shalt.err (!%p3742_p1)
}
  0x23   :  { %70 = dma.hbm_to_vmem [thread:$0]  %s5114_s6, 32, %s68_s21, [#allocation9]  }
  0x24   :  { %s3844_s28 = smov [#allocation2]   ;;  %s3845_s30 = smov [#allocation7]  }
  0x25   :  { %s35_s29 = sshll.u32 %s3844_s28, 4  ;;  %s55_s16 = sshll.u32 %s3845_s30, 4  ;;  %s36_s29 = int_to_ptr.vmem [resolvable:$true] %s35_s29  ;;  %s56_s16 = int_to_ptr.vmem [resolvable:$true] %s55_s16 }
  0x26   :  { %s3746_s20 = scalar_lea.hbm %s5110_s2, 80 }
  0x27   :  { %p3747_p2 = scmp.ne.s32.totalorder %s5110_s2, %s3746_s20  ;;  %p3750_p3 = scmp.lt.u32.totalorder %s3746_s20, %s5110_s2 }
  0x29   :  { %p3752_p4 = pnand %p3750_p3, %p3747_p2 }
  0x2b   :  { %3755 = shalt.err (!%p3752_p4)
}
  0x2c   :  { %s3756_s6 = scalar_lea.vmem %s36_s29, 80  ;;  %s3760_s21 = scalar_lea.vmem %s36_s29, 96 }
  0x2d   :  { %p3757_p5 = scmp.ne.s32.totalorder %s36_s29, %s3756_s6  ;;  %p3761_p6 = scmp.lt.s32.totalorder %s36_s29, %s36_s29 }
  0x2e   :  { %p3762_p7 = scmp.lt.s32.totalorder %s3760_s21, %s3756_s6 }
  0x30   :  { %p3763_p8 = por %p3762_p7, %p3761_p6 }
  0x32   :  { %p3764_p9 = pnand %p3763_p8, %p3757_p5 }
  0x34   :  { %3767 = shalt.err (!%p3764_p9)
}
  0x35   :  { %38 = dma.hbm_to_vmem [thread:$0]  %s5110_s2, 80, %s36_s29, [#allocation3]  }
  0x36   :  { %s3768_s28 = scalar_lea.hbm %s5112_s4, 80 }
  0x37   :  { %p3769_p10 = scmp.ne.s32.totalorder %s5112_s4, %s3768_s28  ;;  %p3772_p11 = scmp.lt.u32.totalorder %s3768_s28, %s5112_s4 }
  0x39   :  { %p3774_p12 = pnand %p3772_p11, %p3769_p10 }
  0x3b   :  { %3777 = shalt.err (!%p3774_p12)
}
  0x3c   :  { %s3778_s22 = scalar_lea.vmem %s56_s16, 80  ;;  %s3782_s23 = scalar_lea.vmem %s56_s16, 96 }
  0x3d   :  { %p3779_p13 = scmp.ne.s32.totalorder %s56_s16, %s3778_s22  ;;  %p3783_p0 = scmp.lt.s32.totalorder %s56_s16, %s56_s16 }
  0x3e   :  { %p3784_p1 = scmp.lt.s32.totalorder %s3782_s23, %s3778_s22 }
  0x40   :  { %p3785_p2 = por %p3784_p1, %p3783_p0 }
  0x42   :  { %p3786_p3 = pnand %p3785_p2, %p3779_p13 }
  0x44   :  { %3789 = shalt.err (!%p3786_p3)
}
  0x45   :  { %58 = dma.hbm_to_vmem [thread:$0]  %s5112_s4, 80, %s56_s16, [#allocation6]  }
  0x46   :  { %s3846_s24 = smov [#allocation10]   ;;  %s3790_s26 = scalar_lea.hbm %s5120_s12, 32 }
  0x47   :  { %s87_s25 = sshll.u32 %s3846_s24, 4  ;;  %p3791_p4 = scmp.ne.s32.totalorder %s5120_s12, %s3790_s26  ;;  %s88_s25 = int_to_ptr.vmem [resolvable:$true] %s87_s25 }
  0x48   :  { %p3794_p5 = scmp.lt.u32.totalorder %s3790_s26, %s5120_s12 }
  0x4a   :  { %p3796_p6 = pnand %p3794_p5, %p3791_p4 }
  0x4c   :  { %3799 = shalt.err (!%p3796_p6)
}
  0x4d   :  { %s3800_s30 = scalar_lea.vmem %s88_s25, 32  ;;  %p3805_p8 = scmp.lt.s32.totalorder %s88_s25, %s88_s25 }
  0x4e   :  { %p3801_p7 = scmp.ne.s32.totalorder %s88_s25, %s3800_s30  ;;  %p3806_p9 = scmp.lt.s32.totalorder %s3800_s30, %s3800_s30 }
  0x50   :  { %p3807_p10 = por %p3806_p9, %p3805_p8 }
  0x52   :  { %p3808_p11 = pnand %p3807_p10, %p3801_p7 }
  0x54   :  { %3811 = shalt.err (!%p3808_p11)
}
  0x55   :  { %90 = dma.hbm_to_vmem [thread:$0]  %s5120_s12, 32, %s88_s25, [#allocation9]  }
  0x56   :  { %3834 = dma.done.wait [#allocation3], 80  }
  0x57   :  { %3835 = vsyncadd [#allocation3], 4294967216 }
  0x58   :  { %3836 = dma.done.wait [#allocation6], 160  }
  0x59   :  { %3837 = vsyncadd [#allocation6], 4294967136 }
  0x5a   :  { %3838 = dma.done.wait [#allocation9], 64  }
  0x5b   :  { %3839 = vsyncadd [#allocation9], 4294967232  ;;  %v3847_v0 = vmov 0   ;;  %v3362_v1 = vld [vmem:[%s5109_s1 + $0x4] ss:$20 sps:$4 sm:$0xff]   ;;  %vm330_vm0 = vcmask 785408  }
  0x5c   :  { %366 = vmatprep.mubr.bf16.mxu0 %v3847_v0  ;;  %407 = vmatprep.mubr.bf16.mxu1 %v3847_v0  ;;  %v3364_v2 = vld [vmem:[%s5109_s1] ss:$20 sps:$4 sm:$0xff]   ;;  %v3367_v4 = vld [vmem:[%s5109_s1 + $0x28] ss:$20 sps:$4 sm:$0xff]   ;;  %v3370_v6 = vld [vmem:[%s5109_s1 + $0x50] ss:$20 sps:$4 sm:$0xff]  }
  0x5d   :  { %334 = vmatprep.subr.bf16.mxu0 %v3362_v1  ;;  %v3365_v3 = vld [vmem:[%s5109_s1 + $0x2c] ss:$20 sps:$4 sm:$0xff]   ;;  %v3368_v5 = vld [vmem:[%s5109_s1 + $0x54] ss:$20 sps:$4 sm:$0xff]   ;;  %v3371_v7 = vld [vmem:[%s5109_s1 + $0x7c] ss:$20 sps:$4 sm:$0xff]  }
  0x5e   :  { %335 = vmatpush1.bf16.msra.mxu0 %v3364_v2  ;;  %v3380_v8 = vld [vmem:[%s5109_s1 + $0xc] ss:$20 sps:$4 sm:$0xff]   ;;  %v3382_v9 = vld [vmem:[%s5109_s1 + $0x8] ss:$20 sps:$4 sm:$0xff]   ;;  %v3374_v12 = vld [vmem:[%s5109_s1 + $0xa4] ss:$20 sps:$4 sm:$0xff]  }
  0x5f   :  { %336 = vmatprep.subr.bf16.mxu0 %v3365_v3  ;;  %v3373_v10 = vld [vmem:[%s5109_s1 + $0x78] ss:$20 sps:$4 sm:$0xff]   ;;  %v3383_v11 = vld [vmem:[%s5109_s1 + $0x34] ss:$20 sps:$4 sm:$0xff]   ;;  %375 = vmatprep.subr.bf16.mxu1 %v3380_v8  ;;  %v3385_v13 = vld [vmem:[%s5109_s1 + $0x30] ss:$20 sps:$4 sm:$0xff]  }
  0x60   :  { %376 = vmatpush1.bf16.msra.mxu1 %v3382_v9  ;;  %v3386_v14 = vld [vmem:[%s5109_s1 + $0x5c] ss:$20 sps:$4 sm:$0xff]   ;;  %v3376_v15 = vld [vmem:[%s5109_s1 + $0xa0] ss:$20 sps:$4 sm:$0xff]   ;;  %v3388_v17 = vld [vmem:[%s5109_s1 + $0x58] ss:$20 sps:$4 sm:$0xff]  }
  0x61   :  { %377 = vmatprep.subr.bf16.mxu1 %v3383_v11  ;;  %v3377_v16 = vld [vmem:[%s5109_s1 + $0xcc] ss:$20 sps:$4 sm:$0xff]   ;;  %v3389_v18 = vld [vmem:[%s5109_s1 + $0x84] ss:$20 sps:$4 sm:$0xff]   ;;  %v3379_v19 = vld [vmem:[%s5109_s1 + $0xc8] ss:$20 sps:$4 sm:$0xff]  }
  0x62   :  { %337 = vmatpush1.bf16.msra.mxu0 %v3367_v4  ;;  %v109_v20 = vld [vmem:[%s5108_s0] sm:$0xff]  ;;  %v3394_v25 = vld [vmem:[%s5109_s1 + $0xa8] ss:$20 sps:$4 sm:$0xff]   ;;  %v3848_v26 = vmov 0.0   ;;  %v3399_v28 = vld [vmem:[%s5109_s1 + $0x38] ss:$20 sps:$4 sm:$0xff]  }
  0x63   :  { %338 = vmatprep.subr.bf16.mxu0 %v3368_v5  ;;  %v3391_v21 = vld [vmem:[%s5109_s1 + $0x80] ss:$20 sps:$4 sm:$0xff]   ;;  %v147_v23 = vpack.c.bf16 %v109_v20, %v109_v20  ;;  %v3395_v24 = vld [vmem:[%s5109_s1 + $0x10] ss:$20 sps:$4 sm:$0xff]   ;;  %vm3849_vm1 = vmmov 0   ;;  %vm989_vm2 = vcmask 523264  }
  0x64   :  { %378 = vmatpush1.bf16.msra.mxu1 %v3385_v13  ;;  %v3392_v22 = vld [vmem:[%s5109_s1 + $0xac] ss:$20 sps:$4 sm:$0xff]   ;;  %v3396_v27 = vld [vmem:[%s5109_s1 + $0xd4] ss:$20 sps:$4 sm:$0xff]   ;;  %v3398_v29 = vld [vmem:[%s5109_s1 + $0xd0] ss:$20 sps:$4 sm:$0xff]  }
  0x65   :  { %379 = vmatprep.subr.bf16.mxu1 %v3386_v14  ;;  %v3406_v30 = vld [vmem:[%s5113_s5 + $0x4] ss:$8 sps:$4 sm:$0xff]   ;;  %v3400_v31 = vld [vmem:[%s5109_s1 + $0x60] ss:$20 sps:$4 sm:$0xff]   ;;  %v3401_v34 = vld [vmem:[%s5109_s1 + $0x88] ss:$20 sps:$4 sm:$0xff]  }
  0x66   :  { %339 = vmatpush1.bf16.msra.mxu0 %v3370_v6  ;;  %v3404_v32 = vld [vmem:[%s5113_s5] ss:$8 sps:$4 sm:$0xff]   ;;  %v3409_v33 = vld [vmem:[%s5113_s5 + $0x14] ss:$8 sps:$4 sm:$0xff]   ;;  %v3407_v35 = vld [vmem:[%s5113_s5 + $0x10] ss:$8 sps:$4 sm:$0xff]  }
  0x67   :  { %340 = vmatprep.subr.bf16.mxu0 %v3371_v7  ;;  %v3412_v36 = vld [vmem:[%s5113_s5 + $0x24] ss:$8 sps:$4 sm:$0xff]   ;;  %v3410_v38 = vld [vmem:[%s5113_s5 + $0x20] ss:$8 sps:$4 sm:$0xff]   ;;  %v3415_v39 = vld [vmem:[%s5113_s5 + $0x34] ss:$8 sps:$4 sm:$0xff]  }
  0x68   :  { %380 = vmatpush1.bf16.msra.mxu1 %v3388_v17  ;;  %v3402_v37 = vld [vmem:[%s5109_s1 + $0xb0] ss:$20 sps:$4 sm:$0xff]   ;;  %v3403_v40 = vld [vmem:[%s5109_s1 + $0xd8] ss:$20 sps:$4 sm:$0xff]   ;;  %v3416_v43 = vld [vmem:[%s5113_s5 + $0x40] ss:$8 sps:$4 sm:$0xff]  }
  0x69   :  { %381 = vmatprep.subr.bf16.mxu1 %v3389_v18  ;;  %v3413_v41 = vld [vmem:[%s5113_s5 + $0x30] ss:$8 sps:$4 sm:$0xff]   ;;  %v3418_v42 = vld [vmem:[%s5113_s5 + $0x44] ss:$8 sps:$4 sm:$0xff]   ;;  %v3421_v44 = vld [vmem:[%s5113_s5 + $0x54] ss:$8 sps:$4 sm:$0xff]  }
  0x6a   :  { %341 = vmatpush1.bf16.msra.mxu0 %v3373_v10  ;;  %v3419_v45 = vld [vmem:[%s5113_s5 + $0x50] ss:$8 sps:$4 sm:$0xff]   ;;  %v3424_v46 = vld [vmem:[%s5113_s5 + $0x64] ss:$8 sps:$4 sm:$0xff]   ;;  %v3422_v47 = vld [vmem:[%s5113_s5 + $0x60] ss:$8 sps:$4 sm:$0xff]  }
  0x6b   :  { %342 = vmatprep.subr.bf16.mxu0 %v3374_v12  ;;  %v3427_v48 = vld [vmem:[%s5113_s5 + $0x74] ss:$8 sps:$4 sm:$0xff]   ;;  %v3425_v49 = vld [vmem:[%s5113_s5 + $0x70] ss:$8 sps:$4 sm:$0xff]   ;;  %v3430_v50 = vld [vmem:[%s5113_s5 + $0x84] ss:$8 sps:$4 sm:$0xff]  }
  0x6c   :  { %382 = vmatpush1.bf16.msra.mxu1 %v3391_v21  ;;  %v3428_v51 = vld [vmem:[%s5113_s5 + $0x80] ss:$8 sps:$4 sm:$0xff]   ;;  %v3433_v52 = vld [vmem:[%s5113_s5 + $0x94] ss:$8 sps:$4 sm:$0xff]   ;;  %v3431_v53 = vld [vmem:[%s5113_s5 + $0x90] ss:$8 sps:$4 sm:$0xff]  }
  0x6d   :  { %383 = vmatprep.subr.bf16.mxu1 %v3392_v22  ;;  %v3436_v54 = vld [vmem:[%s5113_s5 + $0xa4] ss:$8 sps:$4 sm:$0xff]   ;;  %v3434_v55 = vld [vmem:[%s5113_s5 + $0xa0] ss:$8 sps:$4 sm:$0xff]   ;;  %v3439_v56 = vld [vmem:[%s5113_s5 + $0xb4] ss:$8 sps:$4 sm:$0xff]  }
  0x6e   :  { %343 = vmatpush1.bf16.msra.mxu0 %v3376_v15  ;;  %v3437_v57 = vld [vmem:[%s5113_s5 + $0xb0] ss:$8 sps:$4 sm:$0xff]   ;;  %v3442_v58 = vld [vmem:[%s5113_s5 + $0xc4] ss:$8 sps:$4 sm:$0xff]   ;;  %v3440_v59 = vld [vmem:[%s5113_s5 + $0xc0] ss:$8 sps:$4 sm:$0xff]  }
  0x6f   :  { %344 = vmatprep.subr.bf16.mxu0 %v3377_v16  ;;  %v3445_v60 = vld [vmem:[%s5113_s5 + $0xd4] ss:$8 sps:$4 sm:$0xff]   ;;  %v3443_v61 = vld [vmem:[%s5113_s5 + $0xd0] ss:$8 sps:$4 sm:$0xff]   ;;  %v3448_v62 = vld [vmem:[%s5113_s5 + $0xe4] ss:$8 sps:$4 sm:$0xff]  }
  0x70   :  { %384 = vmatpush1.bf16.msra.mxu1 %v3394_v25  ;;  %v3446_v63 = vld [vmem:[%s5113_s5 + $0xe0] ss:$8 sps:$4 sm:$0xff]   ;;  %v3451_v1 = vld [vmem:[%s5113_s5 + $0xf4] ss:$8 sps:$4 sm:$0xff]   ;;  %v3449_v2 = vld [vmem:[%s5113_s5 + $0xf0] ss:$8 sps:$4 sm:$0xff]  }
  0x71   :  { %385 = vmatprep.subr.bf16.mxu1 %v3396_v27  ;;  %v3454_v3 = vld [vmem:[%s5113_s5 + $0x104] ss:$8 sps:$4 sm:$0xff]   ;;  %vm1640_vm3 = vcmask 261120  }
  0x72   :  { %345 = vmatpush1.bf16.msra.mxu0 %v3379_v19  ;;  %v1116_v4 = vld [vmem:[%s5115_s7] sm:$0xff] }
  0x73   :  { %3327 = vmatprep.subr.bf16.mxu0 %v3848_v26  ;;  %v1120_v5 = vld [vmem:[%s5115_s7 + $0x20] sm:$0xff] }
  0x74   :  { %386 = vmatpush1.bf16.msra.mxu1 %v3398_v29  ;;  %v1124_v6 = vld [vmem:[%s5115_s7 + $0x40] sm:$0xff]  ;;  %v3104_v7 = vcombine.low %v1116_v4, %v1120_v5  ;;  %v3105_v8 = vcombine.high %v1116_v4, %v1120_v5 }
  0x75   :  { %3028 = vmatmul.mubr.msk.bf16.vlgmr.msra.gmra.mrb[0].mxu0 %vm330_vm0, %v147_v23  ;;  %993 = vmatprep.subr.bf16.mxu1 %v3406_v30  ;;  %v1128_v9 = vld [vmem:[%s5115_s7 + $0x60] sm:$0xff] }
  0x76   :  { %3328 = vmatpush3.bf16.msra.mxu0 %v3395_v24  ;;  %3339 = vmatprep.mubr.msk.bf16.mxu0 %vm3849_vm1, %v3848_v26  ;;  %v3113_v10 = vcombine.high %v1124_v6, %v1128_v9  ;;  %v1132_v11 = vld [vmem:[%s5115_s7 + $0x80] sm:$0xff]  ;;  %v3112_v13 = vcombine.low %v1124_v6, %v1128_v9 }
  0x77   :  { %3329 = vmatprep.subr.bf16.mxu0 %v3848_v26  ;;  %3029 = vmatmul.mubr.msk.bf16.vlgmr.msra.gmra.mrb[0].mxu1 %vm330_vm0, %v147_v23  ;;  %v1136_v12 = vld [vmem:[%s5115_s7 + $0xa0] sm:$0xff] }
  0x78   :  { %994 = vmatpush1.bf16.msra.mxu1 %v3404_v32  ;;  %v3121_v14 = vcombine.high %v1132_v11, %v1136_v12  ;;  %v1140_v15 = vld [vmem:[%s5115_s7 + $0xc0] sm:$0xff]  ;;  %v3120_v17 = vcombine.low %v1132_v11, %v1136_v12 }
  0x79   :  { %995 = vmatprep.subr.bf16.mxu1 %v3409_v33  ;;  %v1144_v16 = vld [vmem:[%s5115_s7 + $0xe0] sm:$0xff] }
  0x7a   :  { %3330 = vmatpush3.bf16.msra.mxu0 %v3399_v28  ;;  %v3129_v18 = vcombine.high %v1140_v15, %v1144_v16  ;;  %v1148_v19 = vld [vmem:[%s5115_s7 + $0x100] sm:$0xff]  ;;  %v3128_v21 = vcombine.low %v1140_v15, %v1144_v16 }
  0x7b   :  { %3331 = vmatprep.subr.bf16.mxu0 %v3848_v26  ;;  %v1152_v20 = vld [vmem:[%s5115_s7 + $0x120] sm:$0xff] }
  0x7c   :  { %996 = vmatpush1.bf16.msra.mxu1 %v3407_v35  ;;  %v3137_v22 = vcombine.high %v1148_v19, %v1152_v20  ;;  %v1156_v24 = vld [vmem:[%s5115_s7 + $0x140] sm:$0xff] }
  0x7d   :  { %997 = vmatprep.subr.bf16.mxu1 %v3412_v36  ;;  %v1160_v25 = vld [vmem:[%s5115_s7 + $0x160] sm:$0xff] }
  0x7e   :  { %3332 = vmatpush3.bf16.msra.mxu0 %v3400_v31  ;;  %v3145_v27 = vcombine.high %v1156_v24, %v1160_v25  ;;  %v1164_v29 = vld [vmem:[%s5115_s7 + $0x180] sm:$0xff]  ;;  %v3144_v31 = vcombine.low %v1156_v24, %v1160_v25  ;;  %v3455_v25 = vld [vmem:[%s5113_s5 + $0x110] ss:$8 sps:$4 sm:$0xff]  }
  0x7f   :  { %3333 = vmatprep.subr.bf16.mxu0 %v3848_v26  ;;  %v1168_v30 = vld [vmem:[%s5115_s7 + $0x1a0] sm:$0xff] }
  0x80   :  { %998 = vmatpush1.bf16.msra.mxu1 %v3410_v38  ;;  %v3153_v32 = vcombine.high %v1164_v29, %v1168_v30  ;;  %v1176_v35 = vld [vmem:[%s5115_s7 + $0x1e0] sm:$0xff]  ;;  %v3152_v38 = vcombine.low %v1164_v29, %v1168_v30 }
  0x81   :  { %999 = vmatprep.subr.bf16.mxu1 %v3415_v39  ;;  %v4241_v36 = vld [vmem:[#allocation2] sm:$0x1f] }
  0x82   :  { %3334 = vmatpush3.bf16.msra.mxu0 %v3401_v34  ;;  %v1172_v34 = vld [vmem:[%s5115_s7 + $0x1c0] sm:$0xff] }
  0x83   :  { %3335 = vmatprep.subr.bf16.mxu0 %v3848_v26  ;;  %v3161_v39 = vcombine.high %v1172_v34, %v1176_v35  ;;  %v3458_v30 = vld [vmem:[%s5113_s5 + $0x120] ss:$8 sps:$4 sm:$0xff]  }
  0x84   :  { %1000 = vmatpush1.bf16.msra.mxu1 %v3413_v41  ;;  %v1180_v41 = vld [vmem:[%s5115_s7 + $0x200] sm:$0xff] }
  0x85   :  { %1001 = vmatprep.subr.bf16.mxu1 %v3418_v42  ;;  %v1184_v42 = vld [vmem:[%s5115_s7 + $0x220] sm:$0xff] }
  0x86   :  { %3336 = vmatpush3.bf16.msra.mxu0 %v3402_v37 }
  0x87   :  { %3337 = vmatprep.subr.bf16.mxu0 %v3848_v26  ;;  %v3136_v26 = vcombine.low %v1148_v19, %v1152_v20  ;;  %v3452_v20 = vld [vmem:[%s5113_s5 + $0x100] ss:$8 sps:$4 sm:$0xff]  }
  0x88   :  { %1002 = vmatpush1.bf16.msra.mxu1 %v3416_v43 }
  0x89   :  { %1003 = vmatprep.subr.bf16.mxu1 %v3421_v44  ;;  %v3160_v44 = vcombine.low %v1172_v34, %v1176_v35 }
  0x8a   :  { %3338 = vmatpush3.bf16.msra.mxu0 %v3403_v40 }
  0x8b   :  { %1644 = vmatprep.subr.bf16.mxu0 %v3105_v8 }
  0x8c   :  { %1004 = vmatpush1.bf16.msra.mxu1 %v3419_v45 }
  0x8d   :  { %3340 = vmatmul.mubr.msk.bf16.vlgmr.msra.gmra.mrb[4].mxu0 %vm330_vm0, %v147_v23  ;;  %1005 = vmatprep.subr.bf16.mxu1 %v3424_v46  ;;  %v149_v23 = vlaneseq  ;;  %v4256_v46 = vld [vmem:[#allocation5] sm:$0x1f] }
  0x8e   :  { %1645 = vmatpush1.bf16.msra.mxu0 %v3104_v7 }
  0x8f   :  { %1646 = vmatprep.subr.bf16.mxu0 %v3113_v10  ;;  %v4224_v28 = vshrl.u32 %v149_v23, 7 }
  0x90   :  { %1006 = vmatpush1.bf16.msra.mxu1 %v3422_v47  ;;  %v3169_v47 = vcombine.high %v1180_v41, %v1184_v42 }
  0x91   :  { %1007 = vmatprep.subr.bf16.mxu1 %v3427_v48  ;;  %v4233_v33 = vsub.s32 0, %v4224_v28  ;;  %v4244_v37 = vsub.s32 1, %v4224_v28 }
  0x92   :  { %1647 = vmatpush1.bf16.msra.mxu0 %v3112_v13 }
  0x93   :  { %1648 = vmatprep.subr.bf16.mxu0 %v3121_v14  ;;  %v152_v40 = vrot.slane %v4241_v36, %v4233_v33  ;;  %v156_v43 = vrot.slane %v4241_v36, %v4244_v37 }
  0x94   :  { %1008 = vmatpush1.bf16.msra.mxu1 %v3425_v49 }
  0x95   :  { %1009 = vmatprep.subr.bf16.mxu1 %v3430_v50  ;;  %v4258_v50 = vld [vmem:[#allocation7] sm:$0x1f] }
  0x96   :  { %1649 = vmatpush1.bf16.msra.mxu0 %v3120_v17 }
  0x97   :  { %1650 = vmatprep.subr.bf16.mxu0 %v3129_v18 }
  0x98   :  { %1010 = vmatpush1.bf16.msra.mxu1 %v3428_v51 }
  0x99   :  { %1011 = vmatprep.subr.bf16.mxu1 %v3433_v52 }
  0x9a   :  { %1651 = vmatpush1.bf16.msra.mxu0 %v3128_v21 }
  0x9b   :  { %1652 = vmatprep.subr.bf16.mxu0 %v3137_v22  ;;  %v3457_v22 = vld [vmem:[%s5113_s5 + $0x114] ss:$8 sps:$4 sm:$0xff]  }
  0x9c   :  { %1012 = vmatpush1.bf16.msra.mxu1 %v3431_v53 }
  0x9d   :  { %1013 = vmatprep.subr.bf16.mxu1 %v3436_v54  ;;  %v472_v54 = vrot.slane %v4256_v46, %v4233_v33 }
  0x9e   :  { %1653 = vmatpush1.bf16.msra.mxu0 %v3136_v26  ;;  %v3460_v26 = vld [vmem:[%s5113_s5 + $0x124] ss:$8 sps:$4 sm:$0xff]  }
  0x9f   :  { %1654 = vmatprep.subr.bf16.mxu0 %v3145_v27 }
  0xa0   :  { %1014 = vmatpush1.bf16.msra.mxu1 %v3434_v55 }
  0xa1   :  { %1015 = vmatprep.subr.bf16.mxu1 %v3439_v56  ;;  %v4263_v56 = vsub.s32 3, %v4224_v28 }
  0xa2   :  { %1655 = vmatpush1.bf16.msra.mxu0 %v3144_v31 }
  0xa3   :  { %1656 = vmatprep.subr.bf16.mxu0 %v3153_v32  ;;  %v484_v15 = vrot.slane %v4256_v46, %v4263_v56  ;;  %v515_v18 = vrot.slane %v4258_v50, %v4263_v56  ;;  %v3463_v32 = vld [vmem:[%s5113_s5 + $0x134] ss:$8 sps:$4 sm:$0xff]  }
  0xa4   :  { %1016 = vmatpush1.bf16.msra.mxu1 %v3437_v57  ;;  %v3168_v57 = vcombine.low %v1180_v41, %v1184_v42  ;;  %v3466_v41 = vld [vmem:[%s5113_s5 + $0x144] ss:$8 sps:$4 sm:$0xff]   ;;  %v3464_v42 = vld [vmem:[%s5113_s5 + $0x140] ss:$8 sps:$4 sm:$0xff]  }
  0xa5   :  { %1017 = vmatprep.subr.bf16.mxu1 %v3442_v58 }
  0xa6   :  { %1657 = vmatpush1.bf16.msra.mxu0 %v3152_v38 }
  0xa7   :  { %1658 = vmatprep.subr.bf16.mxu0 %v3161_v39 }
  0xa8   :  { %1018 = vmatpush1.bf16.msra.mxu1 %v3440_v59  ;;  %v476_v59 = vrot.slane %v4256_v46, %v4244_v37 }
  0xa9   :  { %1019 = vmatprep.subr.bf16.mxu1 %v3445_v60 }
  0xaa   :  { %1659 = vmatpush1.bf16.msra.mxu0 %v3160_v44  ;;  %v3467_v44 = vld [vmem:[%s5113_s5 + $0x150] ss:$8 sps:$4 sm:$0xff]  }
  0xab   :  { %1660 = vmatprep.subr.bf16.mxu0 %v3169_v47  ;;  %v3470_v47 = vld [vmem:[%s5113_s5 + $0x160] ss:$8 sps:$4 sm:$0xff]  }
  0xac   :  { %1020 = vmatpush1.bf16.msra.mxu1 %v3443_v61  ;;  %v503_v61 = vrot.slane %v4258_v50, %v4233_v33 }
  0xad   :  { %1021 = vmatprep.subr.bf16.mxu1 %v3448_v62 }
  0xae   :  { %1661 = vmatpush1.bf16.msra.mxu0 %v3168_v57 }
  0xb0   :  { %1022 = vmatpush1.bf16.msra.mxu1 %v3446_v63  ;;  %v507_v63 = vrot.slane %v4258_v50, %v4244_v37 }
  0xb1   :  { %1023 = vmatprep.subr.bf16.mxu1 %v3451_v1 }
  0xb4   :  { %1024 = vmatpush1.bf16.msra.mxu1 %v3449_v2  ;;  %v164_v2 = vrot.slane %v4241_v36, %v4263_v56 }
  0xb5   :  { %1034 = vmatprep.subr.bf16.mxu1 %v3454_v3 }
 0x148   :  { %v368_v45 = vpop.f32.mrb[0].mxu0 }
 0x149   :  { %v369_v48 = vadd.f32 %v368_v45, %v152_v40  ;;  %v370_v49 = vpop.f32.mrb[1].mxu0  ;;  %v3461_v40 = vld [vmem:[%s5113_s5 + $0x130] ss:$8 sps:$4 sm:$0xff]   ;;  %v3472_v45 = vld [vmem:[%s5113_s5 + $0x164] ss:$8 sps:$4 sm:$0xff]  }
 0x14a   :  { %v371_v51 = vadd.f32 %v370_v49, %v156_v43  ;;  %v372_v52 = vpop.f32.mrb[2].mxu0  ;;  %v4273_v5 = vpop.f32.mrb[0].mxu1  ;;  %v3469_v43 = vld [vmem:[%s5113_s5 + $0x154] ss:$8 sps:$4 sm:$0xff]   ;;  %v4322_v49 = vsub.s32 2, %v4224_v28 }
 0x14b   :  { %v456_v53 = vmax.f32 %v369_v48, 0.0  ;;  %v373_v55 = vpop.f32.mrb[3].mxu0  ;;  %v411_v7 = vpop.f32.mrb[1].mxu1  ;;  %v3475_v48 = vld [vmem:[%s5113_s5 + $0x174] ss:$8 sps:$4 sm:$0xff]  }
 0x14c   :  { %v457_v58 = vmax.f32 %v371_v51, 0.0  ;;  %v412_v9 = vadd.f32 %v411_v7, %v164_v2  ;;  %v413_v10 = vpop.f32.mrb[2].mxu1  ;;  %v3473_v51 = vld [vmem:[%s5113_s5 + $0x170] ss:$8 sps:$4 sm:$0xff]   ;;  %v3478_v52 = vld [vmem:[%s5113_s5 + $0x184] ss:$8 sps:$4 sm:$0xff]  }
 0x14d   :  { %v461_v60 = vmin.f32 %v456_v53, 6.0  ;;  %v414_v12 = vpop.f32.mrb[3].mxu1  ;;  %v160_v53 = vrot.slane %v4241_v36, %v4322_v49  ;;  %v3481_v55 = vld [vmem:[%s5113_s5 + $0x194] ss:$8 sps:$4 sm:$0xff]   ;;  %v4354_v2 = vsub.s32 4, %v4224_v28 }
 0x14e   :  { %v462_v62 = vmin.f32 %v457_v58, 6.0  ;;  %v459_v14 = vmax.f32 %v412_v9, 0.0  ;;  %v3479_v58 = vld [vmem:[%s5113_s5 + $0x190] ss:$8 sps:$4 sm:$0xff]   ;;  %v3493_v9 = vld [vmem:[%s5113_s5 + $0x1d4] ss:$8 sps:$4 sm:$0xff]  }
 0x14f   :  { %v494_v1 = vmul.f32 %v472_v54, %v461_v60  ;;  %v3476_v54 = vld [vmem:[%s5113_s5 + $0x180] ss:$8 sps:$4 sm:$0xff]   ;;  %v410_v57 = vadd.f32 %v4273_v5, %v160_v53  ;;  %v168_v7 = vrot.slane %v4241_v36, %v4354_v2  ;;  %v3491_v12 = vld [vmem:[%s5113_s5 + $0x1d0] ss:$8 sps:$4 sm:$0xff]   ;;  %v3496_v36 = vld [vmem:[%s5113_s5 + $0x1e4] ss:$8 sps:$4 sm:$0xff]  }
 0x150   :  { %v495_v3 = vmul.f32 %v476_v59, %v462_v62  ;;  %v464_v17 = vmin.f32 %v459_v14, 6.0  ;;  %v3484_v59 = vld [vmem:[%s5113_s5 + $0x1a4] ss:$8 sps:$4 sm:$0xff]   ;;  %v3487_v62 = vld [vmem:[%s5113_s5 + $0x1b4] ss:$8 sps:$4 sm:$0xff]  }
 0x151   :  { %v525_v4 = vadd.f32 %v503_v61, %v494_v1  ;;  %v458_v60 = vmax.f32 %v410_v57, 0.0  ;;  %v3482_v61 = vld [vmem:[%s5113_s5 + $0x1a0] ss:$8 sps:$4 sm:$0xff]   ;;  %v480_v1 = vrot.slane %v4256_v46, %v4322_v49  ;;  %v3514_v53 = vld [vmem:[%s5119_s11 + $0x4] ss:$8 sps:$4 sm:$0xff]  }
 0x152   :  { %v526_v6 = vadd.f32 %v507_v63, %v495_v3  ;;  %v497_v23 = vmul.f32 %v484_v15, %v464_v17  ;;  %v3485_v3 = vld [vmem:[%s5113_s5 + $0x1b0] ss:$8 sps:$4 sm:$0xff]   ;;  %v3494_v15 = vld [vmem:[%s5113_s5 + $0x1e0] ss:$8 sps:$4 sm:$0xff]  }
 0x153   :  { %v530_v8 = vmax.f32 %v525_v4, 0.0  ;;  %v463_v63 = vmin.f32 %v458_v60, 6.0  ;;  %v3490_v4 = vld [vmem:[%s5113_s5 + $0x1c4] ss:$8 sps:$4 sm:$0xff]  }
 0x154   :  { %v531_v11 = vmax.f32 %v526_v6, 0.0  ;;  %v528_v24 = vadd.f32 %v515_v18, %v497_v23  ;;  %v511_v6 = vrot.slane %v4258_v50, %v4322_v49 }
 0x155   :  { %v535_v13 = vmin.f32 %v530_v8, 6.0  ;;  %v496_v5 = vmul.f32 %v480_v1, %v463_v63  ;;  %v3488_v8 = vld [vmem:[%s5113_s5 + $0x1c0] ss:$8 sps:$4 sm:$0xff]   ;;  %v3515_v63 = vld [vmem:[%s5119_s11 + $0x10] ss:$8 sps:$4 sm:$0xff]  }
 0x156   :  { %v536_v16 = vmin.f32 %v531_v11, 6.0  ;;  %v533_v27 = vmax.f32 %v528_v24, 0.0  ;;  %v519_v24 = vrot.slane %v4258_v50, %v4354_v2  ;;  %v3508_v50 = vld [vmem:[%s5113_s5 + $0x224] ss:$8 sps:$4 sm:$0xff]  }
 0x157   :  { %v613_v21 = vpack.c.bf16 %v535_v13, %v535_v13  ;;  %v527_v10 = vadd.f32 %v511_v6, %v496_v5 }
 0x158   :  { %v614_v19 = vpack.c.bf16 %v536_v16, %v536_v16  ;;  %v538_v29 = vmin.f32 %v533_v27, 6.0  ;;  %v3499_v16 = vld [vmem:[%s5113_s5 + $0x1f4] ss:$8 sps:$4 sm:$0xff]   ;;  %v3503_v27 = vld [vmem:[%s5113_s5 + $0x210] ss:$8 sps:$4 sm:$0xff]  }
 0x159   :  { %v532_v13 = vmax.f32 %v527_v10, 0.0  ;;  %v3523_v10 = vld [vmem:[%s5119_s11 + $0x34] ss:$8 sps:$4 sm:$0xff]  }
 0x15a   :  { %1025 = vmatprep.mubr.bf16.mxu1 %v614_v19  ;;  %v616_v35 = vpack.c.bf16 %v538_v29, %v538_v29  ;;  %v488_v19 = vrot.slane %v4256_v46, %v4354_v2  ;;  %v3500_v46 = vld [vmem:[%s5113_s5 + $0x200] ss:$8 sps:$4 sm:$0xff]  }
 0x15b   :  { %1026 = vmatmul.mubr.bf16.vlgmr.msra.gmra.mrb[4].mxu1 %v613_v21  ;;  %v537_v17 = vmin.f32 %v532_v13, 6.0  ;;  %v3502_v21 = vld [vmem:[%s5113_s5 + $0x204] ss:$8 sps:$4 sm:$0xff]  }
 0x15c   :  { %1035 = vmatpush1.bf16.msra.mxu1 %v3452_v20  ;;  %1066 = vmatprep.mubr.bf16.mxu1 %v616_v35  ;;  %v3497_v20 = vld [vmem:[%s5113_s5 + $0x1f0] ss:$8 sps:$4 sm:$0xff]   ;;  %v1145_v13 = vld [vmem:[%s5115_s7 + $0xe8] sm:$0xff] }
 0x15d   :  { %1036 = vmatprep.subr.bf16.mxu1 %v3457_v22  ;;  %v615_v22 = vpack.c.bf16 %v537_v17, %v537_v17 }
 0x160   :  { %1037 = vmatpush1.bf16.msra.mxu1 %v3455_v25  ;;  %v450_v31 = vpop.f32.mrb[4].mxu0  ;;  %v3505_v25 = vld [vmem:[%s5113_s5 + $0x214] ss:$8 sps:$4 sm:$0xff]  }
 0x161   :  { %1038 = vmatprep.subr.bf16.mxu1 %v3460_v26  ;;  %v3341_v34 = vpop.f32.mrb[5].mxu0  ;;  %v451_v11 = vadd.f32 %v450_v31, %v168_v7  ;;  %v3511_v31 = vld [vmem:[%s5113_s5 + $0x234] ss:$8 sps:$4 sm:$0xff]   ;;  %v1133_v7 = vld [vmem:[%s5115_s7 + $0x88] sm:$0xff] }
 0x162   :  { %v453_v38 = vpop.f32.mrb[6].mxu0  ;;  %v3509_v34 = vld [vmem:[%s5113_s5 + $0x230] ss:$8 sps:$4 sm:$0xff]  }
 0x163   :  { %v3342_v39 = vpop.f32.mrb[7].mxu0  ;;  %v460_v14 = vmax.f32 %v451_v11, 0.0  ;;  %v1188_v38 = vld [vmem:[%s5115_s7 + $0x240] sm:$0xff] }
 0x164   :  { %1039 = vmatpush1.bf16.msra.mxu1 %v3458_v30  ;;  %v3506_v30 = vld [vmem:[%s5113_s5 + $0x220] ss:$8 sps:$4 sm:$0xff]  }
 0x165   :  { %1040 = vmatprep.subr.bf16.mxu1 %v3463_v32  ;;  %v465_v18 = vmin.f32 %v460_v14, 6.0  ;;  %v1192_v39 = vld [vmem:[%s5115_s7 + $0x260] sm:$0xff]  ;;  %v3521_v14 = vld [vmem:[%s5119_s11 + $0x30] ss:$8 sps:$4 sm:$0xff]  }
 0x167   :  { %v498_v23 = vmul.f32 %v488_v19, %v465_v18  ;;  %v1149_v18 = vld [vmem:[%s5115_s7 + $0x108] sm:$0xff] }
 0x168   :  { %1041 = vmatpush1.bf16.msra.mxu1 %v3461_v40  ;;  %v3177_v40 = vcombine.high %v1188_v38, %v1192_v39  ;;  %v1153_v19 = vld [vmem:[%s5115_s7 + $0x128] sm:$0xff] }
 0x169   :  { %1042 = vmatprep.subr.bf16.mxu1 %v3466_v41  ;;  %v529_v26 = vadd.f32 %v519_v24, %v498_v23  ;;  %v3176_v41 = vcombine.low %v1188_v38, %v1192_v39  ;;  %v3139_v23 = vcombine.high %v1149_v18, %v1153_v19  ;;  %v1157_v24 = vld [vmem:[%s5115_s7 + $0x148] sm:$0xff] }
 0x16a   :  { %1662 = vmatprep.subr.bf16.mxu0 %v3177_v40  ;;  %v1173_v38 = vld [vmem:[%s5115_s7 + $0x1c8] sm:$0xff]  ;;  %v3533_v40 = vld [vmem:[%s5119_s11 + $0x70] ss:$8 sps:$4 sm:$0xff]  }
 0x16b   :  { %v534_v29 = vmax.f32 %v529_v26, 0.0  ;;  %1663 = vmatpush1.bf16.msra.mxu0 %v3176_v41  ;;  %v3532_v26 = vld [vmem:[%s5119_s11 + $0x64] ss:$8 sps:$4 sm:$0xff]  }
 0x16c   :  { %1043 = vmatpush1.bf16.msra.mxu1 %v3464_v42  ;;  %v1117_v42 = vld [vmem:[%s5115_s7 + $0x8] sm:$0xff] }
 0x16d   :  { %1044 = vmatprep.subr.bf16.mxu1 %v3469_v43  ;;  %v539_v32 = vmin.f32 %v534_v29, 6.0  ;;  %v1121_v43 = vld [vmem:[%s5115_s7 + $0x28] sm:$0xff] }
 0x16e   :  { %v1165_v29 = vld [vmem:[%s5115_s7 + $0x188] sm:$0xff] }
 0x16f   :  { %v617_v35 = vpack.c.bf16 %v539_v32, %v539_v32  ;;  %v3535_v32 = vld [vmem:[%s5119_s11 + $0x74] ss:$8 sps:$4 sm:$0xff]   ;;  %v1177_v39 = vld [vmem:[%s5115_s7 + $0x1e8] sm:$0xff] }
 0x170   :  { %1045 = vmatpush1.bf16.msra.mxu1 %v3467_v44  ;;  %v3107_v44 = vcombine.high %v1117_v42, %v1121_v43  ;;  %v3538_v41 = vld [vmem:[%s5119_s11 + $0x84] ss:$8 sps:$4 sm:$0xff]  }
 0x171   :  { %1046 = vmatprep.subr.bf16.mxu1 %v3472_v45  ;;  %v3106_v45 = vcombine.low %v1117_v42, %v1121_v43  ;;  %v3163_v43 = vcombine.high %v1173_v38, %v1177_v39 }
 0x172   :  { %1685 = vmatprep.subr.bf16.mxu0 %v3107_v44  ;;  %v1181_v44 = vld [vmem:[%s5115_s7 + $0x208] sm:$0xff] }
 0x174   :  { %1047 = vmatpush1.bf16.msra.mxu1 %v3470_v47  ;;  %v612_v47 = vld [vmem:[#allocation8] sm:$0x3] }
 0x175   :  { %1048 = vmatprep.subr.bf16.mxu1 %v3475_v48  ;;  %v622_v48 = vrot.slane %v612_v47, %v4233_v33 }
 0x178   :  { %1049 = vmatpush1.bf16.msra.mxu1 %v3473_v51  ;;  %v626_v51 = vrot.slane %v612_v47, %v4244_v37  ;;  %v3536_v47 = vld [vmem:[%s5119_s11 + $0x80] ss:$8 sps:$4 sm:$0xff]  }
 0x179   :  { %1050 = vmatprep.subr.bf16.mxu1 %v3478_v52  ;;  %v3512_v52 = vld [vmem:[%s5119_s11] ss:$8 sps:$4 sm:$0xff]  }
 0x17c   :  { %1051 = vmatpush1.bf16.msra.mxu1 %v3476_v54 }
 0x17d   :  { %1052 = vmatprep.subr.bf16.mxu1 %v3481_v55  ;;  %v3517_v55 = vld [vmem:[%s5119_s11 + $0x14] ss:$8 sps:$4 sm:$0xff]  }
 0x180   :  { %1053 = vmatpush1.bf16.msra.mxu1 %v3479_v58 }
 0x181   :  { %1054 = vmatprep.subr.bf16.mxu1 %v3484_v59 }
 0x184   :  { %1055 = vmatpush1.bf16.msra.mxu1 %v3482_v61  ;;  %v1125_v61 = vld [vmem:[%s5115_s7 + $0x48] sm:$0xff] }
 0x185   :  { %1056 = vmatprep.subr.bf16.mxu1 %v3487_v62  ;;  %v1129_v62 = vld [vmem:[%s5115_s7 + $0x68] sm:$0xff] }
 0x186   :  { %v3115_v6 = vcombine.high %v1125_v61, %v1129_v62  ;;  %v3114_v11 = vcombine.low %v1125_v61, %v1129_v62  ;;  %v1118_v62 = vld [vmem:[%s5115_s7 + $0x10] sm:$0xff] }
 0x188   :  { %1057 = vmatpush1.bf16.msra.mxu1 %v3485_v3  ;;  %v3520_v3 = vld [vmem:[%s5119_s11 + $0x24] ss:$8 sps:$4 sm:$0xff]  }
 0x189   :  { %1058 = vmatprep.subr.bf16.mxu1 %v3490_v4 }
 0x18c   :  { %1059 = vmatpush1.bf16.msra.mxu1 %v3488_v8  ;;  %v1137_v8 = vld [vmem:[%s5115_s7 + $0xa8] sm:$0xff] }
 0x18d   :  { %1060 = vmatprep.subr.bf16.mxu1 %v3493_v9  ;;  %v3518_v9 = vld [vmem:[%s5119_s11 + $0x20] ss:$8 sps:$4 sm:$0xff]  }
 0x190   :  { %1061 = vmatpush1.bf16.msra.mxu1 %v3491_v12  ;;  %v3123_v12 = vcombine.high %v1133_v7, %v1137_v8 }
 0x191   :  { %1062 = vmatprep.subr.bf16.mxu1 %v3496_v36  ;;  %v1141_v36 = vld [vmem:[%s5115_s7 + $0xc8] sm:$0xff] }
 0x192   :  { %v3131_v17 = vcombine.high %v1141_v36, %v1145_v13 }
 0x194   :  { %1063 = vmatpush1.bf16.msra.mxu1 %v3494_v15  ;;  %v3526_v15 = vld [vmem:[%s5119_s11 + $0x44] ss:$8 sps:$4 sm:$0xff]  }
 0x195   :  { %1064 = vmatprep.subr.bf16.mxu1 %v3499_v16  ;;  %v3122_v16 = vcombine.low %v1133_v7, %v1137_v8  ;;  %v1126_v8 = vld [vmem:[%s5115_s7 + $0x50] sm:$0xff] }
 0x198   :  { %1065 = vmatpush1.bf16.msra.mxu1 %v3497_v20  ;;  %v3524_v20 = vld [vmem:[%s5119_s11 + $0x40] ss:$8 sps:$4 sm:$0xff]  }
 0x199   :  { %1075 = vmatprep.subr.bf16.mxu1 %v3502_v21  ;;  %v3529_v21 = vld [vmem:[%s5119_s11 + $0x54] ss:$8 sps:$4 sm:$0xff]  }
 0x19b   :  { %1067 = vmatmul.mubr.bf16.vlgmr.msra.gmra.mrb[4].mxu1 %v615_v22  ;;  %v3130_v22 = vcombine.low %v1141_v36, %v1145_v13  ;;  %v1134_v36 = vld [vmem:[%s5115_s7 + $0x90] sm:$0xff] }
 0x19c   :  { %1076 = vmatpush1.bf16.msra.mxu1 %v3500_v46  ;;  %1107 = vmatprep.mubr.bf16.mxu1 %v3847_v0  ;;  %v1161_v46 = vld [vmem:[%s5115_s7 + $0x168] sm:$0xff]  ;;  %v1138_v13 = vld [vmem:[%s5115_s7 + $0xb0] sm:$0xff] }
 0x19d   :  { %1077 = vmatprep.subr.bf16.mxu1 %v3505_v25  ;;  %v3527_v25 = vld [vmem:[%s5119_s11 + $0x50] ss:$8 sps:$4 sm:$0xff]  }
 0x1a0   :  { %1078 = vmatpush1.bf16.msra.mxu1 %v3503_v27  ;;  %v3138_v27 = vcombine.low %v1149_v18, %v1153_v19  ;;  %v3124_v18 = vcombine.low %v1134_v36, %v1138_v13 }
 0x1a1   :  { %1079 = vmatprep.subr.bf16.mxu1 %v3508_v50  ;;  %v3147_v50 = vcombine.high %v1157_v24, %v1161_v46 }
 0x1a4   :  { %1080 = vmatpush1.bf16.msra.mxu1 %v3506_v30  ;;  %v1169_v30 = vld [vmem:[%s5115_s7 + $0x1a8] sm:$0xff] }
 0x1a5   :  { %1081 = vmatprep.subr.bf16.mxu1 %v3511_v31  ;;  %v3530_v31 = vld [vmem:[%s5119_s11 + $0x60] ss:$8 sps:$4 sm:$0xff]   ;;  %v3154_v42 = vcombine.low %v1165_v29, %v1169_v30 }
 0x1a8   :  { %1082 = vmatpush1.bf16.msra.mxu1 %v3509_v34  ;;  %v3146_v34 = vcombine.low %v1157_v24, %v1161_v46  ;;  %v1158_v24 = vld [vmem:[%s5115_s7 + $0x150] sm:$0xff] }
 0x1a9   :  { %2683 = vmatprep.subr.bf16.mxu1 %v3514_v53  ;;  %v1189_v53 = vld [vmem:[%s5115_s7 + $0x248] sm:$0xff]  ;;  %v1162_v46 = vld [vmem:[%s5115_s7 + $0x170] sm:$0xff] }
 0x1ab   :  { %3103 = vmatmul.mubr.msk.bf16.vlgmr.msra.gmra.mrb[4].mxu1 %vm989_vm2, %v617_v35  ;;  %v3155_v35 = vcombine.high %v1165_v29, %v1169_v30  ;;  %v3148_v29 = vcombine.low %v1158_v24, %v1162_v46 }
 0x1ac   :  { %2684 = vmatpush1.bf16.msra.mxu1 %v3512_v52 }
 0x1ad   :  { %2685 = vmatprep.subr.bf16.mxu1 %v3517_v55  ;;  %v3539_v55 = vld [vmem:[%s5119_s11 + $0x90] ss:$8 sps:$4 sm:$0xff]  }
 0x1b0   :  { %2686 = vmatpush1.bf16.msra.mxu1 %v3515_v63  ;;  %v1122_v63 = vld [vmem:[%s5115_s7 + $0x30] sm:$0xff] }
 0x1b1   :  { %2687 = vmatprep.subr.bf16.mxu1 %v3520_v3  ;;  %v3553_v3 = vld [vmem:[%s5119_s11 + $0xb4] ss:$8 sps:$4 sm:$0xff]   ;;  %v3109_v7 = vcombine.high %v1118_v62, %v1122_v63 }
 0x1b4   :  { %2688 = vmatpush1.bf16.msra.mxu1 %v3518_v9  ;;  %v1130_v9 = vld [vmem:[%s5115_s7 + $0x70] sm:$0xff] }
 0x1b5   :  { %2689 = vmatprep.subr.bf16.mxu1 %v3523_v10  ;;  %v3551_v10 = vld [vmem:[%s5119_s11 + $0xb0] ss:$8 sps:$4 sm:$0xff]  }
 0x1b8   :  { %2690 = vmatpush1.bf16.msra.mxu1 %v3521_v14  ;;  %v3116_v14 = vcombine.low %v1126_v8, %v1130_v9 }
 0x1b9   :  { %2691 = vmatprep.subr.bf16.mxu1 %v3526_v15  ;;  %v3125_v15 = vcombine.high %v1134_v36, %v1138_v13  ;;  %v3563_v13 = vld [vmem:[%s5119_s11 + $0xd0] ss:$8 sps:$4 sm:$0xff]  }
 0x1bc   :  { %2692 = vmatpush1.bf16.msra.mxu1 %v3524_v20  ;;  %v1150_v20 = vld [vmem:[%s5115_s7 + $0x110] sm:$0xff] }
 0x1bd   :  { %2693 = vmatprep.subr.bf16.mxu1 %v3529_v21  ;;  %v1154_v21 = vld [vmem:[%s5115_s7 + $0x130] sm:$0xff] }
 0x1c0   :  { %2694 = vmatpush1.bf16.msra.mxu1 %v3527_v25  ;;  %v3140_v25 = vcombine.low %v1150_v20, %v1154_v21 }
 0x1c1   :  { %2695 = vmatprep.subr.bf16.mxu1 %v3532_v26  ;;  %v3149_v26 = vcombine.high %v1158_v24, %v1162_v46  ;;  %v3575_v46 = vld [vmem:[%s5119_s11 + $0xf0] ss:$8 sps:$4 sm:$0xff]  }
 0x1c4   :  { %2696 = vmatpush1.bf16.msra.mxu1 %v3530_v31  ;;  %v1174_v31 = vld [vmem:[%s5115_s7 + $0x1d0] sm:$0xff] }
 0x1c5   :  { %2697 = vmatprep.subr.bf16.mxu1 %v3535_v32  ;;  %v1178_v32 = vld [vmem:[%s5115_s7 + $0x1f0] sm:$0xff] }
 0x1c8   :  { %2698 = vmatpush1.bf16.msra.mxu1 %v3533_v40  ;;  %v3164_v40 = vcombine.low %v1174_v31, %v1178_v32 }
 0x1c9   :  { %2699 = vmatprep.subr.bf16.mxu1 %v3538_v41 }
 0x1cc   :  { %2700 = vmatpush1.bf16.msra.mxu1 %v3536_v47  ;;  %v1119_v47 = vld [vmem:[%s5115_s7 + $0x18] sm:$0xff] }
 0x27e   :  { %v1109_v54 = vpop.f32.mrb[4].mxu1 }
 0x27f   :  { %v4440_v57 = vadd.f32 %v1109_v54, %v622_v48  ;;  %v1111_v58 = vpop.f32.mrb[5].mxu1  ;;  %v3541_v48 = vld [vmem:[%s5119_s11 + $0x94] ss:$8 sps:$4 sm:$0xff]   ;;  %v1193_v54 = vld [vmem:[%s5115_s7 + $0x268] sm:$0xff] }
 0x280   :  { %v4442_v59 = vadd.f32 %v1111_v58, %v626_v51  ;;  %v1113_v60 = vpop.f32.mrb[6].mxu1  ;;  %v3162_v51 = vcombine.low %v1173_v38, %v1177_v39  ;;  %2701 = vmatprep.subr.bf16.mxu1 %v3541_v48  ;;  %v3547_v58 = vld [vmem:[%s5119_s11 + $0xa4] ss:$8 sps:$4 sm:$0xff]   ;;  %v3179_v61 = vcombine.high %v1189_v53, %v1193_v54  ;;  %v1182_v38 = vld [vmem:[%s5115_s7 + $0x210] sm:$0xff]  ;;  %v1123_v48 = vld [vmem:[%s5115_s7 + $0x38] sm:$0xff] }
 0x281   :  { %v1114_v1 = vpop.f32.mrb[7].mxu1  ;;  %v4462_v5 = vpack.c.bf16 %v4440_v57, %v4440_v57  ;;  %2702 = vmatpush1.bf16.msra.mxu1 %v3539_v55  ;;  %v1186_v39 = vld [vmem:[%s5115_s7 + $0x230] sm:$0xff]  ;;  %v3110_v55 = vcombine.low %v1119_v47, %v1123_v48 }
 0x282   :  { %v4458_v4 = vpack.c.bf16 %v4442_v59, %v4442_v59  ;;  %v3545_v1 = vld [vmem:[%s5119_s11 + $0xa0] ss:$8 sps:$4 sm:$0xff]   ;;  %2703 = vmatprep.subr.bf16.mxu1 %v3547_v58  ;;  %v3173_v41 = vcombine.high %v1182_v38, %v1186_v39 }
 0x284   :  { %3184 = vmatprep.mubr.msk.bf16.mxu0 %vm1640_vm3, %v4458_v4 }
 0x285   :  { %1677 = vmatmul.mubr.bf16.vlgmr.msra.gmra.mrb[8].mxu0 %v4462_v5  ;;  %2704 = vmatpush1.bf16.msra.mxu1 %v3545_v1  ;;  %v1143_v1 = vld [vmem:[%s5115_s7 + $0xd8] sm:$0xff] }
 0x286   :  { %1686 = vmatpush1.bf16.msra.mxu0 %v3106_v45  ;;  %3185 = vmatprep.mubr.msk.bf16.mxu0 %vm1640_vm3, %v4458_v4  ;;  %v1185_v45 = vld [vmem:[%s5115_s7 + $0x228] sm:$0xff] }
 0x287   :  { %1687 = vmatprep.subr.bf16.mxu0 %v3115_v6  ;;  %v3171_v52 = vcombine.high %v1181_v44, %v1185_v45  ;;  %v3170_v60 = vcombine.low %v1181_v44, %v1185_v45  ;;  %v3178_v6 = vcombine.low %v1189_v53, %v1193_v54  ;;  %2705 = vmatprep.subr.bf16.mxu1 %v3553_v3  ;;  %v1127_v53 = vld [vmem:[%s5115_s7 + $0x58] sm:$0xff] }
 0x288   :  { %v3172_v44 = vcombine.low %v1182_v38, %v1186_v39  ;;  %v1131_v54 = vld [vmem:[%s5115_s7 + $0x78] sm:$0xff] }
 0x289   :  { %2706 = vmatpush1.bf16.msra.mxu1 %v3551_v10  ;;  %v3119_v58 = vcombine.high %v1127_v53, %v1131_v54  ;;  %v1147_v3 = vld [vmem:[%s5115_s7 + $0xf8] sm:$0xff] }
 0x28a   :  { %1688 = vmatpush1.bf16.msra.mxu0 %v3114_v11  ;;  %v3108_v11 = vcombine.low %v1118_v62, %v1122_v63  ;;  %v3118_v62 = vcombine.low %v1127_v53, %v1131_v54  ;;  %v1155_v10 = vld [vmem:[%s5115_s7 + $0x138] sm:$0xff]  ;;  %v3566_v53 = vld [vmem:[%s5119_s11 + $0x140] ss:$8 sps:$4 sm:$0xff]  }
 0x28b   :  { %1689 = vmatprep.subr.bf16.mxu0 %v3123_v12  ;;  %v3117_v12 = vcombine.high %v1126_v8, %v1130_v9  ;;  %v3135_v8 = vcombine.high %v1143_v1, %v1147_v3  ;;  %v1151_v9 = vld [vmem:[%s5115_s7 + $0x118] sm:$0xff] }
 0x28c   :  { %v3143_v36 = vcombine.high %v1151_v9, %v1155_v10  ;;  %v1195_v38 = vld [vmem:[%s5115_s7 + $0x278] sm:$0xff] }
 0x28d   :  { %v3574_v54 = vld [vmem:[%s5119_s11 + $0x154] ss:$8 sps:$4 sm:$0xff]  }
 0x28e   :  { %1690 = vmatpush1.bf16.msra.mxu0 %v3122_v16  ;;  %v1142_v16 = vld [vmem:[%s5115_s7 + $0xd0] sm:$0xff] }
 0x28f   :  { %1691 = vmatprep.subr.bf16.mxu0 %v3131_v17  ;;  %v1146_v17 = vld [vmem:[%s5115_s7 + $0xf0] sm:$0xff] }
 0x290   :  { %v3133_v19 = vcombine.high %v1142_v16, %v1146_v17 }
 0x292   :  { %1692 = vmatpush1.bf16.msra.mxu0 %v3130_v22  ;;  %v3132_v22 = vcombine.low %v1142_v16, %v1146_v17  ;;  %v3142_v16 = vcombine.low %v1151_v9, %v1155_v10  ;;  %v3571_v17 = vld [vmem:[%s5119_s11 + $0xe4] ss:$8 sps:$4 sm:$0xff]   ;;  %v3596_v9 = vld [vmem:[%s5119_s11 + $0x1b0] ss:$8 sps:$4 sm:$0xff]  }
 0x293   :  { %1693 = vmatprep.subr.bf16.mxu0 %v3139_v23  ;;  %v3141_v23 = vcombine.high %v1150_v20, %v1154_v21  ;;  %v1167_v20 = vld [vmem:[%s5115_s7 + $0x198] sm:$0xff]  ;;  %v3604_v10 = vld [vmem:[%s5119_s11 + $0x1c4] ss:$8 sps:$4 sm:$0xff]  }
 0x294   :  { %v1171_v21 = vld [vmem:[%s5115_s7 + $0x1b8] sm:$0xff] }
 0x295   :  { %v3159_v24 = vcombine.high %v1167_v20, %v1171_v21 }
 0x296   :  { %1694 = vmatpush1.bf16.msra.mxu0 %v3138_v27  ;;  %v1166_v27 = vld [vmem:[%s5115_s7 + $0x190] sm:$0xff] }
 0x297   :  { %1695 = vmatprep.subr.bf16.mxu0 %v3147_v50  ;;  %v1170_v50 = vld [vmem:[%s5115_s7 + $0x1b0] sm:$0xff] }
 0x298   :  { %v3157_v30 = vcombine.high %v1166_v27, %v1170_v50 }
 0x29a   :  { %1696 = vmatpush1.bf16.msra.mxu0 %v3146_v34  ;;  %v3156_v34 = vcombine.low %v1166_v27, %v1170_v50  ;;  %v3158_v27 = vcombine.low %v1167_v20, %v1171_v21 }
 0x29b   :  { %1697 = vmatprep.subr.bf16.mxu0 %v3155_v35  ;;  %v3165_v35 = vcombine.high %v1174_v31, %v1178_v32  ;;  %v3595_v32 = vld [vmem:[%s5119_s11 + $0x204] ss:$8 sps:$4 sm:$0xff]  }
 0x29e   :  { %1698 = vmatpush1.bf16.msra.mxu0 %v3154_v42  ;;  %v1190_v42 = vld [vmem:[%s5115_s7 + $0x250] sm:$0xff] }
 0x29f   :  { %1699 = vmatprep.subr.bf16.mxu0 %v3163_v43  ;;  %v1194_v43 = vld [vmem:[%s5115_s7 + $0x270] sm:$0xff] }
 0x2a0   :  { %v3181_v45 = vcombine.high %v1190_v42, %v1194_v43 }
 0x2a2   :  { %1700 = vmatpush1.bf16.msra.mxu0 %v3162_v51  ;;  %v3180_v51 = vcombine.low %v1190_v42, %v1194_v43  ;;  %v3544_v42 = vld [vmem:[%s5119_s11 + $0x104] ss:$8 sps:$4 sm:$0xff]   ;;  %v3542_v43 = vld [vmem:[%s5119_s11 + $0x100] ss:$8 sps:$4 sm:$0xff]  }
 0x2a3   :  { %1701 = vmatprep.subr.bf16.mxu0 %v3171_v52  ;;  %v3111_v52 = vcombine.high %v1119_v47, %v1123_v48  ;;  %v3556_v47 = vld [vmem:[%s5119_s11 + $0x124] ss:$8 sps:$4 sm:$0xff]   ;;  %v3554_v48 = vld [vmem:[%s5119_s11 + $0x120] ss:$8 sps:$4 sm:$0xff]  }
 0x2a6   :  { %1702 = vmatpush1.bf16.msra.mxu0 %v3170_v60  ;;  %v1135_v60 = vld [vmem:[%s5115_s7 + $0x98] sm:$0xff] }
 0x2a7   :  { %1703 = vmatprep.subr.bf16.mxu0 %v3179_v61  ;;  %v1139_v61 = vld [vmem:[%s5115_s7 + $0xb8] sm:$0xff] }
 0x2a8   :  { %v3127_v63 = vcombine.high %v1135_v60, %v1139_v61 }
 0x2aa   :  { %1704 = vmatpush1.bf16.msra.mxu0 %v3178_v6  ;;  %v3126_v6 = vcombine.low %v1135_v60, %v1139_v61  ;;  %v3578_v60 = vld [vmem:[%s5119_s11 + $0x160] ss:$8 sps:$4 sm:$0xff]   ;;  %v3583_v61 = vld [vmem:[%s5119_s11 + $0x174] ss:$8 sps:$4 sm:$0xff]  }
 0x2ab   :  { %1726 = vmatprep.subr.bf16.mxu0 %v3109_v7  ;;  %v3559_v7 = vld [vmem:[%s5119_s11 + $0xc4] ss:$8 sps:$4 sm:$0xff]  }
 0x2ac   :  { %2707 = vmatprep.subr.bf16.mxu1 %v3559_v7  ;;  %v3592_v7 = vld [vmem:[%s5119_s11 + $0x1a4] ss:$8 sps:$4 sm:$0xff]  }
 0x2ad   :  { %1718 = vmatmul.mubr.bf16.vlgmr.msra.gmra.mrb[12].mxu0 %v4462_v5 }
 0x2ae   :  { %1727 = vmatpush1.bf16.msra.mxu0 %v3108_v11  ;;  %3186 = vmatprep.mubr.msk.bf16.mxu0 %vm1640_vm3, %v4458_v4  ;;  %v3134_v11 = vcombine.low %v1143_v1, %v1147_v3  ;;  %v3584_v1 = vld [vmem:[%s5119_s11 + $0x180] ss:$8 sps:$4 sm:$0xff]   ;;  %v3589_v3 = vld [vmem:[%s5119_s11 + $0x194] ss:$8 sps:$4 sm:$0xff]  }
 0x2af   :  { %1728 = vmatprep.subr.bf16.mxu0 %v3117_v12  ;;  %v3565_v12 = vld [vmem:[%s5119_s11 + $0xd4] ss:$8 sps:$4 sm:$0xff]  }
 0x2b2   :  { %1729 = vmatpush1.bf16.msra.mxu0 %v3116_v14  ;;  %v1159_v14 = vld [vmem:[%s5115_s7 + $0x158] sm:$0xff] }
 0x2b3   :  { %1730 = vmatprep.subr.bf16.mxu0 %v3125_v15  ;;  %v1163_v15 = vld [vmem:[%s5115_s7 + $0x178] sm:$0xff] }
 0x2b6   :  { %1731 = vmatpush1.bf16.msra.mxu0 %v3124_v18  ;;  %v3151_v18 = vcombine.high %v1159_v14, %v1163_v15 }
 0x2b7   :  { %1732 = vmatprep.subr.bf16.mxu0 %v3133_v19  ;;  %v3569_v19 = vld [vmem:[%s5119_s11 + $0xe0] ss:$8 sps:$4 sm:$0xff]  }
 0x2ba   :  { %1733 = vmatpush1.bf16.msra.mxu0 %v3132_v22  ;;  %v3150_v22 = vcombine.low %v1159_v14, %v1163_v15  ;;  %v3614_v14 = vld [vmem:[%s5119_s11 + $0x1e0] ss:$8 sps:$4 sm:$0xff]   ;;  %v3622_v15 = vld [vmem:[%s5119_s11 + $0x1f4] ss:$8 sps:$4 sm:$0xff]  }
 0x2bb   :  { %1734 = vmatprep.subr.bf16.mxu0 %v3141_v23  ;;  %v3577_v23 = vld [vmem:[%s5119_s11 + $0xf4] ss:$8 sps:$4 sm:$0xff]  }
 0x2be   :  { %1735 = vmatpush1.bf16.msra.mxu0 %v3140_v25  ;;  %v1175_v25 = vld [vmem:[%s5115_s7 + $0x1d8] sm:$0xff] }
 0x2bf   :  { %1736 = vmatprep.subr.bf16.mxu0 %v3149_v26  ;;  %v1179_v26 = vld [vmem:[%s5115_s7 + $0x1f8] sm:$0xff] }
 0x2c0   :  { %v3167_v50 = vcombine.high %v1175_v25, %v1179_v26  ;;  %v3166_v31 = vcombine.low %v1175_v25, %v1179_v26 }
 0x2c2   :  { %1737 = vmatpush1.bf16.msra.mxu0 %v3148_v29  ;;  %v1183_v29 = vld [vmem:[%s5115_s7 + $0x218] sm:$0xff] }
 0x2c3   :  { %1738 = vmatprep.subr.bf16.mxu0 %v3157_v30  ;;  %v1187_v30 = vld [vmem:[%s5115_s7 + $0x238] sm:$0xff] }
 0x2c4   :  { %v3174_v39 = vcombine.low %v1183_v29, %v1187_v30 }
 0x2c6   :  { %1739 = vmatpush1.bf16.msra.mxu0 %v3156_v34  ;;  %v3175_v34 = vcombine.high %v1183_v29, %v1187_v30 }
 0x2c7   :  { %1740 = vmatprep.subr.bf16.mxu0 %v3165_v35  ;;  %v1191_v35 = vld [vmem:[%s5115_s7 + $0x258] sm:$0xff] }
 0x2ca   :  { %1741 = vmatpush1.bf16.msra.mxu0 %v3164_v40  ;;  %v3183_v40 = vcombine.high %v1191_v35, %v1195_v38 }
 0x2cb   :  { %1742 = vmatprep.subr.bf16.mxu0 %v3173_v41  ;;  %v3182_v41 = vcombine.low %v1191_v35, %v1195_v38 }
 0x2ce   :  { %1743 = vmatpush1.bf16.msra.mxu0 %v3172_v44  ;;  %v3550_v44 = vld [vmem:[%s5119_s11 + $0x114] ss:$8 sps:$4 sm:$0xff]  }
 0x2cf   :  { %1744 = vmatprep.subr.bf16.mxu0 %v3181_v45  ;;  %v3548_v45 = vld [vmem:[%s5119_s11 + $0x110] ss:$8 sps:$4 sm:$0xff]  }
 0x2d2   :  { %1745 = vmatpush1.bf16.msra.mxu0 %v3180_v51  ;;  %v3560_v51 = vld [vmem:[%s5119_s11 + $0x130] ss:$8 sps:$4 sm:$0xff]  }
 0x2d3   :  { %1767 = vmatprep.subr.bf16.mxu0 %v3111_v52  ;;  %v3568_v52 = vld [vmem:[%s5119_s11 + $0x144] ss:$8 sps:$4 sm:$0xff]  }
 0x2d5   :  { %1759 = vmatmul.mubr.bf16.vlgmr.msra.gmra.mrb[16].mxu0 %v4462_v5 }
 0x2d6   :  { %1768 = vmatpush1.bf16.msra.mxu0 %v3110_v55  ;;  %3187 = vmatprep.mubr.msk.bf16.mxu0 %vm1640_vm3, %v4458_v4  ;;  %v3557_v4 = vld [vmem:[%s5119_s11 + $0xc0] ss:$8 sps:$4 sm:$0xff]   ;;  %v3572_v55 = vld [vmem:[%s5119_s11 + $0x150] ss:$8 sps:$4 sm:$0xff]  }
 0x2d7   :  { %1769 = vmatprep.subr.bf16.mxu0 %v3119_v58  ;;  %2708 = vmatpush1.bf16.msra.mxu1 %v3557_v4  ;;  %v3580_v58 = vld [vmem:[%s5119_s11 + $0x164] ss:$8 sps:$4 sm:$0xff]   ;;  %v3598_v4 = vld [vmem:[%s5119_s11 + $0x1b4] ss:$8 sps:$4 sm:$0xff]  }
 0x2d8   :  { %2709 = vmatprep.subr.bf16.mxu1 %v3565_v12  ;;  %v3610_v12 = vld [vmem:[%s5119_s11 + $0x1d4] ss:$8 sps:$4 sm:$0xff]  }
 0x2da   :  { %1770 = vmatpush1.bf16.msra.mxu0 %v3118_v62  ;;  %v3581_v62 = vld [vmem:[%s5119_s11 + $0x170] ss:$8 sps:$4 sm:$0xff]  }
 0x2db   :  { %1771 = vmatprep.subr.bf16.mxu0 %v3127_v63  ;;  %2710 = vmatpush1.bf16.msra.mxu1 %v3563_v13  ;;  %v3586_v63 = vld [vmem:[%s5119_s11 + $0x184] ss:$8 sps:$4 sm:$0xff]  }
 0x2dc   :  { %2711 = vmatprep.subr.bf16.mxu1 %v3571_v17  ;;  %v3616_v13 = vld [vmem:[%s5119_s11 + $0x1e4] ss:$8 sps:$4 sm:$0xff]  }
 0x2dd   :  { %v3655_v17 = vld [vmem:[%s5119_s11 + $0x304] ss:$8 sps:$4 sm:$0xff]  }
 0x2de   :  { %1772 = vmatpush1.bf16.msra.mxu0 %v3126_v6  ;;  %v3587_v6 = vld [vmem:[%s5119_s11 + $0x190] ss:$8 sps:$4 sm:$0xff]  }
 0x2df   :  { %1773 = vmatprep.subr.bf16.mxu0 %v3135_v8  ;;  %2712 = vmatpush1.bf16.msra.mxu1 %v3569_v19  ;;  %v3590_v8 = vld [vmem:[%s5119_s11 + $0x1a0] ss:$8 sps:$4 sm:$0xff]  }
 0x2e0   :  { %2713 = vmatprep.subr.bf16.mxu1 %v3577_v23 }
 0x2e2   :  { %1774 = vmatpush1.bf16.msra.mxu0 %v3134_v11  ;;  %v3602_v11 = vld [vmem:[%s5119_s11 + $0x1c0] ss:$8 sps:$4 sm:$0xff]  }
 0x2e3   :  { %1775 = vmatprep.subr.bf16.mxu0 %v3143_v36  ;;  %2714 = vmatpush1.bf16.msra.mxu1 %v3575_v46  ;;  %v3608_v36 = vld [vmem:[%s5119_s11 + $0x1d0] ss:$8 sps:$4 sm:$0xff]   ;;  %v4844_v46 = vld [vmem:[%s5118_s10] sm:$0xff] }
 0x2e4   :  { %2765 = vmatprep.subr.bf16.mxu1 %v3595_v32  ;;  %v1883_v38 = vrot.slane %v4844_v46, %v4244_v37 }
 0x2e6   :  { %1776 = vmatpush1.bf16.msra.mxu0 %v3142_v16  ;;  %v3620_v16 = vld [vmem:[%s5119_s11 + $0x1f0] ss:$8 sps:$4 sm:$0xff]  }
 0x2e7   :  { %1777 = vmatprep.subr.bf16.mxu0 %v3151_v18  ;;  %v4830_v18 = vld [vmem:[%s5116_s8] sm:$0xff] }
 0x2e8   :  { %v1203_v19 = vrot.slane %v4830_v18, %v4233_v33  ;;  %v1207_v20 = vrot.slane %v4830_v18, %v4244_v37 }
 0x2ea   :  { %1778 = vmatpush1.bf16.msra.mxu0 %v3150_v22  ;;  %v4839_v22 = vld [vmem:[%s5117_s9] sm:$0xff] }
 0x2eb   :  { %1779 = vmatprep.subr.bf16.mxu0 %v3159_v24 }
 0x2ee   :  { %1780 = vmatpush1.bf16.msra.mxu0 %v3158_v27 }
 0x2ef   :  { %1781 = vmatprep.subr.bf16.mxu0 %v3167_v50  ;;  %v1830_v50 = vrot.slane %v4839_v22, %v4233_v33 }
 0x2f2   :  { %1782 = vmatpush1.bf16.msra.mxu0 %v3166_v31  ;;  %v1834_v31 = vrot.slane %v4839_v22, %v4244_v37 }
 0x2f3   :  { %1783 = vmatprep.subr.bf16.mxu0 %v3175_v34  ;;  %v1879_v34 = vrot.slane %v4844_v46, %v4233_v33 }
 0x2f6   :  { %1784 = vmatpush1.bf16.msra.mxu0 %v3174_v39 }
 0x2f7   :  { %1785 = vmatprep.subr.bf16.mxu0 %v3183_v40 }
 0x2fa   :  { %1786 = vmatpush1.bf16.msra.mxu0 %v3182_v41 }
 0x2fb   :  { %2724 = vmatprep.subr.bf16.mxu0 %v3544_v42 }
 0x2fd   :  { %1800 = vmatmul.mubr.bf16.vlgmr.msra.gmra.mrb[20].mxu0 %v4462_v5  ;;  %v3562_v5 = vld [vmem:[%s5119_s11 + $0x134] ss:$8 sps:$4 sm:$0xff]  }
 0x2fe   :  { %2725 = vmatpush1.bf16.msra.mxu0 %v3542_v43 }
 0x2ff   :  { %2726 = vmatprep.subr.bf16.mxu0 %v3550_v44 }
 0x302   :  { %2727 = vmatpush1.bf16.msra.mxu0 %v3548_v45 }
 0x303   :  { %2728 = vmatprep.subr.bf16.mxu0 %v3556_v47 }
 0x306   :  { %2729 = vmatpush1.bf16.msra.mxu0 %v3554_v48 }
 0x307   :  { %2730 = vmatprep.subr.bf16.mxu0 %v3562_v5  ;;  %v3593_v5 = vld [vmem:[%s5119_s11 + $0x200] ss:$8 sps:$4 sm:$0xff]  }
 0x30a   :  { %2731 = vmatpush1.bf16.msra.mxu0 %v3560_v51 }
 0x30b   :  { %2732 = vmatprep.subr.bf16.mxu0 %v3568_v52  ;;  %v3601_v52 = vld [vmem:[%s5119_s11 + $0x214] ss:$8 sps:$4 sm:$0xff]  }
 0x30e   :  { %2733 = vmatpush1.bf16.msra.mxu0 %v3566_v53  ;;  %v3599_v53 = vld [vmem:[%s5119_s11 + $0x210] ss:$8 sps:$4 sm:$0xff]  }
 0x30f   :  { %2734 = vmatprep.subr.bf16.mxu0 %v3574_v54  ;;  %v3607_v54 = vld [vmem:[%s5119_s11 + $0x224] ss:$8 sps:$4 sm:$0xff]  }
 0x312   :  { %2735 = vmatpush1.bf16.msra.mxu0 %v3572_v55  ;;  %v3605_v55 = vld [vmem:[%s5119_s11 + $0x220] ss:$8 sps:$4 sm:$0xff]  }
 0x313   :  { %2736 = vmatprep.subr.bf16.mxu0 %v3580_v58  ;;  %v3613_v58 = vld [vmem:[%s5119_s11 + $0x234] ss:$8 sps:$4 sm:$0xff]  }
 0x316   :  { %2737 = vmatpush1.bf16.msra.mxu0 %v3578_v60  ;;  %v3611_v60 = vld [vmem:[%s5119_s11 + $0x230] ss:$8 sps:$4 sm:$0xff]  }
 0x317   :  { %2738 = vmatprep.subr.bf16.mxu0 %v3583_v61  ;;  %v3619_v61 = vld [vmem:[%s5119_s11 + $0x244] ss:$8 sps:$4 sm:$0xff]  }
 0x31a   :  { %2739 = vmatpush1.bf16.msra.mxu0 %v3581_v62  ;;  %v3617_v62 = vld [vmem:[%s5119_s11 + $0x240] ss:$8 sps:$4 sm:$0xff]  }
 0x31b   :  { %2740 = vmatprep.subr.bf16.mxu0 %v3586_v63  ;;  %v3625_v63 = vld [vmem:[%s5119_s11 + $0x254] ss:$8 sps:$4 sm:$0xff]  }
 0x31e   :  { %2741 = vmatpush1.bf16.msra.mxu0 %v3584_v1  ;;  %v3623_v1 = vld [vmem:[%s5119_s11 + $0x250] ss:$8 sps:$4 sm:$0xff]  }
 0x31f   :  { %2742 = vmatprep.subr.bf16.mxu0 %v3589_v3  ;;  %v1211_v3 = vrot.slane %v4830_v18, %v4322_v49 }
 0x322   :  { %2743 = vmatpush1.bf16.msra.mxu0 %v3587_v6  ;;  %v3628_v6 = vld [vmem:[%s5119_s11 + $0x264] ss:$8 sps:$4 sm:$0xff]  }
 0x323   :  { %2744 = vmatprep.subr.bf16.mxu0 %v3592_v7  ;;  %v1215_v7 = vrot.slane %v4830_v18, %v4263_v56 }
 0x326   :  { %2745 = vmatpush1.bf16.msra.mxu0 %v3590_v8 }
 0x327   :  { %2746 = vmatprep.subr.bf16.mxu0 %v3598_v4  ;;  %v3626_v4 = vld [vmem:[%s5119_s11 + $0x260] ss:$8 sps:$4 sm:$0xff]  }
 0x32a   :  { %2747 = vmatpush1.bf16.msra.mxu0 %v3596_v9 }
 0x32b   :  { %2748 = vmatprep.subr.bf16.mxu0 %v3604_v10 }
 0x32e   :  { %2749 = vmatpush1.bf16.msra.mxu0 %v3602_v11  ;;  %v3631_v11 = vld [vmem:[%s5119_s11 + $0x274] ss:$8 sps:$4 sm:$0xff]  }
 0x32f   :  { %2750 = vmatprep.subr.bf16.mxu0 %v3610_v12 }
 0x332   :  { %2751 = vmatpush1.bf16.msra.mxu0 %v3608_v36 }
 0x333   :  { %2752 = vmatprep.subr.bf16.mxu0 %v3616_v13 }
 0x336   :  { %2753 = vmatpush1.bf16.msra.mxu0 %v3614_v14  ;;  %v1838_v14 = vrot.slane %v4839_v22, %v4322_v49 }
 0x337   :  { %2754 = vmatprep.subr.bf16.mxu0 %v3622_v15 }
 0x33a   :  { %2755 = vmatpush1.bf16.msra.mxu0 %v3620_v16 }
 0x33b   :  { %2806 = vmatprep.subr.bf16.mxu0 %v3655_v17  ;;  %v1842_v17 = vrot.slane %v4839_v22, %v4263_v56 }
 0x358   :  { %v1678_v21 = vpop.f32.mrb[8].mxu0 }
 0x359   :  { %v1679_v23 = vadd.f32 %v1678_v21, %v1203_v19  ;;  %v1680_v24 = vpop.f32.mrb[9].mxu0  ;;  %v3629_v19 = vld [vmem:[%s5119_s11 + $0x270] ss:$8 sps:$4 sm:$0xff]   ;;  %v1887_v21 = vrot.slane %v4844_v46, %v4322_v49  ;;  %v3637_v49 = vld [vmem:[%s5119_s11 + $0x294] ss:$8 sps:$4 sm:$0xff]  }
 0x35a   :  { %v1681_v25 = vadd.f32 %v1680_v24, %v1207_v20  ;;  %v1682_v26 = vpop.f32.mrb[10].mxu0 }
 0x35b   :  { %v1808_v27 = vmax.f32 %v1679_v23, 0.0  ;;  %v1683_v29 = vpop.f32.mrb[11].mxu0  ;;  %v3634_v23 = vld [vmem:[%s5119_s11 + $0x284] ss:$8 sps:$4 sm:$0xff]  }
 0x35c   :  { %v1809_v30 = vmax.f32 %v1681_v25, 0.0  ;;  %v1891_v25 = vrot.slane %v4844_v46, %v4263_v56  ;;  %v3635_v56 = vld [vmem:[%s5119_s11 + $0x290] ss:$8 sps:$4 sm:$0xff]  }
 0x35d   :  { %v1816_v32 = vmin.f32 %v1808_v27, 6.0 }
 0x35e   :  { %v1817_v35 = vmin.f32 %v1809_v30, 6.0 }
 0x35f   :  { %v1867_v39 = vmul.f32 %v1830_v50, %v1816_v32  ;;  %v3632_v50 = vld [vmem:[%s5119_s11 + $0x280] ss:$8 sps:$4 sm:$0xff]  }
 0x360   :  { %v1868_v40 = vmul.f32 %v1834_v31, %v1817_v35  ;;  %v3640_v35 = vld [vmem:[%s5119_s11 + $0x2a4] ss:$8 sps:$4 sm:$0xff]  }
 0x361   :  { %v1916_v41 = vadd.f32 %v1879_v34, %v1867_v39 }
 0x362   :  { %v1917_v42 = vadd.f32 %v1883_v38, %v1868_v40  ;;  %v3638_v40 = vld [vmem:[%s5119_s11 + $0x2a0] ss:$8 sps:$4 sm:$0xff]  }
 0x363   :  { %v1924_v43 = vmax.f32 %v1916_v41, 0.0  ;;  %v3653_v41 = vld [vmem:[%s5119_s11 + $0x300] ss:$8 sps:$4 sm:$0xff]  }
 0x364   :  { %v1925_v44 = vmax.f32 %v1917_v42, 0.0 }
 0x365   :  { %v1932_v45 = vmin.f32 %v1924_v43, 6.0  ;;  %v3643_v43 = vld [vmem:[%s5119_s11 + $0x2b4] ss:$8 sps:$4 sm:$0xff]  }
 0x366   :  { %v1933_v47 = vmin.f32 %v1925_v44, 6.0  ;;  %v3661_v44 = vld [vmem:[%s5119_s11 + $0x314] ss:$8 sps:$4 sm:$0xff]  }
 0x367   :  { %v2061_v51 = vpack.c.bf16 %v1932_v45, %v1932_v45  ;;  %v3641_v45 = vld [vmem:[%s5119_s11 + $0x2b0] ss:$8 sps:$4 sm:$0xff]  }
 0x368   :  { %v2062_v48 = vpack.c.bf16 %v1933_v47, %v1933_v47  ;;  %v3659_v47 = vld [vmem:[%s5119_s11 + $0x310] ss:$8 sps:$4 sm:$0xff]  }
 0x36a   :  { %2715 = vmatprep.mubr.bf16.mxu1 %v2062_v48  ;;  %v3646_v48 = vld [vmem:[%s5119_s11 + $0x2c4] ss:$8 sps:$4 sm:$0xff]  }
 0x36b   :  { %2716 = vmatmul.mubr.bf16.vlgmr.msra.gmra.mrb[8].mxu1 %v2061_v51  ;;  %v3644_v51 = vld [vmem:[%s5119_s11 + $0x2c0] ss:$8 sps:$4 sm:$0xff]  }
 0x36c   :  { %2766 = vmatpush1.bf16.msra.mxu1 %v3593_v5  ;;  %v3664_v5 = vld [vmem:[%s5119_s11 + $0x324] ss:$8 sps:$4 sm:$0xff]  }
 0x36d   :  { %2767 = vmatprep.subr.bf16.mxu1 %v3601_v52  ;;  %v3662_v52 = vld [vmem:[%s5119_s11 + $0x320] ss:$8 sps:$4 sm:$0xff]  }
 0x370   :  { %2768 = vmatpush1.bf16.msra.mxu1 %v3599_v53  ;;  %v3649_v53 = vld [vmem:[%s5119_s11 + $0x2d4] ss:$8 sps:$4 sm:$0xff]  }
 0x371   :  { %2769 = vmatprep.subr.bf16.mxu1 %v3607_v54  ;;  %v3667_v54 = vld [vmem:[%s5119_s11 + $0x334] ss:$8 sps:$4 sm:$0xff]  }
 0x374   :  { %2770 = vmatpush1.bf16.msra.mxu1 %v3605_v55  ;;  %v3647_v55 = vld [vmem:[%s5119_s11 + $0x2d0] ss:$8 sps:$4 sm:$0xff]  }
 0x375   :  { %2771 = vmatprep.subr.bf16.mxu1 %v3613_v58  ;;  %v3665_v58 = vld [vmem:[%s5119_s11 + $0x330] ss:$8 sps:$4 sm:$0xff]  }
 0x378   :  { %2772 = vmatpush1.bf16.msra.mxu1 %v3611_v60  ;;  %v3652_v60 = vld [vmem:[%s5119_s11 + $0x2e4] ss:$8 sps:$4 sm:$0xff]  }
 0x379   :  { %2773 = vmatprep.subr.bf16.mxu1 %v3619_v61  ;;  %v3670_v61 = vld [vmem:[%s5119_s11 + $0x344] ss:$8 sps:$4 sm:$0xff]  }
 0x37c   :  { %2774 = vmatpush1.bf16.msra.mxu1 %v3617_v62  ;;  %v3650_v62 = vld [vmem:[%s5119_s11 + $0x2e0] ss:$8 sps:$4 sm:$0xff]  }
 0x37d   :  { %2775 = vmatprep.subr.bf16.mxu1 %v3625_v63  ;;  %v3668_v63 = vld [vmem:[%s5119_s11 + $0x340] ss:$8 sps:$4 sm:$0xff]  }
 0x380   :  { %v1719_v8 = vpop.f32.mrb[12].mxu0  ;;  %2776 = vmatpush1.bf16.msra.mxu1 %v3623_v1  ;;  %v3658_v1 = vld [vmem:[%s5119_s11 + $0x2f4] ss:$8 sps:$4 sm:$0xff]  }
 0x381   :  { %v1720_v9 = vadd.f32 %v1719_v8, %v1211_v3  ;;  %v1721_v10 = vpop.f32.mrb[13].mxu0  ;;  %2777 = vmatprep.subr.bf16.mxu1 %v3628_v6  ;;  %v3673_v3 = vld [vmem:[%s5119_s11 + $0x354] ss:$8 sps:$4 sm:$0xff]   ;;  %v1222_v6 = vsub.s32 5, %v4224_v28  ;;  %v3671_v8 = vld [vmem:[%s5119_s11 + $0x350] ss:$8 sps:$4 sm:$0xff]  }
 0x382   :  { %v1722_v12 = vadd.f32 %v1721_v10, %v1215_v7  ;;  %v1723_v36 = vpop.f32.mrb[14].mxu0  ;;  %v3656_v7 = vld [vmem:[%s5119_s11 + $0x2f0] ss:$8 sps:$4 sm:$0xff]  }
 0x383   :  { %v1810_v13 = vmax.f32 %v1720_v9, 0.0  ;;  %v1724_v15 = vpop.f32.mrb[15].mxu0  ;;  %v3676_v9 = vld [vmem:[%s5119_s11 + $0x364] ss:$8 sps:$4 sm:$0xff]   ;;  %v1223_v10 = vrot.slane %v4830_v18, %v1222_v6 }
 0x384   :  { %v1811_v16 = vmax.f32 %v1722_v12, 0.0  ;;  %2778 = vmatpush1.bf16.msra.mxu1 %v3626_v4  ;;  %v1219_v4 = vrot.slane %v4830_v18, %v4354_v2  ;;  %v3674_v12 = vld [vmem:[%s5119_s11 + $0x360] ss:$8 sps:$4 sm:$0xff]  }
 0x385   :  { %v1818_v20 = vmin.f32 %v1810_v13, 6.0  ;;  %2779 = vmatprep.subr.bf16.mxu1 %v3631_v11 }
 0x386   :  { %v1819_v24 = vmin.f32 %v1811_v16, 6.0 }
 0x387   :  { %v1869_v26 = vmul.f32 %v1838_v14, %v1818_v20  ;;  %v3679_v14 = vld [vmem:[%s5119_s11 + $0x374] ss:$8 sps:$4 sm:$0xff]  }
 0x388   :  { %v1870_v27 = vmul.f32 %v1842_v17, %v1819_v24  ;;  %2780 = vmatpush1.bf16.msra.mxu1 %v3629_v19  ;;  %v1846_v19 = vrot.slane %v4839_v22, %v4354_v2  ;;  %v3677_v24 = vld [vmem:[%s5119_s11 + $0x370] ss:$8 sps:$4 sm:$0xff]  }
 0x389   :  { %v1918_v29 = vadd.f32 %v1887_v21, %v1869_v26  ;;  %2781 = vmatprep.subr.bf16.mxu1 %v3634_v23  ;;  %v1850_v23 = vrot.slane %v4839_v22, %v1222_v6  ;;  %v1895_v26 = vrot.slane %v4844_v46, %v4354_v2  ;;  %v3685_v2 = vld [vmem:[%s5119_s11 + $0x394] ss:$8 sps:$4 sm:$0xff]  }
 0x38a   :  { %v1919_v30 = vadd.f32 %v1891_v25, %v1870_v27  ;;  %v3682_v27 = vld [vmem:[%s5119_s11 + $0x384] ss:$8 sps:$4 sm:$0xff]  }
 0x38b   :  { %v1926_v31 = vmax.f32 %v1918_v29, 0.0  ;;  %v1899_v29 = vrot.slane %v4844_v46, %v1222_v6 }
 0x38c   :  { %v1927_v32 = vmax.f32 %v1919_v30, 0.0  ;;  %2782 = vmatpush1.bf16.msra.mxu1 %v3632_v50 }
 0x38d   :  { %v1934_v34 = vmin.f32 %v1926_v31, 6.0  ;;  %2783 = vmatprep.subr.bf16.mxu1 %v3637_v49  ;;  %v3680_v31 = vld [vmem:[%s5119_s11 + $0x380] ss:$8 sps:$4 sm:$0xff]  }
 0x38e   :  { %v1935_v38 = vmin.f32 %v1927_v32, 6.0 }
 0x38f   :  { %v2063_v42 = vpack.c.bf16 %v1934_v34, %v1934_v34 }
 0x390   :  { %v2064_v39 = vpack.c.bf16 %v1935_v38, %v1935_v38  ;;  %2784 = vmatpush1.bf16.msra.mxu1 %v3635_v56  ;;  %v3683_v38 = vld [vmem:[%s5119_s11 + $0x390] ss:$8 sps:$4 sm:$0xff]  }
 0x391   :  { %2785 = vmatprep.subr.bf16.mxu1 %v3640_v35 }
 0x392   :  { %2756 = vmatprep.mubr.bf16.mxu0 %v2064_v39 }
 0x393   :  { %2757 = vmatmul.mubr.bf16.vlgmr.msra.gmra.mrb[24].mxu0 %v2063_v42 }
 0x394   :  { %2786 = vmatpush1.bf16.msra.mxu1 %v3638_v40  ;;  %2807 = vmatpush1.bf16.msra.mxu0 %v3653_v41  ;;  %v3688_v40 = vld [vmem:[%s5119_s11 + $0x3a4] ss:$8 sps:$4 sm:$0xff]  }
 0x395   :  { %2787 = vmatprep.subr.bf16.mxu1 %v3643_v43  ;;  %2808 = vmatprep.subr.bf16.mxu0 %v3661_v44  ;;  %v3686_v43 = vld [vmem:[%s5119_s11 + $0x3a0] ss:$8 sps:$4 sm:$0xff]  }
 0x398   :  { %2788 = vmatpush1.bf16.msra.mxu1 %v3641_v45  ;;  %2809 = vmatpush1.bf16.msra.mxu0 %v3659_v47  ;;  %v3691_v45 = vld [vmem:[%s5119_s11 + $0x3b4] ss:$8 sps:$4 sm:$0xff]   ;;  %v3689_v47 = vld [vmem:[%s5119_s11 + $0x3b0] ss:$8 sps:$4 sm:$0xff]  }
 0x399   :  { %2789 = vmatprep.subr.bf16.mxu1 %v3646_v48  ;;  %2810 = vmatprep.subr.bf16.mxu0 %v3664_v5  ;;  %v1226_v48 = vsub.s32 6, %v4224_v28  ;;  %v1230_v5 = vsub.s32 7, %v4224_v28 }
 0x39c   :  { %2790 = vmatpush1.bf16.msra.mxu1 %v3644_v51  ;;  %2811 = vmatpush1.bf16.msra.mxu0 %v3662_v52  ;;  %v1227_v51 = vrot.slane %v4830_v18, %v1226_v48  ;;  %v1231_v52 = vrot.slane %v4830_v18, %v1230_v5 }
 0x39d   :  { %2791 = vmatprep.subr.bf16.mxu1 %v3649_v53  ;;  %2812 = vmatprep.subr.bf16.mxu0 %v3667_v54 }
 0x3a0   :  { %2792 = vmatpush1.bf16.msra.mxu1 %v3647_v55  ;;  %2813 = vmatpush1.bf16.msra.mxu0 %v3665_v58 }
 0x3a1   :  { %2793 = vmatprep.subr.bf16.mxu1 %v3652_v60  ;;  %2814 = vmatprep.subr.bf16.mxu0 %v3670_v61 }
 0x3a4   :  { %2794 = vmatpush1.bf16.msra.mxu1 %v3650_v62  ;;  %2815 = vmatpush1.bf16.msra.mxu0 %v3668_v63  ;;  %v1854_v62 = vrot.slane %v4839_v22, %v1226_v48 }
 0x3a5   :  { %2795 = vmatprep.subr.bf16.mxu1 %v3658_v1  ;;  %2816 = vmatprep.subr.bf16.mxu0 %v3673_v3  ;;  %v1858_v3 = vrot.slane %v4839_v22, %v1230_v5  ;;  %v3692_v22 = vld [vmem:[%s5121_s13] sm:$0xff]  }
 0x3a8   :  { %v1760_v11 = vpop.f32.mrb[16].mxu0  ;;  %2796 = vmatpush1.bf16.msra.mxu1 %v3656_v7  ;;  %2817 = vmatpush1.bf16.msra.mxu0 %v3671_v8  ;;  %v1903_v7 = vrot.slane %v4844_v46, %v1226_v48  ;;  %v1907_v8 = vrot.slane %v4844_v46, %v1230_v5  ;;  %v3693_v46 = vld [vmem:[%s5121_s13 + $0x8] sm:$0xff]  }
 0x3a9   :  { %v1761_v36 = vadd.f32 %v1760_v11, %v1219_v4  ;;  %v1762_v13 = vpop.f32.mrb[17].mxu0  ;;  %2818 = vmatprep.subr.bf16.mxu0 %v3676_v9  ;;  %2934 = vmatprep.subr.bf16.mxu1 %v3847_v0 }
 0x3aa   :  { %v1763_v15 = vadd.f32 %v1762_v13, %v1223_v10  ;;  %v1764_v16 = vpop.f32.mrb[18].mxu0 }
 0x3ab   :  { %v1812_v17 = vmax.f32 %v1761_v36, 0.0  ;;  %v1765_v20 = vpop.f32.mrb[19].mxu0  ;;  %v3694_v16 = vld [vmem:[%s5121_s13 + $0x10] sm:$0xff]  }
 0x3ac   :  { %v1813_v21 = vmax.f32 %v1763_v15, 0.0  ;;  %2819 = vmatpush1.bf16.msra.mxu0 %v3674_v12  ;;  %v3697_v20 = vld [vmem:[%s5121_s13 + $0x28] sm:$0xff]  }
 0x3ad   :  { %v1820_v25 = vmin.f32 %v1812_v17, 6.0  ;;  %2820 = vmatprep.subr.bf16.mxu0 %v3679_v14  ;;  %v3695_v17 = vld [vmem:[%s5121_s13 + $0x18] sm:$0xff]  }
 0x3ae   :  { %v1821_v50 = vmin.f32 %v1813_v21, 6.0  ;;  %v3698_v21 = vld [vmem:[%s5121_s13 + $0x30] sm:$0xff]  }
 0x3af   :  { %v1871_v49 = vmul.f32 %v1846_v19, %v1820_v25  ;;  %v3696_v19 = vld [vmem:[%s5121_s13 + $0x20] sm:$0xff]   ;;  %v3701_v25 = vld [vmem:[%s5121_s13 + $0x48] sm:$0xff]  }
 0x3b0   :  { %v1872_v30 = vmul.f32 %v1850_v23, %v1821_v50  ;;  %2821 = vmatpush1.bf16.msra.mxu0 %v3677_v24  ;;  %v3699_v23 = vld [vmem:[%s5121_s13 + $0x38] sm:$0xff]   ;;  %v3700_v24 = vld [vmem:[%s5121_s13 + $0x40] sm:$0xff]   ;;  %s3850_s13 = smov [#allocation11]  }
 0x3b1   :  { %v1920_v32 = vadd.f32 %v1895_v26, %v1871_v49  ;;  %2822 = vmatprep.subr.bf16.mxu0 %v3682_v27  ;;  %v2060_v49 = vld [vmem:[#allocation10] sm:$0x3]  ;;  %s2983_s22 = sshll.u32 %s3850_s13, 4  ;;  %s2984_s22 = int_to_ptr.vmem [resolvable:$true] %s2983_s22 }
 0x3b2   :  { %v1921_v56 = vadd.f32 %v1899_v29, %v1872_v30  ;;  %v2073_v30 = vrot.slane %v2060_v49, %v4233_v33  ;;  %s3812_s12 = scalar_lea.vmem %s2984_s22, 256  ;;  %p3817_p13 = scmp.lt.s32.totalorder %s2984_s22, %s2984_s22 }
 0x3b3   :  { %v1928_v34 = vmax.f32 %v1920_v32, 0.0  ;;  %p3813_p12 = scmp.ne.s32.totalorder %s2984_s22, %s3812_s12  ;;  %p3818_p0 = scmp.lt.s32.totalorder %s3812_s12, %s3812_s12 }
 0x3b4   :  { %v1929_v35 = vmax.f32 %v1921_v56, 0.0  ;;  %2823 = vmatpush1.bf16.msra.mxu0 %v3680_v31  ;;  %v2077_v31 = vrot.slane %v2060_v49, %v4244_v37 }
 0x3b5   :  { %v1936_v39 = vmin.f32 %v1928_v34, 6.0  ;;  %2824 = vmatprep.subr.bf16.mxu0 %v3685_v2  ;;  %p3819_p1 = por %p3818_p0, %p3817_p13 }
 0x3b6   :  { %v1937_v41 = vmin.f32 %v1929_v35, 6.0 }
 0x3b7   :  { %v2065_v44 = vpack.c.bf16 %v1936_v39, %v1936_v39  ;;  %p3820_p2 = pnand %p3819_p1, %p3813_p12 }
 0x3b8   :  { %v2066_v42 = vpack.c.bf16 %v1937_v41, %v1937_v41  ;;  %2825 = vmatpush1.bf16.msra.mxu0 %v3683_v38 }
 0x3b9   :  { %2826 = vmatprep.subr.bf16.mxu0 %v3688_v40 }
 0x3ba   :  { %2797 = vmatprep.mubr.bf16.mxu1 %v2066_v42 }
 0x3bb   :  { %2798 = vmatmul.mubr.bf16.vlgmr.msra.gmra.mrb[12].mxu1 %v2065_v44 }
 0x3bc   :  { %2827 = vmatpush1.bf16.msra.mxu0 %v3686_v43  ;;  %2935 = vmatpush1.bf16.msra.mxu1 %v3692_v22 }
 0x3bd   :  { %2828 = vmatprep.subr.bf16.mxu0 %v3691_v45  ;;  %2936 = vmatprep.subr.bf16.mxu1 %v3847_v0 }
 0x3c0   :  { %2829 = vmatpush1.bf16.msra.mxu0 %v3689_v47  ;;  %2937 = vmatpush1.bf16.msra.mxu1 %v3693_v46 }
 0x3c1   :  { %2938 = vmatprep.subr.bf16.mxu1 %v3847_v0 }
 0x3c4   :  { %2939 = vmatpush1.bf16.msra.mxu1 %v3694_v16 }
 0x3c5   :  { %2940 = vmatprep.subr.bf16.mxu1 %v3847_v0 }
 0x3c8   :  { %2941 = vmatpush1.bf16.msra.mxu1 %v3695_v17 }
 0x3c9   :  { %2942 = vmatprep.subr.bf16.mxu1 %v3847_v0 }
 0x3cc   :  { %2943 = vmatpush1.bf16.msra.mxu1 %v3696_v19 }
 0x3cd   :  { %2944 = vmatprep.subr.bf16.mxu1 %v3847_v0 }
 0x3d0   :  { %v1801_v53 = vpop.f32.mrb[20].mxu0  ;;  %2945 = vmatpush1.bf16.msra.mxu1 %v3697_v20 }
 0x3d1   :  { %v1802_v54 = vadd.f32 %v1801_v53, %v1227_v51  ;;  %v1803_v55 = vpop.f32.mrb[21].mxu0  ;;  %2946 = vmatprep.subr.bf16.mxu1 %v3847_v0 }
 0x3d2   :  { %v1804_v58 = vadd.f32 %v1803_v55, %v1231_v52  ;;  %v1805_v60 = vpop.f32.mrb[22].mxu0 }
 0x3d3   :  { %v1814_v61 = vmax.f32 %v1802_v54, 0.0  ;;  %v1806_v63 = vpop.f32.mrb[23].mxu0 }
 0x3d4   :  { %v1815_v1 = vmax.f32 %v1804_v58, 0.0  ;;  %2947 = vmatpush1.bf16.msra.mxu1 %v3698_v21 }
 0x3d5   :  { %v1822_v6 = vmin.f32 %v1814_v61, 6.0  ;;  %2948 = vmatprep.subr.bf16.mxu1 %v3847_v0 }
 0x3d6   :  { %v1823_v28 = vmin.f32 %v1815_v1, 6.0 }
 0x3d7   :  { %v1873_v4 = vmul.f32 %v1854_v62, %v1822_v6 }
 0x3d8   :  { %v1874_v18 = vmul.f32 %v1858_v3, %v1823_v28  ;;  %2949 = vmatpush1.bf16.msra.mxu1 %v3699_v23 }
 0x3d9   :  { %v1922_v9 = vadd.f32 %v1903_v7, %v1873_v4  ;;  %2950 = vmatprep.subr.bf16.mxu1 %v3847_v0 }
 0x3da   :  { %v1923_v10 = vadd.f32 %v1907_v8, %v1874_v18 }
 0x3db   :  { %v1930_v11 = vmax.f32 %v1922_v9, 0.0 }
 0x3dc   :  { %v1931_v12 = vmax.f32 %v1923_v10, 0.0  ;;  %2951 = vmatpush1.bf16.msra.mxu1 %v3700_v24 }
 0x3dd   :  { %v1938_v36 = vmin.f32 %v1930_v11, 6.0  ;;  %2952 = vmatprep.subr.bf16.mxu1 %v3847_v0 }
 0x3de   :  { %v1939_v13 = vmin.f32 %v1931_v12, 6.0 }
 0x3df   :  { %v2067_v15 = vpack.c.bf16 %v1938_v36, %v1938_v36 }
 0x3e0   :  { %v2068_v14 = vpack.c.bf16 %v1939_v13, %v1939_v13  ;;  %2953 = vmatpush1.bf16.msra.mxu1 %v3701_v25 }
 0x3e2   :  { %3308 = vmatprep.mubr.msk.bf16.mxu0 %vm989_vm2, %v2068_v14 }
 0x3e3   :  { %2839 = vmatmul.mubr.bf16.vlgmr.msra.gmra.mrb[28].mxu0 %v2067_v15 }
 0x43e   :  { %v2717_v26 = vpop.f32.mrb[8].mxu1 }
 0x43f   :  { %v2719_v27 = vpop.f32.mrb[9].mxu1  ;;  %v2718_v32 = vadd.f32 %v2717_v26, %v2073_v30 }
 0x440   :  { %v2721_v50 = vpop.f32.mrb[10].mxu1  ;;  %v2720_v2 = vadd.f32 %v2719_v27, %v2077_v31 }
 0x441   :  { %v2722_v29 = vpop.f32.mrb[11].mxu1 }
 0x466   :  { %v2758_v56 = vpop.f32.mrb[24].mxu0 }
 0x467   :  { %v2759_v34 = vadd.f32 %v2758_v56, %v2718_v32  ;;  %v2760_v35 = vpop.f32.mrb[25].mxu0 }
 0x468   :  { %v2761_v0 = vadd.f32 %v2760_v35, %v2720_v2  ;;  %v2762_v38 = vpop.f32.mrb[26].mxu0 }
 0x469   :  { %v2763_v39 = vpop.f32.mrb[27].mxu0 }
 0x48e   :  { %v2799_v40 = vpop.f32.mrb[12].mxu1 }
 0x48f   :  { %v2800_v41 = vadd.f32 %v2799_v40, %v2759_v34  ;;  %v2801_v42 = vpop.f32.mrb[13].mxu1 }
 0x490   :  { %v2802_v43 = vadd.f32 %v2801_v42, %v2761_v0  ;;  %v2803_v44 = vpop.f32.mrb[14].mxu1 }
 0x491   :  { %v2804_v45 = vpop.f32.mrb[15].mxu1 }
 0x4b6   :  { %v2840_v47 = vpop.f32.mrb[28].mxu0 }
 0x4b7   :  { %v2841_v48 = vadd.f32 %v2840_v47, %v2800_v41  ;;  %v2842_v5 = vpop.f32.mrb[29].mxu0 }
 0x4b8   :  { %v2843_v33 = vadd.f32 %v2842_v5, %v2802_v43  ;;  %v2844_v51 = vpop.f32.mrb[30].mxu0 }
 0x4b9   :  { %v2847_v37 = vadd.f32 %v4440_v57, %v2841_v48  ;;  %v2845_v52 = vpop.f32.mrb[31].mxu0 }
 0x4ba   :  { %v2848_v53 = vadd.f32 %v4442_v59, %v2843_v33 }
 0x4bb   :  { %2975 = vst [vmem:[#allocation11] sm:$0xff] %v2847_v37  ;;  %v2869_v55 = vpack.c.bf16 %v2847_v37, %v2847_v37 }
 0x4bc   :  { %v2870_v54 = vpack.c.bf16 %v2848_v53, %v2848_v53  ;;  %2976 = vst.msk [vmem:[#allocation11 + $0x8] sm:$0xff] %vm1640_vm3, %v2848_v53 }
 0x4be   :  { %3319 = vmatprep.mubr.msk.bf16.mxu1 %vm1640_vm3, %v2870_v54 }
 0x4bf   :  { %2967 = vmatmul.mubr.bf16.vlgmr.msra.gmra.mrb[16].mxu1 %v2869_v55 }
 0x4c0   :  { %3823 = shalt.err (!%p3820_p2)
}
 0x4c1   :  { %s3824_s2 = scalar_lea.hbm %s5122_s14, 256 }
 0x4c2   :  { %p3825_p3 = scmp.ne.s32.totalorder %s5122_s14, %s3824_s2  ;;  %p3828_p4 = scmp.lt.u32.totalorder %s3824_s2, %s5122_s14 }
 0x4c4   :  { %p3830_p5 = pnand %p3828_p4, %p3825_p3 }
 0x4c6   :  { %3833 = shalt.err (!%p3830_p5)
}
 0x4c7   :  { %2986 = dma.vmem_to_hbm [thread:$0]  %s2984_s22, 256, %s5122_s14, [#allocation4]  }
 0x592   :  { %v2968_v57 = vpop.f32.mrb[16].mxu1 }
 0x593   :  { %2974 = vst [vmem:[%s5123_s15] sm:$0xff] %v2968_v57  ;;  %v2970_v59 = vpop.f32.mrb[17].mxu1 }
 0x594   :  { %v2971_v58 = vpop.f32.mrb[18].mxu1 }
 0x595   :  { %v2972_v60 = vpop.f32.mrb[19].mxu1 }
 0x596   :  { %3840 = dma.done.wait [#allocation4], 256  }
 0x597   :  { %3841 = vsyncadd [#allocation4], 4294967040 }
 0x598   :  { %2994 = vsyncpa [#allocation3], 1 }
 0x599   :  { %2995 = vsyncpa [#allocation6], 1 }
 0x59a   :  { %2996 = vsyncpa [#allocation9], 1 }
 0x59b   :  { %2997 = vsyncpa [#allocation4], 1 }

// kernel: _lambda_.17
= control target key start
LH: loop header
LB: loop body
LE: loop exit
PB: predicated region body
PF: predicated region fallthrough
CT: control target
= control target key end

     0   :  { %10 = vsyncpa [#allocation3], 0  ;;  %s805_s0 = inlined_call_operand.vmem [shape: f32[128,24], index: 0, kind: input, shape index: {}]   ;;  %s806_s1 = inlined_call_operand.vmem [shape: f32[128,128], index: 1, kind: input, shape index: {}]   ;;  %s807_s2 = inlined_call_operand.vmem [shape: bf16[24,128], index: 2, kind: input, shape index: {}]   ;;  %s808_s3 = inlined_call_operand.vmem [shape: bf16[128,128], index: 3, kind: input, shape index: {}]   ;;  %s809_s4 = inlined_call_operand.hbm [shape: f32[1,128], index: 4, kind: input, shape index: {}]   ;;  %s810_s5 = inlined_call_operand.hbm [shape: f32[128,128], index: 5, kind: output, shape index: {}]  }
   0x1   :  { %11 = vsyncpa [#allocation4], 0  ;;  %s613_s18 = smov [#allocation2]   ;;  %s565_s22 = scalar_lea.hbm %s809_s4, 16 }
   0x2   :  { %s26_s19 = sshll.u32 %s613_s18, 4  ;;  %p566_p0 = scmp.ne.s32.totalorder %s809_s4, %s565_s22  ;;  %s27_s19 = int_to_ptr.vmem [resolvable:$true] %s26_s19 }
   0x3   :  { %p569_p1 = scmp.lt.u32.totalorder %s565_s22, %s809_s4 }
   0x5   :  { %p571_p2 = pnand %p569_p1, %p566_p0 }
   0x7   :  { %574 = shalt.err (!%p571_p2)
}
   0x8   :  { %s575_s27 = scalar_lea.vmem %s27_s19, 16  ;;  %s579_s28 = scalar_lea.vmem %s27_s19, 32 }
   0x9   :  { %p576_p3 = scmp.ne.s32.totalorder %s27_s19, %s575_s27  ;;  %p580_p4 = scmp.lt.s32.totalorder %s27_s19, %s27_s19 }
   0xa   :  { %p581_p5 = scmp.lt.s32.totalorder %s579_s28, %s575_s27 }
   0xc   :  { %p582_p6 = por %p581_p5, %p580_p4 }
   0xe   :  { %p583_p7 = pnand %p582_p6, %p576_p3 }
  0x10   :  { %586 = shalt.err (!%p583_p7)
}
  0x11   :  { %29 = dma.hbm_to_vmem [thread:$0]  %s809_s4, 16, %s27_s19, [#allocation3]  }
  0x12   :  { %609 = dma.done.wait [#allocation3], 16  }
  0x13   :  { %610 = vsyncadd [#allocation3], 4294967280  ;;  %v555_v0 = vld [vmem:[%s807_s2] sm:$0xff]   ;;  %v556_v1 = vld [vmem:[%s807_s2 + $0x8] ss:$0 sps:$4 sm:$0xff]   ;;  %vm111_vm0 = vcmask 1043456  }
  0x14   :  { %v34_v2 = vld [vmem:[%s805_s0] sm:$0xff]  ;;  %482 = vmatprep.subr.bf16.mxu0 %v555_v0  ;;  %v35_v3 = vld [vmem:[%s805_s0 + $0x8] sm:$0xff]  ;;  %vm86_vm1 = vcmask 195584   ;;  %v36_v5 = vld [vmem:[%s805_s0 + $0x10] sm:$0xff]  ;;  %v113_v7 = vsel %vm111_vm0, %v556_v1, 0 }
  0x15   :  { %483 = vmatpush3.bf16.msra.mxu0 %v555_v0  ;;  %v50_v4 = vpack.c.bf16 %v35_v3, %v34_v2  ;;  %v37_v6 = vld [vmem:[%s805_s0 + $0x18] sm:$0xff]  ;;  %v38_v8 = vld [vmem:[%s805_s0 + $0x20] sm:$0xff]  ;;  %v39_v9 = vld [vmem:[%s805_s0 + $0x28] sm:$0xff] }
  0x16   :  { %550 = vmatprep.subr.msk.bf16.mxu0 %vm111_vm0, %v556_v1  ;;  %v51_v10 = vpack.c.bf16 %v37_v6, %v36_v5  ;;  %v52_v11 = vpack.c.bf16 %v39_v9, %v38_v8  ;;  %v557_v12 = vld [vmem:[%s808_s3] sm:$0xff]   ;;  %v558_v13 = vld [vmem:[%s808_s3 + $0x8] sm:$0xff]   ;;  %v40_v14 = vld [vmem:[%s805_s0 + $0x30] sm:$0xff] }
  0x17   :  { %486 = vmatprep.mubr.msk.bf16.mxu0 %vm86_vm1, %v50_v4  ;;  %v41_v15 = vld [vmem:[%s805_s0 + $0x38] sm:$0xff]  ;;  %534 = vmatprep.subr.bf16.mxu1 %v557_v12  ;;  %v42_v16 = vld [vmem:[%s805_s0 + $0x40] sm:$0xff]  ;;  %v43_v17 = vld [vmem:[%s805_s0 + $0x48] sm:$0xff] }
  0x18   :  { %542 = vmatpush3.bf16.msra.mxu1 %v557_v12  ;;  %v559_v18 = vld [vmem:[%s808_s3 + $0x10] sm:$0xff]   ;;  %v53_v19 = vpack.c.bf16 %v41_v15, %v40_v14  ;;  %v54_v20 = vpack.c.bf16 %v43_v17, %v42_v16  ;;  %v560_v21 = vld [vmem:[%s808_s3 + $0x18] sm:$0xff]   ;;  %v46_v24 = vld [vmem:[%s805_s0 + $0x60] sm:$0xff] }
  0x19   :  { %485 = vmatpush3.bf16.msra.mxu0 %v113_v7  ;;  %535 = vmatprep.subr.bf16.mxu1 %v558_v13  ;;  %v44_v22 = vld [vmem:[%s805_s0 + $0x50] sm:$0xff]  ;;  %v45_v23 = vld [vmem:[%s805_s0 + $0x58] sm:$0xff]  ;;  %v47_v25 = vld [vmem:[%s805_s0 + $0x68] sm:$0xff] }
  0x1a   :  { %502 = vmatprep.subr.bf16.mxu0 %v557_v12  ;;  %v561_v26 = vld [vmem:[%s808_s3 + $0x20] sm:$0xff]   ;;  %v55_v27 = vpack.c.bf16 %v45_v23, %v44_v22  ;;  %v56_v28 = vpack.c.bf16 %v47_v25, %v46_v24  ;;  %v562_v29 = vld [vmem:[%s808_s3 + $0x28] sm:$0xff]   ;;  %v48_v30 = vld [vmem:[%s805_s0 + $0x70] sm:$0xff] }
  0x1b   :  { %v49_v31 = vld [vmem:[%s805_s0 + $0x78] sm:$0xff]  ;;  %v563_v33 = vld [vmem:[%s808_s3 + $0x30] sm:$0xff]   ;;  %v61_v39 = vld [vmem:[%s806_s1] sm:$0xff] }
  0x1c   :  { %487 = vmatmul.mubr.msk.bf16.vlgmr.msra.gmra.mrb[0].mxu0 %vm86_vm1, %v51_v10  ;;  %543 = vmatpush3.bf16.msra.mxu1 %v558_v13  ;;  %v57_v32 = vpack.c.bf16 %v49_v31, %v48_v30  ;;  %v564_v34 = vld [vmem:[%s808_s3 + $0x38] sm:$0xff]   ;;  %v63_v35 = vld [vmem:[%s806_s1 + $0x10] sm:$0xff]  ;;  %v62_v40 = vld [vmem:[%s806_s1 + $0x8] sm:$0xff] }
  0x1d   :  { %490 = vmatprep.mubr.msk.bf16.mxu0 %vm86_vm1, %v52_v11  ;;  %503 = vmatpush3.bf16.msra.mxu0 %v557_v12  ;;  %v64_v37 = vld [vmem:[%s806_s1 + $0x18] sm:$0xff]  ;;  %v67_v49 = vld [vmem:[%s806_s1 + $0x30] sm:$0xff]  ;;  %v65_v53 = vld [vmem:[%s806_s1 + $0x20] sm:$0xff] }
  0x1e   :  { %504 = vmatprep.subr.bf16.mxu0 %v558_v13  ;;  %536 = vmatprep.subr.bf16.mxu1 %v559_v18  ;;  %v68_v51 = vld [vmem:[%s806_s1 + $0x38] sm:$0xff]  ;;  %v66_v54 = vld [vmem:[%s806_s1 + $0x28] sm:$0xff]  ;;  %v71_v63 = vld [vmem:[%s806_s1 + $0x50] sm:$0xff] }
  0x1f   :  { %v72_v1 = vld [vmem:[%s806_s1 + $0x58] sm:$0xff]  ;;  %v69_v3 = vld [vmem:[%s806_s1 + $0x40] sm:$0xff]  ;;  %v70_v4 = vld [vmem:[%s806_s1 + $0x48] sm:$0xff] }
  0x20   :  { %544 = vmatpush3.bf16.msra.mxu1 %v559_v18  ;;  %v76_v15 = vld [vmem:[%s806_s1 + $0x78] sm:$0xff]  ;;  %v73_v17 = vld [vmem:[%s806_s1 + $0x60] sm:$0xff] }
  0x21   :  { %505 = vmatpush3.bf16.msra.mxu0 %v558_v13  ;;  %537 = vmatprep.subr.bf16.mxu1 %v560_v21  ;;  %v75_v13 = vld [vmem:[%s806_s1 + $0x70] sm:$0xff] }
  0x22   :  { %506 = vmatprep.subr.bf16.mxu0 %v559_v18 }
  0x24   :  { %491 = vmatmul.mubr.msk.bf16.gmra.mrb[4].mxu0 %vm86_vm1, %v53_v19  ;;  %545 = vmatpush3.bf16.msra.mxu1 %v560_v21 }
  0x25   :  { %494 = vmatprep.mubr.msk.bf16.mxu0 %vm86_vm1, %v54_v20  ;;  %507 = vmatpush3.bf16.msra.mxu0 %v559_v18  ;;  %v74_v18 = vld [vmem:[%s806_s1 + $0x68] sm:$0xff]  ;;  %s614_s1 = smov [#allocation5]  }
  0x26   :  { %508 = vmatprep.subr.bf16.mxu0 %v560_v21  ;;  %538 = vmatprep.subr.bf16.mxu1 %v561_v26  ;;  %s425_s6 = sshll.u32 %s614_s1, 4  ;;  %s426_s6 = int_to_ptr.vmem [resolvable:$true] %s425_s6 }
  0x27   :  { %s587_s7 = scalar_lea.vmem %s426_s6, 2048  ;;  %p592_p9 = scmp.lt.s32.totalorder %s426_s6, %s426_s6 }
  0x28   :  { %546 = vmatpush3.bf16.msra.mxu1 %v561_v26  ;;  %p588_p8 = scmp.ne.s32.totalorder %s426_s6, %s587_s7  ;;  %p593_p10 = scmp.lt.s32.totalorder %s587_s7, %s587_s7 }
  0x29   :  { %509 = vmatpush3.bf16.msra.mxu0 %v560_v21  ;;  %539 = vmatprep.subr.bf16.mxu1 %v562_v29 }
  0x2a   :  { %510 = vmatprep.subr.bf16.mxu0 %v561_v26  ;;  %p594_p11 = por %p593_p10, %p592_p9 }
  0x2c   :  { %495 = vmatmul.mubr.msk.bf16.gmra.mrb[8].mxu0 %vm86_vm1, %v55_v27  ;;  %547 = vmatpush3.bf16.msra.mxu1 %v562_v29  ;;  %v447_v27 = vld [vmem:[#allocation2] ss:$0 sm:$0xff]  ;;  %p595_p12 = pnand %p594_p11, %p588_p8 }
  0x2d   :  { %498 = vmatprep.mubr.msk.bf16.mxu0 %vm86_vm1, %v56_v28  ;;  %511 = vmatpush3.bf16.msra.mxu0 %v561_v26 }
  0x2e   :  { %512 = vmatprep.subr.bf16.mxu0 %v562_v29  ;;  %540 = vmatprep.subr.bf16.mxu1 %v563_v33 }
  0x30   :  { %548 = vmatpush3.bf16.msra.mxu1 %v563_v33 }
  0x31   :  { %513 = vmatpush3.bf16.msra.mxu0 %v562_v29  ;;  %541 = vmatprep.subr.bf16.mxu1 %v564_v34 }
  0x32   :  { %514 = vmatprep.subr.bf16.mxu0 %v563_v33 }
  0x34   :  { %499 = vmatmul.mubr.msk.bf16.gmra.mrb[12].mxu0 %vm86_vm1, %v57_v32  ;;  %549 = vmatpush3.bf16.msra.mxu1 %v564_v34 }
  0x35   :  { %515 = vmatpush3.bf16.msra.mxu0 %v563_v33 }
  0x36   :  { %516 = vmatprep.subr.bf16.mxu0 %v564_v34 }
  0x39   :  { %517 = vmatpush3.bf16.msra.mxu0 %v564_v34 }
  0xef   :  { %v488_v36 = vpop.f32.mrb[0].mxu0 }
  0xf0   :  { %v149_v38 = vpop.f32.mrb[1].mxu0  ;;  %v158_v42 = vadd.f32 %v488_v36, %v63_v35 }
  0xf1   :  { %v489_v41 = vpop.f32.mrb[2].mxu0  ;;  %v150_v45 = vadd.f32 %v149_v38, %v61_v39 }
  0xf2   :  { %v161_v43 = vadd.f32 %v489_v41, %v64_v37  ;;  %v152_v44 = vpop.f32.mrb[3].mxu0 }
  0xf3   :  { %v153_v46 = vadd.f32 %v152_v44, %v62_v40 }
  0xf4   :  { %v213_v47 = vpack.c.bf16 %v161_v43, %v158_v42 }
  0xf5   :  { %v212_v48 = vpack.c.bf16 %v153_v46, %v150_v45 }
  0xf7   :  { %v492_v50 = vpop.f32.mrb[4].mxu0  ;;  %518 = vmatprep.mubr.bf16.mxu0 %v212_v48 }
  0xf8   :  { %v165_v52 = vpop.f32.mrb[5].mxu0  ;;  %519 = vmatmul.mubr.bf16.vlgmr.msra.gmra.mrb[16].mxu0 %v213_v47  ;;  %v174_v56 = vadd.f32 %v492_v50, %v67_v49 }
  0xf9   :  { %v493_v55 = vpop.f32.mrb[6].mxu0  ;;  %v166_v59 = vadd.f32 %v165_v52, %v65_v53 }
  0xfa   :  { %v177_v57 = vadd.f32 %v493_v55, %v68_v51  ;;  %v168_v58 = vpop.f32.mrb[7].mxu0 }
  0xfb   :  { %v169_v60 = vadd.f32 %v168_v58, %v66_v54 }
  0xfc   :  { %v215_v61 = vpack.c.bf16 %v177_v57, %v174_v56 }
  0xfd   :  { %v214_v62 = vpack.c.bf16 %v169_v60, %v166_v59 }
  0xff   :  { %v496_v0 = vpop.f32.mrb[8].mxu0  ;;  %522 = vmatprep.mubr.bf16.mxu1 %v214_v62 }
 0x100   :  { %v181_v2 = vpop.f32.mrb[9].mxu0  ;;  %523 = vmatmul.mubr.bf16.vlgmr.msra.gmra.mrb[0].mxu1 %v215_v61  ;;  %v190_v6 = vadd.f32 %v496_v0, %v71_v63 }
 0x101   :  { %v497_v5 = vpop.f32.mrb[10].mxu0  ;;  %v182_v9 = vadd.f32 %v181_v2, %v69_v3 }
 0x102   :  { %v193_v7 = vadd.f32 %v497_v5, %v72_v1  ;;  %v184_v8 = vpop.f32.mrb[11].mxu0 }
 0x103   :  { %v185_v10 = vadd.f32 %v184_v8, %v70_v4 }
 0x104   :  { %v217_v11 = vpack.c.bf16 %v193_v7, %v190_v6 }
 0x105   :  { %v216_v12 = vpack.c.bf16 %v185_v10, %v182_v9 }
 0x107   :  { %v500_v14 = vpop.f32.mrb[12].mxu0  ;;  %526 = vmatprep.mubr.bf16.mxu1 %v216_v12 }
 0x108   :  { %v197_v16 = vpop.f32.mrb[13].mxu0  ;;  %527 = vmatmul.mubr.bf16.gmra.mrb[4].mxu1 %v217_v11  ;;  %v206_v20 = vadd.f32 %v500_v14, %v75_v13 }
 0x109   :  { %v501_v19 = vpop.f32.mrb[14].mxu0  ;;  %v198_v23 = vadd.f32 %v197_v16, %v73_v17 }
 0x10a   :  { %v209_v21 = vadd.f32 %v501_v19, %v76_v15  ;;  %v200_v22 = vpop.f32.mrb[15].mxu0 }
 0x10b   :  { %v201_v24 = vadd.f32 %v200_v22, %v74_v18 }
 0x10c   :  { %v219_v25 = vpack.c.bf16 %v209_v21, %v206_v20 }
 0x10d   :  { %v218_v26 = vpack.c.bf16 %v201_v24, %v198_v23 }
 0x10f   :  { %530 = vmatprep.mubr.bf16.mxu1 %v218_v26 }
 0x110   :  { %531 = vmatmul.mubr.bf16.gmra.mrb[8].mxu1 %v219_v25 }
 0x1cb   :  { %v520_v28 = vpop.f32.mrb[16].mxu0 }
 0x1cc   :  { %v334_v29 = vadd.f32 %v520_v28, %v447_v27  ;;  %v325_v30 = vpop.f32.mrb[17].mxu0 }
 0x1cd   :  { %v326_v31 = vadd.f32 %v447_v27, %v325_v30  ;;  %v521_v32 = vpop.f32.mrb[18].mxu0 }
 0x1ce   :  { %v390_v33 = vmax.f32 %v334_v29, 0.0  ;;  %v337_v34 = vadd.f32 %v521_v32, %v447_v27  ;;  %v328_v35 = vpop.f32.mrb[19].mxu0 }
 0x1cf   :  { %v388_v36 = vmax.f32 %v326_v31, 0.0  ;;  %v329_v37 = vadd.f32 %v447_v27, %v328_v35 }
 0x1d0   :  { %406 = vst [vmem:[#allocation5 + $0x10] sm:$0xff] %v390_v33  ;;  %v391_v38 = vmax.f32 %v337_v34, 0.0 }
 0x1d1   :  { %404 = vst [vmem:[#allocation5] sm:$0xff] %v388_v36  ;;  %v389_v39 = vmax.f32 %v329_v37, 0.0 }
 0x1d2   :  { %407 = vst [vmem:[#allocation5 + $0x18] sm:$0xff] %v391_v38 }
 0x1d3   :  { %405 = vst [vmem:[#allocation5 + $0x8] sm:$0xff] %v389_v39  ;;  %v524_v40 = vpop.f32.mrb[0].mxu1 }
 0x1d4   :  { %v350_v41 = vadd.f32 %v524_v40, %v447_v27  ;;  %v341_v42 = vpop.f32.mrb[1].mxu1 }
 0x1d5   :  { %v342_v43 = vadd.f32 %v447_v27, %v341_v42  ;;  %v525_v44 = vpop.f32.mrb[2].mxu1 }
 0x1d6   :  { %v394_v45 = vmax.f32 %v350_v41, 0.0  ;;  %v353_v46 = vadd.f32 %v525_v44, %v447_v27  ;;  %v344_v47 = vpop.f32.mrb[3].mxu1 }
 0x1d7   :  { %v392_v48 = vmax.f32 %v342_v43, 0.0  ;;  %v345_v49 = vadd.f32 %v447_v27, %v344_v47 }
 0x1d8   :  { %410 = vst [vmem:[#allocation5 + $0x30] sm:$0xff] %v394_v45  ;;  %v395_v50 = vmax.f32 %v353_v46, 0.0 }
 0x1d9   :  { %408 = vst [vmem:[#allocation5 + $0x20] sm:$0xff] %v392_v48  ;;  %v393_v51 = vmax.f32 %v345_v49, 0.0 }
 0x1da   :  { %411 = vst [vmem:[#allocation5 + $0x38] sm:$0xff] %v395_v50 }
 0x1db   :  { %409 = vst [vmem:[#allocation5 + $0x28] sm:$0xff] %v393_v51  ;;  %v528_v52 = vpop.f32.mrb[4].mxu1 }
 0x1dc   :  { %v366_v53 = vadd.f32 %v528_v52, %v447_v27  ;;  %v357_v54 = vpop.f32.mrb[5].mxu1 }
 0x1dd   :  { %v358_v55 = vadd.f32 %v447_v27, %v357_v54  ;;  %v529_v56 = vpop.f32.mrb[6].mxu1 }
 0x1de   :  { %v398_v57 = vmax.f32 %v366_v53, 0.0  ;;  %v369_v58 = vadd.f32 %v529_v56, %v447_v27  ;;  %v360_v59 = vpop.f32.mrb[7].mxu1 }
 0x1df   :  { %v396_v60 = vmax.f32 %v358_v55, 0.0  ;;  %v361_v61 = vadd.f32 %v447_v27, %v360_v59 }
 0x1e0   :  { %414 = vst [vmem:[#allocation5 + $0x50] sm:$0xff] %v398_v57  ;;  %v399_v62 = vmax.f32 %v369_v58, 0.0 }
 0x1e1   :  { %412 = vst [vmem:[#allocation5 + $0x40] sm:$0xff] %v396_v60  ;;  %v397_v63 = vmax.f32 %v361_v61, 0.0 }
 0x1e2   :  { %415 = vst [vmem:[#allocation5 + $0x58] sm:$0xff] %v399_v62 }
 0x1e3   :  { %413 = vst [vmem:[#allocation5 + $0x48] sm:$0xff] %v397_v63  ;;  %v532_v0 = vpop.f32.mrb[8].mxu1 }
 0x1e4   :  { %v382_v1 = vadd.f32 %v532_v0, %v447_v27  ;;  %v373_v2 = vpop.f32.mrb[9].mxu1 }
 0x1e5   :  { %v374_v3 = vadd.f32 %v447_v27, %v373_v2  ;;  %v533_v4 = vpop.f32.mrb[10].mxu1 }
 0x1e6   :  { %v402_v5 = vmax.f32 %v382_v1, 0.0  ;;  %v385_v6 = vadd.f32 %v533_v4, %v447_v27  ;;  %v376_v7 = vpop.f32.mrb[11].mxu1 }
 0x1e7   :  { %v400_v8 = vmax.f32 %v374_v3, 0.0  ;;  %v377_v9 = vadd.f32 %v447_v27, %v376_v7 }
 0x1e8   :  { %418 = vst [vmem:[#allocation5 + $0x70] sm:$0xff] %v402_v5  ;;  %v403_v10 = vmax.f32 %v385_v6, 0.0 }
 0x1e9   :  { %416 = vst [vmem:[#allocation5 + $0x60] sm:$0xff] %v400_v8  ;;  %v401_v11 = vmax.f32 %v377_v9, 0.0 }
 0x1ea   :  { %419 = vst [vmem:[#allocation5 + $0x78] sm:$0xff] %v403_v10 }
 0x1eb   :  { %417 = vst [vmem:[#allocation5 + $0x68] sm:$0xff] %v401_v11 }
 0x1ec   :  { %598 = shalt.err (!%p595_p12)
}
 0x1ed   :  { %s599_s3 = scalar_lea.hbm %s810_s5, 2048 }
 0x1ee   :  { %p600_p13 = scmp.ne.s32.totalorder %s810_s5, %s599_s3  ;;  %p603_p0 = scmp.lt.u32.totalorder %s599_s3, %s810_s5 }
 0x1f0   :  { %p605_p1 = pnand %p603_p0, %p600_p13 }
 0x1f2   :  { %608 = shalt.err (!%p605_p1)
}
 0x1f3   :  { %s615_s4 = smov 128   ;;  %s616_s14 = smov 8  }
 0x1f4   :  { %431 = dma.vmem_to_hbm [thread:$0]  %s426_s6, 2048, %s810_s5, [#allocation4], %s615_s4, %s615_s4, %s616_s14  }
 0x1f5   :  { %611 = dma.done.wait [#allocation4], 2048  }
 0x1f6   :  { %612 = vsyncadd [#allocation4], 4294965248 }
 0x1f7   :  { %435 = vsyncpa [#allocation3], 1 }
 0x1f8   :  { %436 = vsyncpa [#allocation4], 1 }

</bundles_post_ra>
